<compile_context>
chip_gen: v6e
topology: v6e:2x2x1
jax: 0.10.0
libtpu: 0.0.40
codegen_flags: <defaults>
</compile_context>

<pallas_src>
import jax
import jax.numpy as jnp
from jax.experimental import pallas as pl
from jax.experimental.pallas import tpu as pltpu

# ----------------------------- small config ---------------------------------
SEQ_LEN = 64
PATCH_SIZE = 8
NUM_LEADS = 4
WIDTH = 64
DEPTH = 2
MLP_DIM = 128
HEADS = 4
DIM_HEAD = 16
INNER = HEADS * DIM_HEAD             # 64
NUM_PATCHES = SEQ_LEN // PATCH_SIZE  # 8
EPS = 1e-5
SCALE = DIM_HEAD ** -0.5


# --------------------------- in-kernel helpers -------------------------------
def _layer_norm(x, w, b):
    mu = jnp.mean(x, axis=-1, keepdims=True)
    var = jnp.mean((x - mu) ** 2, axis=-1, keepdims=True)
    return (x - mu) * jax.lax.rsqrt(var + EPS) * w + b


def _gelu(x):
    # TODO(synk): tanh-form GELU (EUP tanh) instead of nn.GELU()'s exact erf form;
    # max abs error ~3e-4, acceptable for inference.
    c = 0.7978845608028654  # sqrt(2/pi)
    return 0.5 * x * (1.0 + jnp.tanh(c * (x + 0.044715 * x * x * x)))


# ------------------------------ fused kernel ---------------------------------
def make_fused_kernel(batch, num_leads, num_patches):
    B, C, N = batch, num_leads, num_patches
    CN = C * N                 # patch tokens per batch row
    S = C * (N + 2)            # total tokens per batch row (patches first, SEPs last)

    def kernel(patches_ref, emb_add_ref,
               lnp_w, lnp_b, proj_w, proj_b, lnw_w, lnw_b,
               ln1w, ln1b, wqkv, bqkv, wo, bo,
               ln2w, ln2b, w1, b1, w2, b2,
               lnf_w, lnf_b, o_ref):
        # ---- patch embedding: LN(patch) -> Linear(patch->width) -> LN(width) ----
        p = patches_ref[...]                                           # (B*C*N, P)
        hp = _layer_norm(p, lnp_w[...], lnp_b[...])
        hp = jnp.dot(hp, proj_w[...], preferred_element_type=jnp.float32) + proj_b[...]
        h = _layer_norm(hp, lnw_w[...], lnw_b[...])                    # (B*C*N, W)

        # ---- token assembly (permuted layout: patch tokens, then SEP tokens) ----
        emb = emb_add_ref[...]                                         # (S, W)
        patch_add = emb[0:CN, :]                                       # pos+lead additive
        sep_tok = emb[CN:S, :]                                         # full SEP token values
        pieces = []
        for b_ in range(B):
            pieces.append(h[b_ * CN:(b_ + 1) * CN, :] + patch_add)     # (CN, W)
            pieces.append(sep_tok)                                     # (2C, W)
        x = jnp.concatenate(pieces, axis=0)                            # (B*S, W)

        # ---- transformer blocks (weights VMEM-resident, batch folded into rows) ----
        for d in range(DEPTH):
            # PreNorm + multi-head self-attention + residual
            h1 = _layer_norm(x, ln1w[d], ln1b[d])
            qkv = jnp.dot(h1, wqkv[d], preferred_element_type=jnp.float32) + bqkv[d]
            head_outs = []
            for hh in range(HEADS):
                q = qkv[:, hh * DIM_HEAD:(hh + 1) * DIM_HEAD].reshape(B, S, DIM_HEAD)
                k = qkv[:, INNER + hh * DIM_HEAD:INNER + (hh + 1) * DIM_HEAD].reshape(B, S, DIM_HEAD)
                v = qkv[:, 2 * INNER + hh * DIM_HEAD:2 * INNER + (hh + 1) * DIM_HEAD].reshape(B, S, DIM_HEAD)
                dots = jnp.einsum('bnd,bmd->bnm', q, k,
                                  preferred_element_type=jnp.float32) * SCALE   # (B, S, S)
                dots = dots - jnp.max(dots, axis=-1, keepdims=True)
                e = jnp.exp(dots)
                attn = e * pl.reciprocal(jnp.sum(e, axis=-1, keepdims=True), approx=True)
                ho = jnp.einsum('bnm,bmd->bnd', attn, v,
                                preferred_element_type=jnp.float32)              # (B, S, dh)
                head_outs.append(ho.reshape(B * S, DIM_HEAD))
            heads_cat = jnp.concatenate(head_outs, axis=-1)                      # (B*S, INNER)
            att = jnp.dot(heads_cat, wo[d], preferred_element_type=jnp.float32) + bo[d]
            x = x + att

            # PreNorm + GELU MLP + residual
            h2 = _layer_norm(x, ln2w[d], ln2b[d])
            f = jnp.dot(h2, w1[d], preferred_element_type=jnp.float32) + b1[d]
            f = _gelu(f)
            f = jnp.dot(f, w2[d], preferred_element_type=jnp.float32) + b2[d]
            x = x + f

        # ---- pool patch tokens (mean over leads x patches) + final LayerNorm ----
        lw = lnf_w[...]
        lb = lnf_b[...]
        for b_ in range(B):
            xb = x[b_ * S:b_ * S + CN, :]                              # (CN, W) patch tokens only
            m = jnp.mean(xb, axis=0, keepdims=True)                    # (1, W)
            o_ref[pl.ds(b_, 1), :] = _layer_norm(m, lw, lb)

    return kernel


# ------------------------------ parameters -----------------------------------
def init_params(key):
    keys = list(jax.random.split(key, 16))
    it = iter(keys)

    def dense(in_d, out_d):
        w = jax.random.normal(next(it), (in_d, out_d), jnp.float32) * 0.02
        b = jnp.zeros((1, out_d), jnp.float32)
        return w, b

    p = {}
    # patch embedding: LayerNorm(patch) -> Linear(patch, width) -> LayerNorm(width)
    p['lnp_w'] = jnp.ones((1, PATCH_SIZE), jnp.float32)
    p['lnp_b'] = jnp.zeros((1, PATCH_SIZE), jnp.float32)
    p['proj_w'], p['proj_b'] = dense(PATCH_SIZE, WIDTH)
    p['lnw_w'] = jnp.ones((1, WIDTH), jnp.float32)
    p['lnw_b'] = jnp.zeros((1, WIDTH), jnp.float32)
    # embeddings
    p['pos_emb'] = jax.random.normal(next(it), (1, NUM_PATCHES + 2, WIDTH), jnp.float32)
    p['sep_emb'] = jax.random.normal(next(it), (WIDTH,), jnp.float32)
    p['lead_emb'] = jax.random.normal(next(it), (NUM_LEADS, WIDTH), jnp.float32)
    # transformer blocks, stacked over DEPTH on the leading axis
    ln1_w, ln1_b, wqkv, bqkv, wo, bo = [], [], [], [], [], []
    ln2_w, ln2_b, w1, b1, w2, b2 = [], [], [], [], [], []
    for _ in range(DEPTH):
        ln1_w.append(jnp.ones((1, WIDTH), jnp.float32))
        ln1_b.append(jnp.zeros((1, WIDTH), jnp.float32))
        w, bb = dense(WIDTH, 3 * INNER); wqkv.append(w); bqkv.append(bb)
        w, bb = dense(INNER, WIDTH); wo.append(w); bo.append(bb)
        ln2_w.append(jnp.ones((1, WIDTH), jnp.float32))
        ln2_b.append(jnp.zeros((1, WIDTH), jnp.float32))
        w, bb = dense(WIDTH, MLP_DIM); w1.append(w); b1.append(bb)
        w, bb = dense(MLP_DIM, WIDTH); w2.append(w); b2.append(bb)
    stack = lambda xs: jnp.stack(xs, axis=0)
    p['ln1_w'], p['ln1_b'] = stack(ln1_w), stack(ln1_b)
    p['wqkv'], p['bqkv'] = stack(wqkv), stack(bqkv)
    p['wo'], p['bo'] = stack(wo), stack(bo)
    p['ln2_w'], p['ln2_b'] = stack(ln2_w), stack(ln2_b)
    p['w1'], p['b1'] = stack(w1), stack(b1)
    p['w2'], p['b2'] = stack(w2), stack(b2)
    # final norm
    p['lnf_w'] = jnp.ones((1, WIDTH), jnp.float32)
    p['lnf_b'] = jnp.zeros((1, WIDTH), jnp.float32)
    return p


# ------------------------------ forward pass ----------------------------------
def st_mem_vit_forward(series, params):
    b, c, L = series.shape
    n = L // PATCH_SIZE
    cn = c * n
    s = c * (n + 2)

    # (b, c, L) -> (b*c*n, P) patches, row order (batch, lead, patch)
    patches = series.reshape(b * c * n, PATCH_SIZE)

    # Batch-independent additive-embedding table for the permuted token layout:
    #   rows [0, c*n)        : pos[1+i] + lead[c_]          (added to patch tokens in-kernel)
    #   rows [c*n, c*(n+2))  : sep + pos[{0, n+1}] + lead[c_] (full SEP token values)
    pos = params['pos_emb'][0]                               # (n+2, W)
    lead = params['lead_emb']                                # (c, W)
    sep = params['sep_emb']                                  # (W,)
    patch_add = (lead[:, None, :] + pos[None, 1:n + 1, :]).reshape(cn, WIDTH)
    sep_pos = jnp.stack([pos[0], pos[n + 1]], axis=0)        # (2, W)
    sep_add = (lead[:, None, :] + sep[None, None, :] + sep_pos[None, :, :]).reshape(2 * c, WIDTH)
    emb_add = jnp.concatenate([patch_add, sep_add], axis=0)  # (s, W)

    kernel = make_fused_kernel(b, c, n)
    vmem = pl.BlockSpec(memory_space=pltpu.MemorySpace.VMEM)
    out = pl.pallas_call(
        kernel,
        out_shape=jax.ShapeDtypeStruct((b, WIDTH), jnp.float32),
        in_specs=[vmem] * 22,
        out_specs=vmem,
    )(patches, emb_add,
      params['lnp_w'], params['lnp_b'], params['proj_w'], params['proj_b'],
      params['lnw_w'], params['lnw_b'],
      params['ln1_w'], params['ln1_b'], params['wqkv'], params['bqkv'],
      params['wo'], params['bo'], params['ln2_w'], params['ln2_b'],
      params['w1'], params['b1'], params['w2'], params['b2'],
      params['lnf_w'], params['lnf_b'])
    # head = Identity (num_classes=None)
    return out


# ---------------------------------- main --------------------------------------
if __name__ == "__main__":
    key = jax.random.PRNGKey(0)
    k_param, k_data = jax.random.split(key)
    params = init_params(k_param)
    series = jax.random.normal(k_data, (2, NUM_LEADS, SEQ_LEN), jnp.float32)

    fwd = jax.jit(st_mem_vit_forward)
    out = jax.block_until_ready(fwd(series, params))
    assert out.shape == (2, WIDTH)
    assert bool(jnp.all(jnp.isfinite(out)))
    print("KERNEL_OK")
</pallas_src>

<mosaic_0001>
module attributes {stable_mosaic.version = 11 : i64} {
  func.func @kernel(%arg0: memref<64x8xf32, #tpu.memory_space<vmem>>, %arg1: memref<40x64xf32, #tpu.memory_space<vmem>>, %arg2: memref<1x8xf32, #tpu.memory_space<vmem>>, %arg3: memref<1x8xf32, #tpu.memory_space<vmem>>, %arg4: memref<8x64xf32, #tpu.memory_space<vmem>>, %arg5: memref<1x64xf32, #tpu.memory_space<vmem>>, %arg6: memref<1x64xf32, #tpu.memory_space<vmem>>, %arg7: memref<1x64xf32, #tpu.memory_space<vmem>>, %arg8: memref<2x1x64xf32, #tpu.memory_space<vmem>>, %arg9: memref<2x1x64xf32, #tpu.memory_space<vmem>>, %arg10: memref<2x64x192xf32, #tpu.memory_space<vmem>>, %arg11: memref<2x1x192xf32, #tpu.memory_space<vmem>>, %arg12: memref<2x64x64xf32, #tpu.memory_space<vmem>>, %arg13: memref<2x1x64xf32, #tpu.memory_space<vmem>>, %arg14: memref<2x1x64xf32, #tpu.memory_space<vmem>>, %arg15: memref<2x1x64xf32, #tpu.memory_space<vmem>>, %arg16: memref<2x64x128xf32, #tpu.memory_space<vmem>>, %arg17: memref<2x1x128xf32, #tpu.memory_space<vmem>>, %arg18: memref<2x128x64xf32, #tpu.memory_space<vmem>>, %arg19: memref<2x1x64xf32, #tpu.memory_space<vmem>>, %arg20: memref<1x64xf32, #tpu.memory_space<vmem>>, %arg21: memref<1x64xf32, #tpu.memory_space<vmem>>, %arg22: memref<2x64xf32, #tpu.memory_space<vmem>>) attributes {dimension_semantics = [], scalar_prefetch = 0 : i64, scratch_operands = 0 : i64, tpu.core_type = #tpu.core_type<tc>} {
    %c0 = arith.constant 0 : index
    %c0_0 = arith.constant 0 : index
    %0 = vector.load %arg0[%c0, %c0_0] : memref<64x8xf32, #tpu.memory_space<vmem>>, vector<64x8xf32>
    %c0_1 = arith.constant 0 : index
    %c0_2 = arith.constant 0 : index
    %1 = vector.load %arg2[%c0_1, %c0_2] : memref<1x8xf32, #tpu.memory_space<vmem>>, vector<1x8xf32>
    %c0_3 = arith.constant 0 : index
    %c0_4 = arith.constant 0 : index
    %2 = vector.load %arg3[%c0_3, %c0_4] : memref<1x8xf32, #tpu.memory_space<vmem>>, vector<1x8xf32>
    %cst = arith.constant dense<0.000000e+00> : vector<64xf32>
    %3 = vector.multi_reduction <add>, %0, %cst [1] : vector<64x8xf32> to vector<64xf32>
    %4 = vector.shape_cast %3 : vector<64xf32> to vector<64x1xf32>
    %cst_5 = arith.constant 8.000000e+00 : f32
    %5 = vector.broadcast %cst_5 : f32 to vector<64x1xf32>
    %6 = arith.divf %4, %5 : vector<64x1xf32>
    %7 = vector.broadcast %6 : vector<64x1xf32> to vector<64x8xf32>
    %8 = arith.subf %0, %7 : vector<64x8xf32>
    %9 = arith.mulf %8, %8 : vector<64x8xf32>
    %cst_6 = arith.constant dense<0.000000e+00> : vector<64xf32>
    %10 = vector.multi_reduction <add>, %9, %cst_6 [1] : vector<64x8xf32> to vector<64xf32>
    %11 = vector.shape_cast %10 : vector<64xf32> to vector<64x1xf32>
    %cst_7 = arith.constant 8.000000e+00 : f32
    %12 = vector.broadcast %cst_7 : f32 to vector<64x1xf32>
    %13 = arith.divf %11, %12 : vector<64x1xf32>
    %14 = vector.broadcast %6 : vector<64x1xf32> to vector<64x8xf32>
    %15 = arith.subf %0, %14 : vector<64x8xf32>
    %cst_8 = arith.constant 9.99999974E-6 : f32
    %16 = vector.broadcast %cst_8 : f32 to vector<64x1xf32>
    %17 = arith.addf %13, %16 : vector<64x1xf32>
    %18 = math.rsqrt %17 : vector<64x1xf32>
    %19 = vector.broadcast %18 : vector<64x1xf32> to vector<64x8xf32>
    %20 = arith.mulf %15, %19 : vector<64x8xf32>
    %21 = vector.broadcast %1 : vector<1x8xf32> to vector<64x8xf32>
    %22 = arith.mulf %20, %21 : vector<64x8xf32>
    %23 = vector.broadcast %2 : vector<1x8xf32> to vector<64x8xf32>
    %24 = arith.addf %22, %23 : vector<64x8xf32>
    %c0_9 = arith.constant 0 : index
    %c0_10 = arith.constant 0 : index
    %25 = vector.load %arg4[%c0_9, %c0_10] : memref<8x64xf32, #tpu.memory_space<vmem>>, vector<8x64xf32>
    %cst_11 = arith.constant dense<0.000000e+00> : vector<64x64xf32>
    %26 = tpu.matmul %24, %25, %cst_11 {dimension_numbers = #tpu.dot_dimension_numbers<[1], [0], [0], [1], [0, 0, 1, 1], [], []>} : vector<64x8xf32>, vector<8x64xf32>, vector<64x64xf32> -> vector<64x64xf32>
    %c0_12 = arith.constant 0 : index
    %c0_13 = arith.constant 0 : index
    %27 = vector.load %arg5[%c0_12, %c0_13] : memref<1x64xf32, #tpu.memory_space<vmem>>, vector<1x64xf32>
    %28 = vector.broadcast %27 : vector<1x64xf32> to vector<64x64xf32>
    %29 = arith.addf %26, %28 : vector<64x64xf32>
    %c0_14 = arith.constant 0 : index
    %c0_15 = arith.constant 0 : index
    %30 = vector.load %arg6[%c0_14, %c0_15] : memref<1x64xf32, #tpu.memory_space<vmem>>, vector<1x64xf32>
    %c0_16 = arith.constant 0 : index
    %c0_17 = arith.constant 0 : index
    %31 = vector.load %arg7[%c0_16, %c0_17] : memref<1x64xf32, #tpu.memory_space<vmem>>, vector<1x64xf32>
    %cst_18 = arith.constant dense<0.000000e+00> : vector<64xf32>
    %32 = vector.multi_reduction <add>, %29, %cst_18 [1] : vector<64x64xf32> to vector<64xf32>
    %33 = vector.shape_cast %32 : vector<64xf32> to vector<64x1xf32>
    %cst_19 = arith.constant 6.400000e+01 : f32
    %34 = vector.broadcast %cst_19 : f32 to vector<64x1xf32>
    %35 = arith.divf %33, %34 : vector<64x1xf32>
    %36 = vector.broadcast %35 : vector<64x1xf32> to vector<64x64xf32>
    %37 = arith.subf %29, %36 : vector<64x64xf32>
    %38 = arith.mulf %37, %37 : vector<64x64xf32>
    %cst_20 = arith.constant dense<0.000000e+00> : vector<64xf32>
    %39 = vector.multi_reduction <add>, %38, %cst_20 [1] : vector<64x64xf32> to vector<64xf32>
    %40 = vector.shape_cast %39 : vector<64xf32> to vector<64x1xf32>
    %cst_21 = arith.constant 6.400000e+01 : f32
    %41 = vector.broadcast %cst_21 : f32 to vector<64x1xf32>
    %42 = arith.divf %40, %41 : vector<64x1xf32>
    %43 = vector.broadcast %35 : vector<64x1xf32> to vector<64x64xf32>
    %44 = arith.subf %29, %43 : vector<64x64xf32>
    %cst_22 = arith.constant 9.99999974E-6 : f32
    %45 = vector.broadcast %cst_22 : f32 to vector<64x1xf32>
    %46 = arith.addf %42, %45 : vector<64x1xf32>
    %47 = math.rsqrt %46 : vector<64x1xf32>
    %48 = vector.broadcast %47 : vector<64x1xf32> to vector<64x64xf32>
    %49 = arith.mulf %44, %48 : vector<64x64xf32>
    %50 = vector.broadcast %30 : vector<1x64xf32> to vector<64x64xf32>
    %51 = arith.mulf %49, %50 : vector<64x64xf32>
    %52 = vector.broadcast %31 : vector<1x64xf32> to vector<64x64xf32>
    %53 = arith.addf %51, %52 : vector<64x64xf32>
    %c0_23 = arith.constant 0 : index
    %c0_24 = arith.constant 0 : index
    %54 = vector.load %arg1[%c0_23, %c0_24] : memref<40x64xf32, #tpu.memory_space<vmem>>, vector<40x64xf32>
    %55 = vector.extract_strided_slice %54 {offsets = [0, 0], sizes = [32, 64], strides = [1, 1]} : vector<40x64xf32> to vector<32x64xf32>
    %56 = vector.extract_strided_slice %54 {offsets = [32, 0], sizes = [8, 64], strides = [1, 1]} : vector<40x64xf32> to vector<8x64xf32>
    %57 = vector.extract_strided_slice %53 {offsets = [0, 0], sizes = [32, 64], strides = [1, 1]} : vector<64x64xf32> to vector<32x64xf32>
    %58 = arith.addf %57, %55 : vector<32x64xf32>
    %59 = vector.extract_strided_slice %53 {offsets = [32, 0], sizes = [32, 64], strides = [1, 1]} : vector<64x64xf32> to vector<32x64xf32>
    %60 = arith.addf %59, %55 : vector<32x64xf32>
    %61 = tpu.concatenate %58, %56, %60, %56 in 0 : vector<32x64xf32>, vector<8x64xf32>, vector<32x64xf32>, vector<8x64xf32> -> vector<80x64xf32>
    %c0_25 = arith.constant 0 : index
    %c0_26 = arith.constant 0 : index
    %c0_27 = arith.constant 0 : index
    %62 = vector.load %arg8[%c0_25, %c0_26, %c0_27] : memref<2x1x64xf32, #tpu.memory_space<vmem>>, vector<1x1x64xf32>
    %63 = vector.shape_cast %62 : vector<1x1x64xf32> to vector<1x64xf32>
    %c0_28 = arith.constant 0 : index
    %c0_29 = arith.constant 0 : index
    %c0_30 = arith.constant 0 : index
    %64 = vector.load %arg9[%c0_28, %c0_29, %c0_30] : memref<2x1x64xf32, #tpu.memory_space<vmem>>, vector<1x1x64xf32>
    %65 = vector.shape_cast %64 : vector<1x1x64xf32> to vector<1x64xf32>
    %cst_31 = arith.constant dense<0.000000e+00> : vector<80xf32>
    %66 = vector.multi_reduction <add>, %61, %cst_31 [1] : vector<80x64xf32> to vector<80xf32>
    %67 = vector.shape_cast %66 : vector<80xf32> to vector<80x1xf32>
    %cst_32 = arith.constant 6.400000e+01 : f32
    %68 = vector.broadcast %cst_32 : f32 to vector<80x1xf32>
    %69 = arith.divf %67, %68 : vector<80x1xf32>
    %70 = vector.broadcast %69 : vector<80x1xf32> to vector<80x64xf32>
    %71 = arith.subf %61, %70 : vector<80x64xf32>
    %72 = arith.mulf %71, %71 : vector<80x64xf32>
    %cst_33 = arith.constant dense<0.000000e+00> : vector<80xf32>
    %73 = vector.multi_reduction <add>, %72, %cst_33 [1] : vector<80x64xf32> to vector<80xf32>
    %74 = vector.shape_cast %73 : vector<80xf32> to vector<80x1xf32>
    %cst_34 = arith.constant 6.400000e+01 : f32
    %75 = vector.broadcast %cst_34 : f32 to vector<80x1xf32>
    %76 = arith.divf %74, %75 : vector<80x1xf32>
    %77 = vector.broadcast %69 : vector<80x1xf32> to vector<80x64xf32>
    %78 = arith.subf %61, %77 : vector<80x64xf32>
    %cst_35 = arith.constant 9.99999974E-6 : f32
    %79 = vector.broadcast %cst_35 : f32 to vector<80x1xf32>
    %80 = arith.addf %76, %79 : vector<80x1xf32>
    %81 = math.rsqrt %80 : vector<80x1xf32>
    %82 = vector.broadcast %81 : vector<80x1xf32> to vector<80x64xf32>
    %83 = arith.mulf %78, %82 : vector<80x64xf32>
    %84 = vector.broadcast %63 : vector<1x64xf32> to vector<80x64xf32>
    %85 = arith.mulf %83, %84 : vector<80x64xf32>
    %86 = vector.broadcast %65 : vector<1x64xf32> to vector<80x64xf32>
    %87 = arith.addf %85, %86 : vector<80x64xf32>
    %c0_36 = arith.constant 0 : index
    %c0_37 = arith.constant 0 : index
    %c0_38 = arith.constant 0 : index
    %88 = vector.load %arg10[%c0_36, %c0_37, %c0_38] : memref<2x64x192xf32, #tpu.memory_space<vmem>>, vector<1x64x192xf32>
    %89 = vector.shape_cast %88 : vector<1x64x192xf32> to vector<64x192xf32>
    %cst_39 = arith.constant dense<0.000000e+00> : vector<80x192xf32>
    %90 = tpu.matmul %87, %89, %cst_39 {dimension_numbers = #tpu.dot_dimension_numbers<[1], [0], [0], [1], [0, 0, 1, 1], [], []>} : vector<80x64xf32>, vector<64x192xf32>, vector<80x192xf32> -> vector<80x192xf32>
    %c0_40 = arith.constant 0 : index
    %c0_41 = arith.constant 0 : index
    %c0_42 = arith.constant 0 : index
    %91 = vector.load %arg11[%c0_40, %c0_41, %c0_42] : memref<2x1x192xf32, #tpu.memory_space<vmem>>, vector<1x1x192xf32>
    %92 = vector.shape_cast %91 : vector<1x1x192xf32> to vector<1x192xf32>
    %93 = vector.broadcast %92 : vector<1x192xf32> to vector<80x192xf32>
    %94 = arith.addf %90, %93 : vector<80x192xf32>
    %95 = vector.extract_strided_slice %94 {offsets = [0, 0], sizes = [80, 16], strides = [1, 1]} : vector<80x192xf32> to vector<80x16xf32>
    %96 = vector.shape_cast %95 : vector<80x16xf32> to vector<2x40x16xf32>
    %97 = vector.extract_strided_slice %94 {offsets = [0, 64], sizes = [80, 16], strides = [1, 1]} : vector<80x192xf32> to vector<80x16xf32>
    %98 = vector.shape_cast %97 : vector<80x16xf32> to vector<2x40x16xf32>
    %99 = vector.extract_strided_slice %94 {offsets = [0, 128], sizes = [80, 16], strides = [1, 1]} : vector<80x192xf32> to vector<80x16xf32>
    %100 = vector.shape_cast %99 : vector<80x16xf32> to vector<2x40x16xf32>
    "tpu.trace_start"() <{level = 10 : i32, message = "bnd,bmd->bnm"}> : () -> ()
    %cst_43 = arith.constant dense<0.000000e+00> : vector<2x40x40xf32>
    %101 = tpu.matmul %96, %98, %cst_43 {dimension_numbers = #tpu.dot_dimension_numbers<[2], [2], [1], [1], [0, 0, 0, 1, 1, 1], [0], [0]>} : vector<2x40x16xf32>, vector<2x40x16xf32>, vector<2x40x40xf32> -> vector<2x40x40xf32>
    "tpu.trace_stop"() : () -> ()
    %cst_44 = arith.constant 2.500000e-01 : f32
    %102 = vector.broadcast %cst_44 : f32 to vector<2x40x40xf32>
    %103 = arith.mulf %101, %102 : vector<2x40x40xf32>
    %cst_45 = arith.constant dense<0xFF800000> : vector<2x40xf32>
    %104 = vector.multi_reduction <maximumf>, %103, %cst_45 [2] : vector<2x40x40xf32> to vector<2x40xf32>
    %105 = vector.shape_cast %104 : vector<2x40xf32> to vector<2x40x1xf32>
    %106 = vector.broadcast %105 : vector<2x40x1xf32> to vector<2x40x40xf32>
    %107 = arith.subf %103, %106 : vector<2x40x40xf32>
    %108 = math.exp %107 : vector<2x40x40xf32>
    %cst_46 = arith.constant dense<0.000000e+00> : vector<2x40xf32>
    %109 = vector.multi_reduction <add>, %108, %cst_46 [2] : vector<2x40x40xf32> to vector<2x40xf32>
    %110 = vector.shape_cast %109 : vector<2x40xf32> to vector<2x40x1xf32>
    %111 = tpu.reciprocal %110 {approx = true} : vector<2x40x1xf32> -> vector<2x40x1xf32>
    %112 = vector.broadcast %111 : vector<2x40x1xf32> to vector<2x40x40xf32>
    %113 = arith.mulf %108, %112 : vector<2x40x40xf32>
    "tpu.trace_start"() <{level = 10 : i32, message = "bnm,bmd->bnd"}> : () -> ()
    %cst_47 = arith.constant dense<0.000000e+00> : vector<2x40x16xf32>
    %114 = tpu.matmul %113, %100, %cst_47 {dimension_numbers = #tpu.dot_dimension_numbers<[2], [1], [1], [2], [0, 0, 0, 1, 1, 2], [0], [0]>} : vector<2x40x40xf32>, vector<2x40x16xf32>, vector<2x40x16xf32> -> vector<2x40x16xf32>
    "tpu.trace_stop"() : () -> ()
    %115 = vector.shape_cast %114 : vector<2x40x16xf32> to vector<80x16xf32>
    %116 = vector.extract_strided_slice %94 {offsets = [0, 16], sizes = [80, 16], strides = [1, 1]} : vector<80x192xf32> to vector<80x16xf32>
    %117 = vector.shape_cast %116 : vector<80x16xf32> to vector<2x40x16xf32>
    %118 = vector.extract_strided_slice %94 {offsets = [0, 80], sizes = [80, 16], strides = [1, 1]} : vector<80x192xf32> to vector<80x16xf32>
    %119 = vector.shape_cast %118 : vector<80x16xf32> to vector<2x40x16xf32>
    %120 = vector.extract_strided_slice %94 {offsets = [0, 144], sizes = [80, 16], strides = [1, 1]} : vector<80x192xf32> to vector<80x16xf32>
    %121 = vector.shape_cast %120 : vector<80x16xf32> to vector<2x40x16xf32>
    "tpu.trace_start"() <{level = 10 : i32, message = "bnd,bmd->bnm"}> : () -> ()
    %cst_48 = arith.constant dense<0.000000e+00> : vector<2x40x40xf32>
    %122 = tpu.matmul %117, %119, %cst_48 {dimension_numbers = #tpu.dot_dimension_numbers<[2], [2], [1], [1], [0, 0, 0, 1, 1, 1], [0], [0]>} : vector<2x40x16xf32>, vector<2x40x16xf32>, vector<2x40x40xf32> -> vector<2x40x40xf32>
    "tpu.trace_stop"() : () -> ()
    %cst_49 = arith.constant 2.500000e-01 : f32
    %123 = vector.broadcast %cst_49 : f32 to vector<2x40x40xf32>
    %124 = arith.mulf %122, %123 : vector<2x40x40xf32>
    %cst_50 = arith.constant dense<0xFF800000> : vector<2x40xf32>
    %125 = vector.multi_reduction <maximumf>, %124, %cst_50 [2] : vector<2x40x40xf32> to vector<2x40xf32>
    %126 = vector.shape_cast %125 : vector<2x40xf32> to vector<2x40x1xf32>
    %127 = vector.broadcast %126 : vector<2x40x1xf32> to vector<2x40x40xf32>
    %128 = arith.subf %124, %127 : vector<2x40x40xf32>
    %129 = math.exp %128 : vector<2x40x40xf32>
    %cst_51 = arith.constant dense<0.000000e+00> : vector<2x40xf32>
    %130 = vector.multi_reduction <add>, %129, %cst_51 [2] : vector<2x40x40xf32> to vector<2x40xf32>
    %131 = vector.shape_cast %130 : vector<2x40xf32> to vector<2x40x1xf32>
    %132 = tpu.reciprocal %131 {approx = true} : vector<2x40x1xf32> -> vector<2x40x1xf32>
    %133 = vector.broadcast %132 : vector<2x40x1xf32> to vector<2x40x40xf32>
    %134 = arith.mulf %129, %133 : vector<2x40x40xf32>
    "tpu.trace_start"() <{level = 10 : i32, message = "bnm,bmd->bnd"}> : () -> ()
    %cst_52 = arith.constant dense<0.000000e+00> : vector<2x40x16xf32>
    %135 = tpu.matmul %134, %121, %cst_52 {dimension_numbers = #tpu.dot_dimension_numbers<[2], [1], [1], [2], [0, 0, 0, 1, 1, 2], [0], [0]>} : vector<2x40x40xf32>, vector<2x40x16xf32>, vector<2x40x16xf32> -> vector<2x40x16xf32>
    "tpu.trace_stop"() : () -> ()
    %136 = vector.shape_cast %135 : vector<2x40x16xf32> to vector<80x16xf32>
    %137 = vector.extract_strided_slice %94 {offsets = [0, 32], sizes = [80, 16], strides = [1, 1]} : vector<80x192xf32> to vector<80x16xf32>
    %138 = vector.shape_cast %137 : vector<80x16xf32> to vector<2x40x16xf32>
    %139 = vector.extract_strided_slice %94 {offsets = [0, 96], sizes = [80, 16], strides = [1, 1]} : vector<80x192xf32> to vector<80x16xf32>
    %140 = vector.shape_cast %139 : vector<80x16xf32> to vector<2x40x16xf32>
    %141 = vector.extract_strided_slice %94 {offsets = [0, 160], sizes = [80, 16], strides = [1, 1]} : vector<80x192xf32> to vector<80x16xf32>
    %142 = vector.shape_cast %141 : vector<80x16xf32> to vector<2x40x16xf32>
    "tpu.trace_start"() <{level = 10 : i32, message = "bnd,bmd->bnm"}> : () -> ()
    %cst_53 = arith.constant dense<0.000000e+00> : vector<2x40x40xf32>
    %143 = tpu.matmul %138, %140, %cst_53 {dimension_numbers = #tpu.dot_dimension_numbers<[2], [2], [1], [1], [0, 0, 0, 1, 1, 1], [0], [0]>} : vector<2x40x16xf32>, vector<2x40x16xf32>, vector<2x40x40xf32> -> vector<2x40x40xf32>
    "tpu.trace_stop"() : () -> ()
    %cst_54 = arith.constant 2.500000e-01 : f32
    %144 = vector.broadcast %cst_54 : f32 to vector<2x40x40xf32>
    %145 = arith.mulf %143, %144 : vector<2x40x40xf32>
    %cst_55 = arith.constant dense<0xFF800000> : vector<2x40xf32>
    %146 = vector.multi_reduction <maximumf>, %145, %cst_55 [2] : vector<2x40x40xf32> to vector<2x40xf32>
    %147 = vector.shape_cast %146 : vector<2x40xf32> to vector<2x40x1xf32>
    %148 = vector.broadcast %147 : vector<2x40x1xf32> to vector<2x40x40xf32>
    %149 = arith.subf %145, %148 : vector<2x40x40xf32>
    %150 = math.exp %149 : vector<2x40x40xf32>
    %cst_56 = arith.constant dense<0.000000e+00> : vector<2x40xf32>
    %151 = vector.multi_reduction <add>, %150, %cst_56 [2] : vector<2x40x40xf32> to vector<2x40xf32>
    %152 = vector.shape_cast %151 : vector<2x40xf32> to vector<2x40x1xf32>
    %153 = tpu.reciprocal %152 {approx = true} : vector<2x40x1xf32> -> vector<2x40x1xf32>
    %154 = vector.broadcast %153 : vector<2x40x1xf32> to vector<2x40x40xf32>
    %155 = arith.mulf %150, %154 : vector<2x40x40xf32>
    "tpu.trace_start"() <{level = 10 : i32, message = "bnm,bmd->bnd"}> : () -> ()
    %cst_57 = arith.constant dense<0.000000e+00> : vector<2x40x16xf32>
    %156 = tpu.matmul %155, %142, %cst_57 {dimension_numbers = #tpu.dot_dimension_numbers<[2], [1], [1], [2], [0, 0, 0, 1, 1, 2], [0], [0]>} : vector<2x40x40xf32>, vector<2x40x16xf32>, vector<2x40x16xf32> -> vector<2x40x16xf32>
    "tpu.trace_stop"() : () -> ()
    %157 = vector.shape_cast %156 : vector<2x40x16xf32> to vector<80x16xf32>
    %158 = vector.extract_strided_slice %94 {offsets = [0, 48], sizes = [80, 16], strides = [1, 1]} : vector<80x192xf32> to vector<80x16xf32>
    %159 = vector.shape_cast %158 : vector<80x16xf32> to vector<2x40x16xf32>
    %160 = vector.extract_strided_slice %94 {offsets = [0, 112], sizes = [80, 16], strides = [1, 1]} : vector<80x192xf32> to vector<80x16xf32>
    %161 = vector.shape_cast %160 : vector<80x16xf32> to vector<2x40x16xf32>
    %162 = vector.extract_strided_slice %94 {offsets = [0, 176], sizes = [80, 16], strides = [1, 1]} : vector<80x192xf32> to vector<80x16xf32>
    %163 = vector.shape_cast %162 : vector<80x16xf32> to vector<2x40x16xf32>
    "tpu.trace_start"() <{level = 10 : i32, message = "bnd,bmd->bnm"}> : () -> ()
    %cst_58 = arith.constant dense<0.000000e+00> : vector<2x40x40xf32>
    %164 = tpu.matmul %159, %161, %cst_58 {dimension_numbers = #tpu.dot_dimension_numbers<[2], [2], [1], [1], [0, 0, 0, 1, 1, 1], [0], [0]>} : vector<2x40x16xf32>, vector<2x40x16xf32>, vector<2x40x40xf32> -> vector<2x40x40xf32>
    "tpu.trace_stop"() : () -> ()
    %cst_59 = arith.constant 2.500000e-01 : f32
    %165 = vector.broadcast %cst_59 : f32 to vector<2x40x40xf32>
    %166 = arith.mulf %164, %165 : vector<2x40x40xf32>
    %cst_60 = arith.constant dense<0xFF800000> : vector<2x40xf32>
    %167 = vector.multi_reduction <maximumf>, %166, %cst_60 [2] : vector<2x40x40xf32> to vector<2x40xf32>
    %168 = vector.shape_cast %167 : vector<2x40xf32> to vector<2x40x1xf32>
    %169 = vector.broadcast %168 : vector<2x40x1xf32> to vector<2x40x40xf32>
    %170 = arith.subf %166, %169 : vector<2x40x40xf32>
    %171 = math.exp %170 : vector<2x40x40xf32>
    %cst_61 = arith.constant dense<0.000000e+00> : vector<2x40xf32>
    %172 = vector.multi_reduction <add>, %171, %cst_61 [2] : vector<2x40x40xf32> to vector<2x40xf32>
    %173 = vector.shape_cast %172 : vector<2x40xf32> to vector<2x40x1xf32>
    %174 = tpu.reciprocal %173 {approx = true} : vector<2x40x1xf32> -> vector<2x40x1xf32>
    %175 = vector.broadcast %174 : vector<2x40x1xf32> to vector<2x40x40xf32>
    %176 = arith.mulf %171, %175 : vector<2x40x40xf32>
    "tpu.trace_start"() <{level = 10 : i32, message = "bnm,bmd->bnd"}> : () -> ()
    %cst_62 = arith.constant dense<0.000000e+00> : vector<2x40x16xf32>
    %177 = tpu.matmul %176, %163, %cst_62 {dimension_numbers = #tpu.dot_dimension_numbers<[2], [1], [1], [2], [0, 0, 0, 1, 1, 2], [0], [0]>} : vector<2x40x40xf32>, vector<2x40x16xf32>, vector<2x40x16xf32> -> vector<2x40x16xf32>
    "tpu.trace_stop"() : () -> ()
    %178 = vector.shape_cast %177 : vector<2x40x16xf32> to vector<80x16xf32>
    %179 = tpu.concatenate %115, %136, %157, %178 in 1 : vector<80x16xf32>, vector<80x16xf32>, vector<80x16xf32>, vector<80x16xf32> -> vector<80x64xf32>
    %c0_63 = arith.constant 0 : index
    %c0_64 = arith.constant 0 : index
    %c0_65 = arith.constant 0 : index
    %180 = vector.load %arg12[%c0_63, %c0_64, %c0_65] : memref<2x64x64xf32, #tpu.memory_space<vmem>>, vector<1x64x64xf32>
    %181 = vector.shape_cast %180 : vector<1x64x64xf32> to vector<64x64xf32>
    %cst_66 = arith.constant dense<0.000000e+00> : vector<80x64xf32>
    %182 = tpu.matmul %179, %181, %cst_66 {dimension_numbers = #tpu.dot_dimension_numbers<[1], [0], [0], [1], [0, 0, 1, 1], [], []>} : vector<80x64xf32>, vector<64x64xf32>, vector<80x64xf32> -> vector<80x64xf32>
    %c0_67 = arith.constant 0 : index
    %c0_68 = arith.constant 0 : index
    %c0_69 = arith.constant 0 : index
    %183 = vector.load %arg13[%c0_67, %c0_68, %c0_69] : memref<2x1x64xf32, #tpu.memory_space<vmem>>, vector<1x1x64xf32>
    %184 = vector.shape_cast %183 : vector<1x1x64xf32> to vector<1x64xf32>
    %185 = vector.broadcast %184 : vector<1x64xf32> to vector<80x64xf32>
    %186 = arith.addf %182, %185 : vector<80x64xf32>
    %187 = arith.addf %61, %186 : vector<80x64xf32>
    %c0_70 = arith.constant 0 : index
    %c0_71 = arith.constant 0 : index
    %c0_72 = arith.constant 0 : index
    %188 = vector.load %arg14[%c0_70, %c0_71, %c0_72] : memref<2x1x64xf32, #tpu.memory_space<vmem>>, vector<1x1x64xf32>
    %189 = vector.shape_cast %188 : vector<1x1x64xf32> to vector<1x64xf32>
    %c0_73 = arith.constant 0 : index
    %c0_74 = arith.constant 0 : index
    %c0_75 = arith.constant 0 : index
    %190 = vector.load %arg15[%c0_73, %c0_74, %c0_75] : memref<2x1x64xf32, #tpu.memory_space<vmem>>, vector<1x1x64xf32>
    %191 = vector.shape_cast %190 : vector<1x1x64xf32> to vector<1x64xf32>
    %cst_76 = arith.constant dense<0.000000e+00> : vector<80xf32>
    %192 = vector.multi_reduction <add>, %187, %cst_76 [1] : vector<80x64xf32> to vector<80xf32>
    %193 = vector.shape_cast %192 : vector<80xf32> to vector<80x1xf32>
    %cst_77 = arith.constant 6.400000e+01 : f32
    %194 = vector.broadcast %cst_77 : f32 to vector<80x1xf32>
    %195 = arith.divf %193, %194 : vector<80x1xf32>
    %196 = vector.broadcast %195 : vector<80x1xf32> to vector<80x64xf32>
    %197 = arith.subf %187, %196 : vector<80x64xf32>
    %198 = arith.mulf %197, %197 : vector<80x64xf32>
    %cst_78 = arith.constant dense<0.000000e+00> : vector<80xf32>
    %199 = vector.multi_reduction <add>, %198, %cst_78 [1] : vector<80x64xf32> to vector<80xf32>
    %200 = vector.shape_cast %199 : vector<80xf32> to vector<80x1xf32>
    %cst_79 = arith.constant 6.400000e+01 : f32
    %201 = vector.broadcast %cst_79 : f32 to vector<80x1xf32>
    %202 = arith.divf %200, %201 : vector<80x1xf32>
    %203 = vector.broadcast %195 : vector<80x1xf32> to vector<80x64xf32>
    %204 = arith.subf %187, %203 : vector<80x64xf32>
    %cst_80 = arith.constant 9.99999974E-6 : f32
    %205 = vector.broadcast %cst_80 : f32 to vector<80x1xf32>
    %206 = arith.addf %202, %205 : vector<80x1xf32>
    %207 = math.rsqrt %206 : vector<80x1xf32>
    %208 = vector.broadcast %207 : vector<80x1xf32> to vector<80x64xf32>
    %209 = arith.mulf %204, %208 : vector<80x64xf32>
    %210 = vector.broadcast %189 : vector<1x64xf32> to vector<80x64xf32>
    %211 = arith.mulf %209, %210 : vector<80x64xf32>
    %212 = vector.broadcast %191 : vector<1x64xf32> to vector<80x64xf32>
    %213 = arith.addf %211, %212 : vector<80x64xf32>
    %c0_81 = arith.constant 0 : index
    %c0_82 = arith.constant 0 : index
    %c0_83 = arith.constant 0 : index
    %214 = vector.load %arg16[%c0_81, %c0_82, %c0_83] : memref<2x64x128xf32, #tpu.memory_space<vmem>>, vector<1x64x128xf32>
    %215 = vector.shape_cast %214 : vector<1x64x128xf32> to vector<64x128xf32>
    %cst_84 = arith.constant dense<0.000000e+00> : vector<80x128xf32>
    %216 = tpu.matmul %213, %215, %cst_84 {dimension_numbers = #tpu.dot_dimension_numbers<[1], [0], [0], [1], [0, 0, 1, 1], [], []>} : vector<80x64xf32>, vector<64x128xf32>, vector<80x128xf32> -> vector<80x128xf32>
    %c0_85 = arith.constant 0 : index
    %c0_86 = arith.constant 0 : index
    %c0_87 = arith.constant 0 : index
    %217 = vector.load %arg17[%c0_85, %c0_86, %c0_87] : memref<2x1x128xf32, #tpu.memory_space<vmem>>, vector<1x1x128xf32>
    %218 = vector.shape_cast %217 : vector<1x1x128xf32> to vector<1x128xf32>
    %219 = vector.broadcast %218 : vector<1x128xf32> to vector<80x128xf32>
    %220 = arith.addf %216, %219 : vector<80x128xf32>
    %cst_88 = arith.constant 5.000000e-01 : f32
    %221 = vector.broadcast %cst_88 : f32 to vector<80x128xf32>
    %222 = arith.mulf %221, %220 : vector<80x128xf32>
    %cst_89 = arith.constant 4.471500e-02 : f32
    %223 = vector.broadcast %cst_89 : f32 to vector<80x128xf32>
    %224 = arith.mulf %223, %220 : vector<80x128xf32>
    %225 = arith.mulf %224, %220 : vector<80x128xf32>
    %226 = arith.mulf %225, %220 : vector<80x128xf32>
    %227 = arith.addf %220, %226 : vector<80x128xf32>
    %cst_90 = arith.constant 0.797884583 : f32
    %228 = vector.broadcast %cst_90 : f32 to vector<80x128xf32>
    %229 = arith.mulf %228, %227 : vector<80x128xf32>
    %230 = math.tanh %229 : vector<80x128xf32>
    %cst_91 = arith.constant 1.000000e+00 : f32
    %231 = vector.broadcast %cst_91 : f32 to vector<80x128xf32>
    %232 = arith.addf %231, %230 : vector<80x128xf32>
    %233 = arith.mulf %222, %232 : vector<80x128xf32>
    %c0_92 = arith.constant 0 : index
    %c0_93 = arith.constant 0 : index
    %c0_94 = arith.constant 0 : index
    %234 = vector.load %arg18[%c0_92, %c0_93, %c0_94] : memref<2x128x64xf32, #tpu.memory_space<vmem>>, vector<1x128x64xf32>
    %235 = vector.shape_cast %234 : vector<1x128x64xf32> to vector<128x64xf32>
    %cst_95 = arith.constant dense<0.000000e+00> : vector<80x64xf32>
    %236 = tpu.matmul %233, %235, %cst_95 {dimension_numbers = #tpu.dot_dimension_numbers<[1], [0], [0], [1], [0, 0, 1, 1], [], []>} : vector<80x128xf32>, vector<128x64xf32>, vector<80x64xf32> -> vector<80x64xf32>
    %c0_96 = arith.constant 0 : index
    %c0_97 = arith.constant 0 : index
    %c0_98 = arith.constant 0 : index
    %237 = vector.load %arg19[%c0_96, %c0_97, %c0_98] : memref<2x1x64xf32, #tpu.memory_space<vmem>>, vector<1x1x64xf32>
    %238 = vector.shape_cast %237 : vector<1x1x64xf32> to vector<1x64xf32>
    %239 = vector.broadcast %238 : vector<1x64xf32> to vector<80x64xf32>
    %240 = arith.addf %236, %239 : vector<80x64xf32>
    %241 = arith.addf %187, %240 : vector<80x64xf32>
    %c1 = arith.constant 1 : index
    %c0_99 = arith.constant 0 : index
    %c0_100 = arith.constant 0 : index
    %242 = vector.load %arg8[%c1, %c0_99, %c0_100] : memref<2x1x64xf32, #tpu.memory_space<vmem>>, vector<1x1x64xf32>
    %243 = vector.shape_cast %242 : vector<1x1x64xf32> to vector<1x64xf32>
    %c1_101 = arith.constant 1 : index
    %c0_102 = arith.constant 0 : index
    %c0_103 = arith.constant 0 : index
    %244 = vector.load %arg9[%c1_101, %c0_102, %c0_103] : memref<2x1x64xf32, #tpu.memory_space<vmem>>, vector<1x1x64xf32>
    %245 = vector.shape_cast %244 : vector<1x1x64xf32> to vector<1x64xf32>
    %cst_104 = arith.constant dense<0.000000e+00> : vector<80xf32>
    %246 = vector.multi_reduction <add>, %241, %cst_104 [1] : vector<80x64xf32> to vector<80xf32>
    %247 = vector.shape_cast %246 : vector<80xf32> to vector<80x1xf32>
    %cst_105 = arith.constant 6.400000e+01 : f32
    %248 = vector.broadcast %cst_105 : f32 to vector<80x1xf32>
    %249 = arith.divf %247, %248 : vector<80x1xf32>
    %250 = vector.broadcast %249 : vector<80x1xf32> to vector<80x64xf32>
    %251 = arith.subf %241, %250 : vector<80x64xf32>
    %252 = arith.mulf %251, %251 : vector<80x64xf32>
    %cst_106 = arith.constant dense<0.000000e+00> : vector<80xf32>
    %253 = vector.multi_reduction <add>, %252, %cst_106 [1] : vector<80x64xf32> to vector<80xf32>
    %254 = vector.shape_cast %253 : vector<80xf32> to vector<80x1xf32>
    %cst_107 = arith.constant 6.400000e+01 : f32
    %255 = vector.broadcast %cst_107 : f32 to vector<80x1xf32>
    %256 = arith.divf %254, %255 : vector<80x1xf32>
    %257 = vector.broadcast %249 : vector<80x1xf32> to vector<80x64xf32>
    %258 = arith.subf %241, %257 : vector<80x64xf32>
    %cst_108 = arith.constant 9.99999974E-6 : f32
    %259 = vector.broadcast %cst_108 : f32 to vector<80x1xf32>
    %260 = arith.addf %256, %259 : vector<80x1xf32>
    %261 = math.rsqrt %260 : vector<80x1xf32>
    %262 = vector.broadcast %261 : vector<80x1xf32> to vector<80x64xf32>
    %263 = arith.mulf %258, %262 : vector<80x64xf32>
    %264 = vector.broadcast %243 : vector<1x64xf32> to vector<80x64xf32>
    %265 = arith.mulf %263, %264 : vector<80x64xf32>
    %266 = vector.broadcast %245 : vector<1x64xf32> to vector<80x64xf32>
    %267 = arith.addf %265, %266 : vector<80x64xf32>
    %c1_109 = arith.constant 1 : index
    %c0_110 = arith.constant 0 : index
    %c0_111 = arith.constant 0 : index
    %268 = vector.load %arg10[%c1_109, %c0_110, %c0_111] : memref<2x64x192xf32, #tpu.memory_space<vmem>>, vector<1x64x192xf32>
    %269 = vector.shape_cast %268 : vector<1x64x192xf32> to vector<64x192xf32>
    %cst_112 = arith.constant dense<0.000000e+00> : vector<80x192xf32>
    %270 = tpu.matmul %267, %269, %cst_112 {dimension_numbers = #tpu.dot_dimension_numbers<[1], [0], [0], [1], [0, 0, 1, 1], [], []>} : vector<80x64xf32>, vector<64x192xf32>, vector<80x192xf32> -> vector<80x192xf32>
    %c1_113 = arith.constant 1 : index
    %c0_114 = arith.constant 0 : index
    %c0_115 = arith.constant 0 : index
    %271 = vector.load %arg11[%c1_113, %c0_114, %c0_115] : memref<2x1x192xf32, #tpu.memory_space<vmem>>, vector<1x1x192xf32>
    %272 = vector.shape_cast %271 : vector<1x1x192xf32> to vector<1x192xf32>
    %273 = vector.broadcast %272 : vector<1x192xf32> to vector<80x192xf32>
    %274 = arith.addf %270, %273 : vector<80x192xf32>
    %275 = vector.extract_strided_slice %274 {offsets = [0, 0], sizes = [80, 16], strides = [1, 1]} : vector<80x192xf32> to vector<80x16xf32>
    %276 = vector.shape_cast %275 : vector<80x16xf32> to vector<2x40x16xf32>
    %277 = vector.extract_strided_slice %274 {offsets = [0, 64], sizes = [80, 16], strides = [1, 1]} : vector<80x192xf32> to vector<80x16xf32>
    %278 = vector.shape_cast %277 : vector<80x16xf32> to vector<2x40x16xf32>
    %279 = vector.extract_strided_slice %274 {offsets = [0, 128], sizes = [80, 16], strides = [1, 1]} : vector<80x192xf32> to vector<80x16xf32>
    %280 = vector.shape_cast %279 : vector<80x16xf32> to vector<2x40x16xf32>
    "tpu.trace_start"() <{level = 10 : i32, message = "bnd,bmd->bnm"}> : () -> ()
    %cst_116 = arith.constant dense<0.000000e+00> : vector<2x40x40xf32>
    %281 = tpu.matmul %276, %278, %cst_116 {dimension_numbers = #tpu.dot_dimension_numbers<[2], [2], [1], [1], [0, 0, 0, 1, 1, 1], [0], [0]>} : vector<2x40x16xf32>, vector<2x40x16xf32>, vector<2x40x40xf32> -> vector<2x40x40xf32>
    "tpu.trace_stop"() : () -> ()
    %cst_117 = arith.constant 2.500000e-01 : f32
    %282 = vector.broadcast %cst_117 : f32 to vector<2x40x40xf32>
    %283 = arith.mulf %281, %282 : vector<2x40x40xf32>
    %cst_118 = arith.constant dense<0xFF800000> : vector<2x40xf32>
    %284 = vector.multi_reduction <maximumf>, %283, %cst_118 [2] : vector<2x40x40xf32> to vector<2x40xf32>
    %285 = vector.shape_cast %284 : vector<2x40xf32> to vector<2x40x1xf32>
    %286 = vector.broadcast %285 : vector<2x40x1xf32> to vector<2x40x40xf32>
    %287 = arith.subf %283, %286 : vector<2x40x40xf32>
    %288 = math.exp %287 : vector<2x40x40xf32>
    %cst_119 = arith.constant dense<0.000000e+00> : vector<2x40xf32>
    %289 = vector.multi_reduction <add>, %288, %cst_119 [2] : vector<2x40x40xf32> to vector<2x40xf32>
    %290 = vector.shape_cast %289 : vector<2x40xf32> to vector<2x40x1xf32>
    %291 = tpu.reciprocal %290 {approx = true} : vector<2x40x1xf32> -> vector<2x40x1xf32>
    %292 = vector.broadcast %291 : vector<2x40x1xf32> to vector<2x40x40xf32>
    %293 = arith.mulf %288, %292 : vector<2x40x40xf32>
    "tpu.trace_start"() <{level = 10 : i32, message = "bnm,bmd->bnd"}> : () -> ()
    %cst_120 = arith.constant dense<0.000000e+00> : vector<2x40x16xf32>
    %294 = tpu.matmul %293, %280, %cst_120 {dimension_numbers = #tpu.dot_dimension_numbers<[2], [1], [1], [2], [0, 0, 0, 1, 1, 2], [0], [0]>} : vector<2x40x40xf32>, vector<2x40x16xf32>, vector<2x40x16xf32> -> vector<2x40x16xf32>
    "tpu.trace_stop"() : () -> ()
    %295 = vector.shape_cast %294 : vector<2x40x16xf32> to vector<80x16xf32>
    %296 = vector.extract_strided_slice %274 {offsets = [0, 16], sizes = [80, 16], strides = [1, 1]} : vector<80x192xf32> to vector<80x16xf32>
    %297 = vector.shape_cast %296 : vector<80x16xf32> to vector<2x40x16xf32>
    %298 = vector.extract_strided_slice %274 {offsets = [0, 80], sizes = [80, 16], strides = [1, 1]} : vector<80x192xf32> to vector<80x16xf32>
    %299 = vector.shape_cast %298 : vector<80x16xf32> to vector<2x40x16xf32>
    %300 = vector.extract_strided_slice %274 {offsets = [0, 144], sizes = [80, 16], strides = [1, 1]} : vector<80x192xf32> to vector<80x16xf32>
    %301 = vector.shape_cast %300 : vector<80x16xf32> to vector<2x40x16xf32>
    "tpu.trace_start"() <{level = 10 : i32, message = "bnd,bmd->bnm"}> : () -> ()
    %cst_121 = arith.constant dense<0.000000e+00> : vector<2x40x40xf32>
    %302 = tpu.matmul %297, %299, %cst_121 {dimension_numbers = #tpu.dot_dimension_numbers<[2], [2], [1], [1], [0, 0, 0, 1, 1, 1], [0], [0]>} : vector<2x40x16xf32>, vector<2x40x16xf32>, vector<2x40x40xf32> -> vector<2x40x40xf32>
    "tpu.trace_stop"() : () -> ()
    %cst_122 = arith.constant 2.500000e-01 : f32
    %303 = vector.broadcast %cst_122 : f32 to vector<2x40x40xf32>
    %304 = arith.mulf %302, %303 : vector<2x40x40xf32>
    %cst_123 = arith.constant dense<0xFF800000> : vector<2x40xf32>
    %305 = vector.multi_reduction <maximumf>, %304, %cst_123 [2] : vector<2x40x40xf32> to vector<2x40xf32>
    %306 = vector.shape_cast %305 : vector<2x40xf32> to vector<2x40x1xf32>
    %307 = vector.broadcast %306 : vector<2x40x1xf32> to vector<2x40x40xf32>
    %308 = arith.subf %304, %307 : vector<2x40x40xf32>
    %309 = math.exp %308 : vector<2x40x40xf32>
    %cst_124 = arith.constant dense<0.000000e+00> : vector<2x40xf32>
    %310 = vector.multi_reduction <add>, %309, %cst_124 [2] : vector<2x40x40xf32> to vector<2x40xf32>
    %311 = vector.shape_cast %310 : vector<2x40xf32> to vector<2x40x1xf32>
    %312 = tpu.reciprocal %311 {approx = true} : vector<2x40x1xf32> -> vector<2x40x1xf32>
    %313 = vector.broadcast %312 : vector<2x40x1xf32> to vector<2x40x40xf32>
    %314 = arith.mulf %309, %313 : vector<2x40x40xf32>
    "tpu.trace_start"() <{level = 10 : i32, message = "bnm,bmd->bnd"}> : () -> ()
    %cst_125 = arith.constant dense<0.000000e+00> : vector<2x40x16xf32>
    %315 = tpu.matmul %314, %301, %cst_125 {dimension_numbers = #tpu.dot_dimension_numbers<[2], [1], [1], [2], [0, 0, 0, 1, 1, 2], [0], [0]>} : vector<2x40x40xf32>, vector<2x40x16xf32>, vector<2x40x16xf32> -> vector<2x40x16xf32>
    "tpu.trace_stop"() : () -> ()
    %316 = vector.shape_cast %315 : vector<2x40x16xf32> to vector<80x16xf32>
    %317 = vector.extract_strided_slice %274 {offsets = [0, 32], sizes = [80, 16], strides = [1, 1]} : vector<80x192xf32> to vector<80x16xf32>
    %318 = vector.shape_cast %317 : vector<80x16xf32> to vector<2x40x16xf32>
    %319 = vector.extract_strided_slice %274 {offsets = [0, 96], sizes = [80, 16], strides = [1, 1]} : vector<80x192xf32> to vector<80x16xf32>
    %320 = vector.shape_cast %319 : vector<80x16xf32> to vector<2x40x16xf32>
    %321 = vector.extract_strided_slice %274 {offsets = [0, 160], sizes = [80, 16], strides = [1, 1]} : vector<80x192xf32> to vector<80x16xf32>
    %322 = vector.shape_cast %321 : vector<80x16xf32> to vector<2x40x16xf32>
    "tpu.trace_start"() <{level = 10 : i32, message = "bnd,bmd->bnm"}> : () -> ()
    %cst_126 = arith.constant dense<0.000000e+00> : vector<2x40x40xf32>
    %323 = tpu.matmul %318, %320, %cst_126 {dimension_numbers = #tpu.dot_dimension_numbers<[2], [2], [1], [1], [0, 0, 0, 1, 1, 1], [0], [0]>} : vector<2x40x16xf32>, vector<2x40x16xf32>, vector<2x40x40xf32> -> vector<2x40x40xf32>
    "tpu.trace_stop"() : () -> ()
    %cst_127 = arith.constant 2.500000e-01 : f32
    %324 = vector.broadcast %cst_127 : f32 to vector<2x40x40xf32>
    %325 = arith.mulf %323, %324 : vector<2x40x40xf32>
    %cst_128 = arith.constant dense<0xFF800000> : vector<2x40xf32>
    %326 = vector.multi_reduction <maximumf>, %325, %cst_128 [2] : vector<2x40x40xf32> to vector<2x40xf32>
    %327 = vector.shape_cast %326 : vector<2x40xf32> to vector<2x40x1xf32>
    %328 = vector.broadcast %327 : vector<2x40x1xf32> to vector<2x40x40xf32>
    %329 = arith.subf %325, %328 : vector<2x40x40xf32>
    %330 = math.exp %329 : vector<2x40x40xf32>
    %cst_129 = arith.constant dense<0.000000e+00> : vector<2x40xf32>
    %331 = vector.multi_reduction <add>, %330, %cst_129 [2] : vector<2x40x40xf32> to vector<2x40xf32>
    %332 = vector.shape_cast %331 : vector<2x40xf32> to vector<2x40x1xf32>
    %333 = tpu.reciprocal %332 {approx = true} : vector<2x40x1xf32> -> vector<2x40x1xf32>
    %334 = vector.broadcast %333 : vector<2x40x1xf32> to vector<2x40x40xf32>
    %335 = arith.mulf %330, %334 : vector<2x40x40xf32>
    "tpu.trace_start"() <{level = 10 : i32, message = "bnm,bmd->bnd"}> : () -> ()
    %cst_130 = arith.constant dense<0.000000e+00> : vector<2x40x16xf32>
    %336 = tpu.matmul %335, %322, %cst_130 {dimension_numbers = #tpu.dot_dimension_numbers<[2], [1], [1], [2], [0, 0, 0, 1, 1, 2], [0], [0]>} : vector<2x40x40xf32>, vector<2x40x16xf32>, vector<2x40x16xf32> -> vector<2x40x16xf32>
    "tpu.trace_stop"() : () -> ()
    %337 = vector.shape_cast %336 : vector<2x40x16xf32> to vector<80x16xf32>
    %338 = vector.extract_strided_slice %274 {offsets = [0, 48], sizes = [80, 16], strides = [1, 1]} : vector<80x192xf32> to vector<80x16xf32>
    %339 = vector.shape_cast %338 : vector<80x16xf32> to vector<2x40x16xf32>
    %340 = vector.extract_strided_slice %274 {offsets = [0, 112], sizes = [80, 16], strides = [1, 1]} : vector<80x192xf32> to vector<80x16xf32>
    %341 = vector.shape_cast %340 : vector<80x16xf32> to vector<2x40x16xf32>
    %342 = vector.extract_strided_slice %274 {offsets = [0, 176], sizes = [80, 16], strides = [1, 1]} : vector<80x192xf32> to vector<80x16xf32>
    %343 = vector.shape_cast %342 : vector<80x16xf32> to vector<2x40x16xf32>
    "tpu.trace_start"() <{level = 10 : i32, message = "bnd,bmd->bnm"}> : () -> ()
    %cst_131 = arith.constant dense<0.000000e+00> : vector<2x40x40xf32>
    %344 = tpu.matmul %339, %341, %cst_131 {dimension_numbers = #tpu.dot_dimension_numbers<[2], [2], [1], [1], [0, 0, 0, 1, 1, 1], [0], [0]>} : vector<2x40x16xf32>, vector<2x40x16xf32>, vector<2x40x40xf32> -> vector<2x40x40xf32>
    "tpu.trace_stop"() : () -> ()
    %cst_132 = arith.constant 2.500000e-01 : f32
    %345 = vector.broadcast %cst_132 : f32 to vector<2x40x40xf32>
    %346 = arith.mulf %344, %345 : vector<2x40x40xf32>
    %cst_133 = arith.constant dense<0xFF800000> : vector<2x40xf32>
    %347 = vector.multi_reduction <maximumf>, %346, %cst_133 [2] : vector<2x40x40xf32> to vector<2x40xf32>
    %348 = vector.shape_cast %347 : vector<2x40xf32> to vector<2x40x1xf32>
    %349 = vector.broadcast %348 : vector<2x40x1xf32> to vector<2x40x40xf32>
    %350 = arith.subf %346, %349 : vector<2x40x40xf32>
    %351 = math.exp %350 : vector<2x40x40xf32>
    %cst_134 = arith.constant dense<0.000000e+00> : vector<2x40xf32>
    %352 = vector.multi_reduction <add>, %351, %cst_134 [2] : vector<2x40x40xf32> to vector<2x40xf32>
    %353 = vector.shape_cast %352 : vector<2x40xf32> to vector<2x40x1xf32>
    %354 = tpu.reciprocal %353 {approx = true} : vector<2x40x1xf32> -> vector<2x40x1xf32>
    %355 = vector.broadcast %354 : vector<2x40x1xf32> to vector<2x40x40xf32>
    %356 = arith.mulf %351, %355 : vector<2x40x40xf32>
    "tpu.trace_start"() <{level = 10 : i32, message = "bnm,bmd->bnd"}> : () -> ()
    %cst_135 = arith.constant dense<0.000000e+00> : vector<2x40x16xf32>
    %357 = tpu.matmul %356, %343, %cst_135 {dimension_numbers = #tpu.dot_dimension_numbers<[2], [1], [1], [2], [0, 0, 0, 1, 1, 2], [0], [0]>} : vector<2x40x40xf32>, vector<2x40x16xf32>, vector<2x40x16xf32> -> vector<2x40x16xf32>
    "tpu.trace_stop"() : () -> ()
    %358 = vector.shape_cast %357 : vector<2x40x16xf32> to vector<80x16xf32>
    %359 = tpu.concatenate %295, %316, %337, %358 in 1 : vector<80x16xf32>, vector<80x16xf32>, vector<80x16xf32>, vector<80x16xf32> -> vector<80x64xf32>
    %c1_136 = arith.constant 1 : index
    %c0_137 = arith.constant 0 : index
    %c0_138 = arith.constant 0 : index
    %360 = vector.load %arg12[%c1_136, %c0_137, %c0_138] : memref<2x64x64xf32, #tpu.memory_space<vmem>>, vector<1x64x64xf32>
    %361 = vector.shape_cast %360 : vector<1x64x64xf32> to vector<64x64xf32>
    %cst_139 = arith.constant dense<0.000000e+00> : vector<80x64xf32>
    %362 = tpu.matmul %359, %361, %cst_139 {dimension_numbers = #tpu.dot_dimension_numbers<[1], [0], [0], [1], [0, 0, 1, 1], [], []>} : vector<80x64xf32>, vector<64x64xf32>, vector<80x64xf32> -> vector<80x64xf32>
    %c1_140 = arith.constant 1 : index
    %c0_141 = arith.constant 0 : index
    %c0_142 = arith.constant 0 : index
    %363 = vector.load %arg13[%c1_140, %c0_141, %c0_142] : memref<2x1x64xf32, #tpu.memory_space<vmem>>, vector<1x1x64xf32>
    %364 = vector.shape_cast %363 : vector<1x1x64xf32> to vector<1x64xf32>
    %365 = vector.broadcast %364 : vector<1x64xf32> to vector<80x64xf32>
    %366 = arith.addf %362, %365 : vector<80x64xf32>
    %367 = arith.addf %241, %366 : vector<80x64xf32>
    %c1_143 = arith.constant 1 : index
    %c0_144 = arith.constant 0 : index
    %c0_145 = arith.constant 0 : index
    %368 = vector.load %arg14[%c1_143, %c0_144, %c0_145] : memref<2x1x64xf32, #tpu.memory_space<vmem>>, vector<1x1x64xf32>
    %369 = vector.shape_cast %368 : vector<1x1x64xf32> to vector<1x64xf32>
    %c1_146 = arith.constant 1 : index
    %c0_147 = arith.constant 0 : index
    %c0_148 = arith.constant 0 : index
    %370 = vector.load %arg15[%c1_146, %c0_147, %c0_148] : memref<2x1x64xf32, #tpu.memory_space<vmem>>, vector<1x1x64xf32>
    %371 = vector.shape_cast %370 : vector<1x1x64xf32> to vector<1x64xf32>
    %cst_149 = arith.constant dense<0.000000e+00> : vector<80xf32>
    %372 = vector.multi_reduction <add>, %367, %cst_149 [1] : vector<80x64xf32> to vector<80xf32>
    %373 = vector.shape_cast %372 : vector<80xf32> to vector<80x1xf32>
    %cst_150 = arith.constant 6.400000e+01 : f32
    %374 = vector.broadcast %cst_150 : f32 to vector<80x1xf32>
    %375 = arith.divf %373, %374 : vector<80x1xf32>
    %376 = vector.broadcast %375 : vector<80x1xf32> to vector<80x64xf32>
    %377 = arith.subf %367, %376 : vector<80x64xf32>
    %378 = arith.mulf %377, %377 : vector<80x64xf32>
    %cst_151 = arith.constant dense<0.000000e+00> : vector<80xf32>
    %379 = vector.multi_reduction <add>, %378, %cst_151 [1] : vector<80x64xf32> to vector<80xf32>
    %380 = vector.shape_cast %379 : vector<80xf32> to vector<80x1xf32>
    %cst_152 = arith.constant 6.400000e+01 : f32
    %381 = vector.broadcast %cst_152 : f32 to vector<80x1xf32>
    %382 = arith.divf %380, %381 : vector<80x1xf32>
    %383 = vector.broadcast %375 : vector<80x1xf32> to vector<80x64xf32>
    %384 = arith.subf %367, %383 : vector<80x64xf32>
    %cst_153 = arith.constant 9.99999974E-6 : f32
    %385 = vector.broadcast %cst_153 : f32 to vector<80x1xf32>
    %386 = arith.addf %382, %385 : vector<80x1xf32>
    %387 = math.rsqrt %386 : vector<80x1xf32>
    %388 = vector.broadcast %387 : vector<80x1xf32> to vector<80x64xf32>
    %389 = arith.mulf %384, %388 : vector<80x64xf32>
    %390 = vector.broadcast %369 : vector<1x64xf32> to vector<80x64xf32>
    %391 = arith.mulf %389, %390 : vector<80x64xf32>
    %392 = vector.broadcast %371 : vector<1x64xf32> to vector<80x64xf32>
    %393 = arith.addf %391, %392 : vector<80x64xf32>
    %c1_154 = arith.constant 1 : index
    %c0_155 = arith.constant 0 : index
    %c0_156 = arith.constant 0 : index
    %394 = vector.load %arg16[%c1_154, %c0_155, %c0_156] : memref<2x64x128xf32, #tpu.memory_space<vmem>>, vector<1x64x128xf32>
    %395 = vector.shape_cast %394 : vector<1x64x128xf32> to vector<64x128xf32>
    %cst_157 = arith.constant dense<0.000000e+00> : vector<80x128xf32>
    %396 = tpu.matmul %393, %395, %cst_157 {dimension_numbers = #tpu.dot_dimension_numbers<[1], [0], [0], [1], [0, 0, 1, 1], [], []>} : vector<80x64xf32>, vector<64x128xf32>, vector<80x128xf32> -> vector<80x128xf32>
    %c1_158 = arith.constant 1 : index
    %c0_159 = arith.constant 0 : index
    %c0_160 = arith.constant 0 : index
    %397 = vector.load %arg17[%c1_158, %c0_159, %c0_160] : memref<2x1x128xf32, #tpu.memory_space<vmem>>, vector<1x1x128xf32>
    %398 = vector.shape_cast %397 : vector<1x1x128xf32> to vector<1x128xf32>
    %399 = vector.broadcast %398 : vector<1x128xf32> to vector<80x128xf32>
    %400 = arith.addf %396, %399 : vector<80x128xf32>
    %cst_161 = arith.constant 5.000000e-01 : f32
    %401 = vector.broadcast %cst_161 : f32 to vector<80x128xf32>
    %402 = arith.mulf %401, %400 : vector<80x128xf32>
    %cst_162 = arith.constant 4.471500e-02 : f32
    %403 = vector.broadcast %cst_162 : f32 to vector<80x128xf32>
    %404 = arith.mulf %403, %400 : vector<80x128xf32>
    %405 = arith.mulf %404, %400 : vector<80x128xf32>
    %406 = arith.mulf %405, %400 : vector<80x128xf32>
    %407 = arith.addf %400, %406 : vector<80x128xf32>
    %cst_163 = arith.constant 0.797884583 : f32
    %408 = vector.broadcast %cst_163 : f32 to vector<80x128xf32>
    %409 = arith.mulf %408, %407 : vector<80x128xf32>
    %410 = math.tanh %409 : vector<80x128xf32>
    %cst_164 = arith.constant 1.000000e+00 : f32
    %411 = vector.broadcast %cst_164 : f32 to vector<80x128xf32>
    %412 = arith.addf %411, %410 : vector<80x128xf32>
    %413 = arith.mulf %402, %412 : vector<80x128xf32>
    %c1_165 = arith.constant 1 : index
    %c0_166 = arith.constant 0 : index
    %c0_167 = arith.constant 0 : index
    %414 = vector.load %arg18[%c1_165, %c0_166, %c0_167] : memref<2x128x64xf32, #tpu.memory_space<vmem>>, vector<1x128x64xf32>
    %415 = vector.shape_cast %414 : vector<1x128x64xf32> to vector<128x64xf32>
    %cst_168 = arith.constant dense<0.000000e+00> : vector<80x64xf32>
    %416 = tpu.matmul %413, %415, %cst_168 {dimension_numbers = #tpu.dot_dimension_numbers<[1], [0], [0], [1], [0, 0, 1, 1], [], []>} : vector<80x128xf32>, vector<128x64xf32>, vector<80x64xf32> -> vector<80x64xf32>
    %c1_169 = arith.constant 1 : index
    %c0_170 = arith.constant 0 : index
    %c0_171 = arith.constant 0 : index
    %417 = vector.load %arg19[%c1_169, %c0_170, %c0_171] : memref<2x1x64xf32, #tpu.memory_space<vmem>>, vector<1x1x64xf32>
    %418 = vector.shape_cast %417 : vector<1x1x64xf32> to vector<1x64xf32>
    %419 = vector.broadcast %418 : vector<1x64xf32> to vector<80x64xf32>
    %420 = arith.addf %416, %419 : vector<80x64xf32>
    %421 = arith.addf %367, %420 : vector<80x64xf32>
    %c0_172 = arith.constant 0 : index
    %c0_173 = arith.constant 0 : index
    %422 = vector.load %arg20[%c0_172, %c0_173] : memref<1x64xf32, #tpu.memory_space<vmem>>, vector<1x64xf32>
    %c0_174 = arith.constant 0 : index
    %c0_175 = arith.constant 0 : index
    %423 = vector.load %arg21[%c0_174, %c0_175] : memref<1x64xf32, #tpu.memory_space<vmem>>, vector<1x64xf32>
    %424 = vector.extract_strided_slice %421 {offsets = [0, 0], sizes = [32, 64], strides = [1, 1]} : vector<80x64xf32> to vector<32x64xf32>
    %cst_176 = arith.constant dense<0.000000e+00> : vector<64xf32>
    %425 = vector.multi_reduction <add>, %424, %cst_176 [0] : vector<32x64xf32> to vector<64xf32>
    %426 = vector.shape_cast %425 : vector<64xf32> to vector<1x64xf32>
    %cst_177 = arith.constant 3.200000e+01 : f32
    %427 = vector.broadcast %cst_177 : f32 to vector<1x64xf32>
    %428 = arith.divf %426, %427 : vector<1x64xf32>
    %cst_178 = arith.constant dense<0.000000e+00> : vector<1xf32>
    %429 = vector.multi_reduction <add>, %428, %cst_178 [1] : vector<1x64xf32> to vector<1xf32>
    %430 = vector.shape_cast %429 : vector<1xf32> to vector<1x1xf32>
    %cst_179 = arith.constant 6.400000e+01 : f32
    %431 = vector.broadcast %cst_179 : f32 to vector<1x1xf32>
    %432 = arith.divf %430, %431 : vector<1x1xf32>
    %433 = vector.broadcast %432 : vector<1x1xf32> to vector<1x64xf32>
    %434 = arith.subf %428, %433 : vector<1x64xf32>
    %435 = arith.mulf %434, %434 : vector<1x64xf32>
    %cst_180 = arith.constant dense<0.000000e+00> : vector<1xf32>
    %436 = vector.multi_reduction <add>, %435, %cst_180 [1] : vector<1x64xf32> to vector<1xf32>
    %437 = vector.shape_cast %436 : vector<1xf32> to vector<1x1xf32>
    %cst_181 = arith.constant 6.400000e+01 : f32
    %438 = vector.broadcast %cst_181 : f32 to vector<1x1xf32>
    %439 = arith.divf %437, %438 : vector<1x1xf32>
    %440 = vector.broadcast %432 : vector<1x1xf32> to vector<1x64xf32>
    %441 = arith.subf %428, %440 : vector<1x64xf32>
    %cst_182 = arith.constant 9.99999974E-6 : f32
    %442 = vector.broadcast %cst_182 : f32 to vector<1x1xf32>
    %443 = arith.addf %439, %442 : vector<1x1xf32>
    %444 = math.rsqrt %443 : vector<1x1xf32>
    %445 = vector.broadcast %444 : vector<1x1xf32> to vector<1x64xf32>
    %446 = arith.mulf %441, %445 : vector<1x64xf32>
    %447 = arith.mulf %446, %422 : vector<1x64xf32>
    %448 = arith.addf %447, %423 : vector<1x64xf32>
    %c0_183 = arith.constant 0 : index
    %c0_184 = arith.constant 0 : index
    %449 = vector.load %arg22[%c0_183, %c0_184] : memref<2x64xf32, #tpu.memory_space<vmem>>, vector<1x64xf32>
    tpu.vector_store %arg22[%c0_183, %c0_184], %448 {strides = array<i32>} : memref<2x64xf32, #tpu.memory_space<vmem>>, vector<1x64xf32>,
    %450 = vector.extract_strided_slice %421 {offsets = [40, 0], sizes = [32, 64], strides = [1, 1]} : vector<80x64xf32> to vector<32x64xf32>
    %cst_185 = arith.constant dense<0.000000e+00> : vector<64xf32>
    %451 = vector.multi_reduction <add>, %450, %cst_185 [0] : vector<32x64xf32> to vector<64xf32>
    %452 = vector.shape_cast %451 : vector<64xf32> to vector<1x64xf32>
    %cst_186 = arith.constant 3.200000e+01 : f32
    %453 = vector.broadcast %cst_186 : f32 to vector<1x64xf32>
    %454 = arith.divf %452, %453 : vector<1x64xf32>
    %cst_187 = arith.constant dense<0.000000e+00> : vector<1xf32>
    %455 = vector.multi_reduction <add>, %454, %cst_187 [1] : vector<1x64xf32> to vector<1xf32>
    %456 = vector.shape_cast %455 : vector<1xf32> to vector<1x1xf32>
    %cst_188 = arith.constant 6.400000e+01 : f32
    %457 = vector.broadcast %cst_188 : f32 to vector<1x1xf32>
    %458 = arith.divf %456, %457 : vector<1x1xf32>
    %459 = vector.broadcast %458 : vector<1x1xf32> to vector<1x64xf32>
    %460 = arith.subf %454, %459 : vector<1x64xf32>
    %461 = arith.mulf %460, %460 : vector<1x64xf32>
    %cst_189 = arith.constant dense<0.000000e+00> : vector<1xf32>
    %462 = vector.multi_reduction <add>, %461, %cst_189 [1] : vector<1x64xf32> to vector<1xf32>
    %463 = vector.shape_cast %462 : vector<1xf32> to vector<1x1xf32>
    %cst_190 = arith.constant 6.400000e+01 : f32
    %464 = vector.broadcast %cst_190 : f32 to vector<1x1xf32>
    %465 = arith.divf %463, %464 : vector<1x1xf32>
    %466 = vector.broadcast %458 : vector<1x1xf32> to vector<1x64xf32>
    %467 = arith.subf %454, %466 : vector<1x64xf32>
    %cst_191 = arith.constant 9.99999974E-6 : f32
    %468 = vector.broadcast %cst_191 : f32 to vector<1x1xf32>
    %469 = arith.addf %465, %468 : vector<1x1xf32>
    %470 = math.rsqrt %469 : vector<1x1xf32>
    %471 = vector.broadcast %470 : vector<1x1xf32> to vector<1x64xf32>
    %472 = arith.mulf %467, %471 : vector<1x64xf32>
    %473 = arith.mulf %472, %422 : vector<1x64xf32>
    %474 = arith.addf %473, %423 : vector<1x64xf32>
    %c1_192 = arith.constant 1 : index
    %c0_193 = arith.constant 0 : index
    %475 = vector.load %arg22[%c1_192, %c0_193] : memref<2x64xf32, #tpu.memory_space<vmem>>, vector<1x64xf32>
    tpu.vector_store %arg22[%c1_192, %c0_193], %474 {strides = array<i32>} : memref<2x64xf32, #tpu.memory_space<vmem>>, vector<1x64xf32>,
    return
  }
}

</mosaic_0001>

<bundles_post_ra>
// kernel: st_mem_vit_forward.1
= control target key start
LH: loop header
LB: loop body
LE: loop exit
PB: predicated region body
PF: predicated region fallthrough
CT: control target
= control target key end

     0   :  { %s14353_s0 = inlined_call_operand.vmem [shape: f32[64,8], index: 0, kind: input, shape index: {}]   ;;  %s14354_s1 = inlined_call_operand.vmem [shape: f32[40,64], index: 1, kind: input, shape index: {}]   ;;  %s14355_s2 = inlined_call_operand.hbm [shape: f32[1,8], index: 2, kind: input, shape index: {}]   ;;  %s14356_s3 = inlined_call_operand.hbm [shape: f32[1,8], index: 3, kind: input, shape index: {}]   ;;  %s14357_s4 = inlined_call_operand.vmem [shape: f32[8,64], index: 4, kind: input, shape index: {}]   ;;  %s14358_s5 = inlined_call_operand.vmem [shape: f32[1,64], index: 5, kind: input, shape index: {}]   ;;  %s14359_s6 = inlined_call_operand.hbm [shape: f32[1,64], index: 6, kind: input, shape index: {}]   ;;  %s14360_s7 = inlined_call_operand.hbm [shape: f32[1,64], index: 7, kind: input, shape index: {}]   ;;  %s14361_s8 = inlined_call_operand.vmem [shape: f32[2,1,64], index: 8, kind: input, shape index: {}]   ;;  %s14362_s9 = inlined_call_operand.vmem [shape: f32[2,1,64], index: 9, kind: input, shape index: {}]   ;;  %s14363_s10 = inlined_call_operand.vmem [shape: f32[2,64,192], index: 10, kind: input, shape index: {}]   ;;  %s14364_s11 = inlined_call_operand.vmem [shape: f32[2,1,192], index: 11, kind: input, shape index: {}]   ;;  %s14365_s12 = inlined_call_operand.vmem [shape: f32[2,64,64], index: 12, kind: input, shape index: {}]   ;;  %s14366_s13 = inlined_call_operand.hbm [shape: f32[2,1,64], index: 13, kind: input, shape index: {}]   ;;  %s14367_s14 = inlined_call_operand.vmem [shape: f32[2,1,64], index: 14, kind: input, shape index: {}]   ;;  %s14368_s15 = inlined_call_operand.vmem [shape: f32[2,1,64], index: 15, kind: input, shape index: {}]   ;;  %s14369_s16 = inlined_call_operand.vmem [shape: f32[2,64,128], index: 16, kind: input, shape index: {}]   ;;  %s14370_s17 = inlined_call_operand.hbm [shape: f32[2,1,128], index: 17, kind: input, shape index: {}]   ;;  %s14371_s18 = inlined_call_operand.vmem [shape: f32[2,128,64], index: 18, kind: input, shape index: {}]   ;;  %s14372_s19 = inlined_call_operand.hbm [shape: f32[2,1,64], index: 19, kind: input, shape index: {}]   ;;  %s14373_s20 = inlined_call_operand.hbm [shape: f32[1,64], index: 20, kind: input, shape index: {}]   ;;  %s14374_s21 = inlined_call_operand.hbm [shape: f32[1,64], index: 21, kind: input, shape index: {}]   ;;  %s14375_s22 = inlined_call_operand.hbm [shape: f32[2,64], index: 22, kind: output, shape index: {}]  }
   0x1   :  { %14402 = sst [smem:[#allocation41_spill]] %s14353_s0 }
   0x2   :  { %14403 = sst [smem:[#allocation42_spill]] %s14354_s1 }
   0x3   :  { %14404 = sst [smem:[#allocation43_spill]] %s14355_s2 }
   0x4   :  { %14405 = sst [smem:[#allocation44_spill]] %s14356_s3 }
   0x5   :  { %14406 = sst [smem:[#allocation45_spill]] %s14357_s4 }
   0x6   :  { %14407 = sst [smem:[#allocation46_spill]] %s14358_s5 }
   0x7   :  { %14408 = sst [smem:[#allocation47_spill]] %s14359_s6 }
   0x8   :  { %27 = vsyncpa [#allocation3], 0 }
   0x9   :  { %28 = vsyncpa [#allocation6], 0 }
   0xa   :  { %29 = vsyncpa [#allocation9], 0 }
   0xb   :  { %30 = vsyncpa [#allocation12], 0 }
   0xc   :  { %31 = vsyncpa [#allocation15], 0 }
   0xd   :  { %32 = vsyncpa [#allocation4], 0  ;;  %s10629_s3 = smov [#allocation5]   ;;  %s10630_s29 = smov [#allocation8]  }
   0xe   :  { %s53_s28 = sshll.u32 %s10629_s3, 4  ;;  %s77_s30 = sshll.u32 %s10630_s29, 4  ;;  %s54_s28 = int_to_ptr.vmem [resolvable:$true] %s53_s28  ;;  %s78_s30 = int_to_ptr.vmem [resolvable:$true] %s77_s30 }
   0xf   :  { %s10425_s4 = scalar_lea.vmem %s54_s28, 16  ;;  %s10429_s0 = scalar_lea.vmem %s54_s28, 32 }
  0x10   :  { %p10426_p0 = scmp.ne.s32.totalorder %s54_s28, %s10425_s4  ;;  %p10430_p1 = scmp.lt.s32.totalorder %s54_s28, %s54_s28 }
  0x11   :  { %p10431_p2 = scmp.lt.s32.totalorder %s10429_s0, %s10425_s4 }
  0x13   :  { %p10432_p3 = por %p10431_p2, %p10430_p1 }
  0x15   :  { %p10433_p4 = pnand %p10432_p3, %p10426_p0 }
  0x17   :  { %10436 = shalt.err (!%p10433_p4)
}
  0x18   :  { %s14409_s5 = sld [smem:[#allocation44_spill]]  ;;  %s10445_s24 = scalar_lea.vmem %s78_s30, 16 }
  0x19   :  { %p10446_p5 = scmp.ne.s32.totalorder %s78_s30, %s10445_s24  ;;  %s10449_s6 = scalar_lea.vmem %s78_s30, 32 }
  0x1a   :  { %p10450_p6 = scmp.lt.s32.totalorder %s78_s30, %s78_s30  ;;  %p10451_p7 = scmp.lt.s32.totalorder %s10449_s6, %s10445_s24 }
  0x1c   :  { %p10452_p8 = por %p10451_p7, %p10450_p6 }
  0x1e   :  { %56 = dma.hbm_to_vmem [thread:$0]  %s14409_s5, 16, %s54_s28, [#allocation6]  }
  0x1f   :  { %p10453_p9 = pnand %p10452_p8, %p10446_p5 }
  0x21   :  { %10456 = shalt.err (!%p10453_p9)
}
  0x22   :  { %80 = dma.hbm_to_vmem [thread:$0]  %s14360_s7, 16, %s78_s30, [#allocation9]  }
  0x23   :  { %s10631_s2 = smov [#allocation11]   ;;  %s10632_s3 = smov [#allocation14]  }
  0x24   :  { %s114_s27 = sshll.u32 %s10631_s2, 4  ;;  %s141_s29 = sshll.u32 %s10632_s3, 4  ;;  %s115_s27 = int_to_ptr.vmem [resolvable:$true] %s114_s27  ;;  %s142_s29 = int_to_ptr.vmem [resolvable:$true] %s141_s29 }
  0x25   :  { %s10465_s4 = scalar_lea.vmem %s115_s27, 32  ;;  %p10470_p11 = scmp.lt.s32.totalorder %s115_s27, %s115_s27 }
  0x26   :  { %p10466_p10 = scmp.ne.s32.totalorder %s115_s27, %s10465_s4  ;;  %p10471_p12 = scmp.lt.s32.totalorder %s10465_s4, %s10465_s4 }
  0x28   :  { %p10472_p13 = por %p10471_p12, %p10470_p11 }
  0x2a   :  { %p10473_p0 = pnand %p10472_p13, %p10466_p10 }
  0x2c   :  { %10476 = shalt.err (!%p10473_p0)
}
  0x2d   :  { %s10633_s28 = smov 16   ;;  %s10634_s0 = smov 1  }
  0x2e   :  { %120 = dma.hbm_to_vmem [thread:$0]  %s14370_s17, 32, %s115_s27, [#allocation12], %s10633_s28, %s10633_s28, %s10634_s0  }
  0x2f   :  { %s10485_s30 = scalar_lea.vmem %s142_s29, 16  ;;  %s10489_s1 = scalar_lea.vmem %s142_s29, 32 }
  0x30   :  { %p10486_p1 = scmp.ne.s32.totalorder %s142_s29, %s10485_s30  ;;  %p10490_p2 = scmp.lt.s32.totalorder %s142_s29, %s142_s29 }
  0x31   :  { %p10491_p3 = scmp.lt.s32.totalorder %s10489_s1, %s10485_s30 }
  0x33   :  { %p10492_p4 = por %p10491_p3, %p10490_p2 }
  0x35   :  { %p10493_p5 = pnand %p10492_p4, %p10486_p1 }
  0x37   :  { %10496 = shalt.err (!%p10493_p5)
}
  0x38   :  { %144 = dma.hbm_to_vmem [thread:$0]  %s14373_s20, 16, %s142_s29, [#allocation15]  }
  0x39   :  { %s10635_s6 = smov [#allocation2]   ;;  %s10636_s26 = smov [#allocation7]  }
  0x3a   :  { %s43_s25 = sshll.u32 %s10635_s6, 4  ;;  %s67_s2 = sshll.u32 %s10636_s26, 4  ;;  %s44_s25 = int_to_ptr.vmem [resolvable:$true] %s43_s25  ;;  %s68_s2 = int_to_ptr.vmem [resolvable:$true] %s67_s2 }
  0x3b   :  { %s10505_s3 = scalar_lea.vmem %s44_s25, 16  ;;  %s10509_s17 = scalar_lea.vmem %s44_s25, 32 }
  0x3c   :  { %p10506_p6 = scmp.ne.s32.totalorder %s44_s25, %s10505_s3  ;;  %p10510_p7 = scmp.lt.s32.totalorder %s44_s25, %s44_s25 }
  0x3d   :  { %p10511_p8 = scmp.lt.s32.totalorder %s10509_s17, %s10505_s3 }
  0x3f   :  { %p10512_p9 = por %p10511_p8, %p10510_p7 }
  0x41   :  { %p10513_p10 = pnand %p10512_p9, %p10506_p6 }
  0x43   :  { %10516 = shalt.err (!%p10513_p10)
}
  0x44   :  { %s14410_s23 = sld [smem:[#allocation43_spill]]  ;;  %s10525_s7 = scalar_lea.vmem %s68_s2, 16 }
  0x45   :  { %p10526_p11 = scmp.ne.s32.totalorder %s68_s2, %s10525_s7  ;;  %s10529_s20 = scalar_lea.vmem %s68_s2, 32 }
  0x46   :  { %p10530_p12 = scmp.lt.s32.totalorder %s68_s2, %s68_s2  ;;  %p10531_p13 = scmp.lt.s32.totalorder %s10529_s20, %s10525_s7 }
  0x48   :  { %p10532_p0 = por %p10531_p13, %p10530_p12 }
  0x4a   :  { %46 = dma.hbm_to_vmem [thread:$0]  %s14410_s23, 16, %s44_s25, [#allocation3]  }
  0x4b   :  { %p10533_p1 = pnand %p10532_p0, %p10526_p11 }
  0x4d   :  { %10536 = shalt.err (!%p10533_p1)
}
  0x4e   :  { %s14411_s1 = sld [smem:[#allocation47_spill]]  ;;  %s10637_s5 = smov [#allocation10]  }
  0x4f   :  { %s96_s24 = sshll.u32 %s10637_s5, 4  ;;  %s10638_s6 = smov [#allocation13]   ;;  %s97_s24 = int_to_ptr.vmem [resolvable:$true] %s96_s24 }
  0x50   :  { %s128_s26 = sshll.u32 %s10638_s6, 4  ;;  %s10545_s3 = scalar_lea.vmem %s97_s24, 32  ;;  %s129_s26 = int_to_ptr.vmem [resolvable:$true] %s128_s26 }
  0x51   :  { %p10546_p2 = scmp.ne.s32.totalorder %s97_s24, %s10545_s3  ;;  %p10550_p3 = scmp.lt.s32.totalorder %s97_s24, %s97_s24 }
  0x52   :  { %p10551_p4 = scmp.lt.s32.totalorder %s10545_s3, %s10545_s3 }
  0x54   :  { %70 = dma.hbm_to_vmem [thread:$0]  %s14411_s1, 16, %s68_s2, [#allocation6]  }
  0x55   :  { %p10552_p5 = por %p10551_p4, %p10550_p3 }
  0x57   :  { %p10553_p6 = pnand %p10552_p5, %p10546_p2 }
  0x59   :  { %10556 = shalt.err (!%p10553_p6)
}
  0x5a   :  { %102 = dma.hbm_to_vmem [thread:$0]  %s14366_s13, 32, %s97_s24, [#allocation9], %s10633_s28, %s10633_s28, %s10634_s0  }
  0x5b   :  { %s10565_s2 = scalar_lea.vmem %s129_s26, 32  ;;  %p10570_p8 = scmp.lt.s32.totalorder %s129_s26, %s129_s26 }
  0x5c   :  { %p10566_p7 = scmp.ne.s32.totalorder %s129_s26, %s10565_s2  ;;  %p10571_p9 = scmp.lt.s32.totalorder %s10565_s2, %s10565_s2 }
  0x5e   :  { %p10572_p10 = por %p10571_p9, %p10570_p8 }
  0x60   :  { %p10573_p11 = pnand %p10572_p10, %p10566_p7 }
  0x62   :  { %10576 = shalt.err (!%p10573_p11)
}
  0x63   :  { %134 = dma.hbm_to_vmem [thread:$0]  %s14372_s19, 32, %s129_s26, [#allocation12], %s10633_s28, %s10633_s28, %s10634_s0  }
  0x64   :  { %s10639_s23 = smov [#allocation16]  }
  0x65   :  { %s151_s7 = sshll.u32 %s10639_s23, 4  ;;  %s152_s7 = int_to_ptr.vmem [resolvable:$true] %s151_s7 }
  0x66   :  { %s10585_s20 = scalar_lea.vmem %s152_s7, 16  ;;  %s10589_s13 = scalar_lea.vmem %s152_s7, 32 }
  0x67   :  { %p10586_p12 = scmp.ne.s32.totalorder %s152_s7, %s10585_s20  ;;  %p10590_p13 = scmp.lt.s32.totalorder %s152_s7, %s152_s7 }
  0x68   :  { %p10591_p0 = scmp.lt.s32.totalorder %s10589_s13, %s10585_s20 }
  0x6a   :  { %p10592_p1 = por %p10591_p0, %p10590_p13 }
  0x6c   :  { %p10593_p2 = pnand %p10592_p1, %p10586_p12 }
  0x6e   :  { %10596 = shalt.err (!%p10593_p2)
}
  0x6f   :  { %154 = dma.hbm_to_vmem [thread:$0]  %s14374_s21, 16, %s152_s7, [#allocation15]  }
  0x70   :  { %10617 = dma.done.wait [#allocation3], 16  }
  0x71   :  { %10618 = vsyncadd [#allocation3], 4294967280 }
  0x72   :  { %10619 = dma.done.wait [#allocation6], 32  }
  0x73   :  { %10620 = vsyncadd [#allocation6], 4294967264 }
  0x74   :  { %10621 = dma.done.wait [#allocation9], 48  }
  0x75   :  { %10622 = vsyncadd [#allocation9], 4294967248 }
  0x76   :  { %10623 = dma.done.wait [#allocation12], 64  }
  0x77   :  { %10624 = vsyncadd [#allocation12], 4294967232 }
  0x78   :  { %10625 = dma.done.wait [#allocation15], 32  }
  0x79   :  { %10626 = vsyncadd [#allocation15], 4294967264  ;;  %vm192_vm0 = vcmask 64512   ;;  %s14412_s1 = sld [smem:[#allocation41_spill]]  ;;  %vm465_vm1 = vcmask 523264   ;;  %s10641_s23 = smov 64  }
  0x7a   :  { %s14413_s30 = sld [smem:[#allocation45_spill]]  ;;  %vm10642_vm2 = vmmov 0   ;;  %vm956_vm3 = vcmask 130048   ;;  %vm1202_vm4 = vcmask 326656   ;;  %s10643_s7 = smov 48   ;;  %vm3523_vm5 = vcmask 261120  }
  0x7b   :  { %s14415_s21 = sld [smem:[#allocation42_spill]]  ;;  %s10644_s20 = smov 112   ;;  %vm3534_vm6 = vcmask 392192   ;;  %vm7996_vm7 = vcmask 516096  }
  0x7c   :  { %s10645_s13 = smov 32   ;;  %s10646_s29 = smov 96  }
  0x7f   :  { %v182_v0 = vld [vmem:[%s14412_s1] sm:$0xff]  ;;  %v184_v1 = vld [vmem:[%s14412_s1 + $0x10] sm:$0xff]  ;;  %v183_v2 = vld [vmem:[%s14412_s1 + $0x8] sm:$0xff] }
  0x80   :  { %v193_v3 = vsel %vm192_vm0, %v182_v0, 0.0  ;;  %v199_v4 = vsel %vm192_vm0, %v184_v1, 0.0  ;;  %v185_v5 = vld [vmem:[%s14412_s1 + $0x18] sm:$0xff]  ;;  %v196_v6 = vsel %vm192_vm0, %v183_v2, 0.0  ;;  %v186_v8 = vld [vmem:[%s14412_s1 + $0x20] sm:$0xff]  ;;  %v187_v9 = vld [vmem:[%s14412_s1 + $0x28] sm:$0xff] }
  0x81   :  { %194 = vadd.xlane.f32.xlu0 %v193_v3  ;;  %200 = vadd.xlane.f32.xlu1 %v199_v4  ;;  %v202_v7 = vsel %vm192_vm0, %v185_v5, 0.0  ;;  %v205_v10 = vsel %vm192_vm0, %v186_v8, 0.0  ;;  %v208_v11 = vsel %vm192_vm0, %v187_v9, 0.0  ;;  %v188_v12 = vld [vmem:[%s14412_s1 + $0x30] sm:$0xff]  ;;  %v189_v13 = vld [vmem:[%s14412_s1 + $0x38] sm:$0xff]  ;;  %v326_v56 = vld [vmem:[%s14413_s30] sm:$0xff] }
  0x82   :  { %v211_v14 = vsel %vm192_vm0, %v188_v12, 0.0  ;;  %v214_v15 = vsel %vm192_vm0, %v189_v13, 0.0  ;;  %8880 = vmatprep.subr.mxu0 %v326_v56  ;;  %s14414_s1 = sld [smem:[#allocation46_spill]]  ;;  %s10647_s30 = smov 80  }
  0x83   :  { %8881 = vmatpush3.msra.mxu0 %v326_v56 }
  0x85   :  { %197 = vadd.xlane.f32.xlu0 %v196_v6  ;;  %203 = vadd.xlane.f32.xlu1 %v202_v7 }
  0x89   :  { %206 = vadd.xlane.f32.xlu0 %v205_v10  ;;  %209 = vadd.xlane.f32.xlu1 %v208_v11 }
  0x8d   :  { %212 = vadd.xlane.f32.xlu0 %v211_v14  ;;  %215 = vadd.xlane.f32.xlu1 %v214_v15 }
 0x10a   :  { %v195_v16 = vpop.xlane.xlu0 %194  ;;  %v201_v17 = vpop.xlane.xlu1 %200 }
 0x10b   :  { %v218_v18 = vmul.f32 0.125, %v195_v16  ;;  %v220_v19 = vmul.f32 0.125, %v201_v17  ;;  %v8047_v17 = vld [vmem:[#allocation2] ss:$0 sm:$0xff] }
 0x10d   :  { %v10832_v20 = vsub.f32 %v182_v0, %v218_v18  ;;  %v10834_v21 = vsub.f32 %v184_v1, %v220_v19 }
 0x10e   :  { %v198_v22 = vpop.xlane.xlu0 %197  ;;  %v204_v23 = vpop.xlane.xlu1 %203 }
 0x10f   :  { %v219_v24 = vmul.f32 0.125, %v198_v22  ;;  %v221_v25 = vmul.f32 0.125, %v204_v23  ;;  %v234_v26 = vmul.f32 %v10832_v20, %v10832_v20  ;;  %v236_v27 = vmul.f32 %v10834_v21, %v10834_v21  ;;  %v8048_v22 = vld [vmem:[#allocation5] ss:$0 sm:$0xff] }
 0x111   :  { %v10840_v28 = vsub.f32 %v183_v2, %v219_v24  ;;  %v10842_v29 = vsub.f32 %v185_v5, %v221_v25  ;;  %v242_v30 = vsel %vm192_vm0, %v234_v26, 0.0  ;;  %v248_v33 = vsel %vm192_vm0, %v236_v27, 0.0 }
 0x112   :  { %243 = vadd.xlane.f32.xlu0 %v242_v30  ;;  %v207_v31 = vpop.xlane.xlu0 %206  ;;  %v210_v32 = vpop.xlane.xlu1 %209 }
 0x113   :  { %v222_v34 = vmul.f32 0.125, %v207_v31  ;;  %v223_v35 = vmul.f32 0.125, %v210_v32  ;;  %v235_v36 = vmul.f32 %v10840_v28, %v10840_v28  ;;  %v237_v37 = vmul.f32 %v10842_v29, %v10842_v29 }
 0x115   :  { %v10850_v38 = vsub.f32 %v186_v8, %v222_v34  ;;  %v10852_v39 = vsub.f32 %v187_v9, %v223_v35  ;;  %v245_v40 = vsel %vm192_vm0, %v235_v36, 0.0  ;;  %v251_v43 = vsel %vm192_vm0, %v237_v37, 0.0 }
 0x116   :  { %249 = vadd.xlane.f32.xlu0 %v248_v33  ;;  %246 = vadd.xlane.f32.xlu1 %v245_v40  ;;  %v213_v41 = vpop.xlane.xlu0 %212  ;;  %v216_v42 = vpop.xlane.xlu1 %215 }
 0x117   :  { %v224_v44 = vmul.f32 0.125, %v213_v41  ;;  %v225_v45 = vmul.f32 0.125, %v216_v42  ;;  %v238_v46 = vmul.f32 %v10850_v38, %v10850_v38  ;;  %v239_v47 = vmul.f32 %v10852_v39, %v10852_v39 }
 0x119   :  { %v10860_v48 = vsub.f32 %v188_v12, %v224_v44  ;;  %v10862_v49 = vsub.f32 %v189_v13, %v225_v45  ;;  %v254_v50 = vsel %vm192_vm0, %v238_v46, 0.0  ;;  %v257_v51 = vsel %vm192_vm0, %v239_v47, 0.0 }
 0x11a   :  { %252 = vadd.xlane.f32.xlu1 %v251_v43  ;;  %255 = vadd.xlane.f32.xlu0 %v254_v50 }
 0x11b   :  { %v240_v52 = vmul.f32 %v10860_v48, %v10860_v48  ;;  %v241_v53 = vmul.f32 %v10862_v49, %v10862_v49 }
 0x11d   :  { %v260_v54 = vsel %vm192_vm0, %v240_v52, 0.0  ;;  %v263_v55 = vsel %vm192_vm0, %v241_v53, 0.0 }
 0x11e   :  { %258 = vadd.xlane.f32.xlu1 %v257_v51  ;;  %261 = vadd.xlane.f32.xlu0 %v260_v54 }
 0x122   :  { %264 = vadd.xlane.f32.xlu1 %v263_v55 }
 0x19b   :  { %v244_v57 = vpop.xlane.xlu0 %243 }
 0x19c   :  { %v266_v58 = vmul.f32 0.125, %v244_v57 }
 0x19e   :  { %v274_v59 = vadd.f32 1e-05, %v266_v58 }
 0x19f   :  { %v247_v60 = vpop.xlane.xlu1 %246  ;;  %v250_v61 = vpop.xlane.xlu0 %249 }
 0x1a0   :  { %9942 = vrsqrt.f32 %v274_v59  ;;  %v267_v62 = vmul.f32 0.125, %v247_v60  ;;  %v268_v63 = vmul.f32 0.125, %v250_v61 }
 0x1a2   :  { %v275_v0 = vadd.f32 1e-05, %v267_v62  ;;  %v276_v1 = vadd.f32 1e-05, %v268_v63 }
 0x1a3   :  { %v253_v2 = vpop.xlane.xlu1 %252  ;;  %v256_v3 = vpop.xlane.xlu0 %255 }
 0x1a4   :  { %9944 = vrsqrt.f32 %v275_v0  ;;  %v269_v4 = vmul.f32 0.125, %v253_v2  ;;  %v270_v5 = vmul.f32 0.125, %v256_v3 }
 0x1a5   :  { %9946 = vrsqrt.f32 %v276_v1 }
 0x1a6   :  { %v277_v6 = vadd.f32 1e-05, %v269_v4  ;;  %v278_v7 = vadd.f32 1e-05, %v270_v5 }
 0x1a7   :  { %v259_v8 = vpop.xlane.xlu1 %258  ;;  %v262_v9 = vpop.xlane.xlu0 %261 }
 0x1a8   :  { %9948 = vrsqrt.f32 %v277_v6  ;;  %v271_v10 = vmul.f32 0.125, %v259_v8  ;;  %v272_v11 = vmul.f32 0.125, %v262_v9 }
 0x1a9   :  { %9950 = vrsqrt.f32 %v278_v7 }
 0x1aa   :  { %v279_v12 = vadd.f32 1e-05, %v271_v10  ;;  %v280_v13 = vadd.f32 1e-05, %v272_v11 }
 0x1ab   :  { %v265_v14 = vpop.xlane.xlu1 %264 }
 0x1ac   :  { %9952 = vrsqrt.f32 %v279_v12  ;;  %v273_v15 = vmul.f32 0.125, %v265_v14 }
 0x1ad   :  { %v9943_v16 = vpop.eup %9942  ;;  %9954 = vrsqrt.f32 %v280_v13 }
 0x1ae   :  { %v281_v18 = vadd.f32 1e-05, %v273_v15  ;;  %v290_v19 = vmul.f32 %v9943_v16, %v10832_v20 }
 0x1b0   :  { %9956 = vrsqrt.f32 %v281_v18  ;;  %v304_v23 = vmul.f32 %v8047_v17, %v290_v19 }
 0x1b1   :  { %v9945_v24 = vpop.eup %9944 }
 0x1b2   :  { %v9947_v25 = vpop.eup %9946  ;;  %v318_v26 = vadd.f32 %v8048_v22, %v304_v23  ;;  %v291_v27 = vmul.f32 %v9945_v24, %v10840_v28 }
 0x1b3   :  { %v292_v30 = vmul.f32 %v9947_v25, %v10834_v21 }
 0x1b4   :  { %8882 = vmatprep.mubr.msk.f32.mxu0 %vm192_vm0, %v318_v26  ;;  %v305_v31 = vmul.f32 %v8047_v17, %v291_v27 }
 0x1b5   :  { %v9949_v32 = vpop.eup %9948  ;;  %v306_v33 = vmul.f32 %v8047_v17, %v292_v30 }
 0x1b6   :  { %v9951_v34 = vpop.eup %9950  ;;  %v319_v35 = vadd.f32 %v8048_v22, %v305_v31  ;;  %v293_v36 = vmul.f32 %v9949_v32, %v10842_v29 }
 0x1b7   :  { %v320_v20 = vadd.f32 %v8048_v22, %v306_v33  ;;  %v294_v37 = vmul.f32 %v9951_v34, %v10850_v38 }
 0x1b8   :  { %8883 = vmatmul.mubr.msk.f32.vlgmr.msra.gmra.mxu0 %vm192_vm0, %v319_v35  ;;  %v307_v40 = vmul.f32 %v8047_v17, %v293_v36 }
 0x1b9   :  { %v9953_v41 = vpop.eup %9952  ;;  %8885 = vmatprep.mubr.msk.f32.mxu0 %vm192_vm0, %v320_v20  ;;  %v308_v28 = vmul.f32 %v8047_v17, %v294_v37 }
 0x1ba   :  { %v9955_v21 = vpop.eup %9954  ;;  %v321_v42 = vadd.f32 %v8048_v22, %v307_v40  ;;  %v295_v43 = vmul.f32 %v9953_v41, %v10852_v39 }
 0x1bb   :  { %v322_v44 = vadd.f32 %v8048_v22, %v308_v28  ;;  %v296_v45 = vmul.f32 %v9955_v21, %v10860_v48  ;;  %v8049_v48 = vld [vmem:[%s14414_s1] ss:$0 sm:$0xff] }
 0x1bc   :  { %8886 = vmatmul.mubr.msk.f32.gmra.mxu0 %vm192_vm0, %v321_v42  ;;  %v309_v29 = vmul.f32 %v8047_v17, %v295_v43 }
 0x1bd   :  { %v9957_v46 = vpop.eup %9956  ;;  %8888 = vmatprep.mubr.msk.f32.mxu0 %vm192_vm0, %v322_v44  ;;  %v310_v38 = vmul.f32 %v8047_v17, %v296_v45 }
 0x1be   :  { %v323_v47 = vadd.f32 %v8048_v22, %v309_v29  ;;  %v297_v50 = vmul.f32 %v9957_v46, %v10862_v49 }
 0x1bf   :  { %v324_v51 = vadd.f32 %v8048_v22, %v310_v38 }
 0x1c0   :  { %8889 = vmatmul.mubr.msk.f32.gmra.mxu0 %vm192_vm0, %v323_v47  ;;  %v311_v52 = vmul.f32 %v8047_v17, %v297_v50 }
 0x1c1   :  { %8891 = vmatprep.mubr.msk.f32.mxu0 %vm192_vm0, %v324_v51 }
 0x1c2   :  { %v325_v39 = vadd.f32 %v8048_v22, %v311_v52 }
 0x1c4   :  { %8892 = vmatmul.mubr.msk.f32.gmra.mxu0 %vm192_vm0, %v325_v39 }
 0x278   :  { %v8884_v53 = vpop.f32.mrf.mxu0 }
 0x279   :  { %v430_v54 = vadd.f32 %v8884_v53, %v8049_v48 }
 0x27a   :  { %v424_v55 = vpop.f32.mrf.mxu0 }
 0x27b   :  { %v425_v56 = vadd.f32 %v8049_v48, %v424_v55  ;;  %v469_v49 = vsel %vm465_vm1, %v430_v54, 0.0 }
 0x27c   :  { %470 = vadd.xlane.f32.xlu1 %v469_v49  ;;  %v8887_v57 = vpop.f32.mrf.mxu0 }
 0x27d   :  { %v440_v58 = vadd.f32 %v8887_v57, %v8049_v48  ;;  %v466_v59 = vsel %vm465_vm1, %v425_v56, 0.0 }
 0x27e   :  { %467 = vadd.xlane.f32.xlu0 %v466_v59  ;;  %v434_v60 = vpop.f32.mrf.mxu0 }
 0x27f   :  { %v435_v61 = vadd.f32 %v8049_v48, %v434_v60  ;;  %v475_v62 = vsel %vm465_vm1, %v440_v58, 0.0 }
 0x280   :  { %476 = vadd.xlane.f32.xlu1 %v475_v62  ;;  %v8890_v63 = vpop.f32.mrf.mxu0 }
 0x281   :  { %v450_v0 = vadd.f32 %v8890_v63, %v8049_v48  ;;  %v472_v1 = vsel %vm465_vm1, %v435_v61, 0.0 }
 0x282   :  { %473 = vadd.xlane.f32.xlu0 %v472_v1  ;;  %v444_v2 = vpop.f32.mrf.mxu0 }
 0x283   :  { %v445_v3 = vadd.f32 %v8049_v48, %v444_v2  ;;  %v481_v4 = vsel %vm465_vm1, %v450_v0, 0.0 }
 0x284   :  { %482 = vadd.xlane.f32.xlu1 %v481_v4  ;;  %v8893_v5 = vpop.f32.mrf.mxu0 }
 0x285   :  { %v460_v6 = vadd.f32 %v8893_v5, %v8049_v48  ;;  %v478_v7 = vsel %vm465_vm1, %v445_v3, 0.0 }
 0x286   :  { %479 = vadd.xlane.f32.xlu0 %v478_v7  ;;  %v454_v8 = vpop.f32.mrf.mxu0 }
 0x287   :  { %v455_v9 = vadd.f32 %v8049_v48, %v454_v8  ;;  %v487_v10 = vsel %vm465_vm1, %v460_v6, 0.0 }
 0x288   :  { %488 = vadd.xlane.f32.xlu1 %v487_v10 }
 0x289   :  { %v484_v11 = vsel %vm465_vm1, %v455_v9, 0.0 }
 0x28a   :  { %485 = vadd.xlane.f32.xlu0 %v484_v11 }
 0x305   :  { %v471_v12 = vpop.xlane.xlu1 %470 }
 0x306   :  { %v492_v13 = vmul.f32 0.015625, %v471_v12 }
 0x307   :  { %v468_v14 = vpop.xlane.xlu0 %467 }
 0x308   :  { %v10902_v15 = vsub.f32 %v430_v54, %v492_v13  ;;  %v491_v16 = vmul.f32 0.015625, %v468_v14  ;;  %v8058_v13 = vld [vmem:[#allocation7] ss:$0 sm:$0xff] }
 0x309   :  { %v477_v17 = vpop.xlane.xlu1 %476 }
 0x30a   :  { %v10904_v18 = vsub.f32 %v425_v56, %v491_v16  ;;  %v494_v19 = vmul.f32 0.015625, %v477_v17  ;;  %v508_v22 = vmul.f32 %v10902_v15, %v10902_v15  ;;  %v8059_v17 = vld [vmem:[#allocation8] ss:$0 sm:$0xff] }
 0x30b   :  { %v474_v23 = vpop.xlane.xlu0 %473 }
 0x30c   :  { %v10908_v24 = vsub.f32 %v440_v58, %v494_v19  ;;  %v493_v25 = vmul.f32 0.015625, %v474_v23  ;;  %v518_v26 = vsel %vm465_vm1, %v508_v22, 0.0  ;;  %v507_v27 = vmul.f32 %v10904_v18, %v10904_v18 }
 0x30d   :  { %v483_v30 = vpop.xlane.xlu1 %482  ;;  %519 = vadd.xlane.f32.xlu1 %v518_v26 }
 0x30e   :  { %v10913_v31 = vsub.f32 %v435_v61, %v493_v25  ;;  %v496_v32 = vmul.f32 0.015625, %v483_v30  ;;  %v515_v33 = vsel %vm465_vm1, %v507_v27, 0.0  ;;  %v510_v34 = vmul.f32 %v10908_v24, %v10908_v24  ;;  %v600_v25 = vld [vmem:[%s14415_s21 + $0x8] sm:$0xff] }
 0x30f   :  { %516 = vadd.xlane.f32.xlu0 %v515_v33  ;;  %v480_v35 = vpop.xlane.xlu0 %479  ;;  %v599_v33 = vld [vmem:[%s14415_s21] sm:$0xff] }
 0x310   :  { %v10918_v36 = vsub.f32 %v450_v0, %v496_v32  ;;  %v495_v20 = vmul.f32 0.015625, %v480_v35  ;;  %v524_v37 = vsel %vm465_vm1, %v510_v34, 0.0  ;;  %v509_v40 = vmul.f32 %v10913_v31, %v10913_v31 }
 0x311   :  { %525 = vadd.xlane.f32.xlu1 %v524_v37  ;;  %v489_v41 = vpop.xlane.xlu1 %488  ;;  %v602_v37 = vld [vmem:[%s14415_s21 + $0x18] sm:$0xff] }
 0x312   :  { %v10923_v28 = vsub.f32 %v445_v3, %v495_v20  ;;  %v498_v21 = vmul.f32 0.015625, %v489_v41  ;;  %v521_v42 = vsel %vm465_vm1, %v509_v40, 0.0  ;;  %v512_v43 = vmul.f32 %v10918_v36, %v10918_v36 }
 0x313   :  { %522 = vadd.xlane.f32.xlu0 %v521_v42  ;;  %v486_v44 = vpop.xlane.xlu0 %485 }
 0x314   :  { %v10928_v45 = vsub.f32 %v460_v6, %v498_v21  ;;  %v497_v29 = vmul.f32 0.015625, %v486_v44  ;;  %v530_v46 = vsel %vm465_vm1, %v512_v43, 0.0  ;;  %v511_v38 = vmul.f32 %v10923_v28, %v10923_v28  ;;  %v601_v43 = vld [vmem:[%s14415_s21 + $0x10] sm:$0xff] }
 0x315   :  { %531 = vadd.xlane.f32.xlu1 %v530_v46 }
 0x316   :  { %v10933_v47 = vsub.f32 %v455_v9, %v497_v29  ;;  %v527_v50 = vsel %vm465_vm1, %v511_v38, 0.0  ;;  %v514_v51 = vmul.f32 %v10928_v45, %v10928_v45 }
 0x317   :  { %528 = vadd.xlane.f32.xlu0 %v527_v50 }
 0x318   :  { %v536_v52 = vsel %vm465_vm1, %v514_v51, 0.0  ;;  %v513_v39 = vmul.f32 %v10933_v47, %v10933_v47 }
 0x319   :  { %537 = vadd.xlane.f32.xlu1 %v536_v52 }
 0x31a   :  { %v533_v48 = vsel %vm465_vm1, %v513_v39, 0.0 }
 0x31b   :  { %534 = vadd.xlane.f32.xlu0 %v533_v48 }
 0x396   :  { %v520_v53 = vpop.xlane.xlu1 %519 }
 0x397   :  { %v540_v54 = vmul.f32 0.015625, %v520_v53 }
 0x398   :  { %v517_v55 = vpop.xlane.xlu0 %516 }
 0x399   :  { %v548_v56 = vadd.f32 1e-05, %v540_v54  ;;  %v539_v49 = vmul.f32 0.015625, %v517_v55  ;;  %v603_v54 = vld [vmem:[%s14415_s21 + $0x20] sm:$0xff] }
 0x39a   :  { %v526_v57 = vpop.xlane.xlu1 %525 }
 0x39b   :  { %9958 = vrsqrt.f32 %v548_v56  ;;  %v547_v58 = vadd.f32 1e-05, %v539_v49  ;;  %v542_v59 = vmul.f32 0.015625, %v526_v57 }
 0x39c   :  { %v523_v60 = vpop.xlane.xlu0 %522 }
 0x39d   :  { %9960 = vrsqrt.f32 %v547_v58  ;;  %v550_v61 = vadd.f32 1e-05, %v542_v59  ;;  %v541_v62 = vmul.f32 0.015625, %v523_v60  ;;  %v626_v58 = vsel %vm465_vm1, %v603_v54, 0.0 }
 0x39e   :  { %v532_v63 = vpop.xlane.xlu1 %531 }
 0x39f   :  { %9962 = vrsqrt.f32 %v550_v61  ;;  %v549_v0 = vadd.f32 1e-05, %v541_v62  ;;  %v544_v1 = vmul.f32 0.015625, %v532_v63 }
 0x3a0   :  { %v529_v2 = vpop.xlane.xlu0 %528 }
 0x3a1   :  { %9964 = vrsqrt.f32 %v549_v0  ;;  %v552_v3 = vadd.f32 1e-05, %v544_v1  ;;  %v543_v4 = vmul.f32 0.015625, %v529_v2 }
 0x3a2   :  { %v538_v5 = vpop.xlane.xlu1 %537 }
 0x3a3   :  { %9966 = vrsqrt.f32 %v552_v3  ;;  %v551_v6 = vadd.f32 1e-05, %v543_v4  ;;  %v546_v7 = vmul.f32 0.015625, %v538_v5 }
 0x3a4   :  { %v535_v8 = vpop.xlane.xlu0 %534 }
 0x3a5   :  { %9968 = vrsqrt.f32 %v551_v6  ;;  %v554_v9 = vadd.f32 1e-05, %v546_v7  ;;  %v545_v10 = vmul.f32 0.015625, %v535_v8 }
 0x3a7   :  { %9970 = vrsqrt.f32 %v554_v9  ;;  %v553_v11 = vadd.f32 1e-05, %v545_v10 }
 0x3a8   :  { %v9959_v12 = vpop.eup %9958 }
 0x3a9   :  { %9972 = vrsqrt.f32 %v553_v11  ;;  %v564_v14 = vmul.f32 %v9959_v12, %v10902_v15 }
 0x3aa   :  { %v9961_v16 = vpop.eup %9960 }
 0x3ab   :  { %v578_v19 = vmul.f32 %v8058_v13, %v564_v14  ;;  %v563_v22 = vmul.f32 %v9961_v16, %v10904_v18 }
 0x3ac   :  { %v9963_v23 = vpop.eup %9962 }
 0x3ad   :  { %v592_v26 = vadd.f32 %v8059_v17, %v578_v19  ;;  %v577_v27 = vmul.f32 %v8058_v13, %v563_v22  ;;  %v566_v30 = vmul.f32 %v9963_v23, %v10908_v24 }
 0x3ae   :  { %v9965_v32 = vpop.eup %9964 }
 0x3af   :  { %v10951_v15 = vadd.f32 %v600_v25, %v592_v26  ;;  %v591_v34 = vadd.f32 %v8059_v17, %v577_v27  ;;  %v580_v35 = vmul.f32 %v8058_v13, %v566_v30  ;;  %v565_v18 = vmul.f32 %v9965_v32, %v10913_v31 }
 0x3b0   :  { %v9967_v20 = vpop.eup %9966 }
 0x3b1   :  { %14416 = vst [vmem:[#allocation24_spill] sm:$0xff] %v10951_v15  ;;  %v617_v40 = vsel %vm465_vm1, %v10951_v15, 0.0  ;;  %v10959_v24 = vadd.f32 %v599_v33, %v591_v34  ;;  %v594_v41 = vadd.f32 %v8059_v17, %v580_v35  ;;  %v579_v21 = vmul.f32 %v8058_v13, %v565_v18 }
 0x3b2   :  { %v9969_v42 = vpop.eup %9968  ;;  %618 = vadd.xlane.f32.xlu1 %v617_v40  ;;  %v568_v31 = vmul.f32 %v9967_v20, %v10918_v36 }
 0x3b3   :  { %14417 = vst [vmem:[#allocation25_spill] sm:$0xff] %v10959_v24  ;;  %v614_v44 = vsel %vm465_vm1, %v10959_v24, 0.0  ;;  %v10967_v29 = vadd.f32 %v602_v37, %v594_v41  ;;  %v593_v46 = vadd.f32 %v8059_v17, %v579_v21  ;;  %v567_v38 = vmul.f32 %v9969_v42, %v10923_v28 }
 0x3b4   :  { %v9971_v50 = vpop.eup %9970  ;;  %615 = vadd.xlane.f32.xlu0 %v614_v44  ;;  %v582_v51 = vmul.f32 %v8058_v13, %v568_v31 }
 0x3b5   :  { %14418 = vst [vmem:[#allocation26_spill] sm:$0xff] %v10967_v29  ;;  %v623_v52 = vsel %vm465_vm1, %v10967_v29, 0.0  ;;  %v10972_v39 = vadd.f32 %v601_v43, %v593_v46  ;;  %v581_v48 = vmul.f32 %v8058_v13, %v567_v38  ;;  %v570_v53 = vmul.f32 %v9971_v50, %v10928_v45 }
 0x3b6   :  { %v9973_v36 = vpop.eup %9972  ;;  %624 = vadd.xlane.f32.xlu1 %v623_v52  ;;  %v596_v55 = vadd.f32 %v8059_v17, %v582_v51 }
 0x3b7   :  { %14419 = vst [vmem:[#allocation27_spill] sm:$0xff] %v10972_v39  ;;  %v620_v28 = vsel %vm465_vm1, %v10972_v39, 0.0  ;;  %v595_v56 = vadd.f32 %v8059_v17, %v581_v48  ;;  %v569_v49 = vmul.f32 %v9973_v36, %v10933_v47  ;;  %v584_v57 = vmul.f32 %v8058_v13, %v570_v53 }
 0x3b8   :  { %621 = vadd.xlane.f32.xlu0 %v620_v28  ;;  %v10986_v61 = vadd.f32 %v600_v25, %v596_v55 }
 0x3b9   :  { %v10982_v59 = vadd.f32 %v599_v33, %v595_v56  ;;  %v583_v45 = vmul.f32 %v8058_v13, %v569_v49  ;;  %v598_v63 = vadd.f32 %v8059_v17, %v584_v57  ;;  %v776_v56 = vld [vmem:[%s14363_s10 + $0x78] sm:$0xff]  ;;  %v775_v49 = vld [vmem:[%s14363_s10 + $0x70] sm:$0xff]  ;;  %v774_v57 = vld [vmem:[%s14363_s10 + $0x68] sm:$0xff] }
 0x3ba   :  { %14421 = vst [vmem:[#allocation29_spill] sm:$0xff] %v10986_v61  ;;  %v632_v47 = vsel %vm465_vm1, %v10986_v61, 0.0  ;;  %832 = vmatprep.subr.mxu1 %v776_v56 }
 0x3bb   :  { %14420 = vst [vmem:[#allocation28_spill] sm:$0xff] %v10982_v59  ;;  %v629_v60 = vsel %vm465_vm1, %v10982_v59, 0.0  ;;  %v597_v62 = vadd.f32 %v8059_v17, %v583_v45  ;;  %v10994_v2 = vadd.f32 %v602_v37, %v598_v63  ;;  %833 = vmatpush1.msra.mxu1 %v775_v49  ;;  %v772_v45 = vld [vmem:[%s14363_s10 + $0x58] sm:$0xff]  ;;  %v769_v63 = vld [vmem:[%s14363_s10 + $0x40] sm:$0xff] }
 0x3bc   :  { %627 = vadd.xlane.f32.xlu0 %v626_v58  ;;  %630 = vadd.xlane.f32.xlu1 %v629_v60  ;;  %v773_v58 = vld [vmem:[%s14363_s10 + $0x60] sm:$0xff]  ;;  %v771_v60 = vld [vmem:[%s14363_s10 + $0x50] sm:$0xff] }
 0x3bd   :  { %v10988_v0 = vadd.f32 %v601_v43, %v597_v62  ;;  %14423 = vst [vmem:[#allocation31_spill] sm:$0xff] %v10994_v2  ;;  %v638_v3 = vsel %vm465_vm1, %v10994_v2, 0.0  ;;  %834 = vmatprep.subr.mxu1 %v774_v57  ;;  %v770_v62 = vld [vmem:[%s14363_s10 + $0x48] sm:$0xff]  ;;  %v8061_v57 = vld [vmem:[%s14362_s9] ss:$0 sm:$0xff] }
 0x3be   :  { %835 = vmatpush1.msra.mxu1 %v773_v58 }
 0x3bf   :  { %14422 = vst [vmem:[#allocation30_spill] sm:$0xff] %v10988_v0  ;;  %v635_v1 = vsel %vm465_vm1, %v10988_v0, 0.0  ;;  %836 = vmatprep.subr.mxu1 %v772_v45 }
 0x3c0   :  { %633 = vadd.xlane.f32.xlu0 %v632_v47  ;;  %636 = vadd.xlane.f32.xlu1 %v635_v1  ;;  %v768_v47 = vld [vmem:[%s14363_s10 + $0x38] sm:$0xff]  ;;  %v767_v1 = vld [vmem:[%s14363_s10 + $0x30] sm:$0xff] }
 0x3c1   :  { %837 = vmatpush1.msra.mxu1 %v771_v60 }
 0x3c2   :  { %838 = vmatprep.subr.mxu1 %v770_v62 }
 0x3c3   :  { %839 = vmatpush1.msra.mxu1 %v769_v63 }
 0x3c4   :  { %639 = vadd.xlane.f32.xlu0 %v638_v3  ;;  %840 = vmatprep.subr.mxu1 %v768_v47  ;;  %v766_v3 = vld [vmem:[%s14363_s10 + $0x28] sm:$0xff] }
 0x3c5   :  { %841 = vmatpush1.msra.mxu1 %v767_v1 }
 0x3c6   :  { %842 = vmatprep.subr.mxu1 %v766_v3 }
 0x43b   :  { %v619_v4 = vpop.xlane.xlu1 %618 }
 0x43c   :  { %v642_v5 = vmul.f32 0.015625, %v619_v4  ;;  %v765_v4 = vld [vmem:[%s14363_s10 + $0x20] sm:$0xff] }
 0x43d   :  { %v616_v6 = vpop.xlane.xlu0 %615  ;;  %843 = vmatpush1.msra.mxu1 %v765_v4 }
 0x43e   :  { %v10999_v7 = vsub.f32 %v10951_v15, %v642_v5  ;;  %v641_v8 = vmul.f32 0.015625, %v616_v6  ;;  %v764_v5 = vld [vmem:[%s14363_s10 + $0x18] sm:$0xff]  ;;  %v763_v6 = vld [vmem:[%s14363_s10 + $0x10] sm:$0xff] }
 0x43f   :  { %v625_v9 = vpop.xlane.xlu1 %624  ;;  %844 = vmatprep.subr.mxu1 %v764_v5 }
 0x440   :  { %v11002_v10 = vsub.f32 %v10959_v24, %v641_v8  ;;  %v644_v11 = vmul.f32 0.015625, %v625_v9  ;;  %v660_v12 = vmul.f32 %v10999_v7, %v10999_v7  ;;  %v762_v8 = vld [vmem:[%s14363_s10 + $0x8] sm:$0xff]  ;;  %v761_v9 = vld [vmem:[%s14363_s10] sm:$0xff]  ;;  %845 = vmatpush1.msra.mxu1 %v763_v6 }
 0x441   :  { %v622_v13 = vpop.xlane.xlu0 %621  ;;  %846 = vmatprep.subr.mxu1 %v762_v8 }
 0x442   :  { %v11007_v14 = vsub.f32 %v10967_v29, %v644_v11  ;;  %v643_v16 = vmul.f32 0.015625, %v622_v13  ;;  %v671_v17 = vsel %vm465_vm1, %v660_v12, 0.0  ;;  %v659_v19 = vmul.f32 %v11002_v10, %v11002_v10  ;;  %847 = vmatpush1.msra.mxu1 %v761_v9 }
 0x443   :  { %672 = vadd.xlane.f32.xlu0 %v671_v17  ;;  %v14380_v11 = vmov 0.0  }
 0x444   :  { %v11013_v22 = vsub.f32 %v10972_v39, %v643_v16  ;;  %v668_v23 = vsel %vm465_vm1, %v659_v19, 0.0  ;;  %v662_v25 = vmul.f32 %v11007_v14, %v11007_v14  ;;  %880 = vmatprep.mubr.f32.mxu1 %v14380_v11  ;;  %8894 = vmatprep.subr.mxu0 %v14380_v11 }
 0x445   :  { %v631_v26 = vpop.xlane.xlu1 %630  ;;  %669 = vadd.xlane.f32.xlu1 %v668_v23  ;;  %v628_v27 = vpop.xlane.xlu0 %627  ;;  %8944 = vmatprep.subr.mxu1 %v14380_v11 }
 0x446   :  { %v646_v30 = vmul.f32 0.015625, %v631_v26  ;;  %v645_v32 = vmul.f32 0.015625, %v628_v27  ;;  %v677_v33 = vsel %vm465_vm1, %v662_v25, 0.0  ;;  %v661_v34 = vmul.f32 %v11013_v22, %v11013_v22  ;;  %8904 = vmatprep.mubr.msk.f32.mxu0 %vm10642_vm2, %v14380_v11 }
 0x447   :  { %678 = vadd.xlane.f32.xlu0 %v677_v33 }
 0x448   :  { %v11022_v35 = vsub.f32 %v10982_v59, %v646_v30  ;;  %v11024_v18 = vsub.f32 %v603_v54, %v645_v32  ;;  %v674_v20 = vsel %vm465_vm1, %v661_v34, 0.0 }
 0x449   :  { %v637_v37 = vpop.xlane.xlu1 %636  ;;  %675 = vadd.xlane.f32.xlu1 %v674_v20  ;;  %v634_v40 = vpop.xlane.xlu0 %633 }
 0x44a   :  { %v648_v41 = vmul.f32 0.015625, %v637_v37  ;;  %v647_v21 = vmul.f32 0.015625, %v634_v40  ;;  %v664_v42 = vmul.f32 %v11022_v35, %v11022_v35  ;;  %v663_v43 = vmul.f32 %v11024_v18, %v11024_v18 }
 0x44c   :  { %v11032_v31 = vsub.f32 %v10988_v0, %v648_v41  ;;  %v11035_v44 = vsub.f32 %v10986_v61, %v647_v21  ;;  %v683_v46 = vsel %vm465_vm1, %v664_v42, 0.0  ;;  %v680_v38 = vsel %vm465_vm1, %v663_v43, 0.0 }
 0x44d   :  { %684 = vadd.xlane.f32.xlu0 %v683_v46  ;;  %681 = vadd.xlane.f32.xlu1 %v680_v38  ;;  %v640_v50 = vpop.xlane.xlu0 %639 }
 0x44e   :  { %v649_v51 = vmul.f32 0.015625, %v640_v50  ;;  %v666_v52 = vmul.f32 %v11032_v31, %v11032_v31  ;;  %v665_v48 = vmul.f32 %v11035_v44, %v11035_v44 }
 0x450   :  { %v11044_v53 = vsub.f32 %v10994_v2, %v649_v51  ;;  %v689_v36 = vsel %vm465_vm1, %v666_v52, 0.0  ;;  %v686_v54 = vsel %vm465_vm1, %v665_v48, 0.0 }
 0x451   :  { %690 = vadd.xlane.f32.xlu0 %v689_v36  ;;  %687 = vadd.xlane.f32.xlu1 %v686_v54 }
 0x452   :  { %v667_v55 = vmul.f32 %v11044_v53, %v11044_v53 }
 0x454   :  { %v692_v28 = vsel %vm465_vm1, %v667_v55, 0.0  ;;  %v8060_v55 = vld [vmem:[%s14361_s8] ss:$0 sm:$0xff] }
 0x455   :  { %693 = vadd.xlane.f32.xlu1 %v692_v28 }
 0x4cc   :  { %v673_v12 = vpop.xlane.xlu0 %672 }
 0x4cd   :  { %v696_v13 = vmul.f32 0.015625, %v673_v12 }
 0x4ce   :  { %v670_v16 = vpop.xlane.xlu1 %669 }
 0x4cf   :  { %v705_v17 = vadd.f32 1e-05, %v696_v13  ;;  %v695_v19 = vmul.f32 0.015625, %v670_v16 }
 0x4d0   :  { %v679_v23 = vpop.xlane.xlu0 %678 }
 0x4d1   :  { %9974 = vrsqrt.f32 %v705_v17  ;;  %v704_v25 = vadd.f32 1e-05, %v695_v19  ;;  %v698_v26 = vmul.f32 0.015625, %v679_v23 }
 0x4d2   :  { %v676_v27 = vpop.xlane.xlu1 %675 }
 0x4d3   :  { %9976 = vrsqrt.f32 %v704_v25  ;;  %v697_v30 = vmul.f32 0.015625, %v676_v27  ;;  %v707_v32 = vadd.f32 1e-05, %v698_v26 }
 0x4d5   :  { %v706_v33 = vadd.f32 1e-05, %v697_v30 }
 0x4d6   :  { %v682_v34 = vpop.xlane.xlu1 %681  ;;  %v685_v20 = vpop.xlane.xlu0 %684 }
 0x4d7   :  { %9978 = vrsqrt.f32 %v706_v33  ;;  %v699_v37 = vmul.f32 0.015625, %v682_v34  ;;  %v700_v41 = vmul.f32 0.015625, %v685_v20  ;;  %v779_v33 = vlaneseq }
 0x4d8   :  { %9980 = vrsqrt.f32 %v707_v32 }
 0x4d9   :  { %v708_v40 = vadd.f32 1e-05, %v699_v37  ;;  %v709_v43 = vadd.f32 1e-05, %v700_v41  ;;  %v11136_v20 = vshrl.u32 %v779_v33, 7 }
 0x4da   :  { %v688_v21 = vpop.xlane.xlu1 %687  ;;  %v691_v46 = vpop.xlane.xlu0 %690 }
 0x4db   :  { %v701_v42 = vmul.f32 0.015625, %v688_v21  ;;  %9982 = vrsqrt.f32 %v708_v40  ;;  %v702_v52 = vmul.f32 0.015625, %v691_v46  ;;  %14424 = vst [vmem:[#allocation32_spill] sm:$0xff] %v11136_v20  ;;  %v14378_v41 = vsub.s32 0, %v11136_v20  ;;  %v777_v21 = vld [vmem:[%s14364_s11] sm:$0x3] }
 0x4dc   :  { %9984 = vrsqrt.f32 %v709_v43 }
 0x4dd   :  { %v710_v51 = vadd.f32 1e-05, %v701_v42  ;;  %v711_v49 = vadd.f32 1e-05, %v702_v52  ;;  %v782_v46 = vrot.slane %v777_v21, %v14378_v41 }
 0x4de   :  { %v9975_v38 = vpop.eup %9974  ;;  %v694_v54 = vpop.xlane.xlu1 %693 }
 0x4df   :  { %v723_v36 = vmul.f32 %v9975_v38, %v10999_v7  ;;  %9986 = vrsqrt.f32 %v710_v51  ;;  %v703_v58 = vmul.f32 0.015625, %v694_v54 }
 0x4e0   :  { %v9977_v50 = vpop.eup %9976  ;;  %9988 = vrsqrt.f32 %v711_v49 }
 0x4e1   :  { %v722_v48 = vmul.f32 %v9977_v50, %v11002_v10  ;;  %v738_v60 = vmul.f32 %v8060_v55, %v723_v36  ;;  %v712_v7 = vadd.f32 1e-05, %v703_v58  ;;  %v14379_v50 = vsub.s32 1, %v11136_v20 }
 0x4e3   :  { %v737_v28 = vmul.f32 %v8060_v55, %v722_v48  ;;  %v753_v63 = vadd.f32 %v8061_v57, %v738_v60  ;;  %9990 = vrsqrt.f32 %v712_v7  ;;  %v11151_v36 = vrot.slane %v777_v21, %v14379_v50 }
 0x4e4   :  { %v9979_v56 = vpop.eup %9978 }
 0x4e5   :  { %v752_v45 = vadd.f32 %v8061_v57, %v737_v28  ;;  %v724_v10 = vmul.f32 %v9979_v56, %v11013_v22  ;;  %v9981_v62 = vpop.eup %9980 }
 0x4e6   :  { %v725_v1 = vmul.f32 %v9981_v62, %v11007_v14 }
 0x4e7   :  { %8062 = vmatmul.mubr.msk.f32.vlgmr.msra.gmra.mxu1 %vm465_vm1, %v752_v45  ;;  %v739_v47 = vmul.f32 %v8060_v55, %v724_v10 }
 0x4e8   :  { %886 = vmatprep.mubr.f32.mxu1 %v14380_v11  ;;  %v9983_v3 = vpop.eup %9982  ;;  %v740_v5 = vmul.f32 %v8060_v55, %v725_v1 }
 0x4e9   :  { %v754_v4 = vadd.f32 %v8061_v57, %v739_v47  ;;  %v726_v22 = vmul.f32 %v9983_v3, %v11024_v18  ;;  %v9985_v6 = vpop.eup %9984 }
 0x4ea   :  { %v755_v9 = vadd.f32 %v8061_v57, %v740_v5  ;;  %v727_v14 = vmul.f32 %v9985_v6, %v11022_v35 }
 0x4eb   :  { %8063 = vmatmul.mubr.msk.f32.gmra.mxu1 %vm465_vm1, %v753_v63  ;;  %v741_v12 = vmul.f32 %v8060_v55, %v726_v22 }
 0x4ec   :  { %892 = vmatprep.mubr.f32.mxu1 %v14380_v11  ;;  %v9987_v8 = vpop.eup %9986  ;;  %v742_v17 = vmul.f32 %v8060_v55, %v727_v14 }
 0x4ed   :  { %v9989_v13 = vpop.eup %9988  ;;  %v756_v16 = vadd.f32 %v8061_v57, %v741_v12  ;;  %v728_v19 = vmul.f32 %v9987_v8, %v11035_v44 }
 0x4ee   :  { %v757_v18 = vadd.f32 %v8061_v57, %v742_v17  ;;  %v729_v25 = vmul.f32 %v9989_v13, %v11032_v31 }
 0x4ef   :  { %8064 = vmatmul.mubr.msk.f32.gmra.mxu1 %vm465_vm1, %v754_v4  ;;  %v743_v23 = vmul.f32 %v8060_v55, %v728_v19 }
 0x4f0   :  { %898 = vmatprep.mubr.f32.mxu1 %v14380_v11  ;;  %v9991_v26 = vpop.eup %9990  ;;  %v744_v27 = vmul.f32 %v8060_v55, %v729_v25 }
 0x4f1   :  { %v758_v35 = vadd.f32 %v8061_v57, %v743_v23  ;;  %v730_v30 = vmul.f32 %v9991_v26, %v11044_v53 }
 0x4f2   :  { %v759_v44 = vadd.f32 %v8061_v57, %v744_v27 }
 0x4f3   :  { %8065 = vmatmul.mubr.msk.f32.gmra.mxu1 %vm465_vm1, %v755_v9  ;;  %v745_v32 = vmul.f32 %v8060_v55, %v730_v30 }
 0x4f4   :  { %904 = vmatprep.mubr.f32.mxu1 %v14380_v11 }
 0x4f5   :  { %v760_v31 = vadd.f32 %v8061_v57, %v745_v32 }
 0x4f7   :  { %8066 = vmatmul.mubr.msk.f32.gmra.mxu1 %vm465_vm1, %v756_v16 }
 0x4f8   :  { %910 = vmatprep.mubr.f32.mxu1 %v14380_v11 }
 0x4fb   :  { %8067 = vmatmul.mubr.msk.f32.gmra.mxu1 %vm465_vm1, %v757_v18 }
 0x4fc   :  { %916 = vmatprep.mubr.f32.mxu1 %v14380_v11 }
 0x4ff   :  { %8068 = vmatmul.mubr.msk.f32.gmra.mxu1 %vm465_vm1, %v758_v35 }
 0x500   :  { %922 = vmatprep.mubr.f32.mxu1 %v14380_v11 }
 0x503   :  { %8069 = vmatmul.mubr.msk.f32.gmra.mxu1 %vm465_vm1, %v759_v44 }
 0x504   :  { %928 = vmatprep.mubr.f32.mxu1 %v14380_v11 }
 0x507   :  { %8070 = vmatmul.mubr.msk.f32.gmra.mxu1 %vm465_vm1, %v760_v31 }
 0x508   :  { %934 = vmatprep.mubr.f32.mxu1 %v14380_v11 }
 0x50b   :  { %8071 = vmatmul.mubr.msk.f32.gmra.mxu1 %vm465_vm1, %v756_v16 }
 0x50c   :  { %8954 = vmatprep.mubr.msk.f32.mxu1 %vm10642_vm2, %v14380_v11 }
 0x5a7   :  { %v882_v34 = vpop.f32.mrf.mxu1 }
 0x5a8   :  { %v11164_v57 = vadd.f32 %v882_v34, %v782_v46 }
 0x5a9   :  { %v884_v53 = vpop.f32.mrf.mxu1 }
 0x5aa   :  { %v11196_v47 = vadd.f32 %v884_v53, %v11151_v36 }
 0x5ab   :  { %v888_v37 = vpop.f32.mrf.mxu1 }
 0x5ac   :  { %v11170_v45 = vadd.f32 %v888_v37, %v782_v46 }
 0x5ad   :  { %v890_v40 = vpop.f32.mrf.mxu1 }
 0x5ae   :  { %v11185_v7 = vadd.f32 %v890_v40, %v11151_v36 }
 0x5af   :  { %v894_v42 = vpop.f32.mrf.mxu1 }
 0x5b0   :  { %v11153_v54 = vadd.f32 %v894_v42, %v782_v46 }
 0x5b1   :  { %v896_v43 = vpop.f32.mrf.mxu1 }
 0x5b2   :  { %v11176_v10 = vadd.f32 %v896_v43, %v11151_v36 }
 0x5b3   :  { %v900_v38 = vpop.f32.mrf.mxu1 }
 0x5b4   :  { %v11145_v51 = vadd.f32 %v900_v38, %v782_v46 }
 0x5b5   :  { %v902_v52 = vpop.f32.mrf.mxu1 }
 0x5b6   :  { %952 = vrot.lane.b32.xlu1 %v11145_v51, %s10641_s23  ;;  %v11167_v58 = vadd.f32 %v902_v52, %v11151_v36 }
 0x5b7   :  { %v906_v48 = vpop.f32.mrf.mxu1 }
 0x5b8   :  { %v11155_v55 = vadd.f32 %v906_v48, %v782_v46 }
 0x5b9   :  { %v908_v28 = vpop.f32.mrf.mxu1 }
 0x5ba   :  { %v11158_v56 = vadd.f32 %v908_v28, %v11151_v36  ;;  %954 = vrot.lane.b32.xlu0 %v11155_v55, %s10641_s23  ;;  %950 = vrot.lane.b32.xlu1 %v11153_v54, %s10641_s23 }
 0x5bb   :  { %v912_v49 = vpop.f32.mrf.mxu1 }
 0x5bc   :  { %8945 = vmatpush3.msra.mxu1 %v11158_v56  ;;  %v11220_v14 = vadd.f32 %v912_v49, %v782_v46 }
 0x5bd   :  { %v11172_v60 = vpop.f32.mrf.mxu1  ;;  %8946 = vmatprep.subr.mxu1 %v14380_v11 }
 0x5be   :  { %946 = vrot.lane.b32.xlu0 %v11164_v57, %s10641_s23  ;;  %8947 = vmatpush3.msra.mxu1 %v11167_v58  ;;  %v11294_v34 = vadd.f32 %v11172_v60, %v11151_v36 }
 0x5bf   :  { %948 = vrot.lane.b32.xlu1 %v11170_v45, %s10641_s23  ;;  %v918_v62 = vpop.f32.mrf.mxu1  ;;  %8948 = vmatprep.subr.mxu1 %v14380_v11 }
 0x5c0   :  { %8949 = vmatpush3.msra.mxu1 %v11176_v10  ;;  %v11208_v8 = vadd.f32 %v918_v62, %v782_v46 }
 0x5c1   :  { %v11190_v63 = vpop.f32.mrf.mxu1  ;;  %8950 = vmatprep.subr.mxu1 %v14380_v11 }
 0x5c2   :  { %8951 = vmatpush3.msra.mxu1 %v11185_v7  ;;  %v11286_v33 = vadd.f32 %v11190_v63, %v11151_v36 }
 0x5c3   :  { %v924_v1 = vpop.f32.mrf.mxu1  ;;  %8952 = vmatprep.subr.mxu1 %v14380_v11 }
 0x5c4   :  { %8953 = vmatpush3.msra.mxu1 %v11196_v47  ;;  %v11216_v12 = vadd.f32 %v924_v1, %v782_v46 }
 0x5c5   :  { %v11201_v3 = vpop.f32.mrf.mxu1  ;;  %8994 = vmatprep.subr.mxu1 %v14380_v11 }
 0x5c6   :  { %v11278_v31 = vadd.f32 %v11201_v3, %v11151_v36 }
 0x5c7   :  { %v930_v4 = vpop.f32.mrf.mxu1 }
 0x5c8   :  { %v11204_v5 = vadd.f32 %v930_v4, %v782_v46 }
 0x5c9   :  { %v932_v22 = vpop.f32.mrf.mxu1 }
 0x5ca   :  { %1078 = vrot.lane.b32.xlu0 %v11204_v5, %s10641_s23  ;;  %v11270_v32 = vadd.f32 %v932_v22, %v11151_v36 }
 0x5cb   :  { %v936_v6 = vpop.f32.mrf.mxu1 }
 0x5cc   :  { %v11210_v9 = vadd.f32 %v936_v6, %v782_v46 }
 0x5cd   :  { %v938_v27 = vpop.f32.mrf.mxu1 }
 0x5ce   :  { %1080 = vrot.lane.b32.xlu1 %v11210_v9, %s10641_s23  ;;  %1074 = vrot.lane.b32.xlu0 %v11208_v8, %s10641_s23  ;;  %v11265_v44 = vadd.f32 %v938_v27, %v11151_v36 }
 0x5d2   :  { %1076 = vrot.lane.b32.xlu1 %v11216_v12, %s10641_s23 }
 0x5d6   :  { %1072 = vrot.lane.b32.xlu1 %v11220_v14, %s10641_s23 }
 0x628   :  { %v953_v13 = vpop.permute.xlu1 %952 }
 0x62c   :  { %v955_v16 = vpop.permute.xlu0 %954  ;;  %v951_v17 = vpop.permute.xlu1 %950 }
 0x62d   :  { %8895 = vmatpush3.xpose.msk.msra.mxu0 %vm956_vm3, %v955_v16 }
 0x62e   :  { %8896 = vmatprep.subr.mxu0 %v14380_v11 }
 0x630   :  { %v947_v18 = vpop.permute.xlu0 %946 }
 0x631   :  { %8897 = vmatpush3.xpose.msk.msra.mxu0 %vm956_vm3, %v953_v13  ;;  %v949_v19 = vpop.permute.xlu1 %948 }
 0x632   :  { %8898 = vmatprep.subr.mxu0 %v14380_v11 }
 0x635   :  { %8899 = vmatpush3.xpose.msk.msra.mxu0 %vm956_vm3, %v951_v17 }
 0x636   :  { %8900 = vmatprep.subr.mxu0 %v14380_v11 }
 0x639   :  { %8901 = vmatpush3.xpose.msk.msra.mxu0 %vm956_vm3, %v949_v19 }
 0x63a   :  { %8902 = vmatprep.subr.mxu0 %v14380_v11 }
 0x63c   :  { %v1079_v25 = vpop.permute.xlu0 %1078 }
 0x63d   :  { %8903 = vmatpush3.xpose.msk.msra.mxu0 %vm956_vm3, %v947_v18 }
 0x63e   :  { %8919 = vmatprep.subr.mxu0 %v14380_v11 }
 0x640   :  { %v1081_v23 = vpop.permute.xlu1 %1080  ;;  %8905 = vmatmul.mubr.msk.f32.vlgmr.msra.gmra.mxu0 %vm956_vm3, %v11164_v57  ;;  %v1075_v35 = vpop.permute.xlu0 %1074 }
 0x641   :  { %8920 = vmatpush3.xpose.msk.msra.mxu0 %vm956_vm3, %v1081_v23  ;;  %8907 = vmatprep.mubr.msk.f32.mxu0 %vm10642_vm2, %v14380_v11 }
 0x642   :  { %8921 = vmatprep.subr.mxu0 %v14380_v11 }
 0x644   :  { %8908 = vmatmul.mubr.msk.f32.gmra.mxu0 %vm956_vm3, %v11170_v45  ;;  %v1077_v26 = vpop.permute.xlu1 %1076 }
 0x645   :  { %8922 = vmatpush3.xpose.msk.msra.mxu0 %vm956_vm3, %v1079_v25  ;;  %8910 = vmatprep.mubr.msk.f32.mxu0 %vm10642_vm2, %v14380_v11 }
 0x646   :  { %8923 = vmatprep.subr.mxu0 %v14380_v11 }
 0x648   :  { %8911 = vmatmul.mubr.msk.f32.gmra.mxu0 %vm956_vm3, %v11153_v54  ;;  %v1073_v30 = vpop.permute.xlu1 %1072 }
 0x649   :  { %8924 = vmatpush3.xpose.msk.msra.mxu0 %vm956_vm3, %v1077_v26  ;;  %8913 = vmatprep.mubr.msk.f32.mxu0 %vm10642_vm2, %v14380_v11 }
 0x64a   :  { %8925 = vmatprep.subr.mxu0 %v14380_v11 }
 0x64c   :  { %8914 = vmatmul.mubr.msk.f32.gmra.mxu0 %vm956_vm3, %v11145_v51 }
 0x64d   :  { %8926 = vmatpush3.xpose.msk.msra.mxu0 %vm956_vm3, %v1075_v35  ;;  %8916 = vmatprep.mubr.msk.f32.mxu0 %vm10642_vm2, %v14380_v11 }
 0x64e   :  { %8927 = vmatprep.subr.mxu0 %v14380_v11 }
 0x650   :  { %8917 = vmatmul.mubr.msk.f32.gmra.mxu0 %vm956_vm3, %v11155_v55 }
 0x651   :  { %8928 = vmatpush3.xpose.msk.msra.mxu0 %vm956_vm3, %v1073_v30  ;;  %8929 = vmatprep.mubr.msk.f32.mxu0 %vm10642_vm2, %v14380_v11 }
 0x652   :  { %8969 = vmatprep.subr.mxu0 %v14380_v11 }
 0x654   :  { %8930 = vmatmul.mubr.msk.f32.vlgmr.msra.gmra.mxu0 %vm956_vm3, %v11220_v14 }
 0x655   :  { %8970 = vmatpush3.msra.mxu0 %v11265_v44  ;;  %8932 = vmatprep.mubr.msk.f32.mxu0 %vm10642_vm2, %v14380_v11 }
 0x656   :  { %8971 = vmatprep.subr.mxu0 %v14380_v11 }
 0x657   :  { %8972 = vmatpush3.msra.mxu0 %v11270_v32 }
 0x658   :  { %8933 = vmatmul.mubr.msk.f32.gmra.mxu0 %vm956_vm3, %v11208_v8  ;;  %8973 = vmatprep.subr.mxu0 %v14380_v11 }
 0x659   :  { %8974 = vmatpush3.msra.mxu0 %v11278_v31  ;;  %8935 = vmatprep.mubr.msk.f32.mxu0 %vm10642_vm2, %v14380_v11 }
 0x65a   :  { %8975 = vmatprep.subr.mxu0 %v14380_v11 }
 0x65b   :  { %8976 = vmatpush3.msra.mxu0 %v11286_v33 }
 0x65c   :  { %8936 = vmatmul.mubr.msk.f32.gmra.mxu0 %vm956_vm3, %v11216_v12  ;;  %8977 = vmatprep.subr.mxu0 %v14380_v11 }
 0x65d   :  { %8978 = vmatpush3.msra.mxu0 %v11294_v34  ;;  %8938 = vmatprep.mubr.msk.f32.mxu0 %vm10642_vm2, %v14380_v11 }
 0x65e   :  { %9019 = vmatprep.subr.mxu0 %v14380_v11 }
 0x660   :  { %8939 = vmatmul.mubr.msk.f32.gmra.mxu0 %vm956_vm3, %v11204_v5 }
 0x661   :  { %8941 = vmatprep.mubr.msk.f32.mxu0 %vm10642_vm2, %v14380_v11 }
 0x664   :  { %8942 = vmatmul.mubr.msk.f32.gmra.mxu0 %vm956_vm3, %v11210_v9 }
 0x665   :  { %8979 = vmatprep.mubr.msk.f32.mxu0 %vm10642_vm2, %v14380_v11 }
 0x700   :  { %v1043_v53 = vpop.f32.mrf.mxu0 }
 0x701   :  { %v1192_v37 = vmul.f32 0.25, %v1043_v53 }
 0x702   :  { %v8906_v40 = vpop.f32.mrf.mxu0 }
 0x703   :  { %v1203_v21 = vsel %vm1202_vm4, %v1192_v37, -inf }
 0x704   :  { %1204 = vmax.xlane.f32.xlu0 %v1203_v21  ;;  %v1048_v42 = vpop.f32.mrf.mxu0 }
 0x705   :  { %v1193_v43 = vmul.f32 0.25, %v1048_v42 }
 0x706   :  { %v8909_v46 = vpop.f32.mrf.mxu0 }
 0x707   :  { %v1206_v38 = vsel %vm1202_vm4, %v1193_v43, -inf }
 0x708   :  { %1207 = vmax.xlane.f32.xlu1 %v1206_v38  ;;  %v1053_v52 = vpop.f32.mrf.mxu0 }
 0x709   :  { %v1194_v48 = vmul.f32 0.25, %v1053_v52 }
 0x70a   :  { %v8912_v36 = vpop.f32.mrf.mxu0 }
 0x70b   :  { %v1209_v28 = vsel %vm1202_vm4, %v1194_v48, -inf }
 0x70c   :  { %1210 = vmax.xlane.f32.xlu0 %v1209_v28  ;;  %v1058_v49 = vpop.f32.mrf.mxu0 }
 0x70d   :  { %v1195_v60 = vmul.f32 0.25, %v1058_v49 }
 0x70e   :  { %v8915_v62 = vpop.f32.mrf.mxu0 }
 0x70f   :  { %v1212_v63 = vsel %vm1202_vm4, %v1195_v60, -inf }
 0x710   :  { %1213 = vmax.xlane.f32.xlu0 %v1212_v63  ;;  %v1063_v1 = vpop.f32.mrf.mxu0 }
 0x711   :  { %v1196_v3 = vmul.f32 0.25, %v1063_v1 }
 0x712   :  { %v8918_v4 = vpop.f32.mrf.mxu0 }
 0x713   :  { %v1215_v22 = vsel %vm1202_vm4, %v1196_v3, -inf }
 0x714   :  { %1216 = vmax.xlane.f32.xlu0 %v1215_v22  ;;  %v1168_v6 = vpop.f32.mrf.mxu0 }
 0x715   :  { %v1197_v13 = vmul.f32 0.25, %v1168_v6 }
 0x716   :  { %v8931_v16 = vpop.f32.mrf.mxu0 }
 0x717   :  { %v1218_v17 = vsel %vm1202_vm4, %v1197_v13, -inf }
 0x718   :  { %1219 = vmax.xlane.f32.xlu1 %v1218_v17  ;;  %v1173_v19 = vpop.f32.mrf.mxu0 }
 0x719   :  { %v11318_v18 = vmul.f32 0.25, %v1173_v19 }
 0x71a   :  { %v8934_v23 = vpop.f32.mrf.mxu0 }
 0x71b   :  { %v1221_v25 = vsel %vm1202_vm4, %v11318_v18, -inf }
 0x71c   :  { %1222 = vmax.xlane.f32.xlu0 %v1221_v25  ;;  %v1178_v26 = vpop.f32.mrf.mxu0 }
 0x71d   :  { %v1199_v35 = vmul.f32 0.25, %v1178_v26 }
 0x71e   :  { %v8937_v27 = vpop.f32.mrf.mxu0 }
 0x71f   :  { %v1224_v30 = vsel %vm1202_vm4, %v1199_v35, -inf }
 0x720   :  { %1225 = vmax.xlane.f32.xlu1 %v1224_v30  ;;  %v1183_v53 = vpop.f32.mrf.mxu0 }
 0x721   :  { %v11323_v40 = vmul.f32 0.25, %v1183_v53 }
 0x722   :  { %v8940_v21 = vpop.f32.mrf.mxu0 }
 0x723   :  { %v1227_v42 = vsel %vm1202_vm4, %v11323_v40, -inf }
 0x724   :  { %1228 = vmax.xlane.f32.xlu0 %v1227_v42  ;;  %v1188_v46 = vpop.f32.mrf.mxu0 }
 0x725   :  { %v11327_v38 = vmul.f32 0.25, %v1188_v46 }
 0x726   :  { %v8943_v52 = vpop.f32.mrf.mxu0 }
 0x727   :  { %v1230_v36 = vsel %vm1202_vm4, %v11327_v38, -inf }
 0x728   :  { %1231 = vmax.xlane.f32.xlu1 %v1230_v36 }
 0x739   :  { %1539 = vrot.lane.b32.xlu1 %v11145_v51, %s10643_s7 }
 0x73a   :  { %1541 = vrot.lane.b32.xlu0 %v11155_v55, %s10643_s7 }
 0x73e   :  { %1537 = vrot.lane.b32.xlu0 %v11153_v54, %s10643_s7 }
 0x742   :  { %1535 = vrot.lane.b32.xlu0 %v11170_v45, %s10643_s7 }
 0x746   :  { %1533 = vrot.lane.b32.xlu0 %v11164_v57, %s10643_s7 }
 0x74a   :  { %1523 = vrot.lane.b32.xlu0 %v11164_v57, %s10644_s20 }
 0x74e   :  { %1671 = vrot.lane.b32.xlu0 %v11210_v9, %s10643_s7 }
 0x752   :  { %1525 = vrot.lane.b32.xlu0 %v11170_v45, %s10644_s20 }
 0x756   :  { %1669 = vrot.lane.b32.xlu0 %v11204_v5, %s10643_s7 }
 0x78d   :  { %v1205_v28 = vpop.xlane.xlu0 %1204 }
 0x78e   :  { %v1233_v49 = vsub.f32 %v1192_v37, %v1205_v28 }
 0x790   :  { %v1243_v62 = vmul.f32 1.442695, %v1233_v49 }
 0x791   :  { %v1208_v63 = vpop.xlane.xlu1 %1207 }
 0x792   :  { %9992 = vpow2.f32 %v1243_v62  ;;  %v1234_v1 = vsub.f32 %v1193_v43, %v1208_v63 }
 0x794   :  { %v1245_v4 = vmul.f32 1.442695, %v1234_v1 }
 0x795   :  { %v1211_v22 = vpop.xlane.xlu0 %1210 }
 0x796   :  { %9994 = vpow2.f32 %v1245_v4  ;;  %v1235_v6 = vsub.f32 %v1194_v48, %v1211_v22 }
 0x798   :  { %v1247_v16 = vmul.f32 1.442695, %v1235_v6 }
 0x799   :  { %v1214_v17 = vpop.xlane.xlu0 %1213 }
 0x79a   :  { %9996 = vpow2.f32 %v1247_v16  ;;  %v1236_v19 = vsub.f32 %v1195_v60, %v1214_v17 }
 0x79c   :  { %v1249_v23 = vmul.f32 1.442695, %v1236_v19 }
 0x79d   :  { %v1217_v25 = vpop.xlane.xlu0 %1216 }
 0x79e   :  { %9998 = vpow2.f32 %v1249_v23  ;;  %v1237_v26 = vsub.f32 %v1196_v3, %v1217_v25 }
 0x79f   :  { %v11349_v27 = vpop.eup %9992 }
 0x7a0   :  { %v1251_v30 = vmul.f32 1.442695, %v1237_v26  ;;  %v1263_v37 = vsel %vm1202_vm4, %v11349_v27, 0.0 }
 0x7a1   :  { %v1220_v53 = vpop.xlane.xlu1 %1219  ;;  %1264 = vadd.xlane.f32.xlu0 %v1263_v37 }
 0x7a2   :  { %10000 = vpow2.f32 %v1251_v30  ;;  %v1238_v43 = vsub.f32 %v1197_v13, %v1220_v53 }
 0x7a3   :  { %v11353_v21 = vpop.eup %9994 }
 0x7a4   :  { %v1253_v48 = vmul.f32 1.442695, %v1238_v43  ;;  %v1266_v60 = vsel %vm1202_vm4, %v11353_v21, 0.0 }
 0x7a5   :  { %1267 = vadd.xlane.f32.xlu1 %v1266_v60  ;;  %v1223_v46 = vpop.xlane.xlu0 %1222 }
 0x7a6   :  { %10002 = vpow2.f32 %v1253_v48  ;;  %v1239_v37 = vsub.f32 %v11318_v18, %v1223_v46 }
 0x7a7   :  { %v11357_v42 = vpop.eup %9996 }
 0x7a8   :  { %v1269_v3 = vsel %vm1202_vm4, %v11357_v42, 0.0  ;;  %v1255_v53 = vmul.f32 1.442695, %v1239_v37 }
 0x7a9   :  { %v1226_v52 = vpop.xlane.xlu1 %1225  ;;  %1270 = vadd.xlane.f32.xlu0 %v1269_v3 }
 0x7aa   :  { %v1240_v36 = vsub.f32 %v1199_v35, %v1226_v52 }
 0x7ab   :  { %v11361_v28 = vpop.eup %9998 }
 0x7ac   :  { %v1257_v13 = vmul.f32 1.442695, %v1240_v36  ;;  %v1272_v49 = vsel %vm1202_vm4, %v11361_v28, 0.0 }
 0x7ad   :  { %1273 = vadd.xlane.f32.xlu1 %v1272_v49  ;;  %v1229_v62 = vpop.xlane.xlu0 %1228 }
 0x7ae   :  { %10004 = vpow2.f32 %v1257_v13  ;;  %v1241_v63 = vsub.f32 %v11323_v40, %v1229_v62 }
 0x7af   :  { %v11366_v1 = vpop.eup %10000 }
 0x7b0   :  { %v1259_v4 = vmul.f32 1.442695, %v1241_v63  ;;  %v1275_v22 = vsel %vm1202_vm4, %v11366_v1, 0.0 }
 0x7b1   :  { %v1232_v6 = vpop.xlane.xlu1 %1231  ;;  %1276 = vadd.xlane.f32.xlu0 %v1275_v22  ;;  %v1542_v18 = vpop.permute.xlu0 %1541 }
 0x7b2   :  { %10006 = vpow2.f32 %v1259_v4  ;;  %v1242_v35 = vsub.f32 %v11327_v38, %v1232_v6 }
 0x7b3   :  { %v11371_v16 = vpop.eup %10002 }
 0x7b4   :  { %v1261_v17 = vmul.f32 1.442695, %v1242_v35  ;;  %v1278_v19 = vsel %vm1202_vm4, %v11371_v16, 0.0 }
 0x7b5   :  { %1279 = vadd.xlane.f32.xlu1 %v1278_v19  ;;  %v1538_v60 = vpop.permute.xlu0 %1537  ;;  %v1540_v62 = vpop.permute.xlu1 %1539 }
 0x7b6   :  { %10008 = vpow2.f32 %v1261_v17 }
 0x7b7   :  { %10010 = vpow2.f32 %v1255_v53 }
 0x7b9   :  { %v1536_v3 = vpop.permute.xlu0 %1535 }
 0x7bb   :  { %v11375_v40 = vpop.eup %10004 }
 0x7bc   :  { %v1284_v23 = vsel %vm1202_vm4, %v11375_v40, 0.0 }
 0x7bd   :  { %1285 = vadd.xlane.f32.xlu1 %v1284_v23  ;;  %v11416_v46 = vpop.permute.xlu0 %1533 }
 0x7bf   :  { %v11379_v25 = vpop.eup %10006 }
 0x7c0   :  { %v1287_v26 = vsel %vm1202_vm4, %v11379_v25, 0.0 }
 0x7c1   :  { %1288 = vadd.xlane.f32.xlu1 %v1287_v26  ;;  %v11420_v52 = vpop.permute.xlu0 %1523 }
 0x7c3   :  { %v11383_v38 = vpop.eup %10008 }
 0x7c4   :  { %v1290_v30 = vsel %vm1202_vm4, %v11383_v38, 0.0  ;;  %v11396_v43 = vpop.eup %10010 }
 0x7c5   :  { %1291 = vadd.xlane.f32.xlu1 %v1290_v30  ;;  %v1281_v48 = vsel %vm1202_vm4, %v11396_v43, 0.0  ;;  %v11426_v36 = vpop.permute.xlu0 %1671 }
 0x7c7   :  { %1527 = vrot.lane.b32.xlu0 %v11153_v54, %s10644_s20 }
 0x7c9   :  { %v11430_v13 = vpop.permute.xlu0 %1525 }
 0x7cd   :  { %v11436_v49 = vpop.permute.xlu0 %1669 }
 0x7d6   :  { %1529 = vrot.lane.b32.xlu1 %v11145_v51, %s10644_s20 }
 0x7da   :  { %1657 = vrot.lane.b32.xlu1 %v11216_v12, %s10644_s20 }
 0x7de   :  { %1661 = vrot.lane.b32.xlu1 %v11210_v9, %s10644_s20 }
 0x7e2   :  { %1914 = vrot.lane.b32.xlu1 %v11167_v58, %s10644_s20 }
 0x7e6   :  { %1282 = vadd.xlane.f32.xlu0 %v1281_v48  ;;  %2171 = vrot.lane.b32.xlu1 %v11155_v55, %s10645_s13 }
 0x7ea   :  { %2163 = vrot.lane.b32.xlu1 %v11164_v57, %s10645_s13 }
 0x7fc   :  { %1667 = vrot.lane.b32.xlu0 %v11216_v12, %s10643_s7 }
 0x800   :  { %1665 = vrot.lane.b32.xlu0 %v11208_v8, %s10643_s7 }
 0x804   :  { %1531 = vrot.lane.b32.xlu0 %v11155_v55, %s10644_s20 }
 0x808   :  { %1663 = vrot.lane.b32.xlu0 %v11220_v14, %s10643_s7 }
 0x80c   :  { %1653 = vrot.lane.b32.xlu0 %v11220_v14, %s10644_s20 }
 0x810   :  { %1655 = vrot.lane.b32.xlu0 %v11208_v8, %s10644_s20 }
 0x814   :  { %1659 = vrot.lane.b32.xlu0 %v11204_v5, %s10644_s20 }
 0x818   :  { %1916 = vrot.lane.b32.xlu0 %v11158_v56, %s10644_s20 }
 0x81c   :  { %1912 = vrot.lane.b32.xlu0 %v11176_v10, %s10644_s20 }
 0x820   :  { %1910 = vrot.lane.b32.xlu0 %v11185_v7, %s10644_s20 }
 0x824   :  { %1908 = vrot.lane.b32.xlu0 %v11196_v47, %s10644_s20 }
 0x828   :  { %2169 = vrot.lane.b32.xlu0 %v11145_v51, %s10645_s13 }
 0x82a   :  { %v1265_v63 = vpop.xlane.xlu0 %1264 }
 0x82b   :  { %10012 = vrcp.f32 %v1265_v63 }
 0x82c   :  { %2167 = vrot.lane.b32.xlu0 %v11153_v54, %s10645_s13 }
 0x82e   :  { %v1268_v4 = vpop.xlane.xlu1 %1267 }
 0x82f   :  { %10014 = vrcp.f32 %v1268_v4 }
 0x830   :  { %2041 = vrot.lane.b32.xlu0 %v11265_v44, %s10644_s20 }
 0x832   :  { %v1271_v22 = vpop.xlane.xlu0 %1270 }
 0x833   :  { %10016 = vrcp.f32 %v1271_v22 }
 0x834   :  { %2039 = vrot.lane.b32.xlu0 %v11270_v32, %s10644_s20 }
 0x836   :  { %v1274_v6 = vpop.xlane.xlu1 %1273 }
 0x837   :  { %10018 = vrcp.f32 %v1274_v6 }
 0x838   :  { %v10013_v35 = vpop.eup %10012  ;;  %2165 = vrot.lane.b32.xlu0 %v11170_v45, %s10645_s13 }
 0x839   :  { %v1303_v17 = vmul.f32 %v10013_v35, %v11349_v27 }
 0x83a   :  { %v1277_v19 = vpop.xlane.xlu0 %1276 }
 0x83b   :  { %10020 = vrcp.f32 %v1277_v19  ;;  %8955 = vmatmul.mubr.msk.f32.vlgmr.msra.gmra.mxu1 %vm1202_vm4, %v1303_v17 }
 0x83c   :  { %v10015_v23 = vpop.eup %10014  ;;  %8995 = vmatpush3.xpose.msk.msra.mxu1 %vm956_vm3, %v1542_v18  ;;  %2037 = vrot.lane.b32.xlu0 %v11278_v31, %s10644_s20 }
 0x83d   :  { %8957 = vmatprep.mubr.msk.f32.mxu1 %vm10642_vm2, %v14380_v11  ;;  %8996 = vmatprep.subr.mxu1 %v14380_v11  ;;  %v1304_v26 = vmul.f32 %v10015_v23, %v11353_v21 }
 0x83e   :  { %v1280_v30 = vpop.xlane.xlu1 %1279 }
 0x83f   :  { %10022 = vrcp.f32 %v1280_v30  ;;  %8958 = vmatmul.mubr.msk.f32.gmra.mxu1 %vm1202_vm4, %v1304_v26 }
 0x840   :  { %v10017_v27 = vpop.eup %10016  ;;  %8997 = vmatpush3.xpose.msk.msra.mxu1 %vm956_vm3, %v1540_v62  ;;  %2035 = vrot.lane.b32.xlu0 %v11286_v33, %s10644_s20 }
 0x841   :  { %8960 = vmatprep.mubr.msk.f32.mxu1 %vm10642_vm2, %v14380_v11  ;;  %8998 = vmatprep.subr.mxu1 %v14380_v11  ;;  %v1305_v37 = vmul.f32 %v10017_v27, %v11357_v42 }
 0x843   :  { %8961 = vmatmul.mubr.msk.f32.gmra.mxu1 %vm1202_vm4, %v1305_v37 }
 0x844   :  { %v10019_v21 = vpop.eup %10018  ;;  %8999 = vmatpush3.xpose.msk.msra.mxu1 %vm956_vm3, %v1538_v60  ;;  %2033 = vrot.lane.b32.xlu0 %v11294_v34, %s10644_s20 }
 0x845   :  { %8963 = vmatprep.mubr.msk.f32.mxu1 %vm10642_vm2, %v14380_v11  ;;  %9000 = vmatprep.subr.mxu1 %v14380_v11  ;;  %v1306_v53 = vmul.f32 %v10019_v21, %v11361_v28 }
 0x846   :  { %v1286_v18 = vpop.xlane.xlu1 %1285 }
 0x847   :  { %8964 = vmatmul.mubr.msk.f32.gmra.mxu1 %vm1202_vm4, %v1306_v53 }
 0x848   :  { %v10021_v48 = vpop.eup %10020  ;;  %9001 = vmatpush3.xpose.msk.msra.mxu1 %vm956_vm3, %v1536_v3  ;;  %2153 = vrot.lane.b32.xlu0 %v11164_v57, %s10646_s29 }
 0x849   :  { %8966 = vmatprep.mubr.msk.f32.mxu1 %vm10642_vm2, %v14380_v11  ;;  %9002 = vmatprep.subr.mxu1 %v14380_v11  ;;  %v1307_v42 = vmul.f32 %v10021_v48, %v11366_v1 }
 0x84a   :  { %v1289_v3 = vpop.xlane.xlu1 %1288 }
 0x84b   :  { %8967 = vmatmul.mubr.msk.f32.gmra.mxu1 %vm1202_vm4, %v1307_v42 }
 0x84c   :  { %v10023_v28 = vpop.eup %10022  ;;  %9003 = vmatpush3.xpose.msk.msra.mxu1 %vm956_vm3, %v11416_v46  ;;  %2301 = vrot.lane.b32.xlu0 %v11210_v9, %s10645_s13 }
 0x84d   :  { %v1308_v60 = vmul.f32 %v10023_v28, %v11371_v16  ;;  %9004 = vmatprep.mubr.msk.f32.mxu1 %vm10642_vm2, %v14380_v11  ;;  %9044 = vmatprep.subr.mxu1 %v14380_v11  ;;  %v1528_v16 = vpop.permute.xlu0 %1527 }
 0x84e   :  { %v1292_v1 = vpop.xlane.xlu1 %1291 }
 0x84f   :  { %8980 = vmatmul.mubr.msk.f32.vlgmr.msra.gmra.mxu0 %vm1202_vm4, %v1308_v60  ;;  %9005 = vmatmul.mubr.msk.f32.vlgmr.msra.gmra.mxu1 %vm956_vm3, %v11420_v52 }
 0x850   :  { %9020 = vmatpush3.xpose.msk.msra.mxu0 %vm956_vm3, %v11426_v36  ;;  %9007 = vmatprep.mubr.msk.f32.mxu1 %vm10642_vm2, %v14380_v11 }
 0x851   :  { %9021 = vmatprep.subr.mxu0 %v14380_v11  ;;  %8982 = vmatprep.mubr.msk.f32.mxu0 %vm10642_vm2, %v14380_v11 }
 0x852   :  { %v1530_v46 = vpop.permute.xlu1 %1529 }
 0x853   :  { %9008 = vmatmul.mubr.msk.f32.gmra.mxu1 %vm956_vm3, %v11430_v13 }
 0x854   :  { %9022 = vmatpush3.xpose.msk.msra.mxu0 %vm956_vm3, %v11436_v49  ;;  %9010 = vmatprep.mubr.msk.f32.mxu1 %vm10642_vm2, %v14380_v11 }
 0x855   :  { %9023 = vmatprep.subr.mxu0 %v14380_v11 }
 0x856   :  { %v1658_v19 = vpop.permute.xlu1 %1657 }
 0x857   :  { %9011 = vmatmul.mubr.msk.f32.gmra.mxu1 %vm956_vm3, %v1528_v16 }
 0x858   :  { %9013 = vmatprep.mubr.msk.f32.mxu1 %vm10642_vm2, %v14380_v11 }
 0x85a   :  { %v1662_v30 = vpop.permute.xlu1 %1661 }
 0x85b   :  { %9014 = vmatmul.mubr.msk.f32.gmra.mxu1 %vm956_vm3, %v1530_v46 }
 0x85c   :  { %9016 = vmatprep.mubr.msk.f32.mxu1 %vm10642_vm2, %v14380_v11 }
 0x86f   :  { %v1283_v52 = vpop.xlane.xlu0 %1282 }
 0x870   :  { %10024 = vrcp.f32 %v1283_v52 }
 0x871   :  { %10026 = vrcp.f32 %v1286_v18 }
 0x872   :  { %10028 = vrcp.f32 %v1289_v3 }
 0x873   :  { %v1668_v36 = vpop.permute.xlu0 %1667  ;;  %10030 = vrcp.f32 %v1292_v1 }
 0x874   :  { %9024 = vmatpush3.xpose.msk.msra.mxu0 %vm956_vm3, %v1668_v36 }
 0x875   :  { %9025 = vmatprep.subr.mxu0 %v14380_v11 }
 0x877   :  { %v1666_v13 = vpop.permute.xlu0 %1665 }
 0x878   :  { %9026 = vmatpush3.xpose.msk.msra.mxu0 %vm956_vm3, %v1666_v13 }
 0x879   :  { %9027 = vmatprep.subr.mxu0 %v14380_v11 }
 0x87b   :  { %v1532_v49 = vpop.permute.xlu0 %1531 }
 0x87c   :  { %9017 = vmatmul.mubr.msk.f32.gmra.mxu1 %vm956_vm3, %v1532_v49 }
 0x87d   :  { %v10025_v62 = vpop.eup %10024  ;;  %9054 = vmatprep.mubr.msk.f32.mxu1 %vm10642_vm2, %v14380_v11 }
 0x87e   :  { %v1309_v63 = vmul.f32 %v10025_v62, %v11396_v43  ;;  %v10027_v4 = vpop.eup %10026 }
 0x87f   :  { %v1664_v22 = vpop.permute.xlu0 %1663  ;;  %v1310_v6 = vmul.f32 %v10027_v4, %v11375_v40  ;;  %v10029_v35 = vpop.eup %10028 }
 0x880   :  { %8983 = vmatmul.mubr.msk.f32.gmra.mxu0 %vm1202_vm4, %v1309_v63  ;;  %v1311_v43 = vmul.f32 %v10029_v35, %v11379_v25  ;;  %v10031_v23 = vpop.eup %10030  ;;  %v1915_v25 = vpop.permute.xlu1 %1914 }
 0x881   :  { %9028 = vmatpush3.xpose.msk.msra.mxu0 %vm956_vm3, %v1664_v22  ;;  %8985 = vmatprep.mubr.msk.f32.mxu0 %vm10642_vm2, %v14380_v11  ;;  %v1312_v40 = vmul.f32 %v10031_v23, %v11383_v38 }
 0x882   :  { %9069 = vmatprep.subr.mxu0 %v14380_v11 }
 0x883   :  { %v1654_v17 = vpop.permute.xlu0 %1653 }
 0x884   :  { %8986 = vmatmul.mubr.msk.f32.gmra.mxu0 %vm1202_vm4, %v1310_v6 }
 0x885   :  { %8988 = vmatprep.mubr.msk.f32.mxu0 %vm10642_vm2, %v14380_v11 }
 0x887   :  { %v1656_v26 = vpop.permute.xlu0 %1655 }
 0x888   :  { %8989 = vmatmul.mubr.msk.f32.gmra.mxu0 %vm1202_vm4, %v1311_v43 }
 0x889   :  { %8991 = vmatprep.mubr.msk.f32.mxu0 %vm10642_vm2, %v14380_v11 }
 0x88b   :  { %v1660_v27 = vpop.permute.xlu0 %1659 }
 0x88c   :  { %8992 = vmatmul.mubr.msk.f32.gmra.mxu0 %vm1202_vm4, %v1312_v40 }
 0x88d   :  { %9029 = vmatprep.mubr.msk.f32.mxu0 %vm10642_vm2, %v14380_v11 }
 0x88f   :  { %v1917_v37 = vpop.permute.xlu0 %1916 }
 0x890   :  { %9030 = vmatmul.mubr.msk.f32.vlgmr.msra.gmra.mxu0 %vm956_vm3, %v1654_v17  ;;  %9045 = vmatpush3.msra.mxu1 %v1917_v37 }
 0x891   :  { %9046 = vmatprep.subr.mxu1 %v14380_v11  ;;  %9032 = vmatprep.mubr.msk.f32.mxu0 %vm10642_vm2, %v14380_v11 }
 0x892   :  { %9047 = vmatpush3.msra.mxu1 %v1915_v25 }
 0x893   :  { %9048 = vmatprep.subr.mxu1 %v14380_v11  ;;  %v1913_v38 = vpop.permute.xlu0 %1912 }
 0x894   :  { %9033 = vmatmul.mubr.msk.f32.gmra.mxu0 %vm956_vm3, %v1656_v26  ;;  %9049 = vmatpush3.msra.mxu1 %v1913_v38 }
 0x895   :  { %9035 = vmatprep.mubr.msk.f32.mxu0 %vm10642_vm2, %v14380_v11  ;;  %9050 = vmatprep.subr.mxu1 %v14380_v11 }
 0x897   :  { %v1911_v21 = vpop.permute.xlu0 %1910 }
 0x898   :  { %9036 = vmatmul.mubr.msk.f32.gmra.mxu0 %vm956_vm3, %v1658_v19  ;;  %9051 = vmatpush3.msra.mxu1 %v1911_v21 }
 0x899   :  { %9038 = vmatprep.mubr.msk.f32.mxu0 %vm10642_vm2, %v14380_v11  ;;  %9052 = vmatprep.subr.mxu1 %v14380_v11 }
 0x89b   :  { %v1909_v53 = vpop.permute.xlu0 %1908 }
 0x89c   :  { %9039 = vmatmul.mubr.msk.f32.gmra.mxu0 %vm956_vm3, %v1660_v27  ;;  %9053 = vmatpush3.msra.mxu1 %v1909_v53 }
 0x89d   :  { %9041 = vmatprep.mubr.msk.f32.mxu0 %vm10642_vm2, %v14380_v11  ;;  %9094 = vmatprep.subr.mxu1 %v14380_v11 }
 0x89f   :  { %v11555_v48 = vpop.permute.xlu0 %2169 }
 0x8a0   :  { %9042 = vmatmul.mubr.msk.f32.gmra.mxu0 %vm956_vm3, %v1662_v30 }
 0x8a1   :  { %9079 = vmatprep.mubr.msk.f32.mxu0 %vm10642_vm2, %v14380_v11 }
 0x8a3   :  { %v11560_v18 = vpop.permute.xlu0 %2167 }
 0x8a7   :  { %v2042_v42 = vpop.permute.xlu0 %2041 }
 0x8a8   :  { %9070 = vmatpush3.msra.mxu0 %v2042_v42 }
 0x8a9   :  { %9071 = vmatprep.subr.mxu0 %v14380_v11 }
 0x8ab   :  { %v2040_v28 = vpop.permute.xlu0 %2039 }
 0x8ac   :  { %9072 = vmatpush3.msra.mxu0 %v2040_v28 }
 0x8ad   :  { %9073 = vmatprep.subr.mxu0 %v14380_v11 }
 0x8af   :  { %v11564_v60 = vpop.permute.xlu0 %2165 }
 0x8b3   :  { %v2038_v3 = vpop.permute.xlu0 %2037 }
 0x8b4   :  { %9074 = vmatpush3.msra.mxu0 %v2038_v3 }
 0x8b5   :  { %9075 = vmatprep.subr.mxu0 %v14380_v11 }
 0x8b7   :  { %v2036_v1 = vpop.permute.xlu0 %2035 }
 0x8b8   :  { %9076 = vmatpush3.msra.mxu0 %v2036_v1 }
 0x8b9   :  { %9077 = vmatprep.subr.mxu0 %v14380_v11 }
 0x8bb   :  { %v2034_v16 = vpop.permute.xlu0 %2033 }
 0x8bc   :  { %9078 = vmatpush3.msra.mxu0 %v2034_v16 }
 0x8bd   :  { %9119 = vmatprep.subr.mxu0 %v14380_v11 }
 0x8fb   :  { %v11569_v46 = vpop.f32.mrf.mxu1 }
 0x8fd   :  { %v8956_v52 = vpop.f32.mrf.mxu1 }
 0x8ff   :  { %v11571_v36 = vpop.f32.mrf.mxu1 }
 0x901   :  { %v8959_v13 = vpop.f32.mrf.mxu1 }
 0x903   :  { %v11573_v49 = vpop.f32.mrf.mxu1 }
 0x905   :  { %v8962_v62 = vpop.f32.mrf.mxu1 }
 0x907   :  { %v11575_v63 = vpop.f32.mrf.mxu1 }
 0x908   :  { %14425 = vst [vmem:[#allocation33_spill] sm:$0xff] %v11575_v63 }
 0x909   :  { %v8965_v4 = vpop.f32.mrf.mxu1 }
 0x90b   :  { %v11577_v22 = vpop.f32.mrf.mxu1 }
 0x90c   :  { %14426 = vst [vmem:[#allocation34_spill] sm:$0xff] %v11577_v22 }
 0x90d   :  { %v8968_v6 = vpop.f32.mrf.mxu1 }
 0x90f   :  { %v11579_v35 = vpop.f32.mrf.mxu0  ;;  %v1629_v17 = vpop.f32.mrf.mxu1 }
 0x910   :  { %14427 = vst [vmem:[#allocation35_spill] sm:$0xff] %v11579_v35  ;;  %v11581_v19 = vmul.f32 0.25, %v1629_v17 }
 0x911   :  { %v8981_v43 = vpop.f32.mrf.mxu0  ;;  %v9006_v23 = vpop.f32.mrf.mxu1 }
 0x912   :  { %v1793_v26 = vsel %vm1202_vm4, %v11581_v19, -inf }
 0x913   :  { %1794 = vmax.xlane.f32.xlu0 %v1793_v26  ;;  %v1634_v40 = vpop.f32.mrf.mxu1 }
 0x914   :  { %v11585_v30 = vmul.f32 0.25, %v1634_v40 }
 0x915   :  { %v9009_v27 = vpop.f32.mrf.mxu1 }
 0x916   :  { %v1796_v37 = vsel %vm1202_vm4, %v11585_v30, -inf }
 0x917   :  { %1797 = vmax.xlane.f32.xlu1 %v1796_v37  ;;  %v1639_v25 = vpop.f32.mrf.mxu1 }
 0x918   :  { %v11589_v38 = vmul.f32 0.25, %v1639_v25 }
 0x919   :  { %v9012_v21 = vpop.f32.mrf.mxu1 }
 0x91a   :  { %v1799_v53 = vsel %vm1202_vm4, %v11589_v38, -inf }
 0x91b   :  { %1800 = vmax.xlane.f32.xlu0 %v1799_v53  ;;  %v1644_v42 = vpop.f32.mrf.mxu1 }
 0x91c   :  { %v1786_v28 = vmul.f32 0.25, %v1644_v42 }
 0x91d   :  { %v9015_v3 = vpop.f32.mrf.mxu1 }
 0x91e   :  { %v1802_v1 = vsel %vm1202_vm4, %v1786_v28, -inf }
 0x91f   :  { %1803 = vmax.xlane.f32.xlu0 %v1802_v1 }
 0x93c   :  { %v1649_v16 = vpop.f32.mrf.mxu1 }
 0x93d   :  { %v11594_v52 = vmul.f32 0.25, %v1649_v16 }
 0x93e   :  { %v9018_v13 = vpop.f32.mrf.mxu1 }
 0x93f   :  { %v1805_v62 = vsel %vm1202_vm4, %v11594_v52, -inf }
 0x940   :  { %v11598_v4 = vpop.f32.mrf.mxu0  ;;  %1806 = vmax.xlane.f32.xlu1 %v1805_v62 }
 0x941   :  { %14428 = vst [vmem:[#allocation36_spill] sm:$0xff] %v11598_v4 }
 0x942   :  { %v8984_v6 = vpop.f32.mrf.mxu0 }
 0x944   :  { %v11600_v17 = vpop.f32.mrf.mxu0 }
 0x945   :  { %14429 = vst [vmem:[#allocation37_spill] sm:$0xff] %v11600_v17 }
 0x946   :  { %v8987_v43 = vpop.f32.mrf.mxu0 }
 0x948   :  { %v11602_v23 = vpop.f32.mrf.mxu0 }
 0x949   :  { %14430 = vst [vmem:[#allocation38_spill] sm:$0xff] %v11602_v23 }
 0x94a   :  { %v8990_v26 = vpop.f32.mrf.mxu0 }
 0x94c   :  { %v11604_v40 = vpop.f32.mrf.mxu0 }
 0x94d   :  { %14431 = vst [vmem:[#allocation39_spill] sm:$0xff] %v11604_v40 }
 0x94e   :  { %v8993_v27 = vpop.f32.mrf.mxu0 }
 0x950   :  { %v1759_v37 = vpop.f32.mrf.mxu0 }
 0x951   :  { %v11606_v25 = vmul.f32 0.25, %v1759_v37 }
 0x952   :  { %v9031_v21 = vpop.f32.mrf.mxu0 }
 0x953   :  { %v1808_v53 = vsel %vm1202_vm4, %v11606_v25, -inf }
 0x954   :  { %1809 = vmax.xlane.f32.xlu0 %v1808_v53  ;;  %v1764_v42 = vpop.f32.mrf.mxu0 }
 0x955   :  { %v11610_v3 = vmul.f32 0.25, %v1764_v42 }
 0x956   :  { %v9034_v1 = vpop.f32.mrf.mxu0 }
 0x957   :  { %v1811_v16 = vsel %vm1202_vm4, %v11610_v3, -inf }
 0x958   :  { %1812 = vmax.xlane.f32.xlu1 %v1811_v16  ;;  %v1769_v13 = vpop.f32.mrf.mxu0 }
 0x959   :  { %v11614_v62 = vmul.f32 0.25, %v1769_v13  ;;  %v11630_v13 = vpop.permute.xlu0 %2153 }
 0x95a   :  { %v9037_v6 = vpop.f32.mrf.mxu0 }
 0x95b   :  { %v1814_v43 = vsel %vm1202_vm4, %v11614_v62, -inf  ;;  %v11632_v6 = vpop.permute.xlu1 %2171 }
 0x95c   :  { %1815 = vmax.xlane.f32.xlu0 %v1814_v43  ;;  %v1774_v26 = vpop.f32.mrf.mxu0 }
 0x95d   :  { %v11618_v27 = vmul.f32 0.25, %v1774_v26  ;;  %v11634_v43 = vpop.permute.xlu0 %2301 }
 0x95e   :  { %v9040_v37 = vpop.f32.mrf.mxu0 }
 0x95f   :  { %v1817_v21 = vsel %vm1202_vm4, %v11618_v27, -inf  ;;  %v11636_v26 = vpop.permute.xlu1 %2163 }
 0x960   :  { %1818 = vmax.xlane.f32.xlu1 %v1817_v21  ;;  %v1779_v53 = vpop.f32.mrf.mxu0 }
 0x961   :  { %v11622_v42 = vmul.f32 0.25, %v1779_v53 }
 0x962   :  { %v9043_v1 = vpop.f32.mrf.mxu0 }
 0x963   :  { %v1820_v16 = vsel %vm1202_vm4, %v11622_v42, -inf }
 0x964   :  { %1821 = vmax.xlane.f32.xlu0 %v1820_v16 }
 0x971   :  { %2299 = vrot.lane.b32.xlu1 %v11204_v5, %s10645_s13 }
 0x97a   :  { %2155 = vrot.lane.b32.xlu0 %v11170_v45, %s10646_s29 }
 0x99c   :  { %v1795_v37 = vpop.xlane.xlu0 %1794 }
 0x99d   :  { %v1823_v21 = vsub.f32 %v11581_v19, %v1795_v37 }
 0x99f   :  { %v1833_v53 = vmul.f32 1.442695, %v1823_v21 }
 0x9a0   :  { %v1798_v1 = vpop.xlane.xlu1 %1797 }
 0x9a1   :  { %10032 = vpow2.f32 %v1833_v53  ;;  %v1824_v16 = vsub.f32 %v11585_v30, %v1798_v1 }
 0x9a3   :  { %v1835_v41 = vmul.f32 1.442695, %v1824_v16 }
 0x9a4   :  { %v1801_v50 = vpop.xlane.xlu0 %1800 }
 0x9a5   :  { %10034 = vpow2.f32 %v1835_v41  ;;  %v1825_v11 = vsub.f32 %v11589_v38, %v1801_v50 }
 0x9a7   :  { %v1837_v20 = vmul.f32 1.442695, %v1825_v11 }
 0x9a8   :  { %v1804_v2 = vpop.xlane.xlu0 %1803 }
 0x9a9   :  { %10036 = vpow2.f32 %v1837_v20  ;;  %v1826_v61 = vsub.f32 %v1786_v28, %v1804_v2 }
 0x9ab   :  { %v1839_v0 = vmul.f32 1.442695, %v1826_v61 }
 0x9ad   :  { %10038 = vpow2.f32 %v1839_v0 }
 0x9ae   :  { %v11641_v59 = vpop.eup %10032 }
 0x9af   :  { %v1853_v19 = vsel %vm1202_vm4, %v11641_v59, 0.0 }
 0x9b0   :  { %1854 = vadd.xlane.f32.xlu1 %v1853_v19 }
 0x9b2   :  { %v11645_v37 = vpop.eup %10034 }
 0x9b3   :  { %v1856_v30 = vsel %vm1202_vm4, %v11645_v37, 0.0 }
 0x9b4   :  { %1857 = vadd.xlane.f32.xlu0 %v1856_v30 }
 0x9b6   :  { %v11649_v41 = vpop.eup %10036 }
 0x9b7   :  { %v1859_v11 = vsel %vm1202_vm4, %v11649_v41, 0.0 }
 0x9b8   :  { %1860 = vadd.xlane.f32.xlu1 %v1859_v11 }
 0x9ba   :  { %v11653_v61 = vpop.eup %10038 }
 0x9bb   :  { %v1862_v0 = vsel %vm1202_vm4, %v11653_v61, 0.0 }
 0x9bc   :  { %1863 = vadd.xlane.f32.xlu0 %v1862_v0 }
 0x9c9   :  { %2297 = vrot.lane.b32.xlu1 %v11216_v12, %s10645_s13  ;;  %v1807_v2 = vpop.xlane.xlu1 %1806 }
 0x9ca   :  { %v1827_v20 = vsub.f32 %v11594_v52, %v1807_v2 }
 0x9cc   :  { %v1841_v50 = vmul.f32 1.442695, %v1827_v20 }
 0x9ce   :  { %10040 = vpow2.f32 %v1841_v50 }
 0x9d2   :  { %2157 = vrot.lane.b32.xlu0 %v11153_v54, %s10646_s29 }
 0x9db   :  { %v11665_v0 = vpop.eup %10040 }
 0x9dd   :  { %v1810_v38 = vpop.xlane.xlu0 %1809 }
 0x9de   :  { %v1828_v28 = vsub.f32 %v11606_v25, %v1810_v38  ;;  %v1865_v25 = vsel %vm1202_vm4, %v11665_v0, 0.0 }
 0x9e0   :  { %v1843_v21 = vmul.f32 1.442695, %v1828_v28 }
 0x9e1   :  { %v1813_v53 = vpop.xlane.xlu1 %1812 }
 0x9e2   :  { %10042 = vpow2.f32 %v1843_v21  ;;  %v1829_v1 = vsub.f32 %v11610_v3, %v1813_v53 }
 0x9e4   :  { %v1845_v16 = vmul.f32 1.442695, %v1829_v1 }
 0x9e5   :  { %v1816_v19 = vpop.xlane.xlu0 %1815 }
 0x9e6   :  { %10044 = vpow2.f32 %v1845_v16  ;;  %v1830_v30 = vsub.f32 %v11614_v62, %v1816_v19 }
 0x9e8   :  { %v1847_v11 = vmul.f32 1.442695, %v1830_v30 }
 0x9e9   :  { %v1819_v29 = vpop.xlane.xlu1 %1818 }
 0x9ea   :  { %10046 = vpow2.f32 %v1847_v11  ;;  %v1831_v52 = vsub.f32 %v11618_v27, %v1819_v29 }
 0x9ec   :  { %v1849_v2 = vmul.f32 1.442695, %v1831_v52 }
 0x9ed   :  { %1866 = vadd.xlane.f32.xlu1 %v1865_v25  ;;  %v1822_v21 = vpop.xlane.xlu0 %1821  ;;  %v11713_v19 = vpop.permute.xlu1 %2299 }
 0x9ee   :  { %10048 = vpow2.f32 %v1849_v2  ;;  %v1832_v53 = vsub.f32 %v11622_v42, %v1822_v21 }
 0x9ef   :  { %v11670_v20 = vpop.eup %10042 }
 0x9f0   :  { %v1868_v3 = vsel %vm1202_vm4, %v11670_v20, 0.0  ;;  %v1851_v1 = vmul.f32 1.442695, %v1832_v53 }
 0x9f1   :  { %1869 = vadd.xlane.f32.xlu1 %v1868_v3  ;;  %v11717_v30 = vpop.permute.xlu0 %2155 }
 0x9f2   :  { %10050 = vpow2.f32 %v1851_v1 }
 0x9f3   :  { %v11674_v62 = vpop.eup %10044 }
 0x9f4   :  { %v1871_v50 = vsel %vm1202_vm4, %v11674_v62, 0.0 }
 0x9f5   :  { %1872 = vadd.xlane.f32.xlu1 %v1871_v50 }
 0x9f7   :  { %v11678_v38 = vpop.eup %10046 }
 0x9f8   :  { %v1874_v29 = vsel %vm1202_vm4, %v11678_v38, 0.0 }
 0x9f9   :  { %1875 = vadd.xlane.f32.xlu0 %v1874_v29 }
 0x9fb   :  { %v11682_v27 = vpop.eup %10048 }
 0x9fc   :  { %v1877_v28 = vsel %vm1202_vm4, %v11682_v27, 0.0 }
 0x9fd   :  { %1878 = vadd.xlane.f32.xlu0 %v1877_v28  ;;  %v14432_v28 = vmov 0.0  }
 0x9ff   :  { %v11703_v16 = vpop.eup %10050 }
 0xa00   :  { %v1880_v42 = vsel %vm1202_vm4, %v11703_v16, 0.0 }
 0xa06   :  { %2295 = vrot.lane.b32.xlu1 %v11208_v8, %s10645_s13 }
 0xa0a   :  { %2293 = vrot.lane.b32.xlu1 %v11220_v14, %s10645_s13 }
 0xa13   :  { %2159 = vrot.lane.b32.xlu0 %v11145_v51, %s10646_s29 }
 0xa17   :  { %2161 = vrot.lane.b32.xlu0 %v11155_v55, %s10646_s29 }
 0xa1b   :  { %2283 = vrot.lane.b32.xlu0 %v11220_v14, %s10646_s29 }
 0xa1f   :  { %2287 = vrot.lane.b32.xlu0 %v11216_v12, %s10646_s29 }
 0xa23   :  { %2291 = vrot.lane.b32.xlu0 %v11210_v9, %s10646_s29 }
 0xa27   :  { %2539 = vrot.lane.b32.xlu0 %v11167_v58, %s10646_s29 }
 0xa2b   :  { %2535 = vrot.lane.b32.xlu0 %v11185_v7, %s10646_s29 }
 0xa2e   :  { %1881 = vadd.xlane.f32.xlu1 %v1880_v42 }
 0xa2f   :  { %2533 = vrot.lane.b32.xlu0 %v11196_v47, %s10646_s29 }
 0xa33   :  { %2789 = vrot.lane.b32.xlu0 %v11145_v51, %s10633_s28 }
 0xa37   :  { %2787 = vrot.lane.b32.xlu0 %v11153_v54, %s10633_s28 }
 0xa39   :  { %v1855_v11 = vpop.xlane.xlu1 %1854 }
 0xa3a   :  { %10052 = vrcp.f32 %v1855_v11 }
 0xa3b   :  { %2661 = vrot.lane.b32.xlu0 %v11265_v44, %s10646_s29 }
 0xa3d   :  { %v1858_v52 = vpop.xlane.xlu0 %1857 }
 0xa3e   :  { %10054 = vrcp.f32 %v1858_v52 }
 0xa3f   :  { %2659 = vrot.lane.b32.xlu0 %v11270_v32, %s10646_s29  ;;  %2285 = vrot.lane.b32.xlu1 %v11208_v8, %s10646_s29 }
 0xa41   :  { %v1861_v2 = vpop.xlane.xlu1 %1860 }
 0xa42   :  { %10056 = vrcp.f32 %v1861_v2 }
 0xa43   :  { %2785 = vrot.lane.b32.xlu0 %v11170_v45, %s10633_s28  ;;  %2289 = vrot.lane.b32.xlu1 %v11204_v5, %s10646_s29 }
 0xa45   :  { %v1864_v25 = vpop.xlane.xlu0 %1863 }
 0xa46   :  { %10058 = vrcp.f32 %v1864_v25 }
 0xa47   :  { %v10053_v3 = vpop.eup %10052  ;;  %2657 = vrot.lane.b32.xlu0 %v11278_v31, %s10646_s29  ;;  %2541 = vrot.lane.b32.xlu1 %v11158_v56, %s10646_s29 }
 0xa48   :  { %v1893_v50 = vmul.f32 %v10053_v3, %v11641_v59 }
 0xa4a   :  { %9055 = vmatmul.mubr.msk.f32.vlgmr.msra.gmra.mxu1 %vm1202_vm4, %v1893_v50 }
 0xa4b   :  { %v10055_v29 = vpop.eup %10054  ;;  %9095 = vmatpush3.xpose.msk.msra.mxu1 %vm956_vm3, %v11632_v6  ;;  %2783 = vrot.lane.b32.xlu0 %v11164_v57, %s10633_s28 }
 0xa4c   :  { %2537 = vrot.lane.b32.xlu1 %v11176_v10, %s10646_s29  ;;  %9057 = vmatprep.mubr.msk.f32.mxu1 %vm10642_vm2, %v14432_v28  ;;  %v1894_v21 = vmul.f32 %v10055_v29, %v11645_v37 }
 0xa4d   :  { %9096 = vmatprep.subr.mxu1 %v14432_v28 }
 0xa4e   :  { %9058 = vmatmul.mubr.msk.f32.gmra.mxu1 %vm1202_vm4, %v1894_v21 }
 0xa4f   :  { %v10057_v59 = vpop.eup %10056  ;;  %9097 = vmatpush3.xpose.msk.msra.mxu1 %vm956_vm3, %v11555_v48  ;;  %2653 = vrot.lane.b32.xlu0 %v11294_v34, %s10646_s29 }
 0xa50   :  { %2791 = vrot.lane.b32.xlu1 %v11155_v55, %s10633_s28  ;;  %9060 = vmatprep.mubr.msk.f32.mxu1 %vm10642_vm2, %v14432_v28  ;;  %v1895_v6 = vmul.f32 %v10057_v59, %v11649_v41  ;;  %v2158_v41 = vpop.permute.xlu0 %2157 }
 0xa51   :  { %9098 = vmatprep.subr.mxu1 %v14432_v28 }
 0xa52   :  { %9061 = vmatmul.mubr.msk.f32.gmra.mxu1 %vm1202_vm4, %v1895_v6 }
 0xa53   :  { %v10059_v37 = vpop.eup %10058  ;;  %9099 = vmatpush3.xpose.msk.msra.mxu1 %vm956_vm3, %v11560_v18  ;;  %2773 = vrot.lane.b32.xlu0 %v11164_v57, %s10647_s30  ;;  %v2298_v57 = vpop.permute.xlu1 %2297 }
 0xa54   :  { %2655 = vrot.lane.b32.xlu1 %v11286_v33, %s10646_s29  ;;  %9063 = vmatprep.mubr.msk.f32.mxu1 %vm10642_vm2, %v14432_v28  ;;  %v1896_v48 = vmul.f32 %v10059_v37, %v11653_v61 }
 0xa55   :  { %9100 = vmatprep.subr.mxu1 %v14432_v28 }
 0xa56   :  { %9064 = vmatmul.mubr.msk.f32.gmra.mxu1 %vm1202_vm4, %v1896_v48 }
 0xa57   :  { %9101 = vmatpush3.xpose.msk.msra.mxu1 %vm956_vm3, %v11564_v60  ;;  %2921 = vrot.lane.b32.xlu0 %v11210_v9, %s10633_s28 }
 0xa58   :  { %2775 = vrot.lane.b32.xlu1 %v11170_v45, %s10647_s30  ;;  %9102 = vmatprep.subr.mxu1 %v14432_v28 }
 0xa59   :  { %9066 = vmatprep.mubr.msk.f32.mxu1 %vm10642_vm2, %v14432_v28 }
 0xa5b   :  { %9103 = vmatpush3.xpose.msk.msra.mxu1 %vm956_vm3, %v11636_v26 }
 0xa5c   :  { %9144 = vmatprep.subr.mxu1 %v14432_v28 }
 0xa76   :  { %v1867_v18 = vpop.xlane.xlu1 %1866 }
 0xa77   :  { %10060 = vrcp.f32 %v1867_v18 }
 0xa7a   :  { %v1870_v60 = vpop.xlane.xlu1 %1869 }
 0xa7b   :  { %10062 = vrcp.f32 %v1870_v60 }
 0xa7e   :  { %v1873_v61 = vpop.xlane.xlu1 %1872 }
 0xa7f   :  { %10064 = vrcp.f32 %v1873_v61 }
 0xa82   :  { %v1876_v53 = vpop.xlane.xlu0 %1875 }
 0xa83   :  { %10066 = vrcp.f32 %v1876_v53 }
 0xa84   :  { %v10061_v45 = vpop.eup %10060 }
 0xa85   :  { %v1897_v1 = vmul.f32 %v10061_v45, %v11665_v0 }
 0xa86   :  { %v1879_v42 = vpop.xlane.xlu0 %1878 }
 0xa87   :  { %10068 = vrcp.f32 %v1879_v42  ;;  %9067 = vmatmul.mubr.msk.f32.gmra.mxu1 %vm1202_vm4, %v1897_v1 }
 0xa88   :  { %v10063_v26 = vpop.eup %10062  ;;  %9104 = vmatprep.mubr.msk.f32.mxu1 %vm10642_vm2, %v14432_v28 }
 0xa89   :  { %v1898_v11 = vmul.f32 %v10063_v26, %v11670_v20 }
 0xa8a   :  { %v2160_v52 = vpop.permute.xlu0 %2159 }
 0xa8b   :  { %9080 = vmatmul.mubr.msk.f32.vlgmr.msra.gmra.mxu0 %vm1202_vm4, %v1898_v11  ;;  %9105 = vmatmul.mubr.msk.f32.vlgmr.msra.gmra.mxu1 %vm956_vm3, %v11630_v13 }
 0xa8c   :  { %v10065_v2 = vpop.eup %10064  ;;  %9120 = vmatpush3.xpose.msk.msra.mxu0 %vm956_vm3, %v11634_v43  ;;  %9082 = vmatprep.mubr.msk.f32.mxu0 %vm10642_vm2, %v14432_v28 }
 0xa8d   :  { %9107 = vmatprep.mubr.msk.f32.mxu1 %vm10642_vm2, %v14432_v28  ;;  %9121 = vmatprep.subr.mxu0 %v14432_v28  ;;  %v1899_v0 = vmul.f32 %v10065_v2, %v11674_v62 }
 0xa8e   :  { %v2162_v20 = vpop.permute.xlu0 %2161 }
 0xa8f   :  { %9083 = vmatmul.mubr.msk.f32.gmra.mxu0 %vm1202_vm4, %v1899_v0  ;;  %9108 = vmatmul.mubr.msk.f32.gmra.mxu1 %vm956_vm3, %v11717_v30 }
 0xa90   :  { %v10067_v13 = vpop.eup %10066  ;;  %9122 = vmatpush3.xpose.msk.msra.mxu0 %vm956_vm3, %v11713_v19  ;;  %9085 = vmatprep.mubr.msk.f32.mxu0 %vm10642_vm2, %v14432_v28  ;;  %v2296_v19 = vpop.permute.xlu1 %2295 }
 0xa91   :  { %9110 = vmatprep.mubr.msk.f32.mxu1 %vm10642_vm2, %v14432_v28  ;;  %9123 = vmatprep.subr.mxu0 %v14432_v28  ;;  %v1900_v43 = vmul.f32 %v10067_v13, %v11678_v38 }
 0xa92   :  { %v2284_v62 = vpop.permute.xlu0 %2283 }
 0xa93   :  { %9086 = vmatmul.mubr.msk.f32.gmra.mxu0 %vm1202_vm4, %v1900_v43  ;;  %9111 = vmatmul.mubr.msk.f32.gmra.mxu1 %vm956_vm3, %v2158_v41 }
 0xa94   :  { %v10069_v30 = vpop.eup %10068  ;;  %9124 = vmatpush3.xpose.msk.msra.mxu0 %vm956_vm3, %v2298_v57  ;;  %9088 = vmatprep.mubr.msk.f32.mxu0 %vm10642_vm2, %v14432_v28  ;;  %v2294_v50 = vpop.permute.xlu1 %2293 }
 0xa95   :  { %9113 = vmatprep.mubr.msk.f32.mxu1 %vm10642_vm2, %v14432_v28  ;;  %9125 = vmatprep.subr.mxu0 %v14432_v28  ;;  %v1901_v25 = vmul.f32 %v10069_v30, %v11682_v27 }
 0xa96   :  { %v2288_v38 = vpop.permute.xlu0 %2287 }
 0xa97   :  { %9089 = vmatmul.mubr.msk.f32.gmra.mxu0 %vm1202_vm4, %v1901_v25  ;;  %9114 = vmatmul.mubr.msk.f32.gmra.mxu1 %vm956_vm3, %v2160_v52 }
 0xa98   :  { %9126 = vmatpush3.xpose.msk.msra.mxu0 %vm956_vm3, %v2296_v19  ;;  %9116 = vmatprep.mubr.msk.f32.mxu1 %vm10642_vm2, %v14432_v28 }
 0xa99   :  { %9127 = vmatprep.subr.mxu0 %v14432_v28  ;;  %9091 = vmatprep.mubr.msk.f32.mxu0 %vm10642_vm2, %v14432_v28 }
 0xa9a   :  { %v2292_v3 = vpop.permute.xlu0 %2291 }
 0xa9b   :  { %9117 = vmatmul.mubr.msk.f32.gmra.mxu1 %vm956_vm3, %v2162_v20 }
 0xa9c   :  { %9128 = vmatpush3.xpose.msk.msra.mxu0 %vm956_vm3, %v2294_v50  ;;  %9154 = vmatprep.mubr.msk.f32.mxu1 %vm10642_vm2, %v14432_v28 }
 0xa9d   :  { %9169 = vmatprep.subr.mxu0 %v14432_v28 }
 0xa9e   :  { %v2540_v27 = vpop.permute.xlu0 %2539 }
 0xaa2   :  { %v2536_v29 = vpop.permute.xlu0 %2535 }
 0xaa6   :  { %v2534_v21 = vpop.permute.xlu0 %2533 }
 0xaaa   :  { %v11829_v59 = vpop.permute.xlu0 %2789 }
 0xaae   :  { %v11831_v6 = vpop.permute.xlu0 %2787 }
 0xab2   :  { %v2662_v37 = vpop.permute.xlu0 %2661 }
 0xab6   :  { %v2660_v18 = vpop.permute.xlu0 %2659 }
 0xab7   :  { %v1882_v48 = vpop.xlane.xlu1 %1881 }
 0xab8   :  { %10070 = vrcp.f32 %v1882_v48 }
 0xaba   :  { %v11833_v41 = vpop.permute.xlu0 %2785 }
 0xabb   :  { %v2286_v57 = vpop.permute.xlu1 %2285 }
 0xabe   :  { %v2658_v42 = vpop.permute.xlu0 %2657 }
 0xabf   :  { %v2290_v60 = vpop.permute.xlu1 %2289 }
 0xac3   :  { %v2542_v61 = vpop.permute.xlu1 %2541 }
 0xac4   :  { %9145 = vmatpush3.msra.mxu1 %v2542_v61 }
 0xac5   :  { %v10071_v53 = vpop.eup %10070  ;;  %9146 = vmatprep.subr.mxu1 %v14432_v28 }
 0xac6   :  { %9147 = vmatpush3.msra.mxu1 %v2540_v27  ;;  %v1902_v45 = vmul.f32 %v10071_v53, %v11703_v16  ;;  %v11848_v16 = vpop.permute.xlu0 %2783 }
 0xac7   :  { %v2538_v1 = vpop.permute.xlu1 %2537  ;;  %9148 = vmatprep.subr.mxu1 %v14432_v28 }
 0xac8   :  { %9092 = vmatmul.mubr.msk.f32.gmra.mxu0 %vm1202_vm4, %v1902_v45  ;;  %9149 = vmatpush3.msra.mxu1 %v2538_v1 }
 0xac9   :  { %9150 = vmatprep.subr.mxu1 %v14432_v28  ;;  %9129 = vmatprep.mubr.msk.f32.mxu0 %vm10642_vm2, %v14432_v28 }
 0xaca   :  { %9151 = vmatpush3.msra.mxu1 %v2536_v29  ;;  %v2654_v52 = vpop.permute.xlu0 %2653 }
 0xacb   :  { %9152 = vmatprep.subr.mxu1 %v14432_v28  ;;  %v11843_v26 = vpop.permute.xlu1 %2791 }
 0xacc   :  { %9130 = vmatmul.mubr.msk.f32.vlgmr.msra.gmra.mxu0 %vm956_vm3, %v2284_v62  ;;  %9153 = vmatpush3.msra.mxu1 %v2534_v21 }
 0xacd   :  { %9170 = vmatpush3.msra.mxu0 %v2662_v37  ;;  %9132 = vmatprep.mubr.msk.f32.mxu0 %vm10642_vm2, %v14432_v28 }
 0xace   :  { %9171 = vmatprep.subr.mxu0 %v14432_v28  ;;  %9194 = vmatprep.subr.mxu1 %v14432_v28 }
 0xacf   :  { %9172 = vmatpush3.msra.mxu0 %v2660_v18  ;;  %v2656_v11 = vpop.permute.xlu1 %2655 }
 0xad0   :  { %9173 = vmatprep.subr.mxu0 %v14432_v28  ;;  %9133 = vmatmul.mubr.msk.f32.gmra.mxu0 %vm956_vm3, %v2286_v57 }
 0xad1   :  { %9174 = vmatpush3.msra.mxu0 %v2658_v42  ;;  %9135 = vmatprep.mubr.msk.f32.mxu0 %vm10642_vm2, %v14432_v28 }
 0xad2   :  { %9175 = vmatprep.subr.mxu0 %v14432_v28 }
 0xad3   :  { %9176 = vmatpush3.msra.mxu0 %v2656_v11 }
 0xad4   :  { %9177 = vmatprep.subr.mxu0 %v14432_v28  ;;  %9136 = vmatmul.mubr.msk.f32.gmra.mxu0 %vm956_vm3, %v2288_v38 }
 0xad5   :  { %9178 = vmatpush3.msra.mxu0 %v2654_v52  ;;  %9138 = vmatprep.mubr.msk.f32.mxu0 %vm10642_vm2, %v14432_v28 }
 0xad6   :  { %9219 = vmatprep.subr.mxu0 %v14432_v28 }
 0xad8   :  { %9139 = vmatmul.mubr.msk.f32.gmra.mxu0 %vm956_vm3, %v2290_v60 }
 0xad9   :  { %9141 = vmatprep.mubr.msk.f32.mxu0 %vm10642_vm2, %v14432_v28 }
 0xadc   :  { %9142 = vmatmul.mubr.msk.f32.gmra.mxu0 %vm956_vm3, %v2292_v3 }
 0xadd   :  { %9179 = vmatprep.mubr.msk.f32.mxu0 %vm10642_vm2, %v14432_v28 }
 0xb0a   :  { %v11868_v2 = vpop.f32.mrf.mxu1 }
 0xb0c   :  { %v9056_v0 = vpop.f32.mrf.mxu1 }
 0xb0e   :  { %v11870_v20 = vpop.f32.mrf.mxu1 }
 0xb10   :  { %v9059_v13 = vpop.f32.mrf.mxu1 }
 0xb12   :  { %v11872_v43 = vpop.f32.mrf.mxu1 }
 0xb14   :  { %v9062_v62 = vpop.f32.mrf.mxu1 }
 0xb16   :  { %v11874_v30 = vpop.f32.mrf.mxu1 }
 0xb18   :  { %v9065_v19 = vpop.f32.mrf.mxu1 }
 0xb47   :  { %v11876_v25 = vpop.f32.mrf.mxu1 }
 0xb49   :  { %v9068_v38 = vpop.f32.mrf.mxu1 }
 0xb4b   :  { %v11878_v50 = vpop.f32.mrf.mxu0  ;;  %v2259_v3 = vpop.f32.mrf.mxu1 }
 0xb4c   :  { %v11880_v27 = vmul.f32 0.25, %v2259_v3 }
 0xb4d   :  { %v9081_v29 = vpop.f32.mrf.mxu0  ;;  %v9106_v21 = vpop.f32.mrf.mxu1 }
 0xb4e   :  { %v2423_v37 = vsel %vm1202_vm4, %v11880_v27, -inf }
 0xb4f   :  { %v11884_v48 = vpop.f32.mrf.mxu0  ;;  %2424 = vmax.xlane.f32.xlu1 %v2423_v37  ;;  %v2264_v57 = vpop.f32.mrf.mxu1 }
 0xb50   :  { %v2414_v18 = vmul.f32 0.25, %v2264_v57 }
 0xb51   :  { %v9084_v60 = vpop.f32.mrf.mxu0  ;;  %v9109_v61 = vpop.f32.mrf.mxu1 }
 0xb52   :  { %v2426_v53 = vsel %vm1202_vm4, %v2414_v18, -inf }
 0xb53   :  { %2427 = vmax.xlane.f32.xlu0 %v2426_v53  ;;  %v11887_v45 = vpop.f32.mrf.mxu0  ;;  %v2269_v1 = vpop.f32.mrf.mxu1 }
 0xb54   :  { %v2415_v42 = vmul.f32 0.25, %v2269_v1 }
 0xb55   :  { %v9087_v11 = vpop.f32.mrf.mxu0  ;;  %v9112_v52 = vpop.f32.mrf.mxu1 }
 0xb56   :  { %v2429_v0 = vsel %vm1202_vm4, %v2415_v42, -inf }
 0xb57   :  { %2430 = vmax.xlane.f32.xlu0 %v2429_v0  ;;  %v11890_v13 = vpop.f32.mrf.mxu0  ;;  %v2274_v62 = vpop.f32.mrf.mxu1 }
 0xb58   :  { %v2416_v19 = vmul.f32 0.25, %v2274_v62 }
 0xb59   :  { %v9090_v38 = vpop.f32.mrf.mxu0  ;;  %v9115_v3 = vpop.f32.mrf.mxu1 }
 0xb5a   :  { %v2432_v29 = vsel %vm1202_vm4, %v2416_v19, -inf }
 0xb5b   :  { %2433 = vmax.xlane.f32.xlu1 %v2432_v29  ;;  %v2279_v21 = vpop.f32.mrf.mxu1 }
 0xb5c   :  { %v2417_v37 = vmul.f32 0.25, %v2279_v21 }
 0xb5d   :  { %v9118_v57 = vpop.f32.mrf.mxu1 }
 0xb5e   :  { %v2435_v60 = vsel %vm1202_vm4, %v2417_v37, -inf }
 0xb5f   :  { %2436 = vmax.xlane.f32.xlu0 %v2435_v60 }
 0xb88   :  { %v11894_v61 = vpop.f32.mrf.mxu0 }
 0xb89   :  { %14433 = vst [vmem:[#allocation40_spill] sm:$0xff] %v11894_v61 }
 0xb8a   :  { %v9093_v53 = vpop.f32.mrf.mxu0 }
 0xb8c   :  { %v2389_v1 = vpop.f32.mrf.mxu0 }
 0xb8d   :  { %v11896_v11 = vmul.f32 0.25, %v2389_v1 }
 0xb8e   :  { %v9131_v52 = vpop.f32.mrf.mxu0 }
 0xb8f   :  { %v2438_v0 = vsel %vm1202_vm4, %v11896_v11, -inf }
 0xb90   :  { %2439 = vmax.xlane.f32.xlu1 %v2438_v0  ;;  %v2394_v62 = vpop.f32.mrf.mxu0 }
 0xb91   :  { %v11900_v38 = vmul.f32 0.25, %v2394_v62 }
 0xb92   :  { %v9134_v3 = vpop.f32.mrf.mxu0 }
 0xb93   :  { %v2441_v29 = vsel %vm1202_vm4, %v11900_v38, -inf }
 0xb94   :  { %2442 = vmax.xlane.f32.xlu0 %v2441_v29  ;;  %v2399_v21 = vpop.f32.mrf.mxu0 }
 0xb95   :  { %v11904_v57 = vmul.f32 0.25, %v2399_v21 }
 0xb96   :  { %v9137_v60 = vpop.f32.mrf.mxu0 }
 0xb97   :  { %v2444_v53 = vsel %vm1202_vm4, %v11904_v57, -inf  ;;  %v11920_v60 = vpop.permute.xlu0 %2773 }
 0xb98   :  { %2445 = vmax.xlane.f32.xlu1 %v2444_v53  ;;  %v2404_v1 = vpop.f32.mrf.mxu0  ;;  %v11922_v53 = vpop.permute.xlu1 %2775 }
 0xb99   :  { %v11908_v52 = vmul.f32 0.25, %v2404_v1 }
 0xb9a   :  { %v9140_v0 = vpop.f32.mrf.mxu0 }
 0xb9b   :  { %v2447_v62 = vsel %vm1202_vm4, %v11908_v52, -inf  ;;  %v11924_v1 = vpop.permute.xlu0 %2921 }
 0xb9c   :  { %2448 = vmax.xlane.f32.xlu0 %v2447_v62  ;;  %v2409_v3 = vpop.f32.mrf.mxu0 }
 0xb9d   :  { %v11916_v29 = vmul.f32 0.25, %v2409_v3 }
 0xb9e   :  { %v9143_v39 = vpop.f32.mrf.mxu0 }
 0xb9f   :  { %v2450_v21 = vsel %vm1202_vm4, %v11916_v29, -inf }
 0xba9   :  { %2777 = vrot.lane.b32.xlu1 %v11153_v54, %s10647_s30 }
 0xbb2   :  { %2919 = vrot.lane.b32.xlu0 %v11204_v5, %s10633_s28 }
 0xbcd   :  { %2451 = vmax.xlane.f32.xlu1 %v2450_v21 }
 0xbd8   :  { %v2425_v0 = vpop.xlane.xlu1 %2424 }
 0xbd9   :  { %v2453_v39 = vsub.f32 %v11880_v27, %v2425_v0 }
 0xbdb   :  { %v2463_v62 = vmul.f32 1.442695, %v2453_v39 }
 0xbdc   :  { %v2428_v54 = vpop.xlane.xlu0 %2427 }
 0xbdd   :  { %10072 = vpow2.f32 %v2463_v62  ;;  %v2454_v24 = vsub.f32 %v2414_v18, %v2428_v54 }
 0xbdf   :  { %v2465_v15 = vmul.f32 1.442695, %v2454_v24 }
 0xbe0   :  { %v2431_v3 = vpop.xlane.xlu0 %2430 }
 0xbe1   :  { %10074 = vpow2.f32 %v2465_v15  ;;  %v2455_v40 = vsub.f32 %v2415_v42, %v2431_v3 }
 0xbe3   :  { %v2467_v23 = vmul.f32 1.442695, %v2455_v40 }
 0xbe4   :  { %v2434_v17 = vpop.xlane.xlu1 %2433 }
 0xbe5   :  { %10076 = vpow2.f32 %v2467_v23  ;;  %v2456_v21 = vsub.f32 %v2416_v19, %v2434_v17 }
 0xbe7   :  { %v2469_v4 = vmul.f32 1.442695, %v2456_v21 }
 0xbe8   :  { %v2437_v35 = vpop.xlane.xlu0 %2436 }
 0xbe9   :  { %10078 = vpow2.f32 %v2469_v4  ;;  %v2457_v61 = vsub.f32 %v2417_v37, %v2437_v35 }
 0xbea   :  { %v11927_v22 = vpop.eup %10072 }
 0xbeb   :  { %v2471_v63 = vmul.f32 1.442695, %v2457_v61  ;;  %v2483_v27 = vsel %vm1202_vm4, %v11927_v22, 0.0 }
 0xbec   :  { %2484 = vadd.xlane.f32.xlu0 %v2483_v27 }
 0xbed   :  { %10080 = vpow2.f32 %v2471_v63 }
 0xbee   :  { %v11931_v24 = vpop.eup %10074 }
 0xbef   :  { %v2486_v15 = vsel %vm1202_vm4, %v11931_v24, 0.0 }
 0xbf0   :  { %2487 = vadd.xlane.f32.xlu1 %v2486_v15 }
 0xbf2   :  { %v11935_v23 = vpop.eup %10076 }
 0xbf3   :  { %v2489_v4 = vsel %vm1202_vm4, %v11935_v23, 0.0 }
 0xbf4   :  { %2490 = vadd.xlane.f32.xlu0 %v2489_v4 }
 0xbf6   :  { %v11939_v35 = vpop.eup %10078 }
 0xbf7   :  { %v2492_v17 = vsel %vm1202_vm4, %v11939_v35, 0.0 }
 0xbf8   :  { %2493 = vadd.xlane.f32.xlu1 %v2492_v17 }
 0xbfa   :  { %v11943_v40 = vpop.eup %10080 }
 0xbfb   :  { %v2495_v63 = vsel %vm1202_vm4, %v11943_v40, 0.0 }
 0xbfc   :  { %2496 = vadd.xlane.f32.xlu0 %v2495_v63 }
 0xc09   :  { %2779 = vrot.lane.b32.xlu1 %v11145_v51, %s10647_s30 }
 0xc19   :  { %v2440_v18 = vpop.xlane.xlu1 %2439 }
 0xc1a   :  { %v2458_v42 = vsub.f32 %v11896_v11, %v2440_v18 }
 0xc1c   :  { %v2473_v19 = vmul.f32 1.442695, %v2458_v42 }
 0xc1d   :  { %v2443_v37 = vpop.xlane.xlu0 %2442 }
 0xc1e   :  { %10082 = vpow2.f32 %v2473_v19  ;;  %v2459_v61 = vsub.f32 %v11900_v38, %v2443_v37 }
 0xc20   :  { %v2475_v0 = vmul.f32 1.442695, %v2459_v61 }
 0xc21   :  { %v2446_v11 = vpop.xlane.xlu1 %2445 }
 0xc22   :  { %10084 = vpow2.f32 %v2475_v0  ;;  %v2460_v38 = vsub.f32 %v11904_v57, %v2446_v11 }
 0xc24   :  { %v2477_v21 = vmul.f32 1.442695, %v2460_v38 }
 0xc25   :  { %v2449_v3 = vpop.xlane.xlu0 %2448  ;;  %v11965_v4 = vpop.permute.xlu1 %2777 }
 0xc26   :  { %v2461_v27 = vsub.f32 %v11908_v52, %v2449_v3  ;;  %10086 = vpow2.f32 %v2477_v21 }
 0xc28   :  { %v2479_v15 = vmul.f32 1.442695, %v2461_v27 }
 0xc2a   :  { %10088 = vpow2.f32 %v2479_v15 }
 0xc2b   :  { %v11951_v39 = vpop.eup %10082 }
 0xc2c   :  { %v2498_v62 = vsel %vm1202_vm4, %v11951_v39, 0.0 }
 0xc2d   :  { %2499 = vadd.xlane.f32.xlu0 %v2498_v62 }
 0xc2f   :  { %v11955_v54 = vpop.eup %10084 }
 0xc30   :  { %v2501_v51 = vsel %vm1202_vm4, %v11955_v54, 0.0 }
 0xc31   :  { %2502 = vadd.xlane.f32.xlu1 %v2501_v51 }
 0xc33   :  { %v11968_v42 = vpop.eup %10086 }
 0xc34   :  { %v2504_v19 = vsel %vm1202_vm4, %v11968_v42, 0.0 }
 0xc37   :  { %v11972_v57 = vpop.eup %10088 }
 0xc38   :  { %v2507_v52 = vsel %vm1202_vm4, %v11972_v57, 0.0 }
 0xc42   :  { %2913 = vrot.lane.b32.xlu1 %v11220_v14, %s10633_s28 }
 0xc43   :  { %2917 = vrot.lane.b32.xlu0 %v11216_v12, %s10633_s28 }
 0xc56   :  { %v2452_v17 = vpop.xlane.xlu1 %2451 }
 0xc57   :  { %v2462_v63 = vsub.f32 %v11916_v29, %v2452_v17  ;;  %v11980_v29 = vpop.permute.xlu0 %2919 }
 0xc59   :  { %v2481_v18 = vmul.f32 1.442695, %v2462_v63 }
 0xc5b   :  { %10090 = vpow2.f32 %v2481_v18 }
 0xc62   :  { %2505 = vadd.xlane.f32.xlu0 %v2504_v19 }
 0xc66   :  { %2508 = vadd.xlane.f32.xlu0 %v2507_v52 }
 0xc68   :  { %v11976_v37 = vpop.eup %10090 }
 0xc69   :  { %v2510_v61 = vsel %vm1202_vm4, %v11976_v37, 0.0 }
 0xc6a   :  { %2511 = vadd.xlane.f32.xlu1 %v2510_v61 }
 0xc75   :  { %v2485_v0 = vpop.xlane.xlu0 %2484 }
 0xc76   :  { %10092 = vrcp.f32 %v2485_v0 }
 0xc79   :  { %v2488_v62 = vpop.xlane.xlu1 %2487 }
 0xc7a   :  { %10094 = vrcp.f32 %v2488_v62 }
 0xc7b   :  { %2903 = vrot.lane.b32.xlu1 %v11220_v14, %s10647_s30 }
 0xc7c   :  { %2915 = vrot.lane.b32.xlu0 %v11208_v8, %s10633_s28 }
 0xc7d   :  { %v2491_v51 = vpop.xlane.xlu0 %2490 }
 0xc7e   :  { %10096 = vrcp.f32 %v2491_v51 }
 0xc7f   :  { %2907 = vrot.lane.b32.xlu1 %v11216_v12, %s10647_s30 }
 0xc80   :  { %2781 = vrot.lane.b32.xlu0 %v11155_v55, %s10647_s30 }
 0xc81   :  { %v2494_v11 = vpop.xlane.xlu1 %2493 }
 0xc82   :  { %10098 = vrcp.f32 %v2494_v11 }
 0xc83   :  { %v10093_v38 = vpop.eup %10092  ;;  %2911 = vrot.lane.b32.xlu1 %v11210_v9, %s10647_s30 }
 0xc84   :  { %v2523_v3 = vmul.f32 %v10093_v38, %v11927_v22  ;;  %2905 = vrot.lane.b32.xlu0 %v11208_v8, %s10647_s30 }
 0xc85   :  { %v2497_v14 = vpop.xlane.xlu0 %2496  ;;  %v2780_v12 = vpop.permute.xlu1 %2779 }
 0xc86   :  { %10100 = vrcp.f32 %v2497_v14  ;;  %9155 = vmatmul.mubr.msk.f32.vlgmr.msra.gmra.mxu1 %vm1202_vm4, %v2523_v3 }
 0xc87   :  { %v10095_v21 = vpop.eup %10094  ;;  %9195 = vmatpush3.xpose.msk.msra.mxu1 %vm956_vm3, %v11843_v26  ;;  %3161 = vrot.lane.b32.xlu1 %v11158_v56, %s10647_s30 }
 0xc88   :  { %2909 = vrot.lane.b32.xlu0 %v11204_v5, %s10647_s30  ;;  %9157 = vmatprep.mubr.msk.f32.mxu1 %vm10642_vm2, %v14432_v28  ;;  %v2524_v55 = vmul.f32 %v10095_v21, %v11931_v24 }
 0xc89   :  { %9196 = vmatprep.subr.mxu1 %v14432_v28 }
 0xc8a   :  { %9158 = vmatmul.mubr.msk.f32.gmra.mxu1 %vm1202_vm4, %v2524_v55 }
 0xc8b   :  { %v10097_v8 = vpop.eup %10096  ;;  %9197 = vmatpush3.xpose.msk.msra.mxu1 %vm956_vm3, %v11829_v59  ;;  %3157 = vrot.lane.b32.xlu1 %v11176_v10, %s10647_s30 }
 0xc8c   :  { %3159 = vrot.lane.b32.xlu0 %v11167_v58, %s10647_s30  ;;  %9160 = vmatprep.mubr.msk.f32.mxu1 %vm10642_vm2, %v14432_v28  ;;  %v2525_v56 = vmul.f32 %v10097_v8, %v11935_v23 }
 0xc8d   :  { %9198 = vmatprep.subr.mxu1 %v14432_v28 }
 0xc8e   :  { %9161 = vmatmul.mubr.msk.f32.gmra.mxu1 %vm1202_vm4, %v2525_v56 }
 0xc8f   :  { %v10099_v5 = vpop.eup %10098  ;;  %9199 = vmatpush3.xpose.msk.msra.mxu1 %vm956_vm3, %v11831_v6  ;;  %9163 = vmatprep.mubr.msk.f32.mxu1 %vm10642_vm2, %v14432_v28 }
 0xc90   :  { %9200 = vmatprep.subr.mxu1 %v14432_v28  ;;  %v2526_v58 = vmul.f32 %v10099_v5, %v11939_v35 }
 0xc92   :  { %9164 = vmatmul.mubr.msk.f32.gmra.mxu1 %vm1202_vm4, %v2526_v58 }
 0xc93   :  { %v10101_v10 = vpop.eup %10100  ;;  %9201 = vmatpush3.xpose.msk.msra.mxu1 %vm956_vm3, %v11833_v41  ;;  %9166 = vmatprep.mubr.msk.f32.mxu1 %vm10642_vm2, %v14432_v28 }
 0xc94   :  { %9202 = vmatprep.subr.mxu1 %v14432_v28  ;;  %v2527_v9 = vmul.f32 %v10101_v10, %v11943_v40 }
 0xc96   :  { %9167 = vmatmul.mubr.msk.f32.gmra.mxu1 %vm1202_vm4, %v2527_v9 }
 0xc97   :  { %9203 = vmatpush3.xpose.msk.msra.mxu1 %vm956_vm3, %v11848_v16  ;;  %9204 = vmatprep.mubr.msk.f32.mxu1 %vm10642_vm2, %v14432_v28 }
 0xc98   :  { %9912 = vmatprep.subr.mxu1 %v14432_v28 }
 0xc9a   :  { %9205 = vmatmul.mubr.msk.f32.vlgmr.msra.gmra.mxu1 %vm956_vm3, %v11920_v60 }
 0xc9b   :  { %9207 = vmatprep.mubr.msk.f32.mxu1 %vm10642_vm2, %v14432_v28 }
 0xc9e   :  { %9208 = vmatmul.mubr.msk.f32.gmra.mxu1 %vm956_vm3, %v11922_v53 }
 0xc9f   :  { %9210 = vmatprep.mubr.msk.f32.mxu1 %vm10642_vm2, %v14432_v28 }
 0xca2   :  { %9211 = vmatmul.mubr.msk.f32.gmra.mxu1 %vm956_vm3, %v11965_v4 }
 0xca3   :  { %9213 = vmatprep.mubr.msk.f32.mxu1 %vm10642_vm2, %v14432_v28 }
 0xca6   :  { %9214 = vmatmul.mubr.msk.f32.gmra.mxu1 %vm956_vm3, %v2780_v12 }
 0xca7   :  { %9216 = vmatprep.mubr.msk.f32.mxu1 %vm10642_vm2, %v14432_v28 }
 0xcb6   :  { %v2500_v22 = vpop.xlane.xlu0 %2499 }
 0xcb7   :  { %10102 = vrcp.f32 %v2500_v22 }
 0xcba   :  { %v2503_v59 = vpop.xlane.xlu1 %2502  ;;  %v2918_v60 = vpop.permute.xlu0 %2917 }
 0xcbb   :  { %10104 = vrcp.f32 %v2503_v59 }
 0xcc4   :  { %v10103_v6 = vpop.eup %10102 }
 0xcc5   :  { %v2528_v41 = vmul.f32 %v10103_v6, %v11951_v39 }
 0xcc7   :  { %9180 = vmatmul.mubr.msk.f32.vlgmr.msra.gmra.mxu0 %vm1202_vm4, %v2528_v41 }
 0xcc8   :  { %v10105_v26 = vpop.eup %10104  ;;  %9220 = vmatpush3.xpose.msk.msra.mxu0 %vm956_vm3, %v11924_v1  ;;  %9182 = vmatprep.mubr.msk.f32.mxu0 %vm10642_vm2, %v14432_v28  ;;  %v2914_v1 = vpop.permute.xlu1 %2913 }
 0xcc9   :  { %9221 = vmatprep.subr.mxu0 %v14432_v28  ;;  %v2529_v16 = vmul.f32 %v10105_v26, %v11955_v54 }
 0xccb   :  { %9183 = vmatmul.mubr.msk.f32.gmra.mxu0 %vm1202_vm4, %v2529_v16 }
 0xccc   :  { %9222 = vmatpush3.xpose.msk.msra.mxu0 %vm956_vm3, %v11980_v29  ;;  %9185 = vmatprep.mubr.msk.f32.mxu0 %vm10642_vm2, %v14432_v28 }
 0xccd   :  { %9223 = vmatprep.subr.mxu0 %v14432_v28 }
 0xcd0   :  { %9224 = vmatpush3.xpose.msk.msra.mxu0 %vm956_vm3, %v2918_v60 }
 0xcd1   :  { %9225 = vmatprep.subr.mxu0 %v14432_v28 }
 0xceb   :  { %v2506_v53 = vpop.xlane.xlu0 %2505 }
 0xcec   :  { %10106 = vrcp.f32 %v2506_v53 }
 0xcef   :  { %v2509_v24 = vpop.xlane.xlu0 %2508 }
 0xcf0   :  { %10108 = vrcp.f32 %v2509_v24 }
 0xcf3   :  { %v2512_v23 = vpop.xlane.xlu1 %2511  ;;  %v2916_v35 = vpop.permute.xlu0 %2915 }
 0xcf4   :  { %10110 = vrcp.f32 %v2512_v23  ;;  %9226 = vmatpush3.xpose.msk.msra.mxu0 %vm956_vm3, %v2916_v35 }
 0xcf5   :  { %9227 = vmatprep.subr.mxu0 %v14432_v28 }
 0xcf7   :  { %v2904_v40 = vpop.permute.xlu1 %2903  ;;  %v2782_v39 = vpop.permute.xlu0 %2781 }
 0xcf8   :  { %9217 = vmatmul.mubr.msk.f32.gmra.mxu1 %vm956_vm3, %v2782_v39  ;;  %9228 = vmatpush3.xpose.msk.msra.mxu0 %vm956_vm3, %v2914_v1 }
 0xcf9   :  { %v10107_v54 = vpop.eup %10106  ;;  %9244 = vmatprep.subr.mxu0 %v14432_v28  ;;  %9257 = vmatprep.mubr.msk.f32.mxu1 %vm10642_vm2, %v14432_v28 }
 0xcfa   :  { %v2530_v27 = vmul.f32 %v10107_v54, %v11968_v42 }
 0xcfb   :  { %v2908_v15 = vpop.permute.xlu1 %2907  ;;  %v2906_v4 = vpop.permute.xlu0 %2905 }
 0xcfc   :  { %9186 = vmatmul.mubr.msk.f32.gmra.mxu0 %vm1202_vm4, %v2530_v27 }
 0xcfd   :  { %v10109_v17 = vpop.eup %10108  ;;  %9188 = vmatprep.mubr.msk.f32.mxu0 %vm10642_vm2, %v14432_v28 }
 0xcfe   :  { %v2531_v63 = vmul.f32 %v10109_v17, %v11972_v57 }
 0xcff   :  { %v2912_v18 = vpop.permute.xlu1 %2911  ;;  %v2910_v19 = vpop.permute.xlu0 %2909 }
 0xd00   :  { %9189 = vmatmul.mubr.msk.f32.gmra.mxu0 %vm1202_vm4, %v2531_v63 }
 0xd01   :  { %v10111_v52 = vpop.eup %10110  ;;  %9191 = vmatprep.mubr.msk.f32.mxu0 %vm10642_vm2, %v14432_v28 }
 0xd02   :  { %v2532_v42 = vmul.f32 %v10111_v52, %v11976_v37 }
 0xd03   :  { %v3162_v61 = vpop.permute.xlu1 %3161  ;;  %v3160_v29 = vpop.permute.xlu0 %3159 }
 0xd04   :  { %9192 = vmatmul.mubr.msk.f32.gmra.mxu0 %vm1202_vm4, %v2532_v42  ;;  %9917 = vmatpush3.msra.mxu1 %v3162_v61 }
 0xd05   :  { %9913 = vmatprep.subr.mxu1 %v14432_v28  ;;  %9229 = vmatprep.mubr.msk.f32.mxu0 %vm10642_vm2, %v14432_v28 }
 0xd06   :  { %9918 = vmatpush3.msra.mxu1 %v3160_v29 }
 0xd07   :  { %v3158_v57 = vpop.permute.xlu1 %3157  ;;  %9914 = vmatprep.subr.mxu1 %v14432_v28 }
 0xd08   :  { %9230 = vmatmul.mubr.msk.f32.vlgmr.msra.gmra.mxu0 %vm956_vm3, %v2904_v40  ;;  %9919 = vmatpush3.msra.mxu1 %v3158_v57 }
 0xd09   :  { %9245 = vmatpush3.msra.mxu0 %v3162_v61  ;;  %9232 = vmatprep.mubr.msk.f32.mxu0 %vm10642_vm2, %v14432_v28 }
 0xd0a   :  { %9246 = vmatprep.subr.mxu0 %v14432_v28  ;;  %9915 = vmatprep.subr.mxu1 %v14432_v28 }
 0xd0b   :  { %9247 = vmatpush3.msra.mxu0 %v3160_v29 }
 0xd0c   :  { %9248 = vmatprep.subr.mxu0 %v14432_v28  ;;  %9233 = vmatmul.mubr.msk.f32.gmra.mxu0 %vm956_vm3, %v2906_v4 }
 0xd0d   :  { %9249 = vmatpush3.msra.mxu0 %v3158_v57  ;;  %9235 = vmatprep.mubr.msk.f32.mxu0 %vm10642_vm2, %v14432_v28 }
 0xd0e   :  { %9250 = vmatprep.subr.mxu0 %v14432_v28 }
 0xd10   :  { %9236 = vmatmul.mubr.msk.f32.gmra.mxu0 %vm956_vm3, %v2908_v15 }
 0xd11   :  { %9238 = vmatprep.mubr.msk.f32.mxu0 %vm10642_vm2, %v14432_v28 }
 0xd14   :  { %9239 = vmatmul.mubr.msk.f32.gmra.mxu0 %vm956_vm3, %v2910_v19 }
 0xd15   :  { %9241 = vmatprep.mubr.msk.f32.mxu0 %vm10642_vm2, %v14432_v28 }
 0xd18   :  { %9242 = vmatmul.mubr.msk.f32.gmra.mxu0 %vm956_vm3, %v2912_v18 }
 0xd19   :  { %9254 = vmatprep.mubr.msk.f32.mxu0 %vm10642_vm2, %v14432_v28 }
 0xd46   :  { %v12108_v37 = vpop.f32.mrf.mxu1 }
 0xd48   :  { %v9156_v0 = vpop.f32.mrf.mxu1 }
 0xd4a   :  { %v12110_v62 = vpop.f32.mrf.mxu1 }
 0xd4c   :  { %v9159_v51 = vpop.f32.mrf.mxu1 }
 0xd4e   :  { %v12112_v11 = vpop.f32.mrf.mxu1 }
 0xd50   :  { %v9162_v38 = vpop.f32.mrf.mxu1 }
 0xd52   :  { %v12114_v3 = vpop.f32.mrf.mxu1 }
 0xd54   :  { %v9165_v14 = vpop.f32.mrf.mxu1 }
 0xd56   :  { %v12116_v21 = vpop.f32.mrf.mxu1 }
 0xd58   :  { %v9168_v55 = vpop.f32.mrf.mxu1 }
 0xd5a   :  { %v2879_v8 = vpop.f32.mrf.mxu1 }
 0xd5b   :  { %v3033_v56 = vmul.f32 0.25, %v2879_v8 }
 0xd5c   :  { %v9206_v5 = vpop.f32.mrf.mxu1 }
 0xd5d   :  { %v3043_v58 = vsel %vm1202_vm4, %v3033_v56, -inf }
 0xd5e   :  { %3044 = vmax.xlane.f32.xlu0 %v3043_v58  ;;  %v2884_v10 = vpop.f32.mrf.mxu1 }
 0xd5f   :  { %v12119_v9 = vmul.f32 0.25, %v2884_v10 }
 0xd60   :  { %v9209_v12 = vpop.f32.mrf.mxu1 }
 0xd61   :  { %v3046_v22 = vsel %vm1202_vm4, %v12119_v9, -inf }
 0xd62   :  { %3047 = vmax.xlane.f32.xlu1 %v3046_v22  ;;  %v2889_v59 = vpop.f32.mrf.mxu1 }
 0xd63   :  { %v3035_v6 = vmul.f32 0.25, %v2889_v59 }
 0xd64   :  { %v9212_v41 = vpop.f32.mrf.mxu1 }
 0xd65   :  { %v3049_v26 = vsel %vm1202_vm4, %v3035_v6, -inf }
 0xd66   :  { %3050 = vmax.xlane.f32.xlu0 %v3049_v26  ;;  %v2894_v16 = vpop.f32.mrf.mxu1 }
 0xd67   :  { %v12124_v60 = vmul.f32 0.25, %v2894_v16 }
 0xd68   :  { %v9215_v53 = vpop.f32.mrf.mxu1 }
 0xd69   :  { %v3052_v1 = vsel %vm1202_vm4, %v12124_v60, -inf }
 0xd6a   :  { %3053 = vmax.xlane.f32.xlu0 %v3052_v1 }
 0xd87   :  { %v12128_v24 = vpop.f32.mrf.mxu0 }
 0xd89   :  { %v9181_v23 = vpop.f32.mrf.mxu0 }
 0xd8b   :  { %v12130_v35 = vpop.f32.mrf.mxu0 }
 0xd8d   :  { %v9184_v40 = vpop.f32.mrf.mxu0 }
 0xdb8   :  { %v2899_v39 = vpop.f32.mrf.mxu1 }
 0xdb9   :  { %v12132_v54 = vmul.f32 0.25, %v2899_v39 }
 0xdba   :  { %v9218_v27 = vpop.f32.mrf.mxu1 }
 0xdbb   :  { %v3055_v15 = vsel %vm1202_vm4, %v12132_v54, -inf }
 0xdbc   :  { %v12136_v4 = vpop.f32.mrf.mxu0  ;;  %3056 = vmax.xlane.f32.xlu1 %v3055_v15 }
 0xdbe   :  { %v9187_v17 = vpop.f32.mrf.mxu0 }
 0xdc0   :  { %v12138_v63 = vpop.f32.mrf.mxu0 }
 0xdc2   :  { %v9190_v18 = vpop.f32.mrf.mxu0 }
 0xdc4   :  { %v12140_v19 = vpop.f32.mrf.mxu0 }
 0xdc6   :  { %v9193_v52 = vpop.f32.mrf.mxu0 }
 0xdc8   :  { %v3009_v42 = vpop.f32.mrf.mxu0 }
 0xdc9   :  { %v3038_v61 = vmul.f32 0.25, %v3009_v42 }
 0xdca   :  { %v9231_v29 = vpop.f32.mrf.mxu0 }
 0xdcb   :  { %v3058_v57 = vsel %vm1202_vm4, %v3038_v61, -inf }
 0xdcc   :  { %3059 = vmax.xlane.f32.xlu0 %v3058_v57  ;;  %v3014_v0 = vpop.f32.mrf.mxu0 }
 0xdcd   :  { %v12143_v51 = vmul.f32 0.25, %v3014_v0 }
 0xdce   :  { %v9234_v38 = vpop.f32.mrf.mxu0 }
 0xdcf   :  { %v3061_v14 = vsel %vm1202_vm4, %v12143_v51, -inf }
 0xdd0   :  { %3062 = vmax.xlane.f32.xlu1 %v3061_v14  ;;  %v3019_v55 = vpop.f32.mrf.mxu0 }
 0xdd1   :  { %v12155_v23 = vmul.f32 0.25, %v3019_v55 }
 0xdd2   :  { %v9237_v8 = vpop.f32.mrf.mxu0 }
 0xdd3   :  { %v3064_v27 = vsel %vm1202_vm4, %v12155_v23, -inf }
 0xdd4   :  { %v3024_v5 = vpop.f32.mrf.mxu0 }
 0xdd5   :  { %v12147_v58 = vmul.f32 0.25, %v3024_v5 }
 0xdd6   :  { %v9240_v10 = vpop.f32.mrf.mxu0 }
 0xdd7   :  { %v3067_v12 = vsel %vm1202_vm4, %v12147_v58, -inf }
 0xdd8   :  { %3068 = vmax.xlane.f32.xlu1 %v3067_v12  ;;  %v3029_v22 = vpop.f32.mrf.mxu0 }
 0xdd9   :  { %v12157_v39 = vmul.f32 0.25, %v3029_v22 }
 0xdda   :  { %v9243_v59 = vpop.f32.mrf.mxu0 }
 0xde2   :  { %3155 = vrot.lane.b32.xlu0 %v11185_v7, %s10647_s30  ;;  %v3070_v7 = vsel %vm1202_vm4, %v12157_v39, -inf }
 0xde7   :  { %v3045_v41 = vpop.xlane.xlu0 %3044 }
 0xde8   :  { %v3073_v26 = vsub.f32 %v3033_v56, %v3045_v41 }
 0xde9   :  { %3281 = vrot.lane.b32.xlu1 %v11265_v44, %s10647_s30 }
 0xdea   :  { %v3083_v53 = vmul.f32 1.442695, %v3073_v26 }
 0xdeb   :  { %v3048_v17 = vpop.xlane.xlu1 %3047 }
 0xdec   :  { %10112 = vpow2.f32 %v3083_v53  ;;  %v3074_v18 = vsub.f32 %v12119_v9, %v3048_v17 }
 0xdee   :  { %v3085_v42 = vmul.f32 1.442695, %v3074_v18 }
 0xdef   :  { %v3051_v16 = vpop.xlane.xlu0 %3050 }
 0xdf0   :  { %v3075_v1 = vsub.f32 %v3035_v6, %v3051_v16 }
 0xdf2   :  { %v3087_v40 = vmul.f32 1.442695, %v3075_v1 }
 0xdf3   :  { %v3054_v52 = vpop.xlane.xlu0 %3053 }
 0xdf4   :  { %10114 = vpow2.f32 %v3087_v40  ;;  %v3076_v29 = vsub.f32 %v12124_v60, %v3054_v52 }
 0xdf5   :  { %10116 = vpow2.f32 %v3085_v42 }
 0xdf6   :  { %v3089_v57 = vmul.f32 1.442695, %v3076_v29 }
 0xdf8   :  { %10118 = vpow2.f32 %v3089_v57 }
 0xdf9   :  { %v12163_v44 = vpop.eup %10112 }
 0xdfa   :  { %v3103_v56 = vsel %vm1202_vm4, %v12163_v44, 0.0 }
 0xe01   :  { %3065 = vmax.xlane.f32.xlu0 %v3064_v27  ;;  %v12167_v6 = vpop.eup %10114 }
 0xe02   :  { %v3109_v15 = vsel %vm1202_vm4, %v12167_v6, 0.0  ;;  %v12175_v0 = vpop.eup %10116 }
 0xe03   :  { %v3106_v38 = vsel %vm1202_vm4, %v12175_v0, 0.0 }
 0xe05   :  { %3071 = vmax.xlane.f32.xlu0 %v3070_v7  ;;  %v12179_v14 = vpop.eup %10118 }
 0xe0d   :  { %3104 = vadd.xlane.f32.xlu1 %v3103_v56 }
 0xe11   :  { %3110 = vadd.xlane.f32.xlu1 %v3109_v15 }
 0xe1b   :  { %3153 = vrot.lane.b32.xlu0 %v11196_v47, %s10647_s30  ;;  %v3112_v47 = vsel %vm1202_vm4, %v12179_v14, 0.0 }
 0xe3a   :  { %3107 = vadd.xlane.f32.xlu0 %v3106_v38 }
 0xe3e   :  { %3113 = vadd.xlane.f32.xlu0 %v3112_v47 }
 0xe45   :  { %v3057_v9 = vpop.xlane.xlu1 %3056 }
 0xe46   :  { %v3077_v55 = vsub.f32 %v12132_v54, %v3057_v9 }
 0xe48   :  { %v3091_v8 = vmul.f32 1.442695, %v3077_v55 }
 0xe4a   :  { %10120 = vpow2.f32 %v3091_v8 }
 0xe55   :  { %v3060_v60 = vpop.xlane.xlu0 %3059 }
 0xe56   :  { %v3078_v5 = vsub.f32 %v3038_v61, %v3060_v60 }
 0xe57   :  { %v12184_v10 = vpop.eup %10120 }
 0xe58   :  { %v3093_v12 = vmul.f32 1.442695, %v3078_v5  ;;  %v3115_v22 = vsel %vm1202_vm4, %v12184_v10, 0.0 }
 0xe59   :  { %v3063_v59 = vpop.xlane.xlu1 %3062  ;;  %3116 = vadd.xlane.f32.xlu1 %v3115_v22  ;;  %v3156_v41 = vpop.permute.xlu0 %3155  ;;  %v3549_v22 = vld [vmem:[%s14365_s12 + $0x20] sm:$0xff] }
 0xe5a   :  { %10122 = vpow2.f32 %v3093_v12  ;;  %v3079_v26 = vsub.f32 %v12143_v51, %v3063_v59  ;;  %9251 = vmatpush3.msra.mxu0 %v3156_v41  ;;  %9920 = vmatpush3.msra.mxu1 %v3156_v41  ;;  %v3550_v12 = vld [vmem:[%s14365_s12 + $0x28] sm:$0xff] }
 0xe5b   :  { %9252 = vmatprep.subr.mxu0 %v14432_v28  ;;  %9916 = vmatprep.subr.mxu1 %v14432_v28 }
 0xe5c   :  { %v3095_v54 = vmul.f32 1.442695, %v3079_v26 }
 0xe5e   :  { %10124 = vpow2.f32 %v3095_v54  ;;  %v3548_v54 = vld [vmem:[%s14365_s12 + $0x18] sm:$0xff] }
 0xe61   :  { %v3069_v61 = vpop.xlane.xlu1 %3068 }
 0xe62   :  { %v3081_v16 = vsub.f32 %v12147_v58, %v3069_v61 }
 0xe64   :  { %v3099_v53 = vmul.f32 1.442695, %v3081_v16  ;;  %v3547_v16 = vld [vmem:[%s14365_s12 + $0x10] sm:$0xff] }
 0xe65   :  { %v3282_v52 = vpop.permute.xlu1 %3281 }
 0xe66   :  { %10126 = vpow2.f32 %v3099_v53 }
 0xe67   :  { %v12192_v1 = vpop.eup %10122 }
 0xe68   :  { %v3118_v40 = vsel %vm1202_vm4, %v12192_v1, 0.0 }
 0xe69   :  { %3119 = vadd.xlane.f32.xlu0 %v3118_v40 }
 0xe6b   :  { %v12196_v51 = vpop.eup %10124 }
 0xe6c   :  { %v3121_v27 = vsel %vm1202_vm4, %v12196_v51, 0.0 }
 0xe6d   :  { %3122 = vadd.xlane.f32.xlu0 %v3121_v27  ;;  %v3546_v27 = vld [vmem:[%s14365_s12 + $0x8] sm:$0xff] }
 0xe73   :  { %v12200_v7 = vpop.eup %10126 }
 0xe74   :  { %v3127_v56 = vsel %vm1202_vm4, %v12200_v7, 0.0 }
 0xe75   :  { %3128 = vadd.xlane.f32.xlu0 %v3127_v56  ;;  %v3545_v56 = vld [vmem:[%s14365_s12] sm:$0xff] }
 0xe8a   :  { %v3066_v58 = vpop.xlane.xlu0 %3065 }
 0xe8b   :  { %v3080_v15 = vsub.f32 %v12155_v23, %v3066_v58  ;;  %3279 = vrot.lane.b32.xlu0 %v11270_v32, %s10647_s30 }
 0xe8d   :  { %v3097_v17 = vmul.f32 1.442695, %v3080_v15 }
 0xe8e   :  { %v3072_v18 = vpop.xlane.xlu0 %3071 }
 0xe8f   :  { %10128 = vpow2.f32 %v3097_v17  ;;  %3403 = vrot.lane.b32.xlu0 %v11868_v2, %s10633_s28 }
 0xe92   :  { %v3154_v42 = vpop.permute.xlu0 %3153 }
 0xe93   :  { %3443 = vrot.lane.b32.xlu0 %v12108_v37, %s10645_s13  ;;  %9253 = vmatpush3.msra.mxu0 %v3154_v42 }
 0xe94   :  { %9921 = vmatpush3.msra.mxu1 %v3154_v42  ;;  %9269 = vmatprep.subr.mxu0 %v14432_v28 }
 0xe96   :  { %v3105_v29 = vpop.xlane.xlu1 %3104 }
 0xe97   :  { %10130 = vrcp.f32 %v3105_v29  ;;  %3407 = vrot.lane.b32.xlu0 %v11872_v43, %s10633_s28  ;;  %v3082_v43 = vsub.f32 %v12157_v39, %v3072_v18 }
 0xe9b   :  { %3447 = vrot.lane.b32.xlu0 %v12112_v11, %s10645_s13  ;;  %v3111_v11 = vpop.xlane.xlu1 %3110 }
 0xe9c   :  { %v12216_v32 = vpop.eup %10128 }
 0xe9d   :  { %v3124_v2 = vsel %vm1202_vm4, %v12216_v32, 0.0 }
 0xe9e   :  { %3125 = vadd.xlane.f32.xlu1 %v3124_v2 }
 0xe9f   :  { %3411 = vrot.lane.b32.xlu0 %v11876_v25, %s10633_s28  ;;  %v3101_v25 = vmul.f32 1.442695, %v3082_v43 }
 0xea3   :  { %3451 = vrot.lane.b32.xlu0 %v12116_v21, %s10645_s13 }
 0xea4   :  { %v10131_v37 = vpop.eup %10130 }
 0xea5   :  { %v3143_v23 = vmul.f32 %v10131_v37, %v12163_v44 }
 0xea7   :  { %9255 = vmatmul.mubr.msk.f32.vlgmr.msra.gmra.mxu0 %vm1202_vm4, %v3143_v23 }
 0xea8   :  { %9270 = vmatpush3.msra.mxu0 %v3282_v52  ;;  %9279 = vmatprep.mubr.msk.f32.mxu0 %vm10642_vm2, %v14432_v28 }
 0xea9   :  { %9271 = vmatprep.subr.mxu0 %v14432_v28 }
 0xeaf   :  { %3277 = vrot.lane.b32.xlu1 %v11278_v31, %s10647_s30 }
 0xeb3   :  { %3275 = vrot.lane.b32.xlu1 %v11286_v33, %s10647_s30 }
 0xec3   :  { %v3108_v21 = vpop.xlane.xlu0 %3107 }
 0xec4   :  { %10132 = vrcp.f32 %v3108_v21 }
 0xec5   :  { %10134 = vpow2.f32 %v3101_v25 }
 0xec6   :  { %10136 = vrcp.f32 %v3111_v11 }
 0xec7   :  { %v3114_v44 = vpop.xlane.xlu0 %3113 }
 0xec8   :  { %10138 = vrcp.f32 %v3114_v44 }
 0xed1   :  { %v10133_v57 = vpop.eup %10132 }
 0xed2   :  { %v12234_v38 = vpop.eup %10134  ;;  %v3144_v47 = vmul.f32 %v10133_v57, %v12175_v0 }
 0xed3   :  { %v10137_v9 = vpop.eup %10136  ;;  %v3130_v31 = vsel %vm1202_vm4, %v12234_v38, 0.0 }
 0xed4   :  { %9258 = vmatmul.mubr.msk.f32.vlgmr.msra.gmra.mxu1 %vm1202_vm4, %v3144_v47  ;;  %v3145_v33 = vmul.f32 %v10137_v9, %v12167_v6 }
 0xed5   :  { %9260 = vmatprep.mubr.msk.f32.mxu1 %vm10642_vm2, %v14432_v28  ;;  %v10139_v39 = vpop.eup %10138 }
 0xed6   :  { %v3146_v0 = vmul.f32 %v10139_v39, %v12179_v14 }
 0xed7   :  { %3131 = vadd.xlane.f32.xlu1 %v3130_v31 }
 0xed8   :  { %9261 = vmatmul.mubr.msk.f32.gmra.mxu1 %vm1202_vm4, %v3145_v33 }
 0xed9   :  { %9263 = vmatprep.mubr.msk.f32.mxu1 %vm10642_vm2, %v14432_v28 }
 0xedc   :  { %9264 = vmatmul.mubr.msk.f32.gmra.mxu1 %vm1202_vm4, %v3146_v0 }
 0xedd   :  { %9266 = vmatprep.mubr.msk.f32.mxu1 %vm10642_vm2, %v14432_v28 }
 0xee2   :  { %v3117_v55 = vpop.xlane.xlu1 %3116 }
 0xee3   :  { %10140 = vrcp.f32 %v3117_v55 }
 0xee8   :  { %3273 = vrot.lane.b32.xlu1 %v11294_v34, %s10647_s30 }
 0xeec   :  { %3405 = vrot.lane.b32.xlu1 %v11870_v20, %s10633_s28 }
 0xef0   :  { %v10141_v6 = vpop.eup %10140  ;;  %3445 = vrot.lane.b32.xlu1 %v12110_v62, %s10645_s13 }
 0xef1   :  { %v3147_v8 = vmul.f32 %v10141_v6, %v12184_v10 }
 0xef2   :  { %v3120_v14 = vpop.xlane.xlu0 %3119 }
 0xef3   :  { %9267 = vmatmul.mubr.msk.f32.gmra.mxu1 %vm1202_vm4, %v3147_v8  ;;  %10142 = vrcp.f32 %v3120_v14 }
 0xef4   :  { %3409 = vrot.lane.b32.xlu1 %v11874_v30, %s10633_s28 }
 0xef6   :  { %v3123_v60 = vpop.xlane.xlu0 %3122 }
 0xef7   :  { %10144 = vrcp.f32 %v3123_v60 }
 0xef8   :  { %3449 = vrot.lane.b32.xlu1 %v12114_v3, %s10645_s13  ;;  %v3551_v3 = vld [vmem:[%s14365_s12 + $0x30] sm:$0xff] }
 0xefc   :  { %3413 = vrot.lane.b32.xlu1 %v11878_v50, %s10633_s28  ;;  %v3552_v50 = vld [vmem:[%s14365_s12 + $0x38] sm:$0xff] }
 0xefd   :  { %9294 = vmatprep.subr.mxu1 %v3552_v50 }
 0xefe   :  { %v3129_v34 = vpop.xlane.xlu0 %3128  ;;  %9295 = vmatpush3.msra.mxu1 %v3552_v50 }
 0xeff   :  { %9296 = vmatprep.subr.mxu1 %v3551_v3 }
 0xf00   :  { %3453 = vrot.lane.b32.xlu1 %v12128_v24, %s10645_s13  ;;  %v10143_v10 = vpop.eup %10142  ;;  %9297 = vmatpush3.msra.mxu1 %v3551_v3 }
 0xf01   :  { %v3148_v41 = vmul.f32 %v10143_v10, %v12192_v1  ;;  %9298 = vmatprep.subr.mxu1 %v3550_v12 }
 0xf02   :  { %v3280_v20 = vpop.permute.xlu0 %3279  ;;  %9299 = vmatpush3.msra.mxu1 %v3550_v12 }
 0xf03   :  { %9272 = vmatpush3.msra.mxu0 %v3280_v20  ;;  %9300 = vmatprep.subr.mxu1 %v3549_v22 }
 0xf04   :  { %9273 = vmatprep.subr.mxu0 %v14432_v28  ;;  %v10145_v26 = vpop.eup %10144  ;;  %9301 = vmatpush3.msra.mxu1 %v3549_v22 }
 0xf05   :  { %v3149_v53 = vmul.f32 %v10145_v26, %v12196_v51  ;;  %9302 = vmatprep.subr.mxu1 %v3548_v54 }
 0xf06   :  { %9303 = vmatpush3.msra.mxu1 %v3548_v54  ;;  %v3404_v23 = vpop.permute.xlu0 %3403  ;;  %v14436_v54 = vld [vmem:[#allocation40_spill] sm:$0xff] }
 0xf07   :  { %9304 = vmatprep.subr.mxu1 %v3547_v16 }
 0xf08   :  { %9305 = vmatpush3.msra.mxu1 %v3547_v16 }
 0xf09   :  { %9306 = vmatprep.subr.mxu1 %v3546_v27 }
 0xf0a   :  { %9307 = vmatpush3.msra.mxu1 %v3546_v27 }
 0xf0b   :  { %9308 = vmatprep.subr.mxu1 %v3545_v56 }
 0xf0c   :  { %9309 = vmatpush3.msra.mxu1 %v3545_v56 }
 0xf27   :  { %v3126_v62 = vpop.xlane.xlu1 %3125 }
 0xf28   :  { %10146 = vrcp.f32 %v3126_v62 }
 0xf29   :  { %10148 = vrcp.f32 %v3129_v34 }
 0xf2b   :  { %v3278_v5 = vpop.permute.xlu1 %3277 }
 0xf2c   :  { %9274 = vmatpush3.msra.mxu0 %v3278_v5 }
 0xf2d   :  { %9275 = vmatprep.subr.mxu0 %v14432_v28 }
 0xf2f   :  { %v3276_v30 = vpop.permute.xlu1 %3275 }
 0xf30   :  { %9276 = vmatpush3.msra.mxu0 %v3276_v30 }
 0xf31   :  { %9277 = vmatprep.subr.mxu0 %v14432_v28 }
 0xf35   :  { %v10147_v1 = vpop.eup %10146 }
 0xf36   :  { %v3150_v51 = vmul.f32 %v10147_v1, %v12216_v32  ;;  %v10149_v58 = vpop.eup %10148 }
 0xf37   :  { %v3151_v15 = vmul.f32 %v10149_v58, %v12200_v7  ;;  %v14437_v58 = vld [vmem:[#allocation35_spill] sm:$0xff] }
 0xf60   :  { %v3132_v24 = vpop.xlane.xlu1 %3131 }
 0xf61   :  { %10150 = vrcp.f32 %v3132_v24 }
 0xf64   :  { %v3274_v59 = vpop.permute.xlu1 %3273 }
 0xf65   :  { %9278 = vmatpush3.msra.mxu0 %v3274_v59 }
 0xf66   :  { %9280 = vmatmul.mubr.msk.f32.vlgmr.msra.gmra.mxu0 %vm1202_vm4, %v3148_v41 }
 0xf67   :  { %v3249_v61 = vpop.f32.mrf.mxu0  ;;  %9282 = vmatprep.mubr.msk.f32.mxu0 %vm10642_vm2, %v14432_v28 }
 0xf68   :  { %3483 = vrot.lane.b32.xlu0 %v3249_v61, %s10643_s7 }
 0xf69   :  { %v9256_v40 = vpop.f32.mrf.mxu0 }
 0xf6a   :  { %9283 = vmatmul.mubr.msk.f32.gmra.mxu0 %vm1202_vm4, %v3149_v53 }
 0xf6b   :  { %9285 = vmatprep.mubr.msk.f32.mxu0 %vm10642_vm2, %v14432_v28 }
 0xf6c   :  { %3415 = vrot.lane.b32.xlu0 %v11884_v48, %s10633_s28 }
 0xf6e   :  { %9286 = vmatmul.mubr.msk.f32.gmra.mxu0 %vm1202_vm4, %v3150_v51  ;;  %v10151_v17 = vpop.eup %10150 }
 0xf6f   :  { %9288 = vmatprep.mubr.msk.f32.mxu0 %vm10642_vm2, %v14432_v28  ;;  %v3152_v48 = vmul.f32 %v10151_v17, %v12234_v38  ;;  %v3406_v38 = vpop.permute.xlu1 %3405 }
 0xf70   :  { %v3514_v39 = vsel %vm956_vm3, %v11571_v36, %v3406_v38  ;;  %v14434_v36 = vld [vmem:[#allocation33_spill] sm:$0xff]  ;;  %v14441_v38 = vld [vmem:[#allocation39_spill] sm:$0xff] }
 0xf72   :  { %9289 = vmatmul.mubr.msk.f32.gmra.mxu0 %vm1202_vm4, %v3151_v15 }
 0xf73   :  { %9291 = vmatprep.mubr.msk.f32.mxu0 %vm10642_vm2, %v14432_v28  ;;  %v3446_v47 = vpop.permute.xlu1 %3445 }
 0xf74   :  { %v3525_v0 = vsel %vm3523_vm5, %v3514_v39, %v3446_v47 }
 0xf76   :  { %9292 = vmatmul.mubr.msk.f32.gmra.mxu0 %vm1202_vm4, %v3152_v48 }
 0xf94   :  { %v3254_v18 = vpop.f32.mrf.mxu1 }
 0xf95   :  { %3485 = vrot.lane.b32.xlu1 %v3254_v18, %s10643_s7 }
 0xf96   :  { %v9259_v52 = vpop.f32.mrf.mxu1 }
 0xf98   :  { %v3259_v42 = vpop.f32.mrf.mxu1 }
 0xf99   :  { %3417 = vrot.lane.b32.xlu1 %v11887_v45, %s10633_s28  ;;  %3487 = vrot.lane.b32.xlu0 %v3259_v42, %s10643_s7  ;;  %v3444_v45 = vpop.permute.xlu0 %3443 }
 0xf9a   :  { %v9262_v7 = vpop.f32.mrf.mxu1 }
 0xf9c   :  { %v3264_v29 = vpop.f32.mrf.mxu1 }
 0xf9d   :  { %3455 = vrot.lane.b32.xlu0 %v12130_v35, %s10645_s13  ;;  %3489 = vrot.lane.b32.xlu1 %v3264_v29, %s10643_s7  ;;  %v3408_v43 = vpop.permute.xlu0 %3407  ;;  %v3513_v35 = vsel %vm956_vm3, %v11569_v46, %v3404_v23 }
 0xf9e   :  { %v9265_v32 = vpop.f32.mrf.mxu1  ;;  %v3515_v8 = vsel %vm956_vm3, %v11573_v49, %v3408_v43  ;;  %v14435_v49 = vld [vmem:[#allocation34_spill] sm:$0xff] }
 0xfa1   :  { %3457 = vrot.lane.b32.xlu1 %v12136_v4, %s10645_s13  ;;  %v3448_v25 = vpop.permute.xlu0 %3447  ;;  %v3524_v4 = vsel %vm3523_vm5, %v3513_v35, %v3444_v45 }
 0xfa2   :  { %v3526_v14 = vsel %vm3523_vm5, %v3515_v8, %v3448_v25 }
 0xfa5   :  { %v3412_v11 = vpop.permute.xlu0 %3411 }
 0xfa6   :  { %v3517_v24 = vsel %vm956_vm3, %v14435_v49, %v3412_v11  ;;  %v14440_v11 = vld [vmem:[#allocation38_spill] sm:$0xff] }
 0xfa7   :  { %v14445_v49 = vld [vmem:[#allocation26_spill] sm:$0xff] }
 0xfa9   :  { %v3452_v21 = vpop.permute.xlu0 %3451 }
 0xfaa   :  { %v3528_v10 = vsel %vm3523_vm5, %v3517_v24, %v3452_v21 }
 0xfb3   :  { %v3269_v2 = vpop.f32.mrf.mxu1 }
 0xfb4   :  { %3491 = vrot.lane.b32.xlu0 %v3269_v2, %s10643_s7  ;;  %v14439_v2 = vld [vmem:[#allocation37_spill] sm:$0xff] }
 0xfb5   :  { %v9268_v37 = vpop.f32.mrf.mxu1 }
 0xfb8   :  { %3419 = vrot.lane.b32.xlu0 %v11890_v13, %s10633_s28  ;;  %v3410_v13 = vpop.permute.xlu1 %3409 }
 0xfb9   :  { %v3516_v62 = vsel %vm956_vm3, %v14434_v36, %v3410_v13 }
 0xfbc   :  { %v3450_v9 = vpop.permute.xlu1 %3449 }
 0xfbd   :  { %v3527_v5 = vsel %vm3523_vm5, %v3516_v62, %v3450_v9 }
 0xfc0   :  { %v3414_v31 = vpop.permute.xlu1 %3413 }
 0xfc1   :  { %v3518_v15 = vsel %vm956_vm3, %v14437_v58, %v3414_v31 }
 0xfc4   :  { %v3454_v33 = vpop.permute.xlu1 %3453 }
 0xfda   :  { %v3484_v44 = vpop.permute.xlu0 %3483 }
 0xfdb   :  { %v3535_v57 = vsel %vm3534_vm6, %v3524_v4, %v3484_v44 }
 0xfdc   :  { %9310 = vmatprep.mubr.msk.f32.mxu1 %vm465_vm1, %v3535_v57 }
 0xfde   :  { %v3416_v55 = vpop.permute.xlu0 %3415 }
0x1007   :  { %v3486_v46 = vpop.permute.xlu1 %3485 }
0x1008   :  { %v3536_v6 = vsel %vm3534_vm6, %v3525_v0, %v3486_v46  ;;  %v14442_v46 = vld [vmem:[#allocation24_spill] sm:$0xff] }
0x1009   :  { %9311 = vmatmul.mubr.msk.f32.vlgmr.msra.gmra.mxu1 %vm465_vm1, %v3536_v6 }
0x100b   :  { %v3418_v60 = vpop.permute.xlu1 %3417  ;;  %v3488_v34 = vpop.permute.xlu0 %3487 }
0x100c   :  { %v3537_v20 = vsel %vm3534_vm6, %v3526_v14, %v3488_v34  ;;  %v3520_v37 = vsel %vm956_vm3, %v14439_v2, %v3418_v60  ;;  %v14443_v14 = vld [vmem:[#allocation25_spill] sm:$0xff] }
0x100d   :  { %9313 = vmatprep.mubr.msk.f32.mxu1 %vm465_vm1, %v3537_v20 }
0x100f   :  { %v3490_v30 = vpop.permute.xlu1 %3489  ;;  %v3456_v3 = vpop.permute.xlu0 %3455 }
0x1010   :  { %v3538_v50 = vsel %vm3534_vm6, %v3527_v5, %v3490_v30 }
0x1011   :  { %9314 = vmatmul.mubr.msk.f32.gmra.mxu1 %vm465_vm1, %v3538_v50  ;;  %v14444_v50 = vld [vmem:[#allocation27_spill] sm:$0xff] }
0x1013   :  { %v3458_v51 = vpop.permute.xlu1 %3457 }
0x1014   :  { %v3531_v23 = vsel %vm3523_vm5, %v3520_v37, %v3458_v51 }
0x1026   :  { %v3369_v12 = vpop.f32.mrf.mxu0  ;;  %v3492_v22 = vpop.permute.xlu0 %3491 }
0x1027   :  { %v3539_v59 = vsel %vm3534_vm6, %v3528_v10, %v3492_v22  ;;  %3493 = vrot.lane.b32.xlu1 %v3369_v12, %s10643_s7 }
0x1028   :  { %v9281_v41 = vpop.f32.mrf.mxu0  ;;  %9316 = vmatprep.mubr.msk.f32.mxu1 %vm465_vm1, %v3539_v59 }
0x102a   :  { %v3374_v26 = vpop.f32.mrf.mxu0  ;;  %v3420_v17 = vpop.permute.xlu0 %3419 }
0x102b   :  { %3421 = vrot.lane.b32.xlu1 %v14436_v54, %s10633_s28  ;;  %3495 = vrot.lane.b32.xlu0 %v3374_v26, %s10643_s7  ;;  %v3521_v21 = vsel %vm956_vm3, %v14440_v11, %v3420_v17  ;;  %v14446_v26 = vld [vmem:[#allocation28_spill] sm:$0xff]  ;;  %v14447_v17 = vld [vmem:[#allocation30_spill] sm:$0xff] }
0x102c   :  { %v9284_v61 = vpop.f32.mrf.mxu0 }
0x102e   :  { %v3379_v16 = vpop.f32.mrf.mxu0 }
0x102f   :  { %3459 = vrot.lane.b32.xlu0 %v12138_v63, %s10645_s13  ;;  %3497 = vrot.lane.b32.xlu1 %v3379_v16, %s10643_s7  ;;  %v3529_v63 = vsel %vm3523_vm5, %v3518_v15, %v3454_v33  ;;  %v8192_v33 = vld [vmem:[#allocation10] ss:$0 sm:$0xff] }
0x1030   :  { %v9287_v53 = vpop.f32.mrf.mxu0 }
0x1031   :  { %v10416_v53 = vld [vmem:[%s14415_s21 + $0x20] sm:$0xff] }
0x1032   :  { %v3384_v1 = vpop.f32.mrf.mxu0 }
0x1033   :  { %3461 = vrot.lane.b32.xlu1 %v12140_v19, %s10645_s13  ;;  %3499 = vrot.lane.b32.xlu0 %v3384_v1, %s10643_s7  ;;  %v14438_v19 = vld [vmem:[#allocation36_spill] sm:$0xff] }
0x1034   :  { %v9290_v40 = vpop.f32.mrf.mxu0  ;;  %v3519_v52 = vsel %vm956_vm3, %v14438_v19, %v3416_v55 }
0x1035   :  { %v3530_v42 = vsel %vm3523_vm5, %v3519_v52, %v3456_v3  ;;  %v14448_v52 = vld [vmem:[#allocation29_spill] sm:$0xff] }
0x1036   :  { %v3389_v27 = vpop.f32.mrf.mxu0 }
0x1037   :  { %3501 = vrot.lane.b32.xlu1 %v3389_v27, %s10643_s7 }
0x1038   :  { %v9293_v56 = vpop.f32.mrf.mxu0 }
0x1099   :  { %v3494_v48 = vpop.permute.xlu1 %3493 }
0x109a   :  { %v3540_v18 = vsel %vm3534_vm6, %v3529_v63, %v3494_v48 }
0x109b   :  { %9317 = vmatmul.mubr.msk.f32.gmra.mxu1 %vm465_vm1, %v3540_v18 }
0x109d   :  { %v3422_v7 = vpop.permute.xlu1 %3421  ;;  %v3496_v29 = vpop.permute.xlu0 %3495 }
0x109e   :  { %v3541_v32 = vsel %vm3534_vm6, %v3530_v42, %v3496_v29  ;;  %v3522_v47 = vsel %vm956_vm3, %v14441_v38, %v3422_v7 }
0x109f   :  { %9319 = vmatprep.mubr.msk.f32.mxu1 %vm465_vm1, %v3541_v32 }
0x10a1   :  { %v3498_v45 = vpop.permute.xlu1 %3497  ;;  %v3460_v43 = vpop.permute.xlu0 %3459 }
0x10a2   :  { %v3542_v25 = vsel %vm3534_vm6, %v3531_v23, %v3498_v45  ;;  %v3532_v35 = vsel %vm3523_vm5, %v3521_v21, %v3460_v43 }
0x10a3   :  { %9320 = vmatmul.mubr.msk.f32.gmra.mxu1 %vm465_vm1, %v3542_v25 }
0x10a5   :  { %v3462_v4 = vpop.permute.xlu1 %3461  ;;  %v3500_v44 = vpop.permute.xlu0 %3499 }
0x10a6   :  { %v3543_v57 = vsel %vm3534_vm6, %v3532_v35, %v3500_v44  ;;  %v3533_v13 = vsel %vm3523_vm5, %v3522_v47, %v3462_v4 }
0x10a7   :  { %9322 = vmatprep.mubr.msk.f32.mxu1 %vm465_vm1, %v3543_v57  ;;  %v14449_v57 = vld [vmem:[#allocation31_spill] sm:$0xff] }
0x10a9   :  { %v3502_v9 = vpop.permute.xlu1 %3501 }
0x10aa   :  { %v3544_v31 = vsel %vm3534_vm6, %v3533_v13, %v3502_v9 }
0x10ab   :  { %9323 = vmatmul.mubr.msk.f32.gmra.mxu1 %vm465_vm1, %v3544_v31 }
0x10c9   :  { %v9312_v39 = vpop.f32.mrf.mxu1 }
0x10ca   :  { %v3662_v0 = vadd.f32 %v9312_v39, %v8192_v33 }
0x10cb   :  { %v3656_v55 = vpop.f32.mrf.mxu1 }
0x10cc   :  { %v12388_v6 = vadd.f32 %v3662_v0, %v14442_v46  ;;  %v3657_v8 = vadd.f32 %v8192_v33, %v3656_v55 }
0x10ce   :  { %v12391_v60 = vadd.f32 %v3657_v8, %v14443_v14  ;;  %v3720_v34 = vsel %vm465_vm1, %v12388_v6, 0.0 }
0x10cf   :  { %3721 = vadd.xlane.f32.xlu1 %v3720_v34  ;;  %v3886_v34 = vld [vmem:[%s14369_s16 + $0x38] sm:$0xff] }
0x10d0   :  { %v3717_v20 = vsel %vm465_vm1, %v12391_v60, 0.0  ;;  %9325 = vmatprep.subr.mxu0 %v3886_v34 }
0x10d1   :  { %3718 = vadd.xlane.f32.xlu0 %v3717_v20  ;;  %v9315_v36 = vpop.f32.mrf.mxu1  ;;  %9326 = vmatpush3.msra.mxu0 %v3886_v34  ;;  %v3885_v20 = vld [vmem:[%s14369_s16 + $0x30] sm:$0xff] }
0x10d2   :  { %v3672_v5 = vadd.f32 %v9315_v36, %v8192_v33  ;;  %9327 = vmatprep.subr.mxu0 %v3885_v20  ;;  %v3884_v36 = vld [vmem:[%s14369_s16 + $0x28] sm:$0xff] }
0x10d3   :  { %v3666_v62 = vpop.f32.mrf.mxu1  ;;  %9328 = vmatpush3.msra.mxu0 %v3885_v20 }
0x10d4   :  { %v3667_v30 = vadd.f32 %v8192_v33, %v3666_v62  ;;  %v12401_v24 = vadd.f32 %v3672_v5, %v14445_v49  ;;  %9329 = vmatprep.subr.mxu0 %v3884_v36  ;;  %v3883_v62 = vld [vmem:[%s14369_s16 + $0x20] sm:$0xff]  ;;  %v3882_v5 = vld [vmem:[%s14369_s16 + $0x18] sm:$0xff] }
0x10d5   :  { %9330 = vmatpush3.msra.mxu0 %v3884_v36  ;;  %v3879_v49 = vld [vmem:[%s14369_s16] sm:$0xff] }
0x10d6   :  { %v12398_v3 = vadd.f32 %v3667_v30, %v14444_v50  ;;  %v3726_v12 = vsel %vm465_vm1, %v12401_v24, 0.0  ;;  %9331 = vmatprep.subr.mxu0 %v3883_v62  ;;  %v3881_v30 = vld [vmem:[%s14369_s16 + $0x10] sm:$0xff]  ;;  %v3880_v50 = vld [vmem:[%s14369_s16 + $0x8] sm:$0xff]  ;;  %v12525_v36 = vld [vmem:[%s14367_s14] ss:$0 sm:$0xff] }
0x10d7   :  { %9332 = vmatpush3.msra.mxu0 %v3883_v62 }
0x10d8   :  { %v3723_v10 = vsel %vm465_vm1, %v12398_v3, 0.0  ;;  %9333 = vmatprep.subr.mxu0 %v3882_v5 }
0x10d9   :  { %3724 = vadd.xlane.f32.xlu0 %v3723_v10  ;;  %9334 = vmatpush3.msra.mxu0 %v3882_v5 }
0x10da   :  { %9335 = vmatprep.subr.mxu0 %v3881_v30 }
0x10db   :  { %9336 = vmatpush3.msra.mxu0 %v3881_v30 }
0x10dc   :  { %9337 = vmatprep.subr.mxu0 %v3880_v50 }
0x10dd   :  { %3727 = vadd.xlane.f32.xlu0 %v3726_v12  ;;  %9338 = vmatpush3.msra.mxu0 %v3880_v50 }
0x10de   :  { %9339 = vmatprep.subr.mxu0 %v3879_v49 }
0x10df   :  { %9340 = vmatpush3.msra.mxu0 %v3879_v49 }
0x1158   :  { %v3722_v15 = vpop.xlane.xlu1 %3721 }
0x1159   :  { %v3748_v19 = vmul.f32 0.015625, %v3722_v15 }
0x115a   :  { %v3719_v16 = vpop.xlane.xlu0 %3718 }
0x115b   :  { %v9318_v22 = vpop.f32.mrf.mxu1  ;;  %v3747_v32 = vmul.f32 0.015625, %v3719_v16  ;;  %v12430_v23 = vsub.f32 %v12388_v6, %v3748_v19 }
0x115c   :  { %v3682_v59 = vadd.f32 %v9318_v22, %v8192_v33 }
0x115d   :  { %v3676_v41 = vpop.f32.mrf.mxu1  ;;  %v12433_v11 = vsub.f32 %v12391_v60, %v3747_v32  ;;  %v3768_v13 = vmul.f32 %v12430_v23, %v12430_v23 }
0x115e   :  { %v12408_v54 = vadd.f32 %v3682_v59, %v14446_v26  ;;  %v3677_v61 = vadd.f32 %v8192_v33, %v3676_v41 }
0x115f   :  { %v3780_v39 = vsel %vm465_vm1, %v3768_v13, 0.0 }
0x1160   :  { %v12413_v1 = vadd.f32 %v10416_v53, %v3677_v61  ;;  %v3732_v40 = vsel %vm465_vm1, %v12408_v54, 0.0 }
0x1161   :  { %3733 = vadd.xlane.f32.xlu0 %v3732_v40 }
0x1162   :  { %v3729_v27 = vsel %vm465_vm1, %v12413_v1, 0.0  ;;  %v3725_v56 = vpop.xlane.xlu0 %3724 }
0x1163   :  { %3730 = vadd.xlane.f32.xlu1 %v3729_v27  ;;  %v9321_v51 = vpop.f32.mrf.mxu1  ;;  %v3749_v21 = vmul.f32 0.015625, %v3725_v56 }
0x1164   :  { %v3692_v58 = vadd.f32 %v9321_v51, %v8192_v33 }
0x1165   :  { %v3686_v63 = vpop.f32.mrf.mxu1  ;;  %v12448_v9 = vsub.f32 %v12398_v3, %v3749_v21 }
0x1166   :  { %v12420_v48 = vadd.f32 %v3692_v58, %v14447_v17  ;;  %v3687_v18 = vadd.f32 %v8192_v33, %v3686_v63  ;;  %v3728_v29 = vpop.xlane.xlu0 %3727 }
0x1167   :  { %v3750_v45 = vmul.f32 0.015625, %v3728_v29  ;;  %v3769_v46 = vmul.f32 %v12448_v9, %v12448_v9 }
0x1168   :  { %v12423_v42 = vadd.f32 %v3687_v18, %v14448_v52  ;;  %v3738_v7 = vsel %vm465_vm1, %v12420_v48, 0.0 }
0x1169   :  { %3739 = vadd.xlane.f32.xlu0 %v3738_v7  ;;  %v12438_v44 = vsub.f32 %v12401_v24, %v3750_v45  ;;  %v3783_v14 = vsel %vm465_vm1, %v3769_v46, 0.0 }
0x116a   :  { %v3735_v2 = vsel %vm465_vm1, %v12423_v42, 0.0 }
0x116b   :  { %3736 = vadd.xlane.f32.xlu1 %v3735_v2  ;;  %v9324_v37 = vpop.f32.mrf.mxu1  ;;  %v3770_v0 = vmul.f32 %v12438_v44, %v12438_v44 }
0x116c   :  { %v3702_v43 = vadd.f32 %v9324_v37, %v8192_v33 }
0x116d   :  { %v3696_v25 = vpop.f32.mrf.mxu1  ;;  %v3786_v8 = vsel %vm465_vm1, %v3770_v0, 0.0 }
0x116e   :  { %v12435_v35 = vadd.f32 %v10416_v53, %v3702_v43  ;;  %v3697_v4 = vadd.f32 %v8192_v33, %v3696_v25  ;;  %v3767_v33 = vmul.f32 %v12433_v11, %v12433_v11 }
0x1170   :  { %v12441_v38 = vadd.f32 %v3697_v4, %v14449_v57  ;;  %v3744_v47 = vsel %vm465_vm1, %v12435_v35, 0.0  ;;  %v3777_v55 = vsel %vm465_vm1, %v3767_v33, 0.0 }
0x1171   :  { %3745 = vadd.xlane.f32.xlu0 %v3744_v47 }
0x1172   :  { %v3741_v31 = vsel %vm465_vm1, %v12441_v38, 0.0 }
0x1173   :  { %3742 = vadd.xlane.f32.xlu1 %v3741_v31 }
0x1175   :  { %3781 = vadd.xlane.f32.xlu0 %v3780_v39 }
0x1177   :  { %3778 = vadd.xlane.f32.xlu1 %v3777_v55 }
0x1179   :  { %3787 = vadd.xlane.f32.xlu0 %v3786_v8 }
0x117b   :  { %3784 = vadd.xlane.f32.xlu1 %v3783_v14 }
0x11ea   :  { %v3734_v10 = vpop.xlane.xlu0 %3733 }
0x11eb   :  { %v3752_v12 = vmul.f32 0.015625, %v3734_v10  ;;  %v12533_v10 = vld [vmem:[%s14368_s15] ss:$0 sm:$0xff] }
0x11ec   :  { %v3731_v22 = vpop.xlane.xlu1 %3730 }
0x11ed   :  { %v12487_v59 = vsub.f32 %v12408_v54, %v3752_v12  ;;  %v3751_v41 = vmul.f32 0.015625, %v3731_v22 }
0x11ef   :  { %v12490_v26 = vsub.f32 %v12413_v1, %v3751_v41  ;;  %v3772_v61 = vmul.f32 %v12487_v59, %v12487_v59 }
0x11f1   :  { %v3792_v16 = vsel %vm465_vm1, %v3772_v61, 0.0  ;;  %v3771_v53 = vmul.f32 %v12490_v26, %v12490_v26 }
0x11f2   :  { %3793 = vadd.xlane.f32.xlu0 %v3792_v16  ;;  %v3740_v40 = vpop.xlane.xlu0 %3739 }
0x11f3   :  { %v3754_v27 = vmul.f32 0.015625, %v3740_v40  ;;  %v3789_v56 = vsel %vm465_vm1, %v3771_v53, 0.0 }
0x11f4   :  { %v3737_v51 = vpop.xlane.xlu1 %3736  ;;  %3790 = vadd.xlane.f32.xlu1 %v3789_v56  ;;  %v4142_v56 = vld [vmem:[%s14371_s18 + $0x68] sm:$0xff] }
0x11f5   :  { %v12499_v58 = vsub.f32 %v12420_v48, %v3754_v27  ;;  %v3753_v15 = vmul.f32 0.015625, %v3737_v51  ;;  %v4141_v51 = vld [vmem:[%s14371_s18 + $0x60] sm:$0xff] }
0x11f7   :  { %v12502_v63 = vsub.f32 %v12423_v42, %v3753_v15  ;;  %v3774_v17 = vmul.f32 %v12499_v58, %v12499_v58  ;;  %v4140_v15 = vld [vmem:[%s14371_s18 + $0x58] sm:$0xff] }
0x11f9   :  { %v3798_v18 = vsel %vm465_vm1, %v3774_v17, 0.0  ;;  %v3773_v19 = vmul.f32 %v12502_v63, %v12502_v63  ;;  %v4139_v17 = vld [vmem:[%s14371_s18 + $0x50] sm:$0xff] }
0x11fa   :  { %3799 = vadd.xlane.f32.xlu0 %v3798_v18  ;;  %v3746_v52 = vpop.xlane.xlu0 %3745  ;;  %v4138_v18 = vld [vmem:[%s14371_s18 + $0x48] sm:$0xff] }
0x11fb   :  { %v3756_v7 = vmul.f32 0.015625, %v3746_v52  ;;  %v3795_v29 = vsel %vm465_vm1, %v3773_v19, 0.0  ;;  %v4137_v19 = vld [vmem:[%s14371_s18 + $0x40] sm:$0xff]  ;;  %v4136_v52 = vld [vmem:[%s14371_s18 + $0x38] sm:$0xff] }
0x11fc   :  { %v3743_v32 = vpop.xlane.xlu1 %3742  ;;  %3796 = vadd.xlane.f32.xlu1 %v3795_v29  ;;  %v4134_v29 = vld [vmem:[%s14371_s18 + $0x28] sm:$0xff] }
0x11fd   :  { %v12511_v2 = vsub.f32 %v12435_v35, %v3756_v7  ;;  %v3755_v37 = vmul.f32 0.015625, %v3743_v32  ;;  %v4135_v7 = vld [vmem:[%s14371_s18 + $0x30] sm:$0xff]  ;;  %v4133_v32 = vld [vmem:[%s14371_s18 + $0x20] sm:$0xff] }
0x11fe   :  { %v3782_v45 = vpop.xlane.xlu0 %3781 }
0x11ff   :  { %v12514_v43 = vsub.f32 %v12441_v38, %v3755_v37  ;;  %v3808_v25 = vmul.f32 0.015625, %v3782_v45  ;;  %v3776_v21 = vmul.f32 %v12511_v2, %v12511_v2  ;;  %v4132_v37 = vld [vmem:[%s14371_s18 + $0x18] sm:$0xff]  ;;  %v4131_v45 = vld [vmem:[%s14371_s18 + $0x10] sm:$0xff] }
0x1200   :  { %v3779_v4 = vpop.xlane.xlu1 %3778 }
0x1201   :  { %v3818_v57 = vadd.f32 1e-05, %v3808_v25  ;;  %v3807_v47 = vmul.f32 0.015625, %v3779_v4  ;;  %v3804_v13 = vsel %vm465_vm1, %v3776_v21, 0.0  ;;  %v3775_v31 = vmul.f32 %v12514_v43, %v12514_v43  ;;  %v4130_v25 = vld [vmem:[%s14371_s18 + $0x8] sm:$0xff]  ;;  %v4129_v21 = vld [vmem:[%s14371_s18] sm:$0xff] }
0x1202   :  { %3805 = vadd.xlane.f32.xlu0 %v3804_v13  ;;  %v3788_v33 = vpop.xlane.xlu0 %3787 }
0x1203   :  { %10152 = vrsqrt.f32 %v3818_v57  ;;  %v3817_v39 = vadd.f32 1e-05, %v3807_v47  ;;  %v3810_v0 = vmul.f32 0.015625, %v3788_v33  ;;  %v3801_v55 = vsel %vm465_vm1, %v3775_v31, 0.0 }
0x1204   :  { %3802 = vadd.xlane.f32.xlu1 %v3801_v55  ;;  %v3785_v46 = vpop.xlane.xlu1 %3784 }
0x1205   :  { %10154 = vrsqrt.f32 %v3817_v39  ;;  %v3820_v8 = vadd.f32 1e-05, %v3810_v0  ;;  %v3809_v14 = vmul.f32 0.015625, %v3785_v46 }
0x1207   :  { %10156 = vrsqrt.f32 %v3820_v8  ;;  %v3819_v34 = vadd.f32 1e-05, %v3809_v14 }
0x1209   :  { %10158 = vrsqrt.f32 %v3819_v34 }
0x1210   :  { %v10153_v20 = vpop.eup %10152 }
0x1211   :  { %v3838_v62 = vmul.f32 %v10153_v20, %v12430_v23 }
0x1212   :  { %v10155_v5 = vpop.eup %10154 }
0x1213   :  { %v3837_v30 = vmul.f32 %v10155_v5, %v12433_v11  ;;  %v3854_v49 = vmul.f32 %v12525_v36, %v3838_v62 }
0x1214   :  { %v10157_v50 = vpop.eup %10156 }
0x1215   :  { %v3853_v12 = vmul.f32 %v12525_v36, %v3837_v30  ;;  %v3840_v22 = vmul.f32 %v10157_v50, %v12438_v44  ;;  %v3870_v16 = vadd.f32 %v12533_v10, %v3854_v49  ;;  %v4144_v44 = vld [vmem:[%s14371_s18 + $0x78] sm:$0xff] }
0x1216   :  { %v10159_v41 = vpop.eup %10158  ;;  %9356 = vmatprep.subr.mxu1 %v4144_v44 }
0x1217   :  { %v3869_v61 = vadd.f32 %v12533_v10, %v3853_v12  ;;  %v3839_v23 = vmul.f32 %v10159_v41, %v12448_v9  ;;  %v3856_v11 = vmul.f32 %v12525_v36, %v3840_v22  ;;  %9357 = vmatpush3.msra.mxu1 %v4144_v44  ;;  %v4143_v9 = vld [vmem:[%s14371_s18 + $0x70] sm:$0xff] }
0x1218   :  { %9358 = vmatprep.subr.mxu1 %v4143_v9 }
0x1219   :  { %9341 = vmatprep.mubr.msk.f32.mxu0 %vm465_vm1, %v3869_v61  ;;  %v3855_v53 = vmul.f32 %v12525_v36, %v3839_v23  ;;  %v3872_v27 = vadd.f32 %v12533_v10, %v3856_v11  ;;  %9359 = vmatpush3.msra.mxu1 %v4143_v9 }
0x121a   :  { %9342 = vmatmul.mubr.msk.f32.vlgmr.msra.gmra.mxu0 %vm465_vm1, %v3870_v16  ;;  %9360 = vmatprep.subr.mxu1 %v4142_v56 }
0x121b   :  { %v3871_v40 = vadd.f32 %v12533_v10, %v3855_v53  ;;  %9361 = vmatpush3.msra.mxu1 %v4142_v56 }
0x121c   :  { %9362 = vmatprep.subr.mxu1 %v4141_v51 }
0x121d   :  { %9344 = vmatprep.mubr.msk.f32.mxu0 %vm465_vm1, %v3871_v40  ;;  %9363 = vmatpush3.msra.mxu1 %v4141_v51 }
0x121e   :  { %9345 = vmatmul.mubr.msk.f32.gmra.mxu0 %vm465_vm1, %v3872_v27  ;;  %9364 = vmatprep.subr.mxu1 %v4140_v15 }
0x121f   :  { %9365 = vmatpush3.msra.mxu1 %v4140_v15 }
0x1220   :  { %9366 = vmatprep.subr.mxu1 %v4139_v17 }
0x1221   :  { %9367 = vmatpush3.msra.mxu1 %v4139_v17 }
0x1222   :  { %9368 = vmatprep.subr.mxu1 %v4138_v18 }
0x1223   :  { %9369 = vmatpush3.msra.mxu1 %v4138_v18 }
0x1224   :  { %9370 = vmatprep.subr.mxu1 %v4137_v19 }
0x1225   :  { %9371 = vmatpush3.msra.mxu1 %v4137_v19 }
0x1226   :  { %9372 = vmatprep.subr.mxu1 %v4136_v52 }
0x1227   :  { %9373 = vmatpush3.msra.mxu1 %v4136_v52 }
0x1228   :  { %9374 = vmatprep.subr.mxu1 %v4135_v7 }
0x1229   :  { %9375 = vmatpush3.msra.mxu1 %v4135_v7 }
0x122a   :  { %9376 = vmatprep.subr.mxu1 %v4134_v29 }
0x122b   :  { %9377 = vmatpush3.msra.mxu1 %v4134_v29 }
0x122c   :  { %9378 = vmatprep.subr.mxu1 %v4133_v32 }
0x122d   :  { %9379 = vmatpush3.msra.mxu1 %v4133_v32 }
0x122e   :  { %9380 = vmatprep.subr.mxu1 %v4132_v37 }
0x122f   :  { %9381 = vmatpush3.msra.mxu1 %v4132_v37 }
0x1230   :  { %9382 = vmatprep.subr.mxu1 %v4131_v45 }
0x1231   :  { %9383 = vmatpush3.msra.mxu1 %v4131_v45 }
0x1232   :  { %9384 = vmatprep.subr.mxu1 %v4130_v25 }
0x1233   :  { %9385 = vmatpush3.msra.mxu1 %v4130_v25 }
0x1234   :  { %9386 = vmatprep.subr.mxu1 %v4129_v21 }
0x1235   :  { %9387 = vmatpush3.msra.mxu1 %v4129_v21 }
0x1236   :  { %9403 = vmatprep.subr.mxu1 %v14432_v28 }
0x127b   :  { %v3794_v4 = vpop.xlane.xlu0 %3793 }
0x127c   :  { %v3812_v57 = vmul.f32 0.015625, %v3794_v4 }
0x127d   :  { %v3791_v47 = vpop.xlane.xlu1 %3790 }
0x127e   :  { %v3822_v13 = vadd.f32 1e-05, %v3812_v57  ;;  %v3811_v31 = vmul.f32 0.015625, %v3791_v47 }
0x1280   :  { %10160 = vrsqrt.f32 %v3822_v13  ;;  %v3821_v33 = vadd.f32 1e-05, %v3811_v31 }
0x1282   :  { %10162 = vrsqrt.f32 %v3821_v33 }
0x1283   :  { %v3800_v39 = vpop.xlane.xlu0 %3799 }
0x1284   :  { %v3814_v0 = vmul.f32 0.015625, %v3800_v39 }
0x1285   :  { %v3797_v55 = vpop.xlane.xlu1 %3796 }
0x1286   :  { %v3824_v46 = vadd.f32 1e-05, %v3814_v0  ;;  %v3813_v8 = vmul.f32 0.015625, %v3797_v55 }
0x1288   :  { %10164 = vrsqrt.f32 %v3824_v46  ;;  %v3823_v14 = vadd.f32 1e-05, %v3813_v8 }
0x128a   :  { %10166 = vrsqrt.f32 %v3823_v14 }
0x128b   :  { %v3806_v34 = vpop.xlane.xlu0 %3805 }
0x128c   :  { %v3816_v20 = vmul.f32 0.015625, %v3806_v34 }
0x128d   :  { %v10161_v62 = vpop.eup %10160  ;;  %v3803_v5 = vpop.xlane.xlu1 %3802 }
0x128e   :  { %v3826_v30 = vadd.f32 1e-05, %v3816_v20  ;;  %v3815_v50 = vmul.f32 0.015625, %v3803_v5  ;;  %v3842_v49 = vmul.f32 %v10161_v62, %v12487_v59 }
0x128f   :  { %v10163_v12 = vpop.eup %10162 }
0x1290   :  { %10168 = vrsqrt.f32 %v3826_v30  ;;  %v3825_v22 = vadd.f32 1e-05, %v3815_v50  ;;  %v3841_v41 = vmul.f32 %v10163_v12, %v12490_v26  ;;  %v3858_v61 = vmul.f32 %v12525_v36, %v3842_v49 }
0x1292   :  { %10170 = vrsqrt.f32 %v3825_v22  ;;  %v3857_v23 = vmul.f32 %v12525_v36, %v3841_v41  ;;  %v3874_v53 = vadd.f32 %v12533_v10, %v3858_v61 }
0x1294   :  { %v3873_v16 = vadd.f32 %v12533_v10, %v3857_v23 }
0x1295   :  { %v10165_v11 = vpop.eup %10164 }
0x1296   :  { %9347 = vmatprep.mubr.msk.f32.mxu0 %vm465_vm1, %v3873_v16  ;;  %v3844_v40 = vmul.f32 %v10165_v11, %v12499_v58 }
0x1297   :  { %v10167_v59 = vpop.eup %10166  ;;  %9348 = vmatmul.mubr.msk.f32.gmra.mxu0 %vm465_vm1, %v3874_v53 }
0x1298   :  { %v3843_v27 = vmul.f32 %v10167_v59, %v12502_v63  ;;  %v3860_v26 = vmul.f32 %v12525_v36, %v3844_v40 }
0x129a   :  { %v3859_v44 = vmul.f32 %v12525_v36, %v3843_v27  ;;  %v3876_v51 = vadd.f32 %v12533_v10, %v3860_v26 }
0x129c   :  { %v3875_v9 = vadd.f32 %v12533_v10, %v3859_v44 }
0x129d   :  { %v10169_v56 = vpop.eup %10168 }
0x129e   :  { %9350 = vmatprep.mubr.msk.f32.mxu0 %vm465_vm1, %v3875_v9  ;;  %v3846_v15 = vmul.f32 %v10169_v56, %v12511_v2  ;;  %v12622_v2 = vld [vmem:[#allocation11] ss:$0 sm:$0xff] }
0x129f   :  { %v10171_v17 = vpop.eup %10170  ;;  %9351 = vmatmul.mubr.msk.f32.gmra.mxu0 %vm465_vm1, %v3876_v51 }
0x12a0   :  { %v3845_v58 = vmul.f32 %v10171_v17, %v12514_v43  ;;  %v3862_v63 = vmul.f32 %v12525_v36, %v3846_v15 }
0x12a2   :  { %v3861_v18 = vmul.f32 %v12525_v36, %v3845_v58  ;;  %v3878_v52 = vadd.f32 %v12533_v10, %v3862_v63 }
0x12a4   :  { %v3877_v19 = vadd.f32 %v12533_v10, %v3861_v18 }
0x12a6   :  { %9353 = vmatprep.mubr.msk.f32.mxu0 %vm465_vm1, %v3877_v19 }
0x12a7   :  { %9354 = vmatmul.mubr.msk.f32.gmra.mxu0 %vm465_vm1, %v3878_v52 }
0x12a8   :  { %4567 = vmatprep.mubr.f32.mxu0 %v14432_v28 }
0x12da   :  { %v9343_v7 = vpop.f32.mrf.mxu0 }
0x12db   :  { %v3996_v29 = vadd.f32 %v9343_v7, %v12622_v2 }
0x12dc   :  { %v3990_v43 = vpop.f32.mrf.mxu0 }
0x12dd   :  { %v4050_v32 = vmul.f32 0.044715, %v3996_v29  ;;  %v3991_v37 = vadd.f32 %v12622_v2, %v3990_v43  ;;  %v4040_v16 = vmul.f32 0.5, %v3996_v29 }
0x12de   :  { %v9346_v36 = vpop.f32.mrf.mxu0 }
0x12df   :  { %v4060_v45 = vmul.f32 %v4050_v32, %v3996_v29  ;;  %v4049_v25 = vmul.f32 0.044715, %v3991_v37  ;;  %v4006_v10 = vadd.f32 %v9346_v36, %v12622_v2  ;;  %v4039_v41 = vmul.f32 0.5, %v3991_v37 }
0x12e0   :  { %v4000_v21 = vpop.f32.mrf.mxu0 }
0x12e1   :  { %v4070_v4 = vmul.f32 %v4060_v45, %v3996_v29  ;;  %v4059_v57 = vmul.f32 %v4049_v25, %v3991_v37  ;;  %v4052_v47 = vmul.f32 0.044715, %v4006_v10  ;;  %v4001_v13 = vadd.f32 %v12622_v2, %v4000_v21 }
0x12e2   :  { %v4042_v44 = vmul.f32 0.5, %v4006_v10 }
0x12e3   :  { %v4080_v31 = vadd.f32 %v4070_v4, %v3996_v29  ;;  %v4062_v33 = vmul.f32 %v4052_v47, %v4006_v10  ;;  %v4051_v39 = vmul.f32 0.044715, %v4001_v13  ;;  %v4069_v0 = vmul.f32 %v4059_v57, %v3991_v37 }
0x12e4   :  { %v4041_v27 = vmul.f32 0.5, %v4001_v13 }
0x12e5   :  { %v4090_v55 = vmul.f32 0.7978846, %v4080_v31  ;;  %v4061_v46 = vmul.f32 %v4051_v39, %v4001_v13  ;;  %v4079_v8 = vadd.f32 %v4069_v0, %v3991_v37  ;;  %v4072_v14 = vmul.f32 %v4062_v33, %v4006_v10 }
0x12e7   :  { %10172 = vtanh.f32 %v4090_v55  ;;  %v4089_v34 = vmul.f32 0.7978846, %v4079_v8  ;;  %v4071_v20 = vmul.f32 %v4061_v46, %v4001_v13  ;;  %v4082_v62 = vadd.f32 %v4072_v14, %v4006_v10 }
0x12e9   :  { %10174 = vtanh.f32 %v4089_v34  ;;  %v4081_v5 = vadd.f32 %v4071_v20, %v4001_v13  ;;  %v4092_v30 = vmul.f32 0.7978846, %v4082_v62 }
0x12eb   :  { %v4091_v50 = vmul.f32 0.7978846, %v4081_v5  ;;  %10176 = vtanh.f32 %v4092_v30 }
0x12ed   :  { %10178 = vtanh.f32 %v4091_v50 }
0x12f4   :  { %v10173_v49 = vpop.eup %10172 }
0x12f5   :  { %v4110_v22 = vadd.f32 1.0, %v10173_v49 }
0x12f6   :  { %v10175_v12 = vpop.eup %10174 }
0x12f7   :  { %v4109_v61 = vadd.f32 1.0, %v10175_v12  ;;  %v4120_v40 = vmul.f32 %v4110_v22, %v4040_v16 }
0x12f8   :  { %v10177_v23 = vpop.eup %10176 }
0x12f9   :  { %v4119_v11 = vmul.f32 %v4109_v61, %v4039_v41  ;;  %v4112_v59 = vadd.f32 1.0, %v10177_v23 }
0x12fa   :  { %v10179_v53 = vpop.eup %10178 }
0x12fb   :  { %9388 = vmatprep.mubr.f32.mxu1 %v4119_v11  ;;  %v4111_v26 = vadd.f32 1.0, %v10179_v53  ;;  %v4122_v56 = vmul.f32 %v4112_v59, %v4042_v44 }
0x12fc   :  { %9389 = vmatmul.mubr.f32.vlgmr.msra.gmra.mxu1 %v4120_v40 }
0x12fd   :  { %v4121_v9 = vmul.f32 %v4111_v26, %v4041_v27 }
0x12ff   :  { %9391 = vmatprep.mubr.f32.mxu1 %v4121_v9 }
0x1300   :  { %9392 = vmatmul.mubr.f32.gmra.mxu1 %v4122_v56 }
0x1357   :  { %v9349_v51 = vpop.f32.mrf.mxu0 }
0x1358   :  { %v4016_v15 = vadd.f32 %v9349_v51, %v12622_v2 }
0x1359   :  { %v4010_v17 = vpop.f32.mrf.mxu0 }
0x135a   :  { %v4054_v58 = vmul.f32 0.044715, %v4016_v15  ;;  %v4011_v63 = vadd.f32 %v12622_v2, %v4010_v17 }
0x135c   :  { %v4064_v18 = vmul.f32 %v4054_v58, %v4016_v15  ;;  %v4053_v19 = vmul.f32 0.044715, %v4011_v63  ;;  %v4043_v53 = vmul.f32 0.5, %v4011_v63 }
0x135e   :  { %v4063_v52 = vmul.f32 %v4053_v19, %v4011_v63  ;;  %v4074_v7 = vmul.f32 %v4064_v18, %v4016_v15 }
0x135f   :  { %v9352_v29 = vpop.f32.mrf.mxu0 }
0x1360   :  { %v4026_v43 = vadd.f32 %v9352_v29, %v12622_v2  ;;  %v4073_v32 = vmul.f32 %v4063_v52, %v4011_v63  ;;  %v4084_v37 = vadd.f32 %v4074_v7, %v4016_v15 }
0x1361   :  { %v4020_v36 = vpop.f32.mrf.mxu0 }
0x1362   :  { %v4056_v45 = vmul.f32 0.044715, %v4026_v43  ;;  %v4021_v25 = vadd.f32 %v12622_v2, %v4020_v36  ;;  %v4083_v10 = vadd.f32 %v4073_v32, %v4011_v63  ;;  %v4094_v21 = vmul.f32 0.7978846, %v4084_v37 }
0x1363   :  { %v4046_v58 = vmul.f32 0.5, %v4026_v43 }
0x1364   :  { %v4066_v4 = vmul.f32 %v4056_v45, %v4026_v43  ;;  %v4055_v57 = vmul.f32 0.044715, %v4021_v25  ;;  %v4093_v47 = vmul.f32 0.7978846, %v4083_v10  ;;  %10180 = vtanh.f32 %v4094_v21  ;;  %v8216_v45 = vld [vmem:[#allocation13] ss:$0 sm:$0xff] }
0x1365   :  { %v4045_v51 = vmul.f32 0.5, %v4021_v25 }
0x1366   :  { %v4065_v13 = vmul.f32 %v4055_v57, %v4021_v25  ;;  %10182 = vtanh.f32 %v4093_v47  ;;  %v4076_v31 = vmul.f32 %v4066_v4, %v4026_v43 }
0x1367   :  { %v9355_v33 = vpop.f32.mrf.mxu0 }
0x1368   :  { %v4036_v39 = vadd.f32 %v9355_v33, %v12622_v2  ;;  %v4075_v0 = vmul.f32 %v4065_v13, %v4021_v25  ;;  %v4086_v55 = vadd.f32 %v4076_v31, %v4026_v43 }
0x1369   :  { %v4030_v46 = vpop.f32.mrf.mxu0 }
0x136a   :  { %v4058_v8 = vmul.f32 0.044715, %v4036_v39  ;;  %v4031_v14 = vadd.f32 %v12622_v2, %v4030_v46  ;;  %v4085_v34 = vadd.f32 %v4075_v0, %v4021_v25  ;;  %v4096_v20 = vmul.f32 0.7978846, %v4086_v55 }
0x136b   :  { %v4044_v2 = vmul.f32 0.5, %v4016_v15  ;;  %v4048_v32 = vmul.f32 0.5, %v4036_v39 }
0x136c   :  { %v4068_v62 = vmul.f32 %v4058_v8, %v4036_v39  ;;  %v4057_v5 = vmul.f32 0.044715, %v4031_v14  ;;  %v4095_v30 = vmul.f32 0.7978846, %v4085_v34  ;;  %10184 = vtanh.f32 %v4096_v20 }
0x136d   :  { %v4047_v29 = vmul.f32 0.5, %v4031_v14 }
0x136e   :  { %v4067_v50 = vmul.f32 %v4057_v5, %v4031_v14  ;;  %10186 = vtanh.f32 %v4095_v30  ;;  %v4078_v49 = vmul.f32 %v4068_v62, %v4036_v39 }
0x1370   :  { %v4077_v12 = vmul.f32 %v4067_v50, %v4031_v14  ;;  %v4088_v22 = vadd.f32 %v4078_v49, %v4036_v39 }
0x1371   :  { %v10181_v41 = vpop.eup %10180 }
0x1372   :  { %v4087_v61 = vadd.f32 %v4077_v12, %v4031_v14  ;;  %v4098_v23 = vmul.f32 0.7978846, %v4088_v22  ;;  %v4114_v11 = vadd.f32 1.0, %v10181_v41 }
0x1373   :  { %v10183_v16 = vpop.eup %10182 }
0x1374   :  { %v4113_v40 = vadd.f32 1.0, %v10183_v16  ;;  %v4097_v59 = vmul.f32 0.7978846, %v4087_v61  ;;  %10188 = vtanh.f32 %v4098_v23  ;;  %v4124_v26 = vmul.f32 %v4114_v11, %v4044_v2 }
0x1376   :  { %v4123_v27 = vmul.f32 %v4113_v40, %v4043_v53  ;;  %10190 = vtanh.f32 %v4097_v59 }
0x1378   :  { %9394 = vmatprep.mubr.f32.mxu1 %v4123_v27 }
0x1379   :  { %v10185_v44 = vpop.eup %10184  ;;  %9395 = vmatmul.mubr.f32.gmra.mxu1 %v4124_v26 }
0x137a   :  { %v4116_v56 = vadd.f32 1.0, %v10185_v44 }
0x137b   :  { %v10187_v9 = vpop.eup %10186 }
0x137c   :  { %v4115_v17 = vadd.f32 1.0, %v10187_v9  ;;  %v4126_v19 = vmul.f32 %v4116_v56, %v4046_v58 }
0x137e   :  { %v4125_v18 = vmul.f32 %v4115_v17, %v4045_v51 }
0x1380   :  { %9397 = vmatprep.mubr.f32.mxu1 %v4125_v18 }
0x1381   :  { %v10189_v52 = vpop.eup %10188  ;;  %9398 = vmatmul.mubr.f32.gmra.mxu1 %v4126_v19 }
0x1382   :  { %v4118_v7 = vadd.f32 1.0, %v10189_v52 }
0x1383   :  { %v10191_v63 = vpop.eup %10190 }
0x1384   :  { %v4117_v15 = vadd.f32 1.0, %v10191_v63  ;;  %v4128_v36 = vmul.f32 %v4118_v7, %v4048_v32 }
0x1386   :  { %v4127_v37 = vmul.f32 %v4117_v15, %v4047_v29 }
0x1388   :  { %9400 = vmatprep.mubr.f32.mxu1 %v4127_v37  ;;  %v8236_v37 = vld [vmem:[%s14363_s10 + $0xf8] sm:$0xff] }
0x1389   :  { %9401 = vmatmul.mubr.f32.gmra.mxu1 %v4128_v36  ;;  %4519 = vmatprep.subr.mxu0 %v8236_v37  ;;  %v8235_v36 = vld [vmem:[%s14363_s10 + $0xf0] sm:$0xff] }
0x138a   :  { %9413 = vmatprep.mubr.msk.f32.mxu1 %vm10642_vm2, %v14432_v28  ;;  %4520 = vmatpush1.msra.mxu0 %v8235_v36 }
0x13bc   :  { %v9390_v25 = vpop.f32.mrf.mxu1 }
0x13bd   :  { %v4224_v43 = vadd.f32 %v9390_v25, %v8216_v45  ;;  %v8233_v25 = vld [vmem:[%s14363_s10 + $0xe0] sm:$0xff] }
0x13be   :  { %v4218_v10 = vpop.f32.mrf.mxu1 }
0x13bf   :  { %v12637_v21 = vadd.f32 %v4224_v43, %v12388_v6  ;;  %v4219_v4 = vadd.f32 %v8216_v45, %v4218_v10  ;;  %v8232_v43 = vld [vmem:[%s14363_s10 + $0xd8] sm:$0xff]  ;;  %v8231_v10 = vld [vmem:[%s14363_s10 + $0xd0] sm:$0xff] }
0x13c0   :  { %v9393_v57 = vpop.f32.mrf.mxu1 }
0x13c1   :  { %14450 = vst [vmem:[#allocation33_spill] sm:$0xff] %v12637_v21  ;;  %v12640_v47 = vadd.f32 %v4219_v4, %v12391_v60  ;;  %v4234_v13 = vadd.f32 %v9393_v57, %v8216_v45  ;;  %v4284_v31 = vsel %vm465_vm1, %v12637_v21, 0.0  ;;  %v8230_v4 = vld [vmem:[%s14363_s10 + $0xc8] sm:$0xff]  ;;  %v8229_v57 = vld [vmem:[%s14363_s10 + $0xc0] sm:$0xff] }
0x13c2   :  { %4285 = vadd.xlane.f32.xlu0 %v4284_v31  ;;  %v4228_v33 = vpop.f32.mrf.mxu1  ;;  %v8227_v31 = vld [vmem:[%s14363_s10 + $0xb0] sm:$0xff] }
0x13c3   :  { %14451 = vst [vmem:[#allocation34_spill] sm:$0xff] %v12640_v47  ;;  %v12645_v39 = vadd.f32 %v4234_v13, %v12401_v24  ;;  %v4229_v0 = vadd.f32 %v8216_v45, %v4228_v33  ;;  %v4281_v55 = vsel %vm465_vm1, %v12640_v47, 0.0  ;;  %v8228_v13 = vld [vmem:[%s14363_s10 + $0xb8] sm:$0xff]  ;;  %v8226_v33 = vld [vmem:[%s14363_s10 + $0xa8] sm:$0xff] }
0x13c4   :  { %4282 = vadd.xlane.f32.xlu1 %v4281_v55  ;;  %v8224_v55 = vld [vmem:[%s14363_s10 + $0x98] sm:$0xff] }
0x13c5   :  { %14452 = vst [vmem:[#allocation40_spill] sm:$0xff] %v12645_v39  ;;  %v12650_v6 = vadd.f32 %v4229_v0, %v12398_v3  ;;  %v4290_v60 = vsel %vm465_vm1, %v12645_v39, 0.0  ;;  %v8225_v0 = vld [vmem:[%s14363_s10 + $0xa0] sm:$0xff] }
0x13c6   :  { %4291 = vadd.xlane.f32.xlu0 %v4290_v60  ;;  %v8223_v60 = vld [vmem:[%s14363_s10 + $0x90] sm:$0xff] }
0x13c7   :  { %14453 = vst [vmem:[#allocation35_spill] sm:$0xff] %v12650_v6  ;;  %v4287_v46 = vsel %vm465_vm1, %v12650_v6, 0.0 }
0x13c8   :  { %4288 = vadd.xlane.f32.xlu1 %v4287_v46  ;;  %v8222_v46 = vld [vmem:[%s14363_s10 + $0x88] sm:$0xff] }
0x1439   :  { %v9396_v8 = vpop.f32.mrf.mxu1 }
0x143a   :  { %v4244_v14 = vadd.f32 %v9396_v8, %v8216_v45  ;;  %v8221_v8 = vld [vmem:[%s14363_s10 + $0x80] sm:$0xff] }
0x143b   :  { %v4238_v24 = vpop.f32.mrf.mxu1 }
0x143c   :  { %v12657_v34 = vadd.f32 %v4244_v14, %v12408_v54  ;;  %v4239_v20 = vadd.f32 %v8216_v45, %v4238_v24 }
0x143e   :  { %14454 = vst [vmem:[#allocation36_spill] sm:$0xff] %v12657_v34  ;;  %v12660_v62 = vadd.f32 %v4239_v20, %v12413_v1  ;;  %v4296_v3 = vsel %vm465_vm1, %v12657_v34, 0.0 }
0x143f   :  { %4297 = vadd.xlane.f32.xlu0 %v4296_v3 }
0x1440   :  { %14455 = vst [vmem:[#allocation37_spill] sm:$0xff] %v12660_v62  ;;  %v4293_v5 = vsel %vm465_vm1, %v12660_v62, 0.0 }
0x1441   :  { %4294 = vadd.xlane.f32.xlu1 %v4293_v5  ;;  %v9399_v30 = vpop.f32.mrf.mxu1 }
0x1442   :  { %v4254_v50 = vadd.f32 %v9399_v30, %v8216_v45 }
0x1443   :  { %v4248_v49 = vpop.f32.mrf.mxu1 }
0x1444   :  { %v12667_v12 = vadd.f32 %v4254_v50, %v12420_v48  ;;  %v4249_v54 = vadd.f32 %v8216_v45, %v4248_v49 }
0x1446   :  { %14456 = vst [vmem:[#allocation38_spill] sm:$0xff] %v12667_v12  ;;  %v12670_v22 = vadd.f32 %v4249_v54, %v12423_v42  ;;  %v4302_v1 = vsel %vm465_vm1, %v12667_v12, 0.0 }
0x1447   :  { %4303 = vadd.xlane.f32.xlu0 %v4302_v1 }
0x1448   :  { %14457 = vst [vmem:[#allocation39_spill] sm:$0xff] %v12670_v22  ;;  %v4299_v41 = vsel %vm465_vm1, %v12670_v22, 0.0 }
0x1449   :  { %4300 = vadd.xlane.f32.xlu1 %v4299_v41  ;;  %v9402_v61 = vpop.f32.mrf.mxu1 }
0x144a   :  { %v4264_v23 = vadd.f32 %v9402_v61, %v8216_v45 }
0x144b   :  { %v4258_v16 = vpop.f32.mrf.mxu1  ;;  %v4286_v11 = vpop.xlane.xlu0 %4285 }
0x144c   :  { %v12677_v53 = vadd.f32 %v4264_v23, %v12435_v35  ;;  %v4259_v48 = vadd.f32 %v8216_v45, %v4258_v16  ;;  %v4312_v40 = vmul.f32 0.015625, %v4286_v11  ;;  %v8234_v45 = vld [vmem:[%s14363_s10 + $0xe8] sm:$0xff] }
0x144d   :  { %v4283_v59 = vpop.xlane.xlu1 %4282  ;;  %4521 = vmatprep.subr.mxu0 %v8234_v45 }
0x144e   :  { %14458 = vst [vmem:[#allocation24_spill] sm:$0xff] %v12677_v53  ;;  %v12680_v42 = vadd.f32 %v4259_v48, %v12441_v38  ;;  %v12683_v2 = vsub.f32 %v12637_v21, %v4312_v40  ;;  %v4311_v27 = vmul.f32 0.015625, %v4283_v59  ;;  %v4308_v26 = vsel %vm465_vm1, %v12677_v53, 0.0  ;;  %4522 = vmatpush1.msra.mxu0 %v8233_v25 }
0x144f   :  { %4309 = vadd.xlane.f32.xlu0 %v4308_v26  ;;  %v4292_v44 = vpop.xlane.xlu0 %4291  ;;  %4523 = vmatprep.subr.mxu0 %v8232_v43 }
0x1450   :  { %14459 = vst [vmem:[#allocation25_spill] sm:$0xff] %v12680_v42  ;;  %v12688_v9 = vsub.f32 %v12640_v47, %v4311_v27  ;;  %v4314_v35 = vmul.f32 0.015625, %v4292_v44  ;;  %v4305_v56 = vsel %vm465_vm1, %v12680_v42, 0.0  ;;  %v4332_v38 = vmul.f32 %v12683_v2, %v12683_v2  ;;  %4524 = vmatpush1.msra.mxu0 %v8231_v10 }
0x1451   :  { %v4289_v51 = vpop.xlane.xlu1 %4288  ;;  %4306 = vadd.xlane.f32.xlu1 %v4305_v56  ;;  %4525 = vmatprep.subr.mxu0 %v8230_v4 }
0x1452   :  { %v12695_v17 = vsub.f32 %v12645_v39, %v4314_v35  ;;  %v4313_v58 = vmul.f32 0.015625, %v4289_v51  ;;  %v4344_v18 = vsel %vm465_vm1, %v4332_v38, 0.0  ;;  %v4331_v19 = vmul.f32 %v12688_v9, %v12688_v9  ;;  %4526 = vmatpush1.msra.mxu0 %v8229_v57 }
0x1453   :  { %4345 = vadd.xlane.f32.xlu0 %v4344_v18  ;;  %4527 = vmatprep.subr.mxu0 %v8228_v13 }
0x1454   :  { %v12701_v52 = vsub.f32 %v12650_v6, %v4313_v58  ;;  %v4341_v63 = vsel %vm465_vm1, %v4331_v19, 0.0  ;;  %v4334_v7 = vmul.f32 %v12695_v17, %v12695_v17  ;;  %4528 = vmatpush1.msra.mxu0 %v8227_v31 }
0x1455   :  { %4342 = vadd.xlane.f32.xlu1 %v4341_v63  ;;  %4529 = vmatprep.subr.mxu0 %v8226_v33 }
0x1456   :  { %v4350_v29 = vsel %vm465_vm1, %v4334_v7, 0.0  ;;  %v4333_v15 = vmul.f32 %v12701_v52, %v12701_v52  ;;  %4530 = vmatpush1.msra.mxu0 %v8225_v0 }
0x1457   :  { %4351 = vadd.xlane.f32.xlu0 %v4350_v29  ;;  %4531 = vmatprep.subr.mxu0 %v8224_v55 }
0x1458   :  { %v4347_v32 = vsel %vm465_vm1, %v4333_v15, 0.0  ;;  %4532 = vmatpush1.msra.mxu0 %v8223_v60  ;;  %v12800_v60 = vld [vmem:[%s14361_s8 + $0x1] ss:$0 sm:$0xff] }
0x1459   :  { %4348 = vadd.xlane.f32.xlu1 %v4347_v32  ;;  %4533 = vmatprep.subr.mxu0 %v8222_v46 }
0x145a   :  { %4534 = vmatpush1.msra.mxu0 %v8221_v8 }
0x145b   :  { %9428 = vmatprep.subr.mxu0 %v14432_v28 }
0x14c8   :  { %v4298_v14 = vpop.xlane.xlu0 %4297 }
0x14c9   :  { %v4316_v24 = vmul.f32 0.015625, %v4298_v14  ;;  %v12806_v14 = vld [vmem:[%s14362_s9 + $0x1] ss:$0 sm:$0xff] }
0x14ca   :  { %v4295_v20 = vpop.xlane.xlu1 %4294 }
0x14cb   :  { %v12760_v3 = vsub.f32 %v12657_v34, %v4316_v24  ;;  %v4315_v5 = vmul.f32 0.015625, %v4295_v20 }
0x14cd   :  { %v12763_v30 = vsub.f32 %v12660_v62, %v4315_v5  ;;  %v4336_v50 = vmul.f32 %v12760_v3, %v12760_v3 }
0x14cf   :  { %v4356_v49 = vsel %vm465_vm1, %v4336_v50, 0.0  ;;  %v4335_v54 = vmul.f32 %v12763_v30, %v12763_v30 }
0x14d0   :  { %4357 = vadd.xlane.f32.xlu0 %v4356_v49  ;;  %v4304_v1 = vpop.xlane.xlu0 %4303 }
0x14d1   :  { %v4318_v41 = vmul.f32 0.015625, %v4304_v1  ;;  %v4353_v61 = vsel %vm465_vm1, %v4335_v54, 0.0 }
0x14d2   :  { %v4301_v23 = vpop.xlane.xlu1 %4300  ;;  %4354 = vadd.xlane.f32.xlu1 %v4353_v61 }
0x14d3   :  { %v12772_v16 = vsub.f32 %v12667_v12, %v4318_v41  ;;  %v4317_v11 = vmul.f32 0.015625, %v4301_v23 }
0x14d5   :  { %v12775_v48 = vsub.f32 %v12670_v22, %v4317_v11  ;;  %v4338_v40 = vmul.f32 %v12772_v16, %v12772_v16 }
0x14d7   :  { %v4362_v59 = vsel %vm465_vm1, %v4338_v40, 0.0  ;;  %v4337_v27 = vmul.f32 %v12775_v48, %v12775_v48 }
0x14d8   :  { %4363 = vadd.xlane.f32.xlu0 %v4362_v59  ;;  %v4310_v26 = vpop.xlane.xlu0 %4309 }
0x14d9   :  { %v4320_v44 = vmul.f32 0.015625, %v4310_v26  ;;  %v4359_v35 = vsel %vm465_vm1, %v4337_v27, 0.0 }
0x14da   :  { %4360 = vadd.xlane.f32.xlu1 %v4359_v35  ;;  %v4307_v56 = vpop.xlane.xlu1 %4306 }
0x14db   :  { %v12784_v38 = vsub.f32 %v12677_v53, %v4320_v44  ;;  %v4319_v51 = vmul.f32 0.015625, %v4307_v56 }
0x14dc   :  { %v4346_v58 = vpop.xlane.xlu0 %4345 }
0x14dd   :  { %v12787_v18 = vsub.f32 %v12680_v42, %v4319_v51  ;;  %v4372_v19 = vmul.f32 0.015625, %v4346_v58  ;;  %v4340_v63 = vmul.f32 %v12784_v38, %v12784_v38 }
0x14de   :  { %v4343_v7 = vpop.xlane.xlu1 %4342 }
0x14df   :  { %v4382_v29 = vadd.f32 1e-05, %v4372_v19  ;;  %v4371_v15 = vmul.f32 0.015625, %v4343_v7  ;;  %v4368_v32 = vsel %vm465_vm1, %v4340_v63, 0.0  ;;  %v4339_v37 = vmul.f32 %v12787_v18, %v12787_v18 }
0x14e0   :  { %4369 = vadd.xlane.f32.xlu0 %v4368_v32  ;;  %v4352_v36 = vpop.xlane.xlu0 %4351 }
0x14e1   :  { %10192 = vrsqrt.f32 %v4382_v29  ;;  %v4381_v45 = vadd.f32 1e-05, %v4371_v15  ;;  %v4374_v25 = vmul.f32 0.015625, %v4352_v36  ;;  %v4365_v43 = vsel %vm465_vm1, %v4339_v37, 0.0 }
0x14e2   :  { %4366 = vadd.xlane.f32.xlu1 %v4365_v43  ;;  %v4349_v10 = vpop.xlane.xlu1 %4348 }
0x14e3   :  { %10194 = vrsqrt.f32 %v4381_v45  ;;  %v4373_v4 = vmul.f32 0.015625, %v4349_v10  ;;  %v4384_v57 = vadd.f32 1e-05, %v4374_v25 }
0x14e5   :  { %v4383_v13 = vadd.f32 1e-05, %v4373_v4 }
0x14e7   :  { %10196 = vrsqrt.f32 %v4383_v13 }
0x14e8   :  { %10198 = vrsqrt.f32 %v4384_v57 }
0x14ee   :  { %v10193_v31 = vpop.eup %10192 }
0x14ef   :  { %v4402_v55 = vmul.f32 %v10193_v31, %v12683_v2 }
0x14f0   :  { %v10195_v33 = vpop.eup %10194 }
0x14f1   :  { %v4401_v0 = vmul.f32 %v10195_v33, %v12688_v9  ;;  %v4418_v20 = vmul.f32 %v12800_v60, %v4402_v55 }
0x14f3   :  { %v4417_v46 = vmul.f32 %v12800_v60, %v4401_v0  ;;  %v4434_v5 = vadd.f32 %v12806_v14, %v4418_v20 }
0x14f4   :  { %v10197_v8 = vpop.eup %10196 }
0x14f5   :  { %v4433_v24 = vadd.f32 %v12806_v14, %v4417_v46  ;;  %v4403_v9 = vmul.f32 %v10197_v8, %v12701_v52  ;;  %v10199_v2 = vpop.eup %10198 }
0x14f6   :  { %v4404_v49 = vmul.f32 %v10199_v2, %v12695_v17 }
0x14f7   :  { %8238 = vmatmul.mubr.msk.f32.vlgmr.msra.gmra.mxu0 %vm465_vm1, %v4433_v24  ;;  %v4419_v50 = vmul.f32 %v12800_v60, %v4403_v9 }
0x14f8   :  { %4573 = vmatprep.mubr.f32.mxu0 %v14432_v28  ;;  %v4420_v1 = vmul.f32 %v12800_v60, %v4404_v49 }
0x14f9   :  { %v4435_v54 = vadd.f32 %v12806_v14, %v4419_v50 }
0x14fa   :  { %v4436_v52 = vadd.f32 %v12806_v14, %v4420_v1 }
0x14fb   :  { %8239 = vmatmul.mubr.msk.f32.gmra.mxu0 %vm465_vm1, %v4434_v5 }
0x14fc   :  { %4579 = vmatprep.mubr.f32.mxu0 %v14432_v28 }
0x14ff   :  { %8240 = vmatmul.mubr.msk.f32.gmra.mxu0 %vm465_vm1, %v4435_v54 }
0x1500   :  { %4585 = vmatprep.mubr.f32.mxu0 %v14432_v28 }
0x1503   :  { %8241 = vmatmul.mubr.msk.f32.gmra.mxu0 %vm465_vm1, %v4436_v52 }
0x1504   :  { %4591 = vmatprep.mubr.f32.mxu0 %v14432_v28 }
0x1559   :  { %v4358_v41 = vpop.xlane.xlu0 %4357 }
0x155a   :  { %v4376_v17 = vmul.f32 0.015625, %v4358_v41 }
0x155b   :  { %v4355_v61 = vpop.xlane.xlu1 %4354 }
0x155c   :  { %v4386_v23 = vadd.f32 1e-05, %v4376_v17  ;;  %v4375_v11 = vmul.f32 0.015625, %v4355_v61 }
0x155e   :  { %10200 = vrsqrt.f32 %v4386_v23  ;;  %v4385_v40 = vadd.f32 1e-05, %v4375_v11 }
0x1560   :  { %10202 = vrsqrt.f32 %v4385_v40 }
0x1561   :  { %v4364_v59 = vpop.xlane.xlu0 %4363 }
0x1562   :  { %v4378_v27 = vmul.f32 0.015625, %v4364_v59 }
0x1563   :  { %v4361_v26 = vpop.xlane.xlu1 %4360 }
0x1564   :  { %v4388_v44 = vadd.f32 1e-05, %v4378_v27  ;;  %v4377_v35 = vmul.f32 0.015625, %v4361_v26 }
0x1566   :  { %10204 = vrsqrt.f32 %v4388_v44  ;;  %v4387_v56 = vadd.f32 1e-05, %v4377_v35 }
0x1568   :  { %10206 = vrsqrt.f32 %v4387_v56 }
0x1569   :  { %v4370_v51 = vpop.xlane.xlu0 %4369 }
0x156a   :  { %v4380_v58 = vmul.f32 0.015625, %v4370_v51 }
0x156b   :  { %v10201_v19 = vpop.eup %10200  ;;  %v4367_v63 = vpop.xlane.xlu1 %4366 }
0x156c   :  { %v4390_v7 = vadd.f32 1e-05, %v4380_v58  ;;  %v4379_v29 = vmul.f32 0.015625, %v4367_v63  ;;  %v4406_v36 = vmul.f32 %v10201_v19, %v12760_v3 }
0x156d   :  { %v10203_v15 = vpop.eup %10202 }
0x156e   :  { %10208 = vrsqrt.f32 %v4390_v7  ;;  %v4389_v32 = vadd.f32 1e-05, %v4379_v29  ;;  %v4405_v37 = vmul.f32 %v10203_v15, %v12763_v30  ;;  %v4422_v43 = vmul.f32 %v12800_v60, %v4406_v36 }
0x1570   :  { %10210 = vrsqrt.f32 %v4389_v32  ;;  %v4421_v45 = vmul.f32 %v12800_v60, %v4405_v37  ;;  %v4438_v57 = vadd.f32 %v12806_v14, %v4422_v43 }
0x1572   :  { %v4437_v25 = vadd.f32 %v12806_v14, %v4421_v45 }
0x1573   :  { %v10205_v10 = vpop.eup %10204 }
0x1574   :  { %8242 = vmatmul.mubr.msk.f32.gmra.mxu0 %vm465_vm1, %v4437_v25  ;;  %v4408_v30 = vmul.f32 %v10205_v10, %v12772_v16 }
0x1575   :  { %v10207_v4 = vpop.eup %10206  ;;  %4597 = vmatprep.mubr.f32.mxu0 %v14432_v28 }
0x1576   :  { %v4407_v13 = vmul.f32 %v10207_v4, %v12775_v48  ;;  %v4424_v33 = vmul.f32 %v12800_v60, %v4408_v30 }
0x1578   :  { %8243 = vmatmul.mubr.msk.f32.gmra.mxu0 %vm465_vm1, %v4438_v57  ;;  %v4423_v3 = vmul.f32 %v12800_v60, %v4407_v13  ;;  %v4440_v48 = vadd.f32 %v12806_v14, %v4424_v33 }
0x1579   :  { %4603 = vmatprep.mubr.f32.mxu0 %v14432_v28 }
0x157a   :  { %v4439_v31 = vadd.f32 %v12806_v14, %v4423_v3 }
0x157b   :  { %v10209_v0 = vpop.eup %10208 }
0x157c   :  { %8244 = vmatmul.mubr.msk.f32.gmra.mxu0 %vm465_vm1, %v4439_v31  ;;  %v4410_v46 = vmul.f32 %v10209_v0, %v12784_v38  ;;  %v8237_v38 = vld [vmem:[%s14364_s11 + $0x2] sm:$0x3] }
0x157d   :  { %v10211_v55 = vpop.eup %10210  ;;  %4609 = vmatprep.mubr.f32.mxu0 %v14432_v28 }
0x157e   :  { %v4409_v16 = vmul.f32 %v10211_v55, %v12787_v18  ;;  %v4426_v20 = vmul.f32 %v12800_v60, %v4410_v46  ;;  %v14460_v18 = vld [vmem:[#allocation32_spill] sm:$0xff] }
0x157f   :  { %v14461_v2 = vsub.s32 1, %v14460_v18  ;;  %v14462_v17 = vsub.s32 0, %v14460_v18 }
0x1580   :  { %8245 = vmatmul.mubr.msk.f32.gmra.mxu0 %vm465_vm1, %v4440_v48  ;;  %v4425_v8 = vmul.f32 %v12800_v60, %v4409_v16  ;;  %v4442_v9 = vadd.f32 %v12806_v14, %v4426_v20 }
0x1581   :  { %4615 = vmatprep.mubr.f32.mxu0 %v14432_v28  ;;  %v12861_v5 = vrot.slane %v8237_v38, %v14461_v2  ;;  %v4466_v61 = vrot.slane %v8237_v38, %v14462_v17 }
0x1582   :  { %v4441_v24 = vadd.f32 %v12806_v14, %v4425_v8 }
0x1584   :  { %8246 = vmatmul.mubr.msk.f32.gmra.mxu0 %vm465_vm1, %v4441_v24 }
0x1585   :  { %4621 = vmatprep.mubr.f32.mxu0 %v14432_v28 }
0x1588   :  { %8247 = vmatmul.mubr.msk.f32.gmra.mxu0 %vm465_vm1, %v4442_v9 }
0x1589   :  { %9438 = vmatprep.mubr.msk.f32.mxu0 %vm10642_vm2, %v14432_v28 }
0x15b7   :  { %v4569_v60 = vpop.f32.mrf.mxu0 }
0x15b8   :  { %v12882_v27 = vadd.f32 %v4569_v60, %v4466_v61 }
0x15b9   :  { %v4571_v50 = vpop.f32.mrf.mxu0 }
0x15ba   :  { %v12864_v49 = vadd.f32 %v4571_v50, %v12861_v5 }
0x15bb   :  { %v4575_v54 = vpop.f32.mrf.mxu0 }
0x15bc   :  { %v12878_v59 = vadd.f32 %v4575_v54, %v4466_v61 }
0x15bd   :  { %v4577_v14 = vpop.f32.mrf.mxu0 }
0x15be   :  { %v12867_v1 = vadd.f32 %v4577_v14, %v12861_v5 }
0x15bf   :  { %v4581_v52 = vpop.f32.mrf.mxu0 }
0x15c0   :  { %v12893_v19 = vadd.f32 %v4581_v52, %v4466_v61 }
0x15c1   :  { %v4583_v41 = vpop.f32.mrf.mxu0 }
0x15c2   :  { %v12872_v23 = vadd.f32 %v4583_v41, %v12861_v5 }
0x15c3   :  { %v4587_v11 = vpop.f32.mrf.mxu0 }
0x15c4   :  { %v12874_v40 = vadd.f32 %v4587_v11, %v4466_v61 }
0x15c5   :  { %v4589_v26 = vpop.f32.mrf.mxu0 }
0x15c6   :  { %4639 = vrot.lane.b32.xlu0 %v12874_v40, %s10641_s23  ;;  %v12958_v8 = vadd.f32 %v4589_v26, %v12861_v5 }
0x15ca   :  { %4635 = vrot.lane.b32.xlu0 %v12878_v59, %s10641_s23 }
0x15ce   :  { %4633 = vrot.lane.b32.xlu0 %v12882_v27, %s10641_s23 }
0x1634   :  { %v4593_v44 = vpop.f32.mrf.mxu0 }
0x1635   :  { %v12886_v35 = vadd.f32 %v4593_v44, %v4466_v61 }
0x1636   :  { %v4595_v56 = vpop.f32.mrf.mxu0 }
0x1637   :  { %v12889_v51 = vadd.f32 %v4595_v56, %v12861_v5  ;;  %4641 = vrot.lane.b32.xlu1 %v12886_v35, %s10641_s23 }
0x1638   :  { %v4599_v58 = vpop.f32.mrf.mxu0  ;;  %v4640_v0 = vpop.permute.xlu0 %4639 }
0x1639   :  { %v12931_v31 = vadd.f32 %v4599_v58, %v4466_v61 }
0x163a   :  { %v4601_v63 = vpop.f32.mrf.mxu0 }
0x163b   :  { %v12896_v7 = vadd.f32 %v4601_v63, %v12861_v5  ;;  %4637 = vrot.lane.b32.xlu1 %v12893_v19, %s10641_s23 }
0x163c   :  { %v4605_v29 = vpop.f32.mrf.mxu0  ;;  %v4636_v48 = vpop.permute.xlu0 %4635 }
0x163d   :  { %v12900_v15 = vadd.f32 %v4605_v29, %v4466_v61 }
0x163e   :  { %v4607_v32 = vpop.f32.mrf.mxu0 }
0x163f   :  { %v12903_v37 = vadd.f32 %v4607_v32, %v12861_v5  ;;  %4760 = vrot.lane.b32.xlu0 %v12900_v15, %s10641_s23 }
0x1640   :  { %v4611_v36 = vpop.f32.mrf.mxu0  ;;  %v4634_v16 = vpop.permute.xlu0 %4633 }
0x1641   :  { %v12927_v3 = vadd.f32 %v4611_v36, %v4466_v61 }
0x1642   :  { %v4613_v45 = vpop.f32.mrf.mxu0 }
0x1643   :  { %v12908_v25 = vadd.f32 %v4613_v45, %v12861_v5  ;;  %5224 = vrot.lane.b32.xlu0 %v12874_v40, %s10643_s7 }
0x1644   :  { %v4617_v43 = vpop.f32.mrf.mxu0 }
0x1645   :  { %v12923_v30 = vadd.f32 %v4617_v43, %v4466_v61 }
0x1646   :  { %v4619_v10 = vpop.f32.mrf.mxu0 }
0x1647   :  { %v12913_v4 = vadd.f32 %v4619_v10, %v12861_v5  ;;  %5220 = vrot.lane.b32.xlu0 %v12878_v59, %s10643_s7 }
0x1648   :  { %v4623_v57 = vpop.f32.mrf.mxu0 }
0x1649   :  { %v12917_v13 = vadd.f32 %v4623_v57, %v4466_v61 }
0x164a   :  { %v4625_v38 = vpop.f32.mrf.mxu0 }
0x164b   :  { %5218 = vrot.lane.b32.xlu0 %v12882_v27, %s10643_s7  ;;  %4766 = vrot.lane.b32.xlu1 %v12917_v13, %s10641_s23  ;;  %v12999_v2 = vadd.f32 %v4625_v38, %v12861_v5 }
0x164f   :  { %4764 = vrot.lane.b32.xlu1 %v12923_v30, %s10641_s23 }
0x1653   :  { %4762 = vrot.lane.b32.xlu1 %v12927_v3, %s10641_s23 }
0x1657   :  { %4758 = vrot.lane.b32.xlu1 %v12931_v31, %s10641_s23 }
0x165b   :  { %5226 = vrot.lane.b32.xlu1 %v12886_v35, %s10643_s7 }
0x165f   :  { %5222 = vrot.lane.b32.xlu1 %v12893_v19, %s10643_s7 }
0x1663   :  { %5354 = vrot.lane.b32.xlu1 %v12923_v30, %s10643_s7 }
0x1667   :  { %5352 = vrot.lane.b32.xlu1 %v12927_v3, %s10643_s7 }
0x166b   :  { %5356 = vrot.lane.b32.xlu1 %v12917_v13, %s10643_s7 }
0x16a9   :  { %v4642_v33 = vpop.permute.xlu1 %4641 }
0x16aa   :  { %9404 = vmatpush3.xpose.msk.msra.mxu1 %vm956_vm3, %v4642_v33 }
0x16ab   :  { %9405 = vmatprep.subr.mxu1 %v14432_v28 }
0x16ad   :  { %v4638_v55 = vpop.permute.xlu1 %4637 }
0x16ae   :  { %9406 = vmatpush3.xpose.msk.msra.mxu1 %vm956_vm3, %v4640_v0 }
0x16af   :  { %9407 = vmatprep.subr.mxu1 %v14432_v28 }
0x16b1   :  { %v4761_v9 = vpop.permute.xlu0 %4760 }
0x16b2   :  { %9408 = vmatpush3.xpose.msk.msra.mxu1 %vm956_vm3, %v4638_v55 }
0x16b3   :  { %9409 = vmatprep.subr.mxu1 %v14432_v28 }
0x16b6   :  { %9410 = vmatpush3.xpose.msk.msra.mxu1 %vm956_vm3, %v4636_v48 }
0x16b7   :  { %9411 = vmatprep.subr.mxu1 %v14432_v28 }
0x16ba   :  { %9412 = vmatpush3.xpose.msk.msra.mxu1 %vm956_vm3, %v4634_v16 }
0x16bb   :  { %9453 = vmatprep.subr.mxu1 %v14432_v28 }
0x16bd   :  { %v4767_v46 = vpop.permute.xlu1 %4766  ;;  %9414 = vmatmul.mubr.msk.f32.vlgmr.msra.gmra.mxu1 %vm956_vm3, %v12882_v27 }
0x16be   :  { %9429 = vmatpush3.xpose.msk.msra.mxu0 %vm956_vm3, %v4767_v46  ;;  %9454 = vmatpush3.msra.mxu1 %v12889_v51 }
0x16bf   :  { %9455 = vmatprep.subr.mxu1 %v14432_v28  ;;  %9416 = vmatprep.mubr.msk.f32.mxu1 %vm10642_vm2, %v14432_v28 }
0x16c0   :  { %9456 = vmatpush3.msra.mxu1 %v12958_v8  ;;  %9430 = vmatprep.subr.mxu0 %v14432_v28 }
0x16c1   :  { %v4765_v24 = vpop.permute.xlu1 %4764  ;;  %9417 = vmatmul.mubr.msk.f32.gmra.mxu1 %vm956_vm3, %v12878_v59  ;;  %9457 = vmatprep.subr.mxu1 %v14432_v28 }
0x16c2   :  { %9431 = vmatpush3.xpose.msk.msra.mxu0 %vm956_vm3, %v4765_v24  ;;  %9458 = vmatpush3.msra.mxu1 %v12872_v23 }
0x16c3   :  { %9459 = vmatprep.subr.mxu1 %v14432_v28  ;;  %9419 = vmatprep.mubr.msk.f32.mxu1 %vm10642_vm2, %v14432_v28 }
0x16c4   :  { %9460 = vmatpush3.msra.mxu1 %v12867_v1  ;;  %9432 = vmatprep.subr.mxu0 %v14432_v28 }
0x16c5   :  { %v4763_v20 = vpop.permute.xlu1 %4762  ;;  %9420 = vmatmul.mubr.msk.f32.gmra.mxu1 %vm956_vm3, %v12893_v19  ;;  %9461 = vmatprep.subr.mxu1 %v14432_v28 }
0x16c6   :  { %9433 = vmatpush3.xpose.msk.msra.mxu0 %vm956_vm3, %v4763_v20  ;;  %9462 = vmatpush3.msra.mxu1 %v12864_v49 }
0x16c7   :  { %9422 = vmatprep.mubr.msk.f32.mxu1 %vm10642_vm2, %v14432_v28  ;;  %9434 = vmatprep.subr.mxu0 %v14432_v28 }
0x16c8   :  { %9503 = vmatprep.subr.mxu1 %v14432_v28 }
0x16c9   :  { %9423 = vmatmul.mubr.msk.f32.gmra.mxu1 %vm956_vm3, %v12874_v40  ;;  %v4759_v18 = vpop.permute.xlu1 %4758 }
0x16ca   :  { %9435 = vmatpush3.xpose.msk.msra.mxu0 %vm956_vm3, %v4761_v9  ;;  %9425 = vmatprep.mubr.msk.f32.mxu1 %vm10642_vm2, %v14432_v28 }
0x16cb   :  { %9436 = vmatprep.subr.mxu0 %v14432_v28 }
0x16cd   :  { %9426 = vmatmul.mubr.msk.f32.gmra.mxu1 %vm956_vm3, %v12886_v35 }
0x16ce   :  { %9437 = vmatpush3.xpose.msk.msra.mxu0 %vm956_vm3, %v4759_v18  ;;  %9463 = vmatprep.mubr.msk.f32.mxu1 %vm10642_vm2, %v14432_v28 }
0x16cf   :  { %9478 = vmatprep.subr.mxu0 %v14432_v28 }
0x16d1   :  { %9439 = vmatmul.mubr.msk.f32.vlgmr.msra.gmra.mxu0 %vm956_vm3, %v12931_v31 }
0x16d2   :  { %9479 = vmatpush3.msra.mxu0 %v12999_v2  ;;  %9441 = vmatprep.mubr.msk.f32.mxu0 %vm10642_vm2, %v14432_v28 }
0x16d3   :  { %9480 = vmatprep.subr.mxu0 %v14432_v28 }
0x16d4   :  { %9481 = vmatpush3.msra.mxu0 %v12913_v4 }
0x16d5   :  { %9442 = vmatmul.mubr.msk.f32.gmra.mxu0 %vm956_vm3, %v12900_v15  ;;  %9482 = vmatprep.subr.mxu0 %v14432_v28 }
0x16d6   :  { %9483 = vmatpush3.msra.mxu0 %v12908_v25  ;;  %9444 = vmatprep.mubr.msk.f32.mxu0 %vm10642_vm2, %v14432_v28 }
0x16d7   :  { %9484 = vmatprep.subr.mxu0 %v14432_v28 }
0x16d8   :  { %9485 = vmatpush3.msra.mxu0 %v12903_v37 }
0x16d9   :  { %9445 = vmatmul.mubr.msk.f32.gmra.mxu0 %vm956_vm3, %v12927_v3  ;;  %9486 = vmatprep.subr.mxu0 %v14432_v28 }
0x16da   :  { %9487 = vmatpush3.msra.mxu0 %v12896_v7  ;;  %9447 = vmatprep.mubr.msk.f32.mxu0 %vm10642_vm2, %v14432_v28 }
0x16db   :  { %9528 = vmatprep.subr.mxu0 %v14432_v28 }
0x16dd   :  { %9448 = vmatmul.mubr.msk.f32.gmra.mxu0 %vm956_vm3, %v12923_v30 }
0x16de   :  { %9450 = vmatprep.mubr.msk.f32.mxu0 %vm10642_vm2, %v14432_v28 }
0x16e1   :  { %9451 = vmatmul.mubr.msk.f32.gmra.mxu0 %vm956_vm3, %v12917_v13 }
0x16e2   :  { %9488 = vmatprep.mubr.msk.f32.mxu0 %vm10642_vm2, %v14432_v28 }
0x177d   :  { %v4729_v5 = vpop.f32.mrf.mxu1 }
0x177e   :  { %v4878_v60 = vmul.f32 0.25, %v4729_v5 }
0x177f   :  { %v9415_v50 = vpop.f32.mrf.mxu1 }
0x1780   :  { %v4888_v54 = vsel %vm1202_vm4, %v4878_v60, -inf }
0x1781   :  { %4889 = vmax.xlane.f32.xlu0 %v4888_v54  ;;  %v4734_v14 = vpop.f32.mrf.mxu1 }
0x1782   :  { %v4879_v52 = vmul.f32 0.25, %v4734_v14 }
0x1783   :  { %v9418_v41 = vpop.f32.mrf.mxu1 }
0x1784   :  { %v4891_v17 = vsel %vm1202_vm4, %v4879_v52, -inf }
0x1785   :  { %4892 = vmax.xlane.f32.xlu1 %v4891_v17  ;;  %v4739_v61 = vpop.f32.mrf.mxu1 }
0x1786   :  { %v4880_v11 = vmul.f32 0.25, %v4739_v61 }
0x1787   :  { %v9421_v26 = vpop.f32.mrf.mxu1 }
0x1788   :  { %v4894_v44 = vsel %vm1202_vm4, %v4880_v11, -inf  ;;  %v13054_v26 = vpop.permute.xlu1 %5226 }
0x1789   :  { %4895 = vmax.xlane.f32.xlu0 %v4894_v44  ;;  %v4744_v56 = vpop.f32.mrf.mxu1 }
0x178a   :  { %v4881_v58 = vmul.f32 0.25, %v4744_v56  ;;  %v13058_v56 = vpop.permute.xlu0 %5224 }
0x178b   :  { %v9424_v63 = vpop.f32.mrf.mxu1 }
0x178c   :  { %v4897_v29 = vsel %vm1202_vm4, %v4881_v58, -inf  ;;  %v13056_v44 = vpop.permute.xlu1 %5222 }
0x178d   :  { %4898 = vmax.xlane.f32.xlu1 %v4897_v29  ;;  %v4749_v32 = vpop.f32.mrf.mxu1 }
0x178e   :  { %v4882_v36 = vmul.f32 0.25, %v4749_v32  ;;  %v13062_v29 = vpop.permute.xlu0 %5220 }
0x178f   :  { %v9427_v45 = vpop.f32.mrf.mxu1 }
0x1790   :  { %v4900_v43 = vsel %vm1202_vm4, %v4882_v36, -inf  ;;  %v13060_v63 = vpop.permute.xlu1 %5354 }
0x1791   :  { %4901 = vmax.xlane.f32.xlu1 %v4900_v43  ;;  %v4854_v10 = vpop.f32.mrf.mxu0 }
0x1792   :  { %v4883_v57 = vmul.f32 0.25, %v4854_v10  ;;  %v13066_v45 = vpop.permute.xlu0 %5218 }
0x1793   :  { %v9440_v33 = vpop.f32.mrf.mxu0 }
0x1794   :  { %v4903_v0 = vsel %vm1202_vm4, %v4883_v57, -inf  ;;  %v13064_v32 = vpop.permute.xlu1 %5352 }
0x1795   :  { %4904 = vmax.xlane.f32.xlu0 %v4903_v0  ;;  %v4859_v55 = vpop.f32.mrf.mxu0 }
0x1796   :  { %v4884_v48 = vmul.f32 0.25, %v4859_v55 }
0x1797   :  { %v9443_v16 = vpop.f32.mrf.mxu0 }
0x1798   :  { %v4906_v46 = vsel %vm1202_vm4, %v4884_v48, -inf  ;;  %v13068_v43 = vpop.permute.xlu1 %5356 }
0x1799   :  { %4907 = vmax.xlane.f32.xlu0 %v4906_v46  ;;  %v4864_v24 = vpop.f32.mrf.mxu0 }
0x179a   :  { %v13038_v20 = vmul.f32 0.25, %v4864_v24 }
0x179b   :  { %v9446_v9 = vpop.f32.mrf.mxu0 }
0x179c   :  { %v4909_v38 = vsel %vm1202_vm4, %v13038_v20, -inf }
0x179d   :  { %4910 = vmax.xlane.f32.xlu0 %v4909_v38  ;;  %v4869_v18 = vpop.f32.mrf.mxu0 }
0x179e   :  { %v13042_v5 = vmul.f32 0.25, %v4869_v18 }
0x179f   :  { %v9449_v50 = vpop.f32.mrf.mxu0 }
0x17a0   :  { %v4912_v54 = vsel %vm1202_vm4, %v13042_v5, -inf }
0x17a1   :  { %4913 = vmax.xlane.f32.xlu1 %v4912_v54  ;;  %v4874_v14 = vpop.f32.mrf.mxu0 }
0x17a2   :  { %v13046_v41 = vmul.f32 0.25, %v4874_v14 }
0x17a3   :  { %v9452_v17 = vpop.f32.mrf.mxu0 }
0x17a4   :  { %v4915_v61 = vsel %vm1202_vm4, %v13046_v41, -inf }
0x17a5   :  { %4916 = vmax.xlane.f32.xlu0 %v4915_v61 }
0x17b2   :  { %5350 = vrot.lane.b32.xlu1 %v12900_v15, %s10643_s7 }
0x17bb   :  { %5208 = vrot.lane.b32.xlu0 %v12882_v27, %s10644_s20 }
0x180a   :  { %v4890_v10 = vpop.xlane.xlu0 %4889 }
0x180b   :  { %v4918_v33 = vsub.f32 %v4878_v60, %v4890_v10 }
0x180d   :  { %v4928_v0 = vmul.f32 1.442695, %v4918_v33 }
0x180e   :  { %v4893_v55 = vpop.xlane.xlu1 %4892 }
0x180f   :  { %10212 = vpow2.f32 %v4928_v0  ;;  %v4919_v16 = vsub.f32 %v4879_v52, %v4893_v55 }
0x1811   :  { %v4930_v46 = vmul.f32 1.442695, %v4919_v16 }
0x1812   :  { %v4896_v24 = vpop.xlane.xlu0 %4895 }
0x1813   :  { %10214 = vpow2.f32 %v4930_v46  ;;  %v4920_v9 = vsub.f32 %v4880_v11, %v4896_v24 }
0x1815   :  { %v4932_v38 = vmul.f32 1.442695, %v4920_v9 }
0x1816   :  { %v4899_v18 = vpop.xlane.xlu1 %4898 }
0x1817   :  { %10216 = vpow2.f32 %v4932_v38  ;;  %v4921_v50 = vsub.f32 %v4881_v58, %v4899_v18 }
0x1819   :  { %v4934_v54 = vmul.f32 1.442695, %v4921_v50 }
0x181a   :  { %v4902_v14 = vpop.xlane.xlu1 %4901 }
0x181b   :  { %10218 = vpow2.f32 %v4934_v54  ;;  %v4922_v17 = vsub.f32 %v4882_v36, %v4902_v14 }
0x181c   :  { %v13070_v61 = vpop.eup %10212 }
0x181d   :  { %v4936_v42 = vmul.f32 1.442695, %v4922_v17  ;;  %v4948_v60 = vsel %vm1202_vm4, %v13070_v61, 0.0 }
0x181e   :  { %4949 = vadd.xlane.f32.xlu1 %v4948_v60  ;;  %v4905_v52 = vpop.xlane.xlu0 %4904 }
0x181f   :  { %10220 = vpow2.f32 %v4936_v42  ;;  %v4923_v10 = vsub.f32 %v4883_v57, %v4905_v52 }
0x1820   :  { %v13074_v33 = vpop.eup %10214 }
0x1821   :  { %v4938_v11 = vmul.f32 1.442695, %v4923_v10  ;;  %v4951_v58 = vsel %vm1202_vm4, %v13074_v33, 0.0 }
0x1822   :  { %4952 = vadd.xlane.f32.xlu0 %v4951_v58  ;;  %v4908_v0 = vpop.xlane.xlu0 %4907 }
0x1823   :  { %10222 = vpow2.f32 %v4938_v11  ;;  %v4924_v36 = vsub.f32 %v4884_v48, %v4908_v0 }
0x1824   :  { %v13078_v55 = vpop.eup %10216 }
0x1825   :  { %v4940_v16 = vmul.f32 1.442695, %v4924_v36  ;;  %v4954_v46 = vsel %vm1202_vm4, %v13078_v55, 0.0 }
0x1826   :  { %4955 = vadd.xlane.f32.xlu1 %v4954_v46  ;;  %v4911_v24 = vpop.xlane.xlu0 %4910 }
0x1827   :  { %10224 = vpow2.f32 %v4940_v16  ;;  %v4925_v42 = vsub.f32 %v13038_v20, %v4911_v24 }
0x1828   :  { %v13083_v57 = vpop.eup %10218 }
0x1829   :  { %v4942_v9 = vmul.f32 1.442695, %v4925_v42  ;;  %v4957_v38 = vsel %vm1202_vm4, %v13083_v57, 0.0 }
0x182a   :  { %4958 = vadd.xlane.f32.xlu1 %v4957_v38  ;;  %v4914_v52 = vpop.xlane.xlu1 %4913 }
0x182b   :  { %10226 = vpow2.f32 %v4942_v9  ;;  %v4926_v10 = vsub.f32 %v13042_v5, %v4914_v52 }
0x182c   :  { %v13087_v48 = vpop.eup %10220 }
0x182d   :  { %v4960_v18 = vsel %vm1202_vm4, %v13087_v48, 0.0  ;;  %v4944_v11 = vmul.f32 1.442695, %v4926_v10 }
0x182e   :  { %4961 = vadd.xlane.f32.xlu1 %v4960_v18  ;;  %v4917_v58 = vpop.xlane.xlu0 %4916 }
0x182f   :  { %10228 = vpow2.f32 %v4944_v11  ;;  %v4927_v0 = vsub.f32 %v13046_v41, %v4917_v58  ;;  %v13145_v41 = vpop.permute.xlu1 %5350 }
0x1830   :  { %v13091_v50 = vpop.eup %10222 }
0x1831   :  { %v4963_v54 = vsel %vm1202_vm4, %v13091_v50, 0.0  ;;  %v4946_v36 = vmul.f32 1.442695, %v4927_v0 }
0x1832   :  { %4964 = vadd.xlane.f32.xlu0 %v4963_v54  ;;  %v5209_v42 = vpop.permute.xlu0 %5208 }
0x1833   :  { %10230 = vpow2.f32 %v4946_v36 }
0x1834   :  { %v13095_v20 = vpop.eup %10224 }
0x1835   :  { %v4966_v14 = vsel %vm1202_vm4, %v13095_v20, 0.0 }
0x1836   :  { %4967 = vadd.xlane.f32.xlu0 %v4966_v14 }
0x1838   :  { %v13099_v17 = vpop.eup %10226 }
0x1839   :  { %v4969_v60 = vsel %vm1202_vm4, %v13099_v17, 0.0 }
0x183a   :  { %4970 = vadd.xlane.f32.xlu0 %v4969_v60 }
0x183c   :  { %v13109_v16 = vpop.eup %10228 }
0x183d   :  { %v4972_v46 = vsel %vm1202_vm4, %v13109_v16, 0.0 }
0x183f   :  { %5348 = vrot.lane.b32.xlu1 %v12931_v31, %s10643_s7 }
0x1840   :  { %v13113_v24 = vpop.eup %10230 }
0x1841   :  { %v4975_v5 = vsel %vm1202_vm4, %v13113_v24, 0.0 }
0x1850   :  { %5210 = vrot.lane.b32.xlu0 %v12878_v59, %s10644_s20 }
0x1863   :  { %4973 = vadd.xlane.f32.xlu1 %v4972_v46 }
0x186f   :  { %4976 = vadd.xlane.f32.xlu0 %v4975_v5 }
0x1874   :  { %5338 = vrot.lane.b32.xlu1 %v12931_v31, %s10644_s20 }
0x1878   :  { %5340 = vrot.lane.b32.xlu1 %v12900_v15, %s10644_s20 }
0x187c   :  { %5342 = vrot.lane.b32.xlu1 %v12927_v3, %s10644_s20 }
0x1880   :  { %5346 = vrot.lane.b32.xlu1 %v12917_v13, %s10644_s20 }
0x1884   :  { %5601 = vrot.lane.b32.xlu1 %v12889_v51, %s10644_s20 }
0x1885   :  { %5212 = vrot.lane.b32.xlu0 %v12893_v19, %s10644_s20 }
0x1888   :  { %5597 = vrot.lane.b32.xlu1 %v12872_v23, %s10644_s20 }
0x1889   :  { %5214 = vrot.lane.b32.xlu0 %v12874_v40, %s10644_s20 }
0x188d   :  { %5216 = vrot.lane.b32.xlu0 %v12886_v35, %s10644_s20 }
0x1891   :  { %5344 = vrot.lane.b32.xlu0 %v12923_v30, %s10644_s20 }
0x1895   :  { %5599 = vrot.lane.b32.xlu0 %v12958_v8, %s10644_s20 }
0x1899   :  { %5595 = vrot.lane.b32.xlu0 %v12867_v1, %s10644_s20 }
0x189d   :  { %5593 = vrot.lane.b32.xlu0 %v12864_v49, %s10644_s20 }
0x18a1   :  { %5726 = vrot.lane.b32.xlu0 %v12999_v2, %s10644_s20 }
0x18a5   :  { %5856 = vrot.lane.b32.xlu0 %v12886_v35, %s10645_s13 }
0x18a7   :  { %v4950_v9 = vpop.xlane.xlu1 %4949 }
0x18a8   :  { %10232 = vrcp.f32 %v4950_v9 }
0x18a9   :  { %5724 = vrot.lane.b32.xlu0 %v12913_v4, %s10644_s20 }
0x18ab   :  { %v4953_v38 = vpop.xlane.xlu0 %4952 }
0x18ac   :  { %10234 = vrcp.f32 %v4953_v38 }
0x18ad   :  { %5722 = vrot.lane.b32.xlu0 %v12908_v25, %s10644_s20 }
0x18af   :  { %v4956_v18 = vpop.xlane.xlu1 %4955 }
0x18b0   :  { %10236 = vrcp.f32 %v4956_v18 }
0x18b1   :  { %5854 = vrot.lane.b32.xlu0 %v12874_v40, %s10645_s13 }
0x18b3   :  { %v4959_v54 = vpop.xlane.xlu1 %4958 }
0x18b4   :  { %10238 = vrcp.f32 %v4959_v54 }
0x18b5   :  { %v10233_v14 = vpop.eup %10232 }
0x18b6   :  { %v4988_v60 = vmul.f32 %v10233_v14, %v13070_v61 }
0x18b7   :  { %v4962_v52 = vpop.xlane.xlu1 %4961 }
0x18b8   :  { %10240 = vrcp.f32 %v4962_v52  ;;  %9464 = vmatmul.mubr.msk.f32.vlgmr.msra.gmra.mxu1 %vm1202_vm4, %v4988_v60 }
0x18b9   :  { %v10235_v10 = vpop.eup %10234  ;;  %9504 = vmatpush3.xpose.msk.msra.mxu1 %vm956_vm3, %v13054_v26  ;;  %9466 = vmatprep.mubr.msk.f32.mxu1 %vm10642_vm2, %v14432_v28 }
0x18ba   :  { %9505 = vmatprep.subr.mxu1 %v14432_v28  ;;  %v4989_v11 = vmul.f32 %v10235_v10, %v13074_v33 }
0x18bb   :  { %v4965_v58 = vpop.xlane.xlu0 %4964 }
0x18bc   :  { %10242 = vrcp.f32 %v4965_v58  ;;  %9467 = vmatmul.mubr.msk.f32.gmra.mxu1 %vm1202_vm4, %v4989_v11 }
0x18bd   :  { %v10237_v61 = vpop.eup %10236  ;;  %9506 = vmatpush3.xpose.msk.msra.mxu1 %vm956_vm3, %v13058_v56  ;;  %9469 = vmatprep.mubr.msk.f32.mxu1 %vm10642_vm2, %v14432_v28 }
0x18be   :  { %9507 = vmatprep.subr.mxu1 %v14432_v28  ;;  %v4990_v26 = vmul.f32 %v10237_v61, %v13078_v55 }
0x18bf   :  { %v4968_v0 = vpop.xlane.xlu0 %4967 }
0x18c0   :  { %10244 = vrcp.f32 %v4968_v0  ;;  %9470 = vmatmul.mubr.msk.f32.gmra.mxu1 %vm1202_vm4, %v4990_v26 }
0x18c1   :  { %v10239_v33 = vpop.eup %10238  ;;  %9508 = vmatpush3.xpose.msk.msra.mxu1 %vm956_vm3, %v13056_v44  ;;  %9472 = vmatprep.mubr.msk.f32.mxu1 %vm10642_vm2, %v14432_v28 }
0x18c2   :  { %9509 = vmatprep.subr.mxu1 %v14432_v28  ;;  %v4991_v56 = vmul.f32 %v10239_v33, %v13083_v57 }
0x18c3   :  { %v4971_v36 = vpop.xlane.xlu0 %4970 }
0x18c4   :  { %10246 = vrcp.f32 %v4971_v36  ;;  %9473 = vmatmul.mubr.msk.f32.gmra.mxu1 %vm1202_vm4, %v4991_v56 }
0x18c5   :  { %v10241_v55 = vpop.eup %10240  ;;  %9510 = vmatpush3.xpose.msk.msra.mxu1 %vm956_vm3, %v13062_v29  ;;  %9475 = vmatprep.mubr.msk.f32.mxu1 %vm10642_vm2, %v14432_v28 }
0x18c6   :  { %9511 = vmatprep.subr.mxu1 %v14432_v28  ;;  %v4992_v44 = vmul.f32 %v10241_v55, %v13087_v48 }
0x18c7   :  { %v5211_v48 = vpop.permute.xlu0 %5210 }
0x18c8   :  { %9476 = vmatmul.mubr.msk.f32.gmra.mxu1 %vm1202_vm4, %v4992_v44 }
0x18c9   :  { %v10243_v46 = vpop.eup %10242  ;;  %9512 = vmatpush3.xpose.msk.msra.mxu1 %vm956_vm3, %v13066_v45  ;;  %9513 = vmatprep.mubr.msk.f32.mxu1 %vm10642_vm2, %v14432_v28 }
0x18ca   :  { %v4993_v57 = vmul.f32 %v10243_v46, %v13091_v50  ;;  %9553 = vmatprep.subr.mxu1 %v14432_v28 }
0x18cc   :  { %9489 = vmatmul.mubr.msk.f32.vlgmr.msra.gmra.mxu0 %vm1202_vm4, %v4993_v57  ;;  %9514 = vmatmul.mubr.msk.f32.vlgmr.msra.gmra.mxu1 %vm956_vm3, %v5209_v42 }
0x18cd   :  { %v10245_v29 = vpop.eup %10244  ;;  %9529 = vmatpush3.xpose.msk.msra.mxu0 %vm956_vm3, %v13068_v43  ;;  %9491 = vmatprep.mubr.msk.f32.mxu0 %vm10642_vm2, %v14432_v28 }
0x18ce   :  { %9516 = vmatprep.mubr.msk.f32.mxu1 %vm10642_vm2, %v14432_v28  ;;  %9530 = vmatprep.subr.mxu0 %v14432_v28  ;;  %v4994_v45 = vmul.f32 %v10245_v29, %v13095_v20 }
0x18d0   :  { %9492 = vmatmul.mubr.msk.f32.gmra.mxu0 %vm1202_vm4, %v4994_v45  ;;  %9517 = vmatmul.mubr.msk.f32.gmra.mxu1 %vm956_vm3, %v5211_v48 }
0x18d1   :  { %v10247_v50 = vpop.eup %10246  ;;  %9531 = vmatpush3.xpose.msk.msra.mxu0 %vm956_vm3, %v13060_v63  ;;  %9494 = vmatprep.mubr.msk.f32.mxu0 %vm10642_vm2, %v14432_v28  ;;  %v5349_v63 = vpop.permute.xlu1 %5348 }
0x18d2   :  { %9532 = vmatprep.subr.mxu0 %v14432_v28  ;;  %v4995_v43 = vmul.f32 %v10247_v50, %v13099_v17  ;;  %9519 = vmatprep.mubr.msk.f32.mxu1 %vm10642_vm2, %v14432_v28 }
0x18d4   :  { %9495 = vmatmul.mubr.msk.f32.gmra.mxu0 %vm1202_vm4, %v4995_v43 }
0x18d5   :  { %9533 = vmatpush3.xpose.msk.msra.mxu0 %vm956_vm3, %v13064_v32  ;;  %9497 = vmatprep.mubr.msk.f32.mxu0 %vm10642_vm2, %v14432_v28 }
0x18d6   :  { %9534 = vmatprep.subr.mxu0 %v14432_v28 }
0x18d9   :  { %9535 = vmatpush3.xpose.msk.msra.mxu0 %vm956_vm3, %v13145_v41 }
0x18da   :  { %9536 = vmatprep.subr.mxu0 %v14432_v28 }
0x18dd   :  { %9537 = vmatpush3.xpose.msk.msra.mxu0 %vm956_vm3, %v5349_v63 }
0x18de   :  { %9578 = vmatprep.subr.mxu0 %v14432_v28 }
0x18ec   :  { %v4974_v20 = vpop.xlane.xlu1 %4973 }
0x18ed   :  { %10248 = vrcp.f32 %v4974_v20 }
0x18f0   :  { %v5339_v17 = vpop.permute.xlu1 %5338 }
0x18f4   :  { %v5341_v5 = vpop.permute.xlu1 %5340 }
0x18f8   :  { %v5343_v32 = vpop.permute.xlu1 %5342  ;;  %v4977_v42 = vpop.xlane.xlu0 %4976 }
0x18f9   :  { %10250 = vrcp.f32 %v4977_v42 }
0x18fa   :  { %v10249_v9 = vpop.eup %10248 }
0x18fb   :  { %v4996_v38 = vmul.f32 %v10249_v9, %v13109_v16 }
0x18fc   :  { %v5347_v18 = vpop.permute.xlu1 %5346  ;;  %v5213_v54 = vpop.permute.xlu0 %5212 }
0x18fd   :  { %9498 = vmatmul.mubr.msk.f32.gmra.mxu0 %vm1202_vm4, %v4996_v38  ;;  %9520 = vmatmul.mubr.msk.f32.gmra.mxu1 %vm956_vm3, %v5213_v54 }
0x18fe   :  { %9522 = vmatprep.mubr.msk.f32.mxu1 %vm10642_vm2, %v14432_v28  ;;  %9500 = vmatprep.mubr.msk.f32.mxu0 %vm10642_vm2, %v14432_v28 }
0x1900   :  { %v5602_v41 = vpop.permute.xlu1 %5601  ;;  %v5215_v14 = vpop.permute.xlu0 %5214 }
0x1901   :  { %9523 = vmatmul.mubr.msk.f32.gmra.mxu1 %vm956_vm3, %v5215_v14 }
0x1902   :  { %9554 = vmatpush3.msra.mxu1 %v5602_v41  ;;  %9525 = vmatprep.mubr.msk.f32.mxu1 %vm10642_vm2, %v14432_v28 }
0x1903   :  { %9555 = vmatprep.subr.mxu1 %v14432_v28 }
0x1904   :  { %v5217_v16 = vpop.permute.xlu0 %5216  ;;  %v5598_v58 = vpop.permute.xlu1 %5597 }
0x1905   :  { %9526 = vmatmul.mubr.msk.f32.gmra.mxu1 %vm956_vm3, %v5217_v16 }
0x1906   :  { %v10251_v60 = vpop.eup %10250  ;;  %9563 = vmatprep.mubr.msk.f32.mxu1 %vm10642_vm2, %v14432_v28 }
0x1907   :  { %v4997_v52 = vmul.f32 %v10251_v60, %v13113_v24 }
0x1908   :  { %v5345_v10 = vpop.permute.xlu0 %5344 }
0x1909   :  { %9501 = vmatmul.mubr.msk.f32.gmra.mxu0 %vm1202_vm4, %v4997_v52 }
0x190a   :  { %9538 = vmatprep.mubr.msk.f32.mxu0 %vm10642_vm2, %v14432_v28 }
0x190c   :  { %v5600_v11 = vpop.permute.xlu0 %5599 }
0x190d   :  { %9539 = vmatmul.mubr.msk.f32.vlgmr.msra.gmra.mxu0 %vm956_vm3, %v5339_v17  ;;  %9556 = vmatpush3.msra.mxu1 %v5600_v11 }
0x190e   :  { %9557 = vmatprep.subr.mxu1 %v14432_v28  ;;  %9541 = vmatprep.mubr.msk.f32.mxu0 %vm10642_vm2, %v14432_v28 }
0x190f   :  { %9558 = vmatpush3.msra.mxu1 %v5598_v58 }
0x1910   :  { %9559 = vmatprep.subr.mxu1 %v14432_v28  ;;  %v5596_v24 = vpop.permute.xlu0 %5595 }
0x1911   :  { %9542 = vmatmul.mubr.msk.f32.gmra.mxu0 %vm956_vm3, %v5341_v5  ;;  %9560 = vmatpush3.msra.mxu1 %v5596_v24 }
0x1912   :  { %9544 = vmatprep.mubr.msk.f32.mxu0 %vm10642_vm2, %v14432_v28  ;;  %9561 = vmatprep.subr.mxu1 %v14432_v28 }
0x1914   :  { %v5594_v61 = vpop.permute.xlu0 %5593 }
0x1915   :  { %9545 = vmatmul.mubr.msk.f32.gmra.mxu0 %vm956_vm3, %v5343_v32  ;;  %9562 = vmatpush3.msra.mxu1 %v5594_v61 }
0x1916   :  { %9547 = vmatprep.mubr.msk.f32.mxu0 %vm10642_vm2, %v14432_v28  ;;  %9603 = vmatprep.subr.mxu1 %v14432_v28 }
0x1918   :  { %v5727_v26 = vpop.permute.xlu0 %5726 }
0x1919   :  { %9548 = vmatmul.mubr.msk.f32.gmra.mxu0 %vm956_vm3, %v5345_v10 }
0x191a   :  { %9579 = vmatpush3.msra.mxu0 %v5727_v26  ;;  %9550 = vmatprep.mubr.msk.f32.mxu0 %vm10642_vm2, %v14432_v28 }
0x191b   :  { %9580 = vmatprep.subr.mxu0 %v14432_v28 }
0x191c   :  { %v13257_v0 = vpop.permute.xlu0 %5856 }
0x191d   :  { %9551 = vmatmul.mubr.msk.f32.gmra.mxu0 %vm956_vm3, %v5347_v18 }
0x191e   :  { %9588 = vmatprep.mubr.msk.f32.mxu0 %vm10642_vm2, %v14432_v28 }
0x1920   :  { %v5725_v33 = vpop.permute.xlu0 %5724 }
0x1921   :  { %9581 = vmatpush3.msra.mxu0 %v5725_v33 }
0x1922   :  { %9582 = vmatprep.subr.mxu0 %v14432_v28 }
0x1924   :  { %v5723_v56 = vpop.permute.xlu0 %5722 }
0x1925   :  { %9583 = vmatpush3.msra.mxu0 %v5723_v56 }
0x1926   :  { %9584 = vmatprep.subr.mxu0 %v14432_v28 }
0x1978   :  { %v13264_v36 = vpop.f32.mrf.mxu1 }
0x197a   :  { %v9465_v55 = vpop.f32.mrf.mxu1 }
0x197c   :  { %v13266_v44 = vpop.f32.mrf.mxu1 }
0x197e   :  { %v9468_v46 = vpop.f32.mrf.mxu1 }
0x1980   :  { %v13268_v57 = vpop.f32.mrf.mxu1 }
0x1982   :  { %v9471_v29 = vpop.f32.mrf.mxu1 }
0x1984   :  { %v13270_v45 = vpop.f32.mrf.mxu1 }
0x1986   :  { %v9474_v48 = vpop.f32.mrf.mxu1 }
0x1988   :  { %v13272_v50 = vpop.f32.mrf.mxu1 }
0x198a   :  { %v9477_v43 = vpop.f32.mrf.mxu1 }
0x198c   :  { %v13274_v63 = vpop.f32.mrf.mxu0  ;;  %v5314_v20 = vpop.f32.mrf.mxu1 }
0x198d   :  { %v13276_v17 = vmul.f32 0.25, %v5314_v20 }
0x198e   :  { %v9490_v5 = vpop.f32.mrf.mxu0  ;;  %v9515_v32 = vpop.f32.mrf.mxu1 }
0x198f   :  { %v5478_v42 = vsel %vm1202_vm4, %v13276_v17, -inf }
0x1990   :  { %5479 = vmax.xlane.f32.xlu0 %v5478_v42  ;;  %v13280_v9 = vpop.f32.mrf.mxu0  ;;  %v5319_v38 = vpop.f32.mrf.mxu1 }
0x1991   :  { %v13282_v18 = vmul.f32 0.25, %v5319_v38 }
0x1992   :  { %v9493_v54 = vpop.f32.mrf.mxu0  ;;  %v9518_v41 = vpop.f32.mrf.mxu1 }
0x1993   :  { %v5481_v14 = vsel %vm1202_vm4, %v13282_v18, -inf }
0x1994   :  { %v13286_v16 = vpop.f32.mrf.mxu0  ;;  %5482 = vmax.xlane.f32.xlu1 %v5481_v14 }
0x1996   :  { %v9496_v60 = vpop.f32.mrf.mxu0 }
0x19bd   :  { %v13288_v52 = vpop.f32.mrf.mxu0  ;;  %v5324_v10 = vpop.f32.mrf.mxu1 }
0x19be   :  { %v13290_v11 = vmul.f32 0.25, %v5324_v10 }
0x19bf   :  { %v9499_v58 = vpop.f32.mrf.mxu0  ;;  %v9521_v24 = vpop.f32.mrf.mxu1 }
0x19c0   :  { %v5484_v61 = vsel %vm1202_vm4, %v13290_v11, -inf }
0x19c1   :  { %5485 = vmax.xlane.f32.xlu0 %v5484_v61  ;;  %v5329_v26 = vpop.f32.mrf.mxu1 }
0x19c2   :  { %v13294_v33 = vmul.f32 0.25, %v5329_v26 }
0x19c3   :  { %v9524_v56 = vpop.f32.mrf.mxu1 }
0x19c4   :  { %v5487_v55 = vsel %vm1202_vm4, %v13294_v33, -inf }
0x19c5   :  { %5488 = vmax.xlane.f32.xlu1 %v5487_v55  ;;  %v5334_v46 = vpop.f32.mrf.mxu1 }
0x19c6   :  { %v13298_v29 = vmul.f32 0.25, %v5334_v46 }
0x19c7   :  { %v9527_v48 = vpop.f32.mrf.mxu1 }
0x19c8   :  { %v5490_v43 = vsel %vm1202_vm4, %v13298_v29, -inf }
0x19c9   :  { %v13302_v20 = vpop.f32.mrf.mxu0  ;;  %5491 = vmax.xlane.f32.xlu1 %v5490_v43 }
0x19cb   :  { %v9502_v5 = vpop.f32.mrf.mxu0 }
0x19cd   :  { %v5444_v32 = vpop.f32.mrf.mxu0 }
0x19ce   :  { %v13304_v42 = vmul.f32 0.25, %v5444_v32 }
0x19cf   :  { %v9540_v38 = vpop.f32.mrf.mxu0 }
0x19d0   :  { %v5493_v54 = vsel %vm1202_vm4, %v13304_v42, -inf }
0x19d1   :  { %v5449_v41 = vpop.f32.mrf.mxu0  ;;  %5494 = vmax.xlane.f32.xlu0 %v5493_v54  ;;  %v13332_v54 = vpop.permute.xlu0 %5854 }
0x19d2   :  { %v13308_v14 = vmul.f32 0.25, %v5449_v41 }
0x19d3   :  { %v9543_v60 = vpop.f32.mrf.mxu0 }
0x19d4   :  { %v5496_v10 = vsel %vm1202_vm4, %v13308_v14, -inf }
0x19d5   :  { %v5454_v58 = vpop.f32.mrf.mxu0  ;;  %5497 = vmax.xlane.f32.xlu0 %v5496_v10 }
0x19d6   :  { %v13312_v24 = vmul.f32 0.25, %v5454_v58 }
0x19d7   :  { %v9546_v61 = vpop.f32.mrf.mxu0 }
0x19d8   :  { %v5499_v26 = vsel %vm1202_vm4, %v13312_v24, -inf }
0x19d9   :  { %5500 = vmax.xlane.f32.xlu0 %v5499_v26  ;;  %v5459_v56 = vpop.f32.mrf.mxu0 }
0x19da   :  { %5718 = vrot.lane.b32.xlu1 %v12896_v7, %s10644_s20  ;;  %v13320_v43 = vmul.f32 0.25, %v5459_v56 }
0x19db   :  { %v9549_v55 = vpop.f32.mrf.mxu0 }
0x19dc   :  { %v5502_v5 = vsel %vm1202_vm4, %v13320_v43, -inf }
0x19dd   :  { %v5464_v46 = vpop.f32.mrf.mxu0 }
0x19de   :  { %v13324_v32 = vmul.f32 0.25, %v5464_v46 }
0x19df   :  { %v9552_v48 = vpop.f32.mrf.mxu0 }
0x19e0   :  { %v5505_v38 = vsel %vm1202_vm4, %v13324_v32, -inf }
0x19ef   :  { %5720 = vrot.lane.b32.xlu0 %v12903_v37, %s10644_s20 }
0x19fe   :  { %5503 = vmax.xlane.f32.xlu1 %v5502_v5 }
0x1a0e   :  { %5506 = vmax.xlane.f32.xlu0 %v5505_v38 }
0x1a0f   :  { %5848 = vrot.lane.b32.xlu1 %v12882_v27, %s10645_s13 }
0x1a13   :  { %5838 = vrot.lane.b32.xlu1 %v12882_v27, %s10646_s29 }
0x1a19   :  { %v5480_v41 = vpop.xlane.xlu0 %5479 }
0x1a1a   :  { %v5508_v60 = vsub.f32 %v13276_v17, %v5480_v41 }
0x1a1c   :  { %v5518_v10 = vmul.f32 1.442695, %v5508_v60 }
0x1a1d   :  { %v5483_v61 = vpop.xlane.xlu1 %5482 }
0x1a1e   :  { %10252 = vpow2.f32 %v5518_v10  ;;  %v5509_v26 = vsub.f32 %v13282_v18, %v5483_v61 }
0x1a20   :  { %v5520_v56 = vmul.f32 1.442695, %v5509_v26 }
0x1a22   :  { %10254 = vpow2.f32 %v5520_v56 }
0x1a24   :  { %5852 = vrot.lane.b32.xlu0 %v12893_v19, %s10645_s13 }
0x1a28   :  { %5986 = vrot.lane.b32.xlu0 %v12917_v13, %s10645_s13 }
0x1a2b   :  { %v13343_v58 = vpop.eup %10252 }
0x1a2c   :  { %5850 = vrot.lane.b32.xlu0 %v12878_v59, %s10645_s13  ;;  %v5538_v17 = vsel %vm1202_vm4, %v13343_v58, 0.0 }
0x1a2f   :  { %v13351_v38 = vpop.eup %10254 }
0x1a30   :  { %5984 = vrot.lane.b32.xlu0 %v12923_v30, %s10645_s13  ;;  %v5541_v53 = vsel %vm1202_vm4, %v13351_v38, 0.0 }
0x1a34   :  { %5982 = vrot.lane.b32.xlu0 %v12927_v3, %s10645_s13 }
0x1a37   :  { %5539 = vadd.xlane.f32.xlu1 %v5538_v17 }
0x1a4a   :  { %v5486_v55 = vpop.xlane.xlu0 %5485 }
0x1a4b   :  { %v5510_v46 = vsub.f32 %v13290_v11, %v5486_v55 }
0x1a4d   :  { %v5522_v48 = vmul.f32 1.442695, %v5510_v46 }
0x1a4e   :  { %v5489_v5 = vpop.xlane.xlu1 %5488 }
0x1a4f   :  { %10256 = vpow2.f32 %v5522_v48  ;;  %v5511_v41 = vsub.f32 %v13294_v33, %v5489_v5 }
0x1a51   :  { %v5524_v60 = vmul.f32 1.442695, %v5511_v41 }
0x1a52   :  { %v5492_v10 = vpop.xlane.xlu1 %5491 }
0x1a53   :  { %10258 = vpow2.f32 %v5524_v60  ;;  %v5512_v18 = vsub.f32 %v13298_v29, %v5492_v10  ;;  %5542 = vadd.xlane.f32.xlu0 %v5541_v53 }
0x1a55   :  { %v5526_v17 = vmul.f32 1.442695, %v5512_v18 }
0x1a57   :  { %10260 = vpow2.f32 %v5526_v17 }
0x1a5a   :  { %v5495_v61 = vpop.xlane.xlu0 %5494 }
0x1a5b   :  { %v5513_v11 = vsub.f32 %v13304_v42, %v5495_v61 }
0x1a5c   :  { %v13358_v26 = vpop.eup %10256 }
0x1a5d   :  { %v5528_v56 = vmul.f32 1.442695, %v5513_v11  ;;  %v5544_v33 = vsel %vm1202_vm4, %v13358_v26, 0.0 }
0x1a5e   :  { %5545 = vadd.xlane.f32.xlu1 %v5544_v33  ;;  %v5498_v55 = vpop.xlane.xlu0 %5497 }
0x1a5f   :  { %10262 = vpow2.f32 %v5528_v56  ;;  %v5514_v46 = vsub.f32 %v13308_v14, %v5498_v55  ;;  %v5719_v14 = vpop.permute.xlu1 %5718 }
0x1a60   :  { %v13363_v48 = vpop.eup %10258 }
0x1a61   :  { %v5530_v29 = vmul.f32 1.442695, %v5514_v46  ;;  %v5547_v53 = vsel %vm1202_vm4, %v13363_v48, 0.0 }
0x1a62   :  { %5548 = vadd.xlane.f32.xlu1 %v5547_v53  ;;  %v5501_v5 = vpop.xlane.xlu0 %5500 }
0x1a63   :  { %10264 = vpow2.f32 %v5530_v29  ;;  %v5515_v42 = vsub.f32 %v13312_v24, %v5501_v5 }
0x1a64   :  { %v13368_v41 = vpop.eup %10260 }
0x1a65   :  { %v5532_v60 = vmul.f32 1.442695, %v5515_v42  ;;  %v5550_v10 = vsel %vm1202_vm4, %v13368_v41, 0.0 }
0x1a66   :  { %5551 = vadd.xlane.f32.xlu1 %v5550_v10  ;;  %v5721_v18 = vpop.permute.xlu0 %5720 }
0x1a67   :  { %10266 = vpow2.f32 %v5532_v60  ;;  %9585 = vmatpush3.msra.mxu0 %v5721_v18 }
0x1a68   :  { %9586 = vmatprep.subr.mxu0 %v14432_v28 }
0x1a69   :  { %9587 = vmatpush3.msra.mxu0 %v5719_v14 }
0x1a6a   :  { %9628 = vmatprep.subr.mxu0 %v14432_v28 }
0x1a6c   :  { %v13374_v17 = vpop.eup %10262 }
0x1a6d   :  { %v5553_v24 = vsel %vm1202_vm4, %v13374_v17, 0.0 }
0x1a6e   :  { %5554 = vadd.xlane.f32.xlu0 %v5553_v24 }
0x1a70   :  { %v13378_v61 = vpop.eup %10264 }
0x1a71   :  { %v5556_v11 = vsel %vm1202_vm4, %v13378_v61, 0.0 }
0x1a72   :  { %5557 = vadd.xlane.f32.xlu0 %v5556_v11 }
0x1a74   :  { %v13382_v56 = vpop.eup %10266 }
0x1a75   :  { %v5559_v33 = vsel %vm1202_vm4, %v13382_v56, 0.0 }
0x1a76   :  { %5560 = vadd.xlane.f32.xlu0 %v5559_v33 }
0x1a77   :  { %5840 = vrot.lane.b32.xlu1 %v12878_v59, %s10646_s29 }
0x1a7b   :  { %5842 = vrot.lane.b32.xlu1 %v12893_v19, %s10646_s29 }
0x1a87   :  { %v5504_v55 = vpop.xlane.xlu1 %5503 }
0x1a88   :  { %v5516_v46 = vsub.f32 %v13320_v43, %v5504_v55 }
0x1a8a   :  { %v5534_v29 = vmul.f32 1.442695, %v5516_v46 }
0x1a8b   :  { %v5849_v43 = vpop.permute.xlu1 %5848 }
0x1a8c   :  { %10268 = vpow2.f32 %v5534_v29 }
0x1a97   :  { %v5507_v53 = vpop.xlane.xlu0 %5506 }
0x1a98   :  { %v5517_v5 = vsub.f32 %v13324_v32, %v5507_v53  ;;  %v13406_v32 = vpop.permute.xlu1 %5838 }
0x1a99   :  { %v13392_v42 = vpop.eup %10268 }
0x1a9a   :  { %v5536_v60 = vmul.f32 1.442695, %v5517_v5  ;;  %v5562_v10 = vsel %vm1202_vm4, %v13392_v42, 0.0 }
0x1a9b   :  { %5563 = vadd.xlane.f32.xlu0 %v5562_v10  ;;  %v5853_v24 = vpop.permute.xlu0 %5852 }
0x1a9c   :  { %10270 = vpow2.f32 %v5536_v60 }
0x1a9f   :  { %v13420_v33 = vpop.permute.xlu0 %5986 }
0x1aa3   :  { %v5851_v55 = vpop.permute.xlu0 %5850 }
0x1aa7   :  { %v13436_v53 = vpop.permute.xlu0 %5984 }
0x1aa9   :  { %v13396_v18 = vpop.eup %10270 }
0x1aaa   :  { %v5565_v14 = vsel %vm1202_vm4, %v13396_v18, 0.0 }
0x1aab   :  { %5566 = vadd.xlane.f32.xlu1 %v5565_v14 }
0x1ab1   :  { %5980 = vrot.lane.b32.xlu0 %v12900_v15, %s10645_s13 }
0x1ab5   :  { %5978 = vrot.lane.b32.xlu0 %v12931_v31, %s10645_s13 }
0x1ab9   :  { %5968 = vrot.lane.b32.xlu0 %v12931_v31, %s10646_s29 }
0x1abc   :  { %5844 = vrot.lane.b32.xlu1 %v12874_v40, %s10646_s29 }
0x1abd   :  { %5970 = vrot.lane.b32.xlu0 %v12900_v15, %s10646_s29 }
0x1ac0   :  { %v5540_v11 = vpop.xlane.xlu1 %5539  ;;  %5846 = vrot.lane.b32.xlu1 %v12886_v35, %s10646_s29 }
0x1ac1   :  { %10272 = vrcp.f32 %v5540_v11  ;;  %5972 = vrot.lane.b32.xlu0 %v12927_v3, %s10646_s29 }
0x1ac4   :  { %5974 = vrot.lane.b32.xlu1 %v12923_v30, %s10646_s29 }
0x1ac5   :  { %5976 = vrot.lane.b32.xlu0 %v12917_v13, %s10646_s29 }
0x1ac8   :  { %6226 = vrot.lane.b32.xlu1 %v12889_v51, %s10646_s29 }
0x1ac9   :  { %6224 = vrot.lane.b32.xlu0 %v12958_v8, %s10646_s29 }
0x1acc   :  { %6222 = vrot.lane.b32.xlu1 %v12872_v23, %s10646_s29 }
0x1acd   :  { %6220 = vrot.lane.b32.xlu0 %v12867_v1, %s10646_s29 }
0x1ace   :  { %v10273_v46 = vpop.eup %10272 }
0x1acf   :  { %v5578_v29 = vmul.f32 %v10273_v46, %v13343_v58  ;;  %v13448_v58 = vpop.permute.xlu0 %5982 }
0x1ad0   :  { %6340 = vrot.lane.b32.xlu1 %v12903_v37, %s10646_s29 }
0x1ad1   :  { %9564 = vmatmul.mubr.msk.f32.vlgmr.msra.gmra.mxu1 %vm1202_vm4, %v5578_v29  ;;  %6218 = vrot.lane.b32.xlu0 %v12864_v49, %s10646_s29 }
0x1ad2   :  { %9604 = vmatpush3.xpose.msk.msra.mxu1 %vm956_vm3, %v13257_v0  ;;  %9566 = vmatprep.mubr.msk.f32.mxu1 %vm10642_vm2, %v14432_v28 }
0x1ad3   :  { %9605 = vmatprep.subr.mxu1 %v14432_v28 }
0x1ad5   :  { %6346 = vrot.lane.b32.xlu0 %v12999_v2, %s10646_s29 }
0x1ad6   :  { %9606 = vmatpush3.xpose.msk.msra.mxu1 %vm956_vm3, %v13332_v54 }
0x1ad7   :  { %9607 = vmatprep.subr.mxu1 %v14432_v28 }
0x1ad9   :  { %6476 = vrot.lane.b32.xlu0 %v12886_v35, %s10633_s28 }
0x1ada   :  { %9608 = vmatpush3.xpose.msk.msra.mxu1 %vm956_vm3, %v5853_v24 }
0x1adb   :  { %9609 = vmatprep.subr.mxu1 %v14432_v28 }
0x1adc   :  { %v5543_v0 = vpop.xlane.xlu0 %5542 }
0x1add   :  { %10274 = vrcp.f32 %v5543_v0  ;;  %6344 = vrot.lane.b32.xlu0 %v12913_v4, %s10646_s29 }
0x1ade   :  { %9610 = vmatpush3.xpose.msk.msra.mxu1 %vm956_vm3, %v5851_v55 }
0x1adf   :  { %9611 = vmatprep.subr.mxu1 %v14432_v28 }
0x1ae1   :  { %6342 = vrot.lane.b32.xlu0 %v12908_v25, %s10646_s29 }
0x1ae2   :  { %9612 = vmatpush3.xpose.msk.msra.mxu1 %vm956_vm3, %v5849_v43 }
0x1ae3   :  { %9653 = vmatprep.subr.mxu1 %v14432_v28 }
0x1ae5   :  { %6474 = vrot.lane.b32.xlu0 %v12874_v40, %s10633_s28 }
0x1ae7   :  { %v5546_v54 = vpop.xlane.xlu1 %5545 }
0x1ae8   :  { %10276 = vrcp.f32 %v5546_v54 }
0x1aea   :  { %v10275_v5 = vpop.eup %10274 }
0x1aeb   :  { %v5549_v60 = vpop.xlane.xlu1 %5548  ;;  %v5579_v10 = vmul.f32 %v10275_v5, %v13351_v38 }
0x1aec   :  { %10278 = vrcp.f32 %v5549_v60 }
0x1aed   :  { %9567 = vmatmul.mubr.msk.f32.gmra.mxu1 %vm1202_vm4, %v5579_v10 }
0x1aee   :  { %9569 = vmatprep.mubr.msk.f32.mxu1 %vm10642_vm2, %v14432_v28 }
0x1aef   :  { %v5552_v14 = vpop.xlane.xlu1 %5551 }
0x1af0   :  { %10280 = vrcp.f32 %v5552_v14 }
0x1af3   :  { %v5841_v54 = vpop.permute.xlu1 %5840 }
0x1af5   :  { %v10277_v43 = vpop.eup %10276 }
0x1af6   :  { %v5580_v24 = vmul.f32 %v10277_v43, %v13358_v26 }
0x1af7   :  { %v5555_v11 = vpop.xlane.xlu0 %5554  ;;  %v5843_v60 = vpop.permute.xlu1 %5842 }
0x1af8   :  { %10282 = vrcp.f32 %v5555_v11  ;;  %9570 = vmatmul.mubr.msk.f32.gmra.mxu1 %vm1202_vm4, %v5580_v24 }
0x1af9   :  { %v10279_v55 = vpop.eup %10278  ;;  %9572 = vmatprep.mubr.msk.f32.mxu1 %vm10642_vm2, %v14432_v28 }
0x1afa   :  { %v5581_v38 = vmul.f32 %v10279_v55, %v13363_v48 }
0x1afb   :  { %v5558_v46 = vpop.xlane.xlu0 %5557 }
0x1afc   :  { %10284 = vrcp.f32 %v5558_v46  ;;  %9573 = vmatmul.mubr.msk.f32.gmra.mxu1 %vm1202_vm4, %v5581_v38 }
0x1afd   :  { %v10281_v29 = vpop.eup %10280  ;;  %9575 = vmatprep.mubr.msk.f32.mxu1 %vm10642_vm2, %v14432_v28 }
0x1afe   :  { %v5582_v26 = vmul.f32 %v10281_v29, %v13368_v41 }
0x1aff   :  { %v5561_v0 = vpop.xlane.xlu0 %5560 }
0x1b00   :  { %10286 = vrcp.f32 %v5561_v0  ;;  %9576 = vmatmul.mubr.msk.f32.gmra.mxu1 %vm1202_vm4, %v5582_v26 }
0x1b01   :  { %9613 = vmatprep.mubr.msk.f32.mxu1 %vm10642_vm2, %v14432_v28 }
0x1b04   :  { %9614 = vmatmul.mubr.msk.f32.vlgmr.msra.gmra.mxu1 %vm956_vm3, %v13406_v32 }
0x1b05   :  { %v10283_v48 = vpop.eup %10282  ;;  %9616 = vmatprep.mubr.msk.f32.mxu1 %vm10642_vm2, %v14432_v28 }
0x1b06   :  { %v5583_v5 = vmul.f32 %v10283_v48, %v13374_v17 }
0x1b08   :  { %9589 = vmatmul.mubr.msk.f32.vlgmr.msra.gmra.mxu0 %vm1202_vm4, %v5583_v5  ;;  %9617 = vmatmul.mubr.msk.f32.gmra.mxu1 %vm956_vm3, %v5841_v54 }
0x1b09   :  { %v10285_v41 = vpop.eup %10284  ;;  %9629 = vmatpush3.xpose.msk.msra.mxu0 %vm956_vm3, %v13420_v33  ;;  %9591 = vmatprep.mubr.msk.f32.mxu0 %vm10642_vm2, %v14432_v28 }
0x1b0a   :  { %9619 = vmatprep.mubr.msk.f32.mxu1 %vm10642_vm2, %v14432_v28  ;;  %9630 = vmatprep.subr.mxu0 %v14432_v28  ;;  %v5584_v32 = vmul.f32 %v10285_v41, %v13378_v61 }
0x1b0c   :  { %9592 = vmatmul.mubr.msk.f32.gmra.mxu0 %vm1202_vm4, %v5584_v32  ;;  %9620 = vmatmul.mubr.msk.f32.gmra.mxu1 %vm956_vm3, %v5843_v60 }
0x1b0d   :  { %v10287_v17 = vpop.eup %10286  ;;  %9631 = vmatpush3.xpose.msk.msra.mxu0 %vm956_vm3, %v13436_v53  ;;  %9594 = vmatprep.mubr.msk.f32.mxu0 %vm10642_vm2, %v14432_v28 }
0x1b0e   :  { %9632 = vmatprep.subr.mxu0 %v14432_v28  ;;  %v5585_v33 = vmul.f32 %v10287_v17, %v13382_v56  ;;  %9622 = vmatprep.mubr.msk.f32.mxu1 %vm10642_vm2, %v14432_v28 }
0x1b10   :  { %9595 = vmatmul.mubr.msk.f32.gmra.mxu0 %vm1202_vm4, %v5585_v33 }
0x1b11   :  { %9633 = vmatpush3.xpose.msk.msra.mxu0 %vm956_vm3, %v13448_v58  ;;  %9597 = vmatprep.mubr.msk.f32.mxu0 %vm10642_vm2, %v14432_v28 }
0x1b12   :  { %9634 = vmatprep.subr.mxu0 %v14432_v28 }
0x1b24   :  { %v5564_v61 = vpop.xlane.xlu0 %5563 }
0x1b25   :  { %10288 = vrcp.f32 %v5564_v61 }
0x1b28   :  { %v5981_v53 = vpop.permute.xlu0 %5980 }
0x1b29   :  { %9635 = vmatpush3.xpose.msk.msra.mxu0 %vm956_vm3, %v5981_v53 }
0x1b2a   :  { %9636 = vmatprep.subr.mxu0 %v14432_v28 }
0x1b2c   :  { %v5979_v56 = vpop.permute.xlu0 %5978 }
0x1b2d   :  { %9637 = vmatpush3.xpose.msk.msra.mxu0 %vm956_vm3, %v5979_v56 }
0x1b2e   :  { %9678 = vmatprep.subr.mxu0 %v14432_v28 }
0x1b30   :  { %v5969_v10 = vpop.permute.xlu0 %5968 }
0x1b32   :  { %v10289_v14 = vpop.eup %10288 }
0x1b33   :  { %v5586_v58 = vmul.f32 %v10289_v14, %v13392_v42 }
0x1b34   :  { %v5567_v43 = vpop.xlane.xlu1 %5566  ;;  %v5971_v24 = vpop.permute.xlu0 %5970 }
0x1b35   :  { %10290 = vrcp.f32 %v5567_v43  ;;  %9598 = vmatmul.mubr.msk.f32.gmra.mxu0 %vm1202_vm4, %v5586_v58 }
0x1b36   :  { %9600 = vmatprep.mubr.msk.f32.mxu0 %vm10642_vm2, %v14432_v28 }
0x1b38   :  { %v5845_v11 = vpop.permute.xlu1 %5844  ;;  %v5973_v55 = vpop.permute.xlu0 %5972 }
0x1b39   :  { %9623 = vmatmul.mubr.msk.f32.gmra.mxu1 %vm956_vm3, %v5845_v11 }
0x1b3a   :  { %9625 = vmatprep.mubr.msk.f32.mxu1 %vm10642_vm2, %v14432_v28 }
0x1b3c   :  { %v5847_v38 = vpop.permute.xlu1 %5846  ;;  %v5977_v46 = vpop.permute.xlu0 %5976 }
0x1b3d   :  { %9626 = vmatmul.mubr.msk.f32.gmra.mxu1 %vm956_vm3, %v5847_v38 }
0x1b3e   :  { %9663 = vmatprep.mubr.msk.f32.mxu1 %vm10642_vm2, %v14432_v28 }
0x1b40   :  { %v5975_v42 = vpop.permute.xlu1 %5974  ;;  %v6225_v29 = vpop.permute.xlu0 %6224 }
0x1b42   :  { %v10291_v26 = vpop.eup %10290 }
0x1b43   :  { %v5587_v0 = vmul.f32 %v10291_v26, %v13396_v18 }
0x1b44   :  { %v6227_v48 = vpop.permute.xlu1 %6226  ;;  %v6221_v54 = vpop.permute.xlu0 %6220 }
0x1b45   :  { %9601 = vmatmul.mubr.msk.f32.gmra.mxu0 %vm1202_vm4, %v5587_v0  ;;  %9654 = vmatpush3.msra.mxu1 %v6227_v48 }
0x1b46   :  { %9655 = vmatprep.subr.mxu1 %v14432_v28  ;;  %9638 = vmatprep.mubr.msk.f32.mxu0 %vm10642_vm2, %v14432_v28 }
0x1b47   :  { %9656 = vmatpush3.msra.mxu1 %v6225_v29 }
0x1b48   :  { %v6223_v5 = vpop.permute.xlu1 %6222  ;;  %9657 = vmatprep.subr.mxu1 %v14432_v28  ;;  %v6219_v41 = vpop.permute.xlu0 %6218 }
0x1b49   :  { %9639 = vmatmul.mubr.msk.f32.vlgmr.msra.gmra.mxu0 %vm956_vm3, %v5969_v10  ;;  %9658 = vmatpush3.msra.mxu1 %v6223_v5 }
0x1b4a   :  { %9659 = vmatprep.subr.mxu1 %v14432_v28  ;;  %9641 = vmatprep.mubr.msk.f32.mxu0 %vm10642_vm2, %v14432_v28 }
0x1b4b   :  { %9660 = vmatpush3.msra.mxu1 %v6221_v54 }
0x1b4c   :  { %9661 = vmatprep.subr.mxu1 %v14432_v28  ;;  %v6347_v18 = vpop.permute.xlu0 %6346  ;;  %v6341_v33 = vpop.permute.xlu1 %6340 }
0x1b4d   :  { %9642 = vmatmul.mubr.msk.f32.gmra.mxu0 %vm956_vm3, %v5971_v24  ;;  %9662 = vmatpush3.msra.mxu1 %v6219_v41 }
0x1b4e   :  { %9679 = vmatpush3.msra.mxu0 %v6347_v18  ;;  %9644 = vmatprep.mubr.msk.f32.mxu0 %vm10642_vm2, %v14432_v28 }
0x1b4f   :  { %9680 = vmatprep.subr.mxu0 %v14432_v28  ;;  %9703 = vmatprep.subr.mxu1 %v14432_v28 }
0x1b50   :  { %v13541_v32 = vpop.permute.xlu0 %6476 }
0x1b51   :  { %9645 = vmatmul.mubr.msk.f32.gmra.mxu0 %vm956_vm3, %v5973_v55 }
0x1b52   :  { %9647 = vmatprep.mubr.msk.f32.mxu0 %vm10642_vm2, %v14432_v28 }
0x1b54   :  { %v6345_v60 = vpop.permute.xlu0 %6344 }
0x1b55   :  { %9648 = vmatmul.mubr.msk.f32.gmra.mxu0 %vm956_vm3, %v5975_v42 }
0x1b56   :  { %9681 = vmatpush3.msra.mxu0 %v6345_v60  ;;  %9650 = vmatprep.mubr.msk.f32.mxu0 %vm10642_vm2, %v14432_v28 }
0x1b57   :  { %9682 = vmatprep.subr.mxu0 %v14432_v28 }
0x1b58   :  { %v6343_v17 = vpop.permute.xlu0 %6342 }
0x1b59   :  { %9651 = vmatmul.mubr.msk.f32.gmra.mxu0 %vm956_vm3, %v5977_v46 }
0x1b5a   :  { %9683 = vmatpush3.msra.mxu0 %v6343_v17  ;;  %9688 = vmatprep.mubr.msk.f32.mxu0 %vm10642_vm2, %v14432_v28 }
0x1b5b   :  { %9684 = vmatprep.subr.mxu0 %v14432_v28 }
0x1b5c   :  { %9685 = vmatpush3.msra.mxu0 %v6341_v33 }
0x1b5d   :  { %9686 = vmatprep.subr.mxu0 %v14432_v28 }
0x1b91   :  { %v13555_v61 = vpop.f32.mrf.mxu1 }
0x1b93   :  { %v9565_v53 = vpop.f32.mrf.mxu1 }
0x1bad   :  { %v13557_v56 = vpop.f32.mrf.mxu1 }
0x1baf   :  { %v9568_v10 = vpop.f32.mrf.mxu1 }
0x1bb8   :  { %v13559_v14 = vpop.f32.mrf.mxu1 }
0x1bba   :  { %v9571_v58 = vpop.f32.mrf.mxu1 }
0x1bbc   :  { %v13561_v43 = vpop.f32.mrf.mxu1 }
0x1bbe   :  { %v9574_v24 = vpop.f32.mrf.mxu1 }
0x1bc0   :  { %v13563_v11 = vpop.f32.mrf.mxu1 }
0x1bc2   :  { %v9577_v55 = vpop.f32.mrf.mxu1 }
0x1bc4   :  { %v5944_v38 = vpop.f32.mrf.mxu1 }
0x1bc5   :  { %v13565_v46 = vmul.f32 0.25, %v5944_v38 }
0x1bc6   :  { %v9615_v42 = vpop.f32.mrf.mxu1 }
0x1bc7   :  { %v6108_v29 = vsel %vm1202_vm4, %v13565_v46, -inf }
0x1bc8   :  { %6109 = vmax.xlane.f32.xlu1 %v6108_v29  ;;  %v13569_v26 = vpop.f32.mrf.mxu0  ;;  %v5949_v0 = vpop.f32.mrf.mxu1 }
0x1bc9   :  { %v13571_v48 = vmul.f32 0.25, %v5949_v0 }
0x1bca   :  { %v9590_v54 = vpop.f32.mrf.mxu0  ;;  %v9618_v5 = vpop.f32.mrf.mxu1 }
0x1bcb   :  { %v6111_v41 = vsel %vm1202_vm4, %v13571_v48, -inf }
0x1bcc   :  { %6112 = vmax.xlane.f32.xlu0 %v6111_v41  ;;  %v13575_v18 = vpop.f32.mrf.mxu0  ;;  %v5954_v60 = vpop.f32.mrf.mxu1 }
0x1bcd   :  { %v6100_v17 = vmul.f32 0.25, %v5954_v60 }
0x1bce   :  { %v9593_v33 = vpop.f32.mrf.mxu0  ;;  %v9621_v53 = vpop.f32.mrf.mxu1 }
0x1bcf   :  { %v6114_v10 = vsel %vm1202_vm4, %v6100_v17, -inf }
0x1bd0   :  { %6115 = vmax.xlane.f32.xlu0 %v6114_v10  ;;  %v13578_v58 = vpop.f32.mrf.mxu0 }
0x1bd2   :  { %v9596_v24 = vpop.f32.mrf.mxu0 }
0x1bf5   :  { %v13580_v55 = vpop.f32.mrf.mxu0 }
0x1bf7   :  { %v9599_v38 = vpop.f32.mrf.mxu0 }
0x1bf9   :  { %v5959_v42 = vpop.f32.mrf.mxu1 }
0x1bfa   :  { %v13582_v29 = vmul.f32 0.25, %v5959_v42 }
0x1bfb   :  { %v9624_v0 = vpop.f32.mrf.mxu1 }
0x1bfc   :  { %v6117_v54 = vsel %vm1202_vm4, %v13582_v29, -inf }
0x1bfd   :  { %6118 = vmax.xlane.f32.xlu1 %v6117_v54  ;;  %v5964_v5 = vpop.f32.mrf.mxu1 }
0x1bfe   :  { %v13586_v41 = vmul.f32 0.25, %v5964_v5 }
0x1bff   :  { %v9627_v60 = vpop.f32.mrf.mxu1 }
0x1c00   :  { %v6120_v33 = vsel %vm1202_vm4, %v13586_v41, -inf }
0x1c01   :  { %6121 = vmax.xlane.f32.xlu1 %v6120_v33 }
0x1c05   :  { %v13590_v53 = vpop.f32.mrf.mxu0 }
0x1c07   :  { %v9602_v10 = vpop.f32.mrf.mxu0 }
0x1c09   :  { %v6074_v24 = vpop.f32.mrf.mxu0 }
0x1c0a   :  { %v13592_v38 = vmul.f32 0.25, %v6074_v24 }
0x1c0b   :  { %v9640_v42 = vpop.f32.mrf.mxu0 }
0x1c0c   :  { %v6123_v0 = vsel %vm1202_vm4, %v13592_v38, -inf }
0x1c0d   :  { %6124 = vmax.xlane.f32.xlu0 %v6123_v0  ;;  %v6079_v54 = vpop.f32.mrf.mxu0 }
0x1c0e   :  { %v13596_v22 = vmul.f32 0.25, %v6079_v54 }
0x1c0f   :  { %v9643_v5 = vpop.f32.mrf.mxu0 }
0x1c10   :  { %v6126_v60 = vsel %vm1202_vm4, %v13596_v22, -inf }
0x1c11   :  { %6127 = vmax.xlane.f32.xlu0 %v6126_v60  ;;  %v6084_v33 = vpop.f32.mrf.mxu0 }
0x1c12   :  { %v13600_v12 = vmul.f32 0.25, %v6084_v33 }
0x1c13   :  { %v9646_v10 = vpop.f32.mrf.mxu0 }
0x1c14   :  { %v6129_v24 = vsel %vm1202_vm4, %v13600_v12, -inf  ;;  %v13618_v10 = vpop.permute.xlu0 %6474 }
0x1c15   :  { %6130 = vmax.xlane.f32.xlu0 %v6129_v24  ;;  %v6089_v42 = vpop.f32.mrf.mxu0 }
0x1c16   :  { %v13604_v62 = vmul.f32 0.25, %v6089_v42 }
0x1c17   :  { %v9649_v0 = vpop.f32.mrf.mxu0 }
0x1c18   :  { %v6132_v54 = vsel %vm1202_vm4, %v13604_v62, -inf }
0x1c19   :  { %6133 = vmax.xlane.f32.xlu1 %v6132_v54  ;;  %v6094_v5 = vpop.f32.mrf.mxu0 }
0x1c1a   :  { %v13614_v60 = vmul.f32 0.25, %v6094_v5 }
0x1c1b   :  { %v9652_v34 = vpop.f32.mrf.mxu0 }
0x1c1c   :  { %v6135_v33 = vsel %vm1202_vm4, %v13614_v60, -inf }
0x1c2a   :  { %6468 = vrot.lane.b32.xlu1 %v12882_v27, %s10633_s28 }
0x1c2b   :  { %6338 = vrot.lane.b32.xlu0 %v12896_v7, %s10646_s29 }
0x1c2e   :  { %6458 = vrot.lane.b32.xlu1 %v12882_v27, %s10647_s30 }
0x1c4a   :  { %6136 = vmax.xlane.f32.xlu0 %v6135_v33 }
0x1c51   :  { %v6110_v24 = vpop.xlane.xlu1 %6109 }
0x1c52   :  { %v6138_v34 = vsub.f32 %v13565_v46, %v6110_v24 }
0x1c54   :  { %v6148_v42 = vmul.f32 1.442695, %v6138_v34 }
0x1c55   :  { %v6113_v0 = vpop.xlane.xlu0 %6112 }
0x1c56   :  { %10292 = vpow2.f32 %v6148_v42 }
0x1c59   :  { %v6116_v54 = vpop.xlane.xlu0 %6115 }
0x1c5a   :  { %v6140_v39 = vsub.f32 %v6100_v17, %v6116_v54 }
0x1c5c   :  { %v6152_v6 = vmul.f32 1.442695, %v6140_v39 }
0x1c5e   :  { %10294 = vpow2.f32 %v6152_v6  ;;  %v6139_v6 = vsub.f32 %v13571_v48, %v6113_v0 }
0x1c60   :  { %6472 = vrot.lane.b32.xlu0 %v12893_v19, %s10633_s28  ;;  %v6150_v17 = vmul.f32 1.442695, %v6139_v6 }
0x1c62   :  { %10296 = vpow2.f32 %v6150_v17 }
0x1c63   :  { %v13623_v27 = vpop.eup %10292 }
0x1c64   :  { %6606 = vrot.lane.b32.xlu0 %v12917_v13, %s10633_s28  ;;  %v6168_v5 = vsel %vm1202_vm4, %v13623_v27, 0.0 }
0x1c65   :  { %6169 = vadd.xlane.f32.xlu1 %v6168_v5 }
0x1c68   :  { %6470 = vrot.lane.b32.xlu0 %v12878_v59, %s10633_s28 }
0x1c6b   :  { %v13631_v46 = vpop.eup %10294 }
0x1c6c   :  { %6604 = vrot.lane.b32.xlu0 %v12923_v30, %s10633_s28  ;;  %v6174_v39 = vsel %vm1202_vm4, %v13631_v46, 0.0 }
0x1c6d   :  { %6175 = vadd.xlane.f32.xlu1 %v6174_v39 }
0x1c6f   :  { %v13641_v54 = vpop.eup %10296 }
0x1c70   :  { %6602 = vrot.lane.b32.xlu0 %v12927_v3, %s10633_s28  ;;  %v6171_v39 = vsel %vm1202_vm4, %v13641_v54, 0.0 }
0x1c86   :  { %v6119_v33 = vpop.xlane.xlu1 %6118 }
0x1c87   :  { %v6141_v24 = vsub.f32 %v13582_v29, %v6119_v33 }
0x1c89   :  { %v6154_v34 = vmul.f32 1.442695, %v6141_v24 }
0x1c8a   :  { %v6122_v42 = vpop.xlane.xlu1 %6121 }
0x1c8b   :  { %10298 = vpow2.f32 %v6154_v34  ;;  %v6142_v5 = vsub.f32 %v13586_v41, %v6122_v42 }
0x1c8d   :  { %v6156_v47 = vmul.f32 1.442695, %v6142_v5 }
0x1c8f   :  { %10300 = vpow2.f32 %v6156_v47  ;;  %6172 = vadd.xlane.f32.xlu0 %v6171_v39 }
0x1c96   :  { %v6125_v21 = vpop.xlane.xlu0 %6124 }
0x1c97   :  { %v6143_v48 = vsub.f32 %v13592_v38, %v6125_v21 }
0x1c98   :  { %v13647_v0 = vpop.eup %10298 }
0x1c99   :  { %v6158_v6 = vmul.f32 1.442695, %v6143_v48  ;;  %v6177_v29 = vsel %vm1202_vm4, %v13647_v0, 0.0 }
0x1c9a   :  { %6178 = vadd.xlane.f32.xlu1 %v6177_v29  ;;  %v6128_v17 = vpop.xlane.xlu0 %6127 }
0x1c9b   :  { %10302 = vpow2.f32 %v6158_v6  ;;  %v6144_v41 = vsub.f32 %v13596_v22, %v6128_v17 }
0x1c9c   :  { %v13652_v33 = vpop.eup %10300 }
0x1c9d   :  { %v6160_v24 = vmul.f32 1.442695, %v6144_v41  ;;  %v6180_v47 = vsel %vm1202_vm4, %v13652_v33, 0.0 }
0x1c9e   :  { %6181 = vadd.xlane.f32.xlu1 %v6180_v47  ;;  %v6131_v34 = vpop.xlane.xlu0 %6130 }
0x1c9f   :  { %10304 = vpow2.f32 %v6160_v24  ;;  %v6145_v21 = vsub.f32 %v13600_v12, %v6131_v34 }
0x1ca1   :  { %v6162_v38 = vmul.f32 1.442695, %v6145_v21 }
0x1ca2   :  { %v6134_v42 = vpop.xlane.xlu1 %6133  ;;  %v6339_v5 = vpop.permute.xlu0 %6338 }
0x1ca3   :  { %10306 = vpow2.f32 %v6162_v38  ;;  %v6146_v39 = vsub.f32 %v13604_v62, %v6134_v42  ;;  %9687 = vmatpush3.msra.mxu0 %v6339_v5 }
0x1ca4   :  { %9728 = vmatprep.subr.mxu0 %v14432_v28 }
0x1ca5   :  { %v6164_v22 = vmul.f32 1.442695, %v6146_v39 }
0x1ca7   :  { %10308 = vpow2.f32 %v6164_v22 }
0x1ca8   :  { %v13659_v48 = vpop.eup %10302 }
0x1ca9   :  { %v6183_v6 = vsel %vm1202_vm4, %v13659_v48, 0.0 }
0x1caa   :  { %6184 = vadd.xlane.f32.xlu0 %v6183_v6 }
0x1cac   :  { %v13663_v29 = vpop.eup %10304 }
0x1cad   :  { %v6186_v12 = vsel %vm1202_vm4, %v13663_v29, 0.0 }
0x1cae   :  { %6187 = vadd.xlane.f32.xlu0 %v6186_v12 }
0x1caf   :  { %6460 = vrot.lane.b32.xlu1 %v12878_v59, %s10647_s30 }
0x1cb0   :  { %v13669_v62 = vpop.eup %10306 }
0x1cb1   :  { %v6189_v17 = vsel %vm1202_vm4, %v13669_v62, 0.0 }
0x1cb2   :  { %6190 = vadd.xlane.f32.xlu0 %v6189_v17 }
0x1cb3   :  { %6462 = vrot.lane.b32.xlu1 %v12893_v19, %s10647_s30  ;;  %v6469_v19 = vpop.permute.xlu1 %6468 }
0x1cb4   :  { %v13675_v41 = vpop.eup %10308 }
0x1cb5   :  { %v6192_v24 = vsel %vm1202_vm4, %v13675_v41, 0.0 }
0x1cb6   :  { %6193 = vadd.xlane.f32.xlu0 %v6192_v24 }
0x1cb7   :  { %v6459_v38 = vpop.permute.xlu1 %6458 }
0x1ccc   :  { %6600 = vrot.lane.b32.xlu0 %v12900_v15, %s10633_s28 }
0x1cd0   :  { %6598 = vrot.lane.b32.xlu0 %v12931_v31, %s10633_s28 }
0x1cd3   :  { %v6137_v59 = vpop.xlane.xlu0 %6136 }
0x1cd4   :  { %v6147_v47 = vsub.f32 %v13614_v60, %v6137_v59  ;;  %6588 = vrot.lane.b32.xlu0 %v12931_v31, %s10647_s30 }
0x1cd6   :  { %v6166_v34 = vmul.f32 1.442695, %v6147_v47 }
0x1cd7   :  { %v6473_v42 = vpop.permute.xlu0 %6472 }
0x1cd8   :  { %10310 = vpow2.f32 %v6166_v34  ;;  %6590 = vrot.lane.b32.xlu0 %v12900_v15, %s10647_s30 }
0x1cdc   :  { %6592 = vrot.lane.b32.xlu0 %v12927_v3, %s10647_s30 }
0x1ce0   :  { %6596 = vrot.lane.b32.xlu0 %v12917_v13, %s10647_s30 }
0x1ce5   :  { %v13692_v21 = vpop.eup %10310 }
0x1ce6   :  { %v6195_v60 = vsel %vm1202_vm4, %v13692_v21, 0.0 }
0x1ce7   :  { %6196 = vadd.xlane.f32.xlu1 %v6195_v60 }
0x1cee   :  { %v6170_v31 = vpop.xlane.xlu1 %6169 }
0x1cef   :  { %10312 = vrcp.f32 %v6170_v31 }
0x1cf8   :  { %6464 = vrot.lane.b32.xlu1 %v12874_v40, %s10647_s30  ;;  %v6607_v40 = vpop.permute.xlu0 %6606 }
0x1cfc   :  { %v10313_v15 = vpop.eup %10312  ;;  %6466 = vrot.lane.b32.xlu1 %v12886_v35, %s10647_s30  ;;  %v6471_v35 = vpop.permute.xlu0 %6470 }
0x1cfd   :  { %v6208_v13 = vmul.f32 %v10313_v15, %v13623_v27 }
0x1cff   :  { %9664 = vmatmul.mubr.msk.f32.vlgmr.msra.gmra.mxu1 %vm1202_vm4, %v6208_v13 }
0x1d00   :  { %9704 = vmatpush3.xpose.msk.msra.mxu1 %vm956_vm3, %v13541_v32  ;;  %6594 = vrot.lane.b32.xlu1 %v12923_v30, %s10647_s30  ;;  %v6605_v30 = vpop.permute.xlu0 %6604  ;;  %v6176_v32 = vpop.xlane.xlu1 %6175 }
0x1d01   :  { %9705 = vmatprep.subr.mxu1 %v14432_v28  ;;  %9666 = vmatprep.mubr.msk.f32.mxu1 %vm10642_vm2, %v14432_v28 }
0x1d04   :  { %9706 = vmatpush3.xpose.msk.msra.mxu1 %vm956_vm3, %v13618_v10  ;;  %v6603_v3 = vpop.permute.xlu0 %6602 }
0x1d05   :  { %9707 = vmatprep.subr.mxu1 %v14432_v28 }
0x1d08   :  { %9708 = vmatpush3.xpose.msk.msra.mxu1 %vm956_vm3, %v6473_v42 }
0x1d09   :  { %9709 = vmatprep.subr.mxu1 %v14432_v28 }
0x1d0c   :  { %9710 = vmatpush3.xpose.msk.msra.mxu1 %vm956_vm3, %v6471_v35 }
0x1d0d   :  { %9711 = vmatprep.subr.mxu1 %v14432_v28 }
0x1d10   :  { %9712 = vmatpush3.xpose.msk.msra.mxu1 %vm956_vm3, %v6469_v19 }
0x1d11   :  { %9753 = vmatprep.subr.mxu1 %v14432_v28 }
0x1d18   :  { %v6173_v27 = vpop.xlane.xlu0 %6172 }
0x1d19   :  { %10314 = vrcp.f32 %v6173_v27 }
0x1d1a   :  { %10316 = vrcp.f32 %v6176_v32 }
0x1d23   :  { %v6179_v10 = vpop.xlane.xlu1 %6178 }
0x1d24   :  { %10318 = vrcp.f32 %v6179_v10 }
0x1d26   :  { %v10315_v5 = vpop.eup %10314 }
0x1d27   :  { %v6182_v39 = vpop.xlane.xlu1 %6181  ;;  %v6209_v22 = vmul.f32 %v10315_v5, %v13641_v54  ;;  %v10317_v6 = vpop.eup %10316 }
0x1d28   :  { %10320 = vrcp.f32 %v6182_v39  ;;  %v6210_v12 = vmul.f32 %v10317_v6, %v13631_v46 }
0x1d29   :  { %9667 = vmatmul.mubr.msk.f32.gmra.mxu1 %vm1202_vm4, %v6209_v22 }
0x1d2a   :  { %9669 = vmatprep.mubr.msk.f32.mxu1 %vm10642_vm2, %v14432_v28 }
0x1d2d   :  { %9670 = vmatmul.mubr.msk.f32.gmra.mxu1 %vm1202_vm4, %v6210_v12 }
0x1d2e   :  { %9672 = vmatprep.mubr.msk.f32.mxu1 %vm10642_vm2, %v14432_v28 }
0x1d31   :  { %v10319_v17 = vpop.eup %10318 }
0x1d32   :  { %v6211_v24 = vmul.f32 %v10319_v17, %v13647_v0  ;;  %v6461_v0 = vpop.permute.xlu1 %6460 }
0x1d33   :  { %v6185_v59 = vpop.xlane.xlu0 %6184 }
0x1d34   :  { %10322 = vrcp.f32 %v6185_v59  ;;  %9673 = vmatmul.mubr.msk.f32.gmra.mxu1 %vm1202_vm4, %v6211_v24 }
0x1d35   :  { %v10321_v54 = vpop.eup %10320  ;;  %9675 = vmatprep.mubr.msk.f32.mxu1 %vm10642_vm2, %v14432_v28 }
0x1d36   :  { %v6212_v47 = vmul.f32 %v10321_v54, %v13652_v33  ;;  %v6463_v31 = vpop.permute.xlu1 %6462 }
0x1d37   :  { %v6188_v34 = vpop.xlane.xlu0 %6187 }
0x1d38   :  { %10324 = vrcp.f32 %v6188_v34  ;;  %9676 = vmatmul.mubr.msk.f32.gmra.mxu1 %vm1202_vm4, %v6212_v47 }
0x1d39   :  { %9713 = vmatprep.mubr.msk.f32.mxu1 %vm10642_vm2, %v14432_v28 }
0x1d3b   :  { %v6191_v46 = vpop.xlane.xlu0 %6190 }
0x1d3c   :  { %10326 = vrcp.f32 %v6191_v46  ;;  %9714 = vmatmul.mubr.msk.f32.vlgmr.msra.gmra.mxu1 %vm956_vm3, %v6459_v38 }
0x1d3d   :  { %9716 = vmatprep.mubr.msk.f32.mxu1 %vm10642_vm2, %v14432_v28 }
0x1d3f   :  { %v6194_v19 = vpop.xlane.xlu0 %6193 }
0x1d40   :  { %10328 = vrcp.f32 %v6194_v19  ;;  %9717 = vmatmul.mubr.msk.f32.gmra.mxu1 %vm956_vm3, %v6461_v0 }
0x1d41   :  { %v10323_v33 = vpop.eup %10322  ;;  %9719 = vmatprep.mubr.msk.f32.mxu1 %vm10642_vm2, %v14432_v28 }
0x1d42   :  { %v6213_v60 = vmul.f32 %v10323_v33, %v13659_v48 }
0x1d44   :  { %9689 = vmatmul.mubr.msk.f32.vlgmr.msra.gmra.mxu0 %vm1202_vm4, %v6213_v60  ;;  %9720 = vmatmul.mubr.msk.f32.gmra.mxu1 %vm956_vm3, %v6463_v31 }
0x1d45   :  { %v10325_v38 = vpop.eup %10324  ;;  %9729 = vmatpush3.xpose.msk.msra.mxu0 %vm956_vm3, %v6607_v40  ;;  %9691 = vmatprep.mubr.msk.f32.mxu0 %vm10642_vm2, %v14432_v28 }
0x1d46   :  { %9730 = vmatprep.subr.mxu0 %v14432_v28  ;;  %v6214_v15 = vmul.f32 %v10325_v38, %v13663_v29  ;;  %9722 = vmatprep.mubr.msk.f32.mxu1 %vm10642_vm2, %v14432_v28  ;;  %v6601_v29 = vpop.permute.xlu0 %6600 }
0x1d48   :  { %9692 = vmatmul.mubr.msk.f32.gmra.mxu0 %vm1202_vm4, %v6214_v15 }
0x1d49   :  { %v10327_v48 = vpop.eup %10326  ;;  %9731 = vmatpush3.xpose.msk.msra.mxu0 %vm956_vm3, %v6605_v30  ;;  %9694 = vmatprep.mubr.msk.f32.mxu0 %vm10642_vm2, %v14432_v28 }
0x1d4a   :  { %9732 = vmatprep.subr.mxu0 %v14432_v28  ;;  %v6215_v42 = vmul.f32 %v10327_v48, %v13669_v62  ;;  %v6599_v62 = vpop.permute.xlu0 %6598 }
0x1d4c   :  { %9695 = vmatmul.mubr.msk.f32.gmra.mxu0 %vm1202_vm4, %v6215_v42 }
0x1d4d   :  { %v10329_v13 = vpop.eup %10328  ;;  %9733 = vmatpush3.xpose.msk.msra.mxu0 %vm956_vm3, %v6603_v3  ;;  %9697 = vmatprep.mubr.msk.f32.mxu0 %vm10642_vm2, %v14432_v28 }
0x1d4e   :  { %9734 = vmatprep.subr.mxu0 %v14432_v28  ;;  %v6216_v40 = vmul.f32 %v10329_v13, %v13675_v41  ;;  %v6589_v27 = vpop.permute.xlu0 %6588 }
0x1d50   :  { %9698 = vmatmul.mubr.msk.f32.gmra.mxu0 %vm1202_vm4, %v6216_v40 }
0x1d51   :  { %9735 = vmatpush3.xpose.msk.msra.mxu0 %vm956_vm3, %v6601_v29  ;;  %9700 = vmatprep.mubr.msk.f32.mxu0 %vm10642_vm2, %v14432_v28 }
0x1d52   :  { %9736 = vmatprep.subr.mxu0 %v14432_v28  ;;  %v6591_v10 = vpop.permute.xlu0 %6590 }
0x1d55   :  { %9737 = vmatpush3.xpose.msk.msra.mxu0 %vm956_vm3, %v6599_v62 }
0x1d56   :  { %9778 = vmatprep.subr.mxu0 %v14432_v28  ;;  %v6593_v5 = vpop.permute.xlu0 %6592 }
0x1d5a   :  { %v6597_v39 = vpop.permute.xlu0 %6596 }
0x1d70   :  { %v6197_v35 = vpop.xlane.xlu1 %6196 }
0x1d71   :  { %10330 = vrcp.f32 %v6197_v35 }
0x1d74   :  { %v6465_v30 = vpop.permute.xlu1 %6464 }
0x1d75   :  { %9723 = vmatmul.mubr.msk.f32.gmra.mxu1 %vm956_vm3, %v6465_v30 }
0x1d76   :  { %9725 = vmatprep.mubr.msk.f32.mxu1 %vm10642_vm2, %v14432_v28 }
0x1d78   :  { %v6467_v41 = vpop.permute.xlu1 %6466 }
0x1d79   :  { %9726 = vmatmul.mubr.msk.f32.gmra.mxu1 %vm956_vm3, %v6467_v41 }
0x1d7a   :  { %9763 = vmatprep.mubr.msk.f32.mxu1 %vm10642_vm2, %v14432_v28 }
0x1d7e   :  { %v10331_v3 = vpop.eup %10330 }
0x1d7f   :  { %v6217_v32 = vmul.f32 %v10331_v3, %v13692_v21  ;;  %v6595_v21 = vpop.permute.xlu1 %6594 }
0x1d81   :  { %9701 = vmatmul.mubr.msk.f32.gmra.mxu0 %vm1202_vm4, %v6217_v32 }
0x1d82   :  { %9738 = vmatprep.mubr.msk.f32.mxu0 %vm10642_vm2, %v14432_v28 }
0x1d85   :  { %9739 = vmatmul.mubr.msk.f32.vlgmr.msra.gmra.mxu0 %vm956_vm3, %v6589_v27 }
0x1d86   :  { %9741 = vmatprep.mubr.msk.f32.mxu0 %vm10642_vm2, %v14432_v28 }
0x1d89   :  { %9742 = vmatmul.mubr.msk.f32.gmra.mxu0 %vm956_vm3, %v6591_v10 }
0x1d8a   :  { %9744 = vmatprep.mubr.msk.f32.mxu0 %vm10642_vm2, %v14432_v28 }
0x1d8d   :  { %9745 = vmatmul.mubr.msk.f32.gmra.mxu0 %vm956_vm3, %v6593_v5 }
0x1d8e   :  { %9747 = vmatprep.mubr.msk.f32.mxu0 %vm10642_vm2, %v14432_v28 }
0x1d91   :  { %9748 = vmatmul.mubr.msk.f32.gmra.mxu0 %vm956_vm3, %v6595_v21 }
0x1d92   :  { %9750 = vmatprep.mubr.msk.f32.mxu0 %vm10642_vm2, %v14432_v28 }
0x1d95   :  { %9751 = vmatmul.mubr.msk.f32.gmra.mxu0 %vm956_vm3, %v6597_v39 }
0x1d96   :  { %9788 = vmatprep.mubr.msk.f32.mxu0 %vm10642_vm2, %v14432_v28 }
0x1dbf   :  { %v13794_v22 = vpop.f32.mrf.mxu1 }
0x1dc1   :  { %v9665_v6 = vpop.f32.mrf.mxu1 }
0x1de9   :  { %v13796_v12 = vpop.f32.mrf.mxu1 }
0x1deb   :  { %v9668_v17 = vpop.f32.mrf.mxu1 }
0x1ded   :  { %v13798_v24 = vpop.f32.mrf.mxu1 }
0x1def   :  { %v9671_v59 = vpop.f32.mrf.mxu1 }
0x1df4   :  { %v13800_v54 = vpop.f32.mrf.mxu1 }
0x1df6   :  { %v9674_v47 = vpop.f32.mrf.mxu1 }
0x1df8   :  { %v13802_v34 = vpop.f32.mrf.mxu1 }
0x1dfa   :  { %v9677_v46 = vpop.f32.mrf.mxu1 }
0x1dfc   :  { %v6564_v0 = vpop.f32.mrf.mxu1 }
0x1dfd   :  { %v6718_v19 = vmul.f32 0.25, %v6564_v0 }
0x1dfe   :  { %v9715_v33 = vpop.f32.mrf.mxu1 }
0x1dff   :  { %v6728_v60 = vsel %vm1202_vm4, %v6718_v19, -inf }
0x1e00   :  { %6729 = vmax.xlane.f32.xlu1 %v6728_v60  ;;  %v6569_v31 = vpop.f32.mrf.mxu1 }
0x1e01   :  { %v6719_v38 = vmul.f32 0.25, %v6569_v31 }
0x1e02   :  { %v9718_v15 = vpop.f32.mrf.mxu1 }
0x1e03   :  { %v6731_v48 = vsel %vm1202_vm4, %v6719_v38, -inf }
0x1e04   :  { %6732 = vmax.xlane.f32.xlu0 %v6731_v48  ;;  %v13806_v42 = vpop.f32.mrf.mxu0  ;;  %v6574_v13 = vpop.f32.mrf.mxu1 }
0x1e05   :  { %v13808_v29 = vmul.f32 0.25, %v6574_v13 }
0x1e06   :  { %v9690_v40 = vpop.f32.mrf.mxu0  ;;  %v9721_v62 = vpop.f32.mrf.mxu1 }
0x1e07   :  { %v6734_v35 = vsel %vm1202_vm4, %v13808_v29, -inf }
0x1e08   :  { %6735 = vmax.xlane.f32.xlu0 %v6734_v35  ;;  %v13812_v30 = vpop.f32.mrf.mxu0 }
0x1e0a   :  { %v9693_v41 = vpop.f32.mrf.mxu0 }
0x1e0c   :  { %v13814_v3 = vpop.f32.mrf.mxu0 }
0x1e0e   :  { %v9696_v32 = vpop.f32.mrf.mxu0 }
0x1e10   :  { %v13816_v27 = vpop.f32.mrf.mxu0 }
0x1e12   :  { %v9699_v10 = vpop.f32.mrf.mxu0 }
0x1e35   :  { %v6579_v5 = vpop.f32.mrf.mxu1 }
0x1e36   :  { %v6721_v21 = vmul.f32 0.25, %v6579_v5 }
0x1e37   :  { %v9724_v39 = vpop.f32.mrf.mxu1 }
0x1e38   :  { %v6737_v6 = vsel %vm1202_vm4, %v6721_v21, -inf }
0x1e39   :  { %6738 = vmax.xlane.f32.xlu0 %v6737_v6  ;;  %v6584_v17 = vpop.f32.mrf.mxu1 }
0x1e3a   :  { %v6722_v59 = vmul.f32 0.25, %v6584_v17 }
0x1e3b   :  { %v9727_v47 = vpop.f32.mrf.mxu1 }
0x1e3c   :  { %v6740_v46 = vsel %vm1202_vm4, %v6722_v59, -inf }
0x1e3d   :  { %6741 = vmax.xlane.f32.xlu0 %v6740_v46 }
0x1e41   :  { %v13820_v0 = vpop.f32.mrf.mxu0 }
0x1e43   :  { %v9702_v33 = vpop.f32.mrf.mxu0 }
0x1e45   :  { %v6694_v60 = vpop.f32.mrf.mxu0 }
0x1e46   :  { %v6723_v31 = vmul.f32 0.25, %v6694_v60 }
0x1e47   :  { %v9740_v15 = vpop.f32.mrf.mxu0 }
0x1e48   :  { %v6743_v48 = vsel %vm1202_vm4, %v6723_v31, -inf }
0x1e49   :  { %6744 = vmax.xlane.f32.xlu1 %v6743_v48  ;;  %v6699_v13 = vpop.f32.mrf.mxu0 }
0x1e4a   :  { %v6724_v40 = vmul.f32 0.25, %v6699_v13 }
0x1e4b   :  { %v9743_v62 = vpop.f32.mrf.mxu0 }
0x1e4c   :  { %v6746_v35 = vsel %vm1202_vm4, %v6724_v40, -inf }
0x1e4d   :  { %6747 = vmax.xlane.f32.xlu1 %v6746_v35  ;;  %v6704_v41 = vpop.f32.mrf.mxu0 }
0x1e4e   :  { %v6725_v32 = vmul.f32 0.25, %v6704_v41 }
0x1e4f   :  { %v9746_v10 = vpop.f32.mrf.mxu0 }
0x1e50   :  { %v6749_v5 = vsel %vm1202_vm4, %v6725_v32, -inf }
0x1e51   :  { %6750 = vmax.xlane.f32.xlu1 %v6749_v5  ;;  %v6709_v39 = vpop.f32.mrf.mxu0 }
0x1e52   :  { %v6726_v6 = vmul.f32 0.25, %v6709_v39 }
0x1e53   :  { %v9749_v17 = vpop.f32.mrf.mxu0 }
0x1e54   :  { %v6752_v47 = vsel %vm1202_vm4, %v6726_v6, -inf }
0x1e55   :  { %6753 = vmax.xlane.f32.xlu0 %v6752_v47  ;;  %v6714_v46 = vpop.f32.mrf.mxu0 }
0x1e56   :  { %v13826_v33 = vmul.f32 0.25, %v6714_v46 }
0x1e57   :  { %v9752_v60 = vpop.f32.mrf.mxu0 }
0x1e58   :  { %v6755_v15 = vsel %vm1202_vm4, %v13826_v33, -inf }
0x1e59   :  { %6756 = vmax.xlane.f32.xlu1 %v6755_v15 }
0x1e6b   :  { %6846 = vrot.lane.b32.xlu0 %v12889_v51, %s10647_s30 }
0x1e89   :  { %v6730_v48 = vpop.xlane.xlu1 %6729 }
0x1e8a   :  { %v6758_v13 = vsub.f32 %v6718_v19, %v6730_v48 }
0x1e8c   :  { %v6768_v62 = vmul.f32 1.442695, %v6758_v13 }
0x1e8d   :  { %v6733_v35 = vpop.xlane.xlu0 %6732 }
0x1e8e   :  { %10332 = vpow2.f32 %v6768_v62  ;;  %v6759_v41 = vsub.f32 %v6719_v38, %v6733_v35 }
0x1e90   :  { %v6770_v10 = vmul.f32 1.442695, %v6759_v41 }
0x1e91   :  { %v6736_v51 = vpop.xlane.xlu0 %6735 }
0x1e92   :  { %10334 = vpow2.f32 %v6770_v10  ;;  %v6760_v19 = vsub.f32 %v13808_v29, %v6736_v51 }
0x1e94   :  { %v6772_v38 = vmul.f32 1.442695, %v6760_v19 }
0x1e96   :  { %10336 = vpow2.f32 %v6772_v38 }
0x1e9b   :  { %v13832_v5 = vpop.eup %10332 }
0x1e9c   :  { %v6788_v39 = vsel %vm1202_vm4, %v13832_v5, 0.0 }
0x1e9d   :  { %6789 = vadd.xlane.f32.xlu0 %v6788_v39 }
0x1e9f   :  { %v13836_v17 = vpop.eup %10334 }
0x1ea0   :  { %v6791_v47 = vsel %vm1202_vm4, %v13836_v17, 0.0 }
0x1ea1   :  { %6792 = vadd.xlane.f32.xlu1 %v6791_v47 }
0x1ea3   :  { %v13845_v35 = vpop.eup %10336 }
0x1eb2   :  { %6844 = vrot.lane.b32.xlu1 %v12958_v8, %s10647_s30  ;;  %v6794_v8 = vsel %vm1202_vm4, %v13845_v35, 0.0 }
0x1eb3   :  { %6842 = vrot.lane.b32.xlu0 %v12872_v23, %s10647_s30 }
0x1ec2   :  { %v6739_v46 = vpop.xlane.xlu0 %6738 }
0x1ec3   :  { %v6761_v60 = vsub.f32 %v6721_v21, %v6739_v46 }
0x1ec5   :  { %v6774_v15 = vmul.f32 1.442695, %v6761_v60 }
0x1ec6   :  { %v6742_v48 = vpop.xlane.xlu0 %6741 }
0x1ec7   :  { %10338 = vpow2.f32 %v6774_v15  ;;  %v6762_v13 = vsub.f32 %v6722_v59, %v6742_v48 }
0x1ec9   :  { %v6776_v62 = vmul.f32 1.442695, %v6762_v13 }
0x1ecb   :  { %10340 = vpow2.f32 %v6776_v62 }
0x1ed2   :  { %v6745_v41 = vpop.xlane.xlu1 %6744  ;;  %6795 = vadd.xlane.f32.xlu0 %v6794_v8 }
0x1ed3   :  { %v6763_v23 = vsub.f32 %v6723_v31, %v6745_v41 }
0x1ed4   :  { %v13849_v10 = vpop.eup %10338 }
0x1ed5   :  { %v6778_v29 = vmul.f32 1.442695, %v6763_v23  ;;  %v6797_v21 = vsel %vm1202_vm4, %v13849_v10, 0.0 }
0x1ed6   :  { %v6748_v39 = vpop.xlane.xlu1 %6747  ;;  %6798 = vadd.xlane.f32.xlu0 %v6797_v21 }
0x1ed7   :  { %10342 = vpow2.f32 %v6778_v29  ;;  %v6764_v59 = vsub.f32 %v6724_v40, %v6748_v39 }
0x1ed8   :  { %v13853_v47 = vpop.eup %10340 }
0x1ed9   :  { %v6780_v51 = vmul.f32 1.442695, %v6764_v59  ;;  %v6800_v19 = vsel %vm1202_vm4, %v13853_v47, 0.0 }
0x1eda   :  { %v6751_v38 = vpop.xlane.xlu1 %6750  ;;  %6801 = vadd.xlane.f32.xlu0 %v6800_v19 }
0x1edb   :  { %10344 = vpow2.f32 %v6780_v51  ;;  %v6765_v31 = vsub.f32 %v6725_v32, %v6751_v38 }
0x1edd   :  { %v6782_v46 = vmul.f32 1.442695, %v6765_v31 }
0x1ede   :  { %v6754_v60 = vpop.xlane.xlu0 %6753 }
0x1edf   :  { %10346 = vpow2.f32 %v6782_v46  ;;  %v6766_v15 = vsub.f32 %v6726_v6, %v6754_v60 }
0x1ee1   :  { %v6784_v48 = vmul.f32 1.442695, %v6766_v15 }
0x1ee2   :  { %v6757_v13 = vpop.xlane.xlu1 %6756  ;;  %v6847_v62 = vpop.permute.xlu0 %6846 }
0x1ee3   :  { %10348 = vpow2.f32 %v6784_v48  ;;  %v6767_v40 = vsub.f32 %v13826_v33, %v6757_v13  ;;  %9754 = vmatpush3.msra.mxu1 %v6847_v62  ;;  %v8375_v13 = vld [vmem:[%s14365_s12 + $0x78] sm:$0xff]  ;;  %v8374_v62 = vld [vmem:[%s14365_s12 + $0x70] sm:$0xff] }
0x1ee4   :  { %v13858_v8 = vpop.eup %10342  ;;  %9755 = vmatprep.subr.mxu1 %v14432_v28 }
0x1ee5   :  { %v6786_v41 = vmul.f32 1.442695, %v6767_v40  ;;  %v6803_v23 = vsel %vm1202_vm4, %v13858_v8, 0.0  ;;  %v8373_v40 = vld [vmem:[%s14365_s12 + $0x68] sm:$0xff] }
0x1ee6   :  { %6804 = vadd.xlane.f32.xlu1 %v6803_v23  ;;  %v8369_v23 = vld [vmem:[%s14365_s12 + $0x48] sm:$0xff] }
0x1ee7   :  { %10350 = vpow2.f32 %v6786_v41  ;;  %v8370_v41 = vld [vmem:[%s14365_s12 + $0x50] sm:$0xff] }
0x1ee8   :  { %v13863_v32 = vpop.eup %10344 }
0x1ee9   :  { %v6806_v6 = vsel %vm1202_vm4, %v13863_v32, 0.0 }
0x1eea   :  { %6807 = vadd.xlane.f32.xlu1 %v6806_v6 }
0x1eec   :  { %v13867_v29 = vpop.eup %10346 }
0x1eed   :  { %v6809_v33 = vsel %vm1202_vm4, %v13867_v29, 0.0 }
0x1eee   :  { %6810 = vadd.xlane.f32.xlu1 %v6809_v33 }
0x1ef0   :  { %v13871_v21 = vpop.eup %10348  ;;  %6840 = vrot.lane.b32.xlu0 %v12867_v1, %s10647_s30 }
0x1ef1   :  { %v6812_v39 = vsel %vm1202_vm4, %v13871_v21, 0.0 }
0x1ef2   :  { %6813 = vadd.xlane.f32.xlu1 %v6812_v39 }
0x1ef4   :  { %v13877_v59 = vpop.eup %10350  ;;  %6838 = vrot.lane.b32.xlu0 %v12864_v49, %s10647_s30 }
0x1ef5   :  { %v6815_v51 = vsel %vm1202_vm4, %v13877_v59, 0.0 }
0x1ef6   :  { %6816 = vadd.xlane.f32.xlu1 %v6815_v51 }
0x1ef8   :  { %6966 = vrot.lane.b32.xlu0 %v12999_v2, %s10647_s30 }
0x1efc   :  { %6964 = vrot.lane.b32.xlu0 %v12913_v4, %s10647_s30 }
0x1f00   :  { %6962 = vrot.lane.b32.xlu0 %v12908_v25, %s10647_s30 }
0x1f04   :  { %6960 = vrot.lane.b32.xlu0 %v12903_v37, %s10647_s30 }
0x1f07   :  { %7128 = vrot.lane.b32.xlu1 %v13794_v22, %s10645_s13 }
0x1f08   :  { %6958 = vrot.lane.b32.xlu0 %v12896_v7, %s10647_s30 }
0x1f0b   :  { %7094 = vrot.lane.b32.xlu1 %v13561_v43, %s10633_s28 }
0x1f0c   :  { %7088 = vrot.lane.b32.xlu0 %v13555_v61, %s10633_s28 }
0x1f0f   :  { %7134 = vrot.lane.b32.xlu1 %v13800_v54, %s10645_s13 }
0x1f10   :  { %7090 = vrot.lane.b32.xlu0 %v13557_v56, %s10633_s28 }
0x1f13   :  { %7098 = vrot.lane.b32.xlu1 %v13569_v26, %s10633_s28 }
0x1f14   :  { %7130 = vrot.lane.b32.xlu0 %v13796_v12, %s10645_s13 }
0x1f17   :  { %7138 = vrot.lane.b32.xlu1 %v13806_v42, %s10645_s13 }
0x1f18   :  { %7092 = vrot.lane.b32.xlu0 %v13559_v14, %s10633_s28 }
0x1f1b   :  { %7102 = vrot.lane.b32.xlu1 %v13578_v58, %s10633_s28 }
0x1f1c   :  { %7132 = vrot.lane.b32.xlu0 %v13798_v24, %s10645_s13 }
0x1f1f   :  { %7142 = vrot.lane.b32.xlu1 %v13814_v3, %s10645_s13 }
0x1f20   :  { %7096 = vrot.lane.b32.xlu0 %v13563_v11, %s10633_s28 }
0x1f23   :  { %7106 = vrot.lane.b32.xlu1 %v13590_v53, %s10633_s28 }
0x1f24   :  { %7136 = vrot.lane.b32.xlu0 %v13802_v34, %s10645_s13 }
0x1f26   :  { %v6790_v49 = vpop.xlane.xlu0 %6789 }
0x1f27   :  { %7146 = vrot.lane.b32.xlu1 %v13820_v0, %s10645_s13  ;;  %10352 = vrcp.f32 %v6790_v49 }
0x1f28   :  { %7100 = vrot.lane.b32.xlu0 %v13575_v18, %s10633_s28 }
0x1f2a   :  { %v6793_v1 = vpop.xlane.xlu1 %6792  ;;  %v6843_v37 = vpop.permute.xlu0 %6842 }
0x1f2b   :  { %10354 = vrcp.f32 %v6793_v1 }
0x1f2c   :  { %7140 = vrot.lane.b32.xlu0 %v13812_v30, %s10645_s13 }
0x1f2e   :  { %v6845_v7 = vpop.permute.xlu1 %6844 }
0x1f2f   :  { %9756 = vmatpush3.msra.mxu1 %v6845_v7 }
0x1f30   :  { %7104 = vrot.lane.b32.xlu0 %v13580_v55, %s10633_s28  ;;  %9757 = vmatprep.subr.mxu1 %v14432_v28 }
0x1f31   :  { %9758 = vmatpush3.msra.mxu1 %v6843_v37 }
0x1f32   :  { %9759 = vmatprep.subr.mxu1 %v14432_v28 }
0x1f34   :  { %7144 = vrot.lane.b32.xlu0 %v13816_v27, %s10645_s13  ;;  %v10353_v56 = vpop.eup %10352 }
0x1f35   :  { %v6828_v14 = vmul.f32 %v10353_v56, %v13832_v5 }
0x1f38   :  { %v10355_v11 = vpop.eup %10354 }
0x1f39   :  { %v6829_v58 = vmul.f32 %v10355_v11, %v13836_v17 }
0x1f5b   :  { %v6796_v25 = vpop.xlane.xlu0 %6795 }
0x1f5c   :  { %10356 = vrcp.f32 %v6796_v25 }
0x1f5f   :  { %v6799_v4 = vpop.xlane.xlu0 %6798 }
0x1f60   :  { %10358 = vrcp.f32 %v6799_v4 }
0x1f63   :  { %v6802_v2 = vpop.xlane.xlu0 %6801 }
0x1f64   :  { %10360 = vrcp.f32 %v6802_v2 }
0x1f67   :  { %v6841_v61 = vpop.permute.xlu0 %6840 }
0x1f68   :  { %9760 = vmatpush3.msra.mxu1 %v6841_v61 }
0x1f69   :  { %9761 = vmatprep.subr.mxu1 %v14432_v28  ;;  %v10357_v55 = vpop.eup %10356 }
0x1f6a   :  { %v6830_v12 = vmul.f32 %v10357_v55, %v13845_v35 }
0x1f6b   :  { %v6839_v43 = vpop.permute.xlu0 %6838 }
0x1f6c   :  { %9762 = vmatpush3.msra.mxu1 %v6839_v43 }
0x1f6d   :  { %9764 = vmatmul.mubr.msk.f32.vlgmr.msra.gmra.mxu1 %vm1202_vm4, %v6828_v14  ;;  %v10359_v24 = vpop.eup %10358  ;;  %9803 = vmatprep.subr.mxu1 %v8375_v13 }
0x1f6e   :  { %9766 = vmatprep.mubr.msk.f32.mxu1 %vm10642_vm2, %v14432_v28  ;;  %v6831_v42 = vmul.f32 %v10359_v24, %v13849_v10  ;;  %9804 = vmatpush3.msra.mxu1 %v8375_v13 }
0x1f6f   :  { %v6805_v26 = vpop.xlane.xlu1 %6804  ;;  %v6967_v18 = vpop.permute.xlu0 %6966  ;;  %9805 = vmatprep.subr.mxu1 %v8374_v62 }
0x1f70   :  { %10362 = vrcp.f32 %v6805_v26  ;;  %9779 = vmatpush3.msra.mxu0 %v6967_v18  ;;  %9806 = vmatpush3.msra.mxu1 %v8374_v62 }
0x1f71   :  { %9767 = vmatmul.mubr.msk.f32.gmra.mxu1 %vm1202_vm4, %v6829_v58  ;;  %9780 = vmatprep.subr.mxu0 %v14432_v28  ;;  %v10361_v30 = vpop.eup %10360 }
0x1f72   :  { %9769 = vmatprep.mubr.msk.f32.mxu1 %vm10642_vm2, %v14432_v28  ;;  %v6832_v0 = vmul.f32 %v10361_v30, %v13853_v47  ;;  %9807 = vmatprep.subr.mxu1 %v8373_v40 }
0x1f73   :  { %v6808_v53 = vpop.xlane.xlu1 %6807  ;;  %v6965_v22 = vpop.permute.xlu0 %6964  ;;  %9808 = vmatpush3.msra.mxu1 %v8373_v40 }
0x1f74   :  { %10364 = vrcp.f32 %v6808_v53  ;;  %9781 = vmatpush3.msra.mxu0 %v6965_v22 }
0x1f75   :  { %9770 = vmatmul.mubr.msk.f32.gmra.mxu1 %vm1202_vm4, %v6830_v12  ;;  %9782 = vmatprep.subr.mxu0 %v14432_v28 }
0x1f76   :  { %9772 = vmatprep.mubr.msk.f32.mxu1 %vm10642_vm2, %v14432_v28 }
0x1f77   :  { %v6811_v54 = vpop.xlane.xlu1 %6810  ;;  %v6963_v34 = vpop.permute.xlu0 %6962 }
0x1f78   :  { %10366 = vrcp.f32 %v6811_v54  ;;  %9783 = vmatpush3.msra.mxu0 %v6963_v34 }
0x1f79   :  { %9773 = vmatmul.mubr.msk.f32.gmra.mxu1 %vm1202_vm4, %v6831_v42  ;;  %9784 = vmatprep.subr.mxu0 %v14432_v28 }
0x1f7a   :  { %9775 = vmatprep.mubr.msk.f32.mxu1 %vm10642_vm2, %v14432_v28 }
0x1f7b   :  { %v6814_v3 = vpop.xlane.xlu1 %6813  ;;  %v6961_v27 = vpop.permute.xlu0 %6960 }
0x1f7c   :  { %10368 = vrcp.f32 %v6814_v3  ;;  %9785 = vmatpush3.msra.mxu0 %v6961_v27 }
0x1f7d   :  { %v10363_v5 = vpop.eup %10362  ;;  %9776 = vmatmul.mubr.msk.f32.gmra.mxu1 %vm1202_vm4, %v6832_v0  ;;  %9786 = vmatprep.subr.mxu0 %v14432_v28 }
0x1f7e   :  { %v6833_v17 = vmul.f32 %v10363_v5, %v13858_v8  ;;  %v8371_v8 = vld [vmem:[%s14365_s12 + $0x58] sm:$0xff] }
0x1f7f   :  { %v6817_v35 = vpop.xlane.xlu1 %6816  ;;  %v6959_v10 = vpop.permute.xlu0 %6958 }
0x1f80   :  { %10370 = vrcp.f32 %v6817_v35  ;;  %9787 = vmatpush3.msra.mxu0 %v6959_v10 }
0x1f81   :  { %v10365_v19 = vpop.eup %10364  ;;  %9789 = vmatmul.mubr.msk.f32.vlgmr.msra.gmra.mxu0 %vm1202_vm4, %v6833_v17 }
0x1f82   :  { %9791 = vmatprep.mubr.msk.f32.mxu0 %vm10642_vm2, %v14432_v28  ;;  %v6834_v47 = vmul.f32 %v10365_v19, %v13863_v32  ;;  %v8368_v32 = vld [vmem:[%s14365_s12 + $0x40] sm:$0xff] }
0x1f83   :  { %v7089_v18 = vpop.permute.xlu0 %7088  ;;  %v7129_v22 = vpop.permute.xlu1 %7128 }
0x1f84   :  { %v7198_v19 = vsel %vm956_vm3, %v13264_v36, %v7089_v18 }
0x1f85   :  { %v10367_v38 = vpop.eup %10366  ;;  %9792 = vmatmul.mubr.msk.f32.gmra.mxu0 %vm1202_vm4, %v6834_v47  ;;  %v7208_v47 = vsel %vm3523_vm5, %v7198_v19, %v7129_v22  ;;  %v14464_v22 = vld [vmem:[#allocation34_spill] sm:$0xff] }
0x1f86   :  { %9794 = vmatprep.mubr.msk.f32.mxu0 %vm10642_vm2, %v14432_v28  ;;  %v6835_v31 = vmul.f32 %v10367_v38, %v13867_v29 }
0x1f87   :  { %v7091_v58 = vpop.permute.xlu0 %7090  ;;  %v7095_v24 = vpop.permute.xlu1 %7094 }
0x1f89   :  { %v10369_v46 = vpop.eup %10368  ;;  %9795 = vmatmul.mubr.msk.f32.gmra.mxu0 %vm1202_vm4, %v6835_v31 }
0x1f8a   :  { %9797 = vmatprep.mubr.msk.f32.mxu0 %vm10642_vm2, %v14432_v28  ;;  %v6836_v60 = vmul.f32 %v10369_v46, %v13871_v21 }
0x1f8b   :  { %v7131_v55 = vpop.permute.xlu0 %7130  ;;  %v7135_v34 = vpop.permute.xlu1 %7134 }
0x1f8d   :  { %v10371_v15 = vpop.eup %10370  ;;  %9798 = vmatmul.mubr.msk.f32.gmra.mxu0 %vm1202_vm4, %v6836_v60  ;;  %v7199_v60 = vsel %vm956_vm3, %v13266_v44, %v7091_v58  ;;  %v7201_v44 = vsel %vm956_vm3, %v13270_v45, %v7095_v24  ;;  %v14463_v58 = vld [vmem:[#allocation33_spill] sm:$0xff] }
0x1f8e   :  { %9800 = vmatprep.mubr.msk.f32.mxu0 %vm10642_vm2, %v14432_v28  ;;  %v6837_v48 = vmul.f32 %v10371_v15, %v13877_v59  ;;  %v8372_v28 = vld [vmem:[%s14365_s12 + $0x60] sm:$0xff]  ;;  %v7209_v15 = vsel %vm3523_vm5, %v7199_v60, %v7131_v55 }
0x1f8f   :  { %9809 = vmatprep.subr.mxu1 %v8372_v28  ;;  %v7093_v53 = vpop.permute.xlu0 %7092  ;;  %v7099_v30 = vpop.permute.xlu1 %7098  ;;  %v14468_v60 = vld [vmem:[#allocation37_spill] sm:$0xff] }
0x1f90   :  { %9810 = vmatpush3.msra.mxu1 %v8372_v28  ;;  %v7200_v36 = vsel %vm956_vm3, %v13268_v57, %v7093_v53  ;;  %v7203_v45 = vsel %vm956_vm3, %v13274_v63, %v7099_v30 }
0x1f91   :  { %9801 = vmatmul.mubr.msk.f32.gmra.mxu0 %vm1202_vm4, %v6837_v48  ;;  %9811 = vmatprep.subr.mxu1 %v8371_v8 }
0x1f92   :  { %9812 = vmatpush3.msra.mxu1 %v8371_v8 }
0x1f93   :  { %9813 = vmatprep.subr.mxu1 %v8370_v41  ;;  %v7133_v12 = vpop.permute.xlu0 %7132  ;;  %v7139_v27 = vpop.permute.xlu1 %7138 }
0x1f94   :  { %9814 = vmatpush3.msra.mxu1 %v8370_v41  ;;  %v7210_v62 = vsel %vm3523_vm5, %v7200_v36, %v7133_v12  ;;  %v7211_v41 = vsel %vm3523_vm5, %v7201_v44, %v7135_v34 }
0x1f95   :  { %9815 = vmatprep.subr.mxu1 %v8369_v23 }
0x1f96   :  { %9816 = vmatpush3.msra.mxu1 %v8369_v23 }
0x1f97   :  { %9817 = vmatprep.subr.mxu1 %v8368_v32  ;;  %v7097_v54 = vpop.permute.xlu0 %7096  ;;  %v7103_v5 = vpop.permute.xlu1 %7102 }
0x1f98   :  { %9818 = vmatpush3.msra.mxu1 %v8368_v32  ;;  %v7202_v57 = vsel %vm956_vm3, %v13272_v50, %v7097_v54  ;;  %v7205_v63 = vsel %vm956_vm3, %v13286_v16, %v7103_v5 }
0x1f9b   :  { %v7137_v42 = vpop.permute.xlu0 %7136  ;;  %v7143_v35 = vpop.permute.xlu1 %7142 }
0x1f9f   :  { %v7101_v3 = vpop.permute.xlu0 %7100  ;;  %v7107_v46 = vpop.permute.xlu1 %7106 }
0x1fa0   :  { %v7204_v50 = vsel %vm956_vm3, %v13280_v9, %v7101_v3  ;;  %v7207_v16 = vsel %vm956_vm3, %v13302_v20, %v7107_v46  ;;  %v14465_v3 = vld [vmem:[#allocation35_spill] sm:$0xff] }
0x1fa3   :  { %v7141_v0 = vpop.permute.xlu0 %7140  ;;  %v7147_v40 = vpop.permute.xlu1 %7146 }
0x1fa7   :  { %v7105_v17 = vpop.permute.xlu0 %7104 }
0x1fa8   :  { %v7206_v9 = vsel %vm956_vm3, %v13288_v52, %v7105_v17 }
0x1fab   :  { %v7145_v10 = vpop.permute.xlu0 %7144 }
0x202d   :  { %v6934_v6 = vpop.f32.mrf.mxu1 }
0x202e   :  { %7168 = vrot.lane.b32.xlu0 %v6934_v6, %s10643_s7  ;;  %v7212_v6 = vsel %vm3523_vm5, %v7202_v57, %v7137_v42 }
0x202f   :  { %v9765_v29 = vpop.f32.mrf.mxu1 }
0x2031   :  { %v6939_v33 = vpop.f32.mrf.mxu1 }
0x2032   :  { %7170 = vrot.lane.b32.xlu0 %v6939_v33, %s10643_s7 }
0x2033   :  { %v9768_v21 = vpop.f32.mrf.mxu1 }
0x2034   :  { %v7213_v21 = vsel %vm3523_vm5, %v7203_v45, %v7139_v27  ;;  %v14471_v45 = vld [vmem:[#allocation24_spill] sm:$0xff] }
0x2035   :  { %v6944_v39 = vpop.f32.mrf.mxu1 }
0x2036   :  { %7172 = vrot.lane.b32.xlu0 %v6944_v39, %s10643_s7 }
0x2037   :  { %v9771_v59 = vpop.f32.mrf.mxu1 }
0x2039   :  { %v6949_v51 = vpop.f32.mrf.mxu1 }
0x203a   :  { %7174 = vrot.lane.b32.xlu1 %v6949_v51, %s10643_s7  ;;  %v7214_v51 = vsel %vm3523_vm5, %v7204_v50, %v7141_v0  ;;  %v14466_v0 = vld [vmem:[#allocation40_spill] sm:$0xff] }
0x203b   :  { %v9774_v49 = vpop.f32.mrf.mxu1 }
0x203d   :  { %v6954_v1 = vpop.f32.mrf.mxu1 }
0x203e   :  { %7176 = vrot.lane.b32.xlu0 %v6954_v1, %s10643_s7 }
0x203f   :  { %v9777_v7 = vpop.f32.mrf.mxu1 }
0x2040   :  { %v7215_v7 = vsel %vm3523_vm5, %v7205_v63, %v7143_v35 }
0x2041   :  { %v7054_v37 = vpop.f32.mrf.mxu0 }
0x2042   :  { %7178 = vrot.lane.b32.xlu1 %v7054_v37, %s10643_s7 }
0x2043   :  { %v9790_v25 = vpop.f32.mrf.mxu0 }
0x2045   :  { %v7059_v4 = vpop.f32.mrf.mxu0 }
0x2046   :  { %7180 = vrot.lane.b32.xlu0 %v7059_v4, %s10643_s7  ;;  %v7216_v4 = vsel %vm3523_vm5, %v7206_v9, %v7145_v10 }
0x2047   :  { %v9793_v2 = vpop.f32.mrf.mxu0 }
0x2049   :  { %v7064_v61 = vpop.f32.mrf.mxu0 }
0x204a   :  { %7182 = vrot.lane.b32.xlu1 %v7064_v61, %s10643_s7 }
0x204b   :  { %v9796_v56 = vpop.f32.mrf.mxu0 }
0x204c   :  { %v7217_v56 = vsel %vm3523_vm5, %v7207_v16, %v7147_v40 }
0x204d   :  { %v7069_v14 = vpop.f32.mrf.mxu0 }
0x204e   :  { %7184 = vrot.lane.b32.xlu0 %v7069_v14, %s10643_s7 }
0x204f   :  { %v9799_v43 = vpop.f32.mrf.mxu0 }
0x2051   :  { %v7074_v11 = vpop.f32.mrf.mxu0 }
0x2052   :  { %7186 = vrot.lane.b32.xlu1 %v7074_v11, %s10643_s7  ;;  %v8376_v11 = vld [vmem:[#allocation10 + $0x1] ss:$0 sm:$0xff] }
0x2053   :  { %v9802_v26 = vpop.f32.mrf.mxu0 }
0x20a0   :  { %v7169_v38 = vpop.permute.xlu0 %7168 }
0x20a1   :  { %v7218_v31 = vsel %vm3534_vm6, %v7208_v47, %v7169_v38  ;;  %v14467_v47 = vld [vmem:[#allocation36_spill] sm:$0xff] }
0x20a2   :  { %9819 = vmatprep.mubr.msk.f32.mxu1 %vm465_vm1, %v7218_v31 }
0x20a4   :  { %v7171_v48 = vpop.permute.xlu0 %7170 }
0x20a5   :  { %v7219_v13 = vsel %vm3534_vm6, %v7209_v15, %v7171_v48 }
0x20a6   :  { %9820 = vmatmul.mubr.msk.f32.vlgmr.msra.gmra.mxu1 %vm465_vm1, %v7219_v13 }
0x20a8   :  { %v7173_v28 = vpop.permute.xlu0 %7172 }
0x20a9   :  { %v7220_v8 = vsel %vm3534_vm6, %v7210_v62, %v7173_v28  ;;  %v14469_v28 = vld [vmem:[#allocation38_spill] sm:$0xff] }
0x20aa   :  { %9822 = vmatprep.mubr.msk.f32.mxu1 %vm465_vm1, %v7220_v8 }
0x20ac   :  { %v7175_v23 = vpop.permute.xlu1 %7174 }
0x20ad   :  { %v7221_v32 = vsel %vm3534_vm6, %v7211_v41, %v7175_v23  ;;  %v14470_v41 = vld [vmem:[#allocation39_spill] sm:$0xff] }
0x20ae   :  { %9823 = vmatmul.mubr.msk.f32.gmra.mxu1 %vm465_vm1, %v7221_v32 }
0x20b0   :  { %v7177_v29 = vpop.permute.xlu0 %7176 }
0x20b1   :  { %v7222_v33 = vsel %vm3534_vm6, %v7212_v6, %v7177_v29 }
0x20b2   :  { %9825 = vmatprep.mubr.msk.f32.mxu1 %vm465_vm1, %v7222_v33 }
0x20b4   :  { %v7179_v39 = vpop.permute.xlu1 %7178 }
0x20b5   :  { %v7223_v59 = vsel %vm3534_vm6, %v7213_v21, %v7179_v39 }
0x20b6   :  { %9826 = vmatmul.mubr.msk.f32.gmra.mxu1 %vm465_vm1, %v7223_v59  ;;  %v14472_v59 = vld [vmem:[#allocation25_spill] sm:$0xff] }
0x20b8   :  { %v7181_v49 = vpop.permute.xlu0 %7180 }
0x20b9   :  { %v7224_v1 = vsel %vm3534_vm6, %v7214_v51, %v7181_v49 }
0x20ba   :  { %9828 = vmatprep.mubr.msk.f32.mxu1 %vm465_vm1, %v7224_v1 }
0x20bc   :  { %v7183_v37 = vpop.permute.xlu1 %7182 }
0x20bd   :  { %v7225_v25 = vsel %vm3534_vm6, %v7215_v7, %v7183_v37 }
0x20be   :  { %9829 = vmatmul.mubr.msk.f32.gmra.mxu1 %vm465_vm1, %v7225_v25 }
0x20c0   :  { %v7185_v2 = vpop.permute.xlu0 %7184 }
0x20c1   :  { %v7226_v61 = vsel %vm3534_vm6, %v7216_v4, %v7185_v2 }
0x20c2   :  { %9831 = vmatprep.mubr.msk.f32.mxu1 %vm465_vm1, %v7226_v61 }
0x20c4   :  { %v7187_v14 = vpop.permute.xlu1 %7186 }
0x20c5   :  { %v7227_v43 = vsel %vm3534_vm6, %v7217_v56, %v7187_v14 }
0x20c6   :  { %9832 = vmatmul.mubr.msk.f32.gmra.mxu1 %vm465_vm1, %v7227_v43 }
0x2166   :  { %v9821_v26 = vpop.f32.mrf.mxu1 }
0x2167   :  { %v7347_v52 = vadd.f32 %v9821_v26, %v8376_v11 }
0x2168   :  { %v7341_v18 = vpop.f32.mrf.mxu1 }
0x2169   :  { %v14061_v55 = vadd.f32 %v7347_v52, %v14463_v58  ;;  %v7342_v53 = vadd.f32 %v8376_v11, %v7341_v18 }
0x216b   :  { %v14064_v12 = vadd.f32 %v7342_v53, %v14464_v22  ;;  %v7407_v20 = vsel %vm465_vm1, %v14061_v55, 0.0 }
0x216c   :  { %7408 = vadd.xlane.f32.xlu1 %v7407_v20 }
0x216d   :  { %v7404_v24 = vsel %vm465_vm1, %v14064_v12, 0.0 }
0x216e   :  { %7405 = vadd.xlane.f32.xlu0 %v7404_v24  ;;  %v9824_v54 = vpop.f32.mrf.mxu1 }
0x216f   :  { %v7357_v42 = vadd.f32 %v9824_v54, %v8376_v11 }
0x2170   :  { %v7351_v34 = vpop.f32.mrf.mxu1 }
0x2171   :  { %v7352_v30 = vadd.f32 %v8376_v11, %v7351_v34  ;;  %v14074_v5 = vadd.f32 %v7357_v42, %v14466_v0 }
0x2173   :  { %v14071_v27 = vadd.f32 %v7352_v30, %v14465_v3  ;;  %v7413_v46 = vsel %vm465_vm1, %v14074_v5, 0.0 }
0x2175   :  { %v7410_v17 = vsel %vm465_vm1, %v14071_v27, 0.0 }
0x2176   :  { %7411 = vadd.xlane.f32.xlu0 %v7410_v17  ;;  %v9827_v35 = vpop.f32.mrf.mxu1 }
0x2177   :  { %v7367_v10 = vadd.f32 %v9827_v35, %v8376_v11 }
0x2178   :  { %v7361_v19 = vpop.f32.mrf.mxu1 }
0x2179   :  { %v14079_v38 = vadd.f32 %v7367_v10, %v14467_v47  ;;  %v7362_v31 = vadd.f32 %v8376_v11, %v7361_v19 }
0x217a   :  { %7414 = vadd.xlane.f32.xlu0 %v7413_v46 }
0x217b   :  { %v7394_v15 = vadd.f32 %v7362_v31, %v14468_v60  ;;  %v7419_v48 = vsel %vm465_vm1, %v14079_v38, 0.0 }
0x217d   :  { %v7416_v13 = vsel %vm465_vm1, %v7394_v15, 0.0 }
0x217e   :  { %7420 = vadd.xlane.f32.xlu0 %v7419_v48  ;;  %7417 = vadd.xlane.f32.xlu1 %v7416_v13  ;;  %v9830_v36 = vpop.f32.mrf.mxu1  ;;  %v8398_v48 = vld [vmem:[%s14369_s16 + $0x78] sm:$0xff] }
0x217f   :  { %v7377_v62 = vadd.f32 %v9830_v36, %v8376_v11  ;;  %9834 = vmatprep.subr.mxu0 %v8398_v48 }
0x2180   :  { %v7371_v40 = vpop.f32.mrf.mxu1  ;;  %9835 = vmatpush3.msra.mxu0 %v8398_v48 }
0x2181   :  { %v14088_v8 = vadd.f32 %v7377_v62, %v14469_v28  ;;  %v7372_v44 = vadd.f32 %v8376_v11, %v7371_v40  ;;  %v8397_v62 = vld [vmem:[%s14369_s16 + $0x70] sm:$0xff] }
0x2182   :  { %9836 = vmatprep.subr.mxu0 %v8397_v62 }
0x2183   :  { %v14091_v23 = vadd.f32 %v7372_v44, %v14470_v41  ;;  %v7425_v32 = vsel %vm465_vm1, %v14088_v8, 0.0  ;;  %9837 = vmatpush3.msra.mxu0 %v8397_v62  ;;  %v8396_v41 = vld [vmem:[%s14369_s16 + $0x68] sm:$0xff] }
0x2184   :  { %7426 = vadd.xlane.f32.xlu0 %v7425_v32  ;;  %9838 = vmatprep.subr.mxu0 %v8396_v41 }
0x2185   :  { %v7422_v57 = vsel %vm465_vm1, %v14091_v23, 0.0  ;;  %9839 = vmatpush3.msra.mxu0 %v8396_v41 }
0x2186   :  { %7423 = vadd.xlane.f32.xlu1 %v7422_v57  ;;  %v9833_v6 = vpop.f32.mrf.mxu1 }
0x2187   :  { %v7387_v29 = vadd.f32 %v9833_v6, %v8376_v11 }
0x2188   :  { %v7381_v33 = vpop.f32.mrf.mxu1 }
0x2189   :  { %v14098_v21 = vadd.f32 %v7387_v29, %v14471_v45  ;;  %v7382_v39 = vadd.f32 %v8376_v11, %v7381_v33  ;;  %v8395_v29 = vld [vmem:[%s14369_s16 + $0x60] sm:$0xff] }
0x218a   :  { %9840 = vmatprep.subr.mxu0 %v8395_v29 }
0x218b   :  { %v14101_v50 = vadd.f32 %v7382_v39, %v14472_v59  ;;  %v7431_v51 = vsel %vm465_vm1, %v14098_v21, 0.0  ;;  %9841 = vmatpush3.msra.mxu0 %v8395_v29  ;;  %v8394_v39 = vld [vmem:[%s14369_s16 + $0x58] sm:$0xff] }
0x218c   :  { %7432 = vadd.xlane.f32.xlu0 %v7431_v51  ;;  %9842 = vmatprep.subr.mxu0 %v8394_v39  ;;  %v8393_v51 = vld [vmem:[%s14369_s16 + $0x50] sm:$0xff] }
0x218d   :  { %v7428_v49 = vsel %vm465_vm1, %v14101_v50, 0.0  ;;  %9843 = vmatpush3.msra.mxu0 %v8394_v39 }
0x218e   :  { %7429 = vadd.xlane.f32.xlu1 %v7428_v49  ;;  %9844 = vmatprep.subr.mxu0 %v8393_v51 }
0x218f   :  { %9845 = vmatpush3.msra.mxu0 %v8393_v51 }
0x21f5   :  { %v7409_v1 = vpop.xlane.xlu1 %7408 }
0x21f6   :  { %v7435_v63 = vmul.f32 0.015625, %v7409_v1  ;;  %v8392_v1 = vld [vmem:[%s14369_s16 + $0x48] sm:$0xff] }
0x21f7   :  { %v7406_v7 = vpop.xlane.xlu0 %7405  ;;  %9846 = vmatprep.subr.mxu0 %v8392_v1 }
0x21f8   :  { %v14108_v37 = vsub.f32 %v14061_v55, %v7435_v63  ;;  %v7434_v25 = vmul.f32 0.015625, %v7406_v7  ;;  %9847 = vmatpush3.msra.mxu0 %v8392_v1  ;;  %v8391_v63 = vld [vmem:[%s14369_s16 + $0x40] sm:$0xff] }
0x21f9   :  { %9848 = vmatprep.subr.mxu0 %v8391_v63 }
0x21fa   :  { %v14111_v9 = vsub.f32 %v14064_v12, %v7434_v25  ;;  %v7455_v4 = vmul.f32 %v14108_v37, %v14108_v37  ;;  %9849 = vmatpush3.msra.mxu0 %v8391_v63 }
0x21fc   :  { %v7467_v2 = vsel %vm465_vm1, %v7455_v4, 0.0  ;;  %v7454_v61 = vmul.f32 %v14111_v9, %v14111_v9 }
0x21fd   :  { %7468 = vadd.xlane.f32.xlu0 %v7467_v2 }
0x21fe   :  { %v7464_v16 = vsel %vm465_vm1, %v7454_v61, 0.0 }
0x21ff   :  { %7465 = vadd.xlane.f32.xlu1 %v7464_v16  ;;  %v7412_v56 = vpop.xlane.xlu0 %7411 }
0x2200   :  { %v7436_v14 = vmul.f32 0.015625, %v7412_v56 }
0x2202   :  { %v14120_v43 = vsub.f32 %v14071_v27, %v7436_v14 }
0x2203   :  { %v7415_v11 = vpop.xlane.xlu0 %7414 }
0x2204   :  { %v7437_v26 = vmul.f32 0.015625, %v7415_v11  ;;  %v7456_v52 = vmul.f32 %v14120_v43, %v14120_v43 }
0x2206   :  { %v14125_v18 = vsub.f32 %v14074_v5, %v7437_v26  ;;  %v7470_v58 = vsel %vm465_vm1, %v7456_v52, 0.0 }
0x2207   :  { %v7418_v53 = vpop.xlane.xlu1 %7417  ;;  %7471 = vadd.xlane.f32.xlu1 %v7470_v58  ;;  %v7421_v22 = vpop.xlane.xlu0 %7420 }
0x2208   :  { %v7438_v20 = vmul.f32 0.015625, %v7418_v53  ;;  %v7439_v24 = vmul.f32 0.015625, %v7421_v22  ;;  %v7457_v54 = vmul.f32 %v14125_v18, %v14125_v18 }
0x220a   :  { %v14130_v34 = vsub.f32 %v7394_v15, %v7438_v20  ;;  %v14133_v42 = vsub.f32 %v14079_v38, %v7439_v24  ;;  %v7473_v30 = vsel %vm465_vm1, %v7457_v54, 0.0  ;;  %v14193_v24 = vld [vmem:[%s14367_s14 + $0x1] ss:$0 sm:$0xff] }
0x220b   :  { %7474 = vadd.xlane.f32.xlu0 %v7473_v30 }
0x220c   :  { %v7458_v3 = vmul.f32 %v14130_v34, %v14130_v34  ;;  %v7459_v0 = vmul.f32 %v14133_v42, %v14133_v42 }
0x220d   :  { %v7427_v17 = vpop.xlane.xlu0 %7426 }
0x220e   :  { %v7441_v35 = vmul.f32 0.015625, %v7427_v17  ;;  %v7476_v10 = vsel %vm465_vm1, %v7458_v3, 0.0  ;;  %v7479_v19 = vsel %vm465_vm1, %v7459_v0, 0.0 }
0x220f   :  { %v7424_v47 = vpop.xlane.xlu1 %7423  ;;  %7477 = vadd.xlane.f32.xlu1 %v7476_v10  ;;  %7480 = vadd.xlane.f32.xlu0 %v7479_v19 }
0x2210   :  { %v14143_v31 = vsub.f32 %v14088_v8, %v7441_v35  ;;  %v7440_v46 = vmul.f32 0.015625, %v7424_v47  ;;  %v8390_v47 = vld [vmem:[%s14368_s15 + $0x1] ss:$0 sm:$0xff] }
0x2212   :  { %v14146_v60 = vsub.f32 %v14091_v23, %v7440_v46  ;;  %v7461_v15 = vmul.f32 %v14143_v31, %v14143_v31 }
0x2214   :  { %v7485_v13 = vsel %vm465_vm1, %v7461_v15, 0.0  ;;  %v7460_v36 = vmul.f32 %v14146_v60, %v14146_v60 }
0x2215   :  { %7486 = vadd.xlane.f32.xlu0 %v7485_v13  ;;  %v7433_v40 = vpop.xlane.xlu0 %7432 }
0x2216   :  { %v7443_v28 = vmul.f32 0.015625, %v7433_v40  ;;  %v7482_v44 = vsel %vm465_vm1, %v7460_v36, 0.0 }
0x2217   :  { %v7430_v32 = vpop.xlane.xlu1 %7429  ;;  %7483 = vadd.xlane.f32.xlu1 %v7482_v44 }
0x2218   :  { %v14164_v57 = vsub.f32 %v14098_v21, %v7443_v28  ;;  %v7442_v6 = vmul.f32 0.015625, %v7430_v32 }
0x221a   :  { %v14170_v33 = vsub.f32 %v14101_v50, %v7442_v6  ;;  %v7463_v45 = vmul.f32 %v14164_v57, %v14164_v57 }
0x221c   :  { %v7491_v21 = vsel %vm465_vm1, %v7463_v45, 0.0  ;;  %v7462_v59 = vmul.f32 %v14170_v33, %v14170_v33 }
0x221d   :  { %7492 = vadd.xlane.f32.xlu0 %v7491_v21 }
0x221e   :  { %v7488_v49 = vsel %vm465_vm1, %v7462_v59, 0.0 }
0x221f   :  { %7489 = vadd.xlane.f32.xlu1 %v7488_v49 }
0x2286   :  { %v7469_v7 = vpop.xlane.xlu0 %7468 }
0x2287   :  { %v7495_v25 = vmul.f32 0.015625, %v7469_v7 }
0x2288   :  { %v7466_v4 = vpop.xlane.xlu1 %7465 }
0x2289   :  { %v7505_v2 = vadd.f32 1e-05, %v7495_v25  ;;  %v7494_v61 = vmul.f32 0.015625, %v7466_v4 }
0x228b   :  { %10372 = vrsqrt.f32 %v7505_v2  ;;  %v7504_v16 = vadd.f32 1e-05, %v7494_v61 }
0x228d   :  { %10374 = vrsqrt.f32 %v7504_v16 }
0x2290   :  { %v7472_v56 = vpop.xlane.xlu1 %7471 }
0x2291   :  { %v7496_v14 = vmul.f32 0.015625, %v7472_v56 }
0x2293   :  { %v7506_v11 = vadd.f32 1e-05, %v7496_v14 }
0x2294   :  { %v7475_v26 = vpop.xlane.xlu0 %7474 }
0x2295   :  { %10376 = vrsqrt.f32 %v7506_v11  ;;  %v7497_v52 = vmul.f32 0.015625, %v7475_v26 }
0x2297   :  { %v7507_v58 = vadd.f32 1e-05, %v7497_v52 }
0x2298   :  { %v10373_v53 = vpop.eup %10372  ;;  %v7478_v22 = vpop.xlane.xlu1 %7477 }
0x2299   :  { %v7481_v20 = vpop.xlane.xlu0 %7480  ;;  %v7525_v54 = vmul.f32 %v10373_v53, %v14108_v37  ;;  %10378 = vrsqrt.f32 %v7507_v58  ;;  %v7498_v30 = vmul.f32 0.015625, %v7478_v22 }
0x229a   :  { %v7499_v3 = vmul.f32 0.015625, %v7481_v20  ;;  %v10375_v0 = vpop.eup %10374 }
0x229b   :  { %v7508_v17 = vadd.f32 1e-05, %v7498_v30  ;;  %v7524_v10 = vmul.f32 %v10375_v0, %v14111_v9  ;;  %v7541_v19 = vmul.f32 %v14193_v24, %v7525_v54  ;;  %v8422_v0 = vld [vmem:[%s14371_s18 + $0xe0] sm:$0xff] }
0x229c   :  { %v7509_v35 = vadd.f32 1e-05, %v7499_v3 }
0x229d   :  { %10380 = vrsqrt.f32 %v7508_v17  ;;  %v7540_v46 = vmul.f32 %v14193_v24, %v7524_v10  ;;  %v7557_v13 = vadd.f32 %v8390_v47, %v7541_v19  ;;  %v8421_v17 = vld [vmem:[%s14371_s18 + $0xd8] sm:$0xff]  ;;  %v8419_v10 = vld [vmem:[%s14371_s18 + $0xc8] sm:$0xff]  ;;  %v8418_v19 = vld [vmem:[%s14371_s18 + $0xc0] sm:$0xff] }
0x229e   :  { %10382 = vrsqrt.f32 %v7509_v35  ;;  %v7487_v15 = vpop.xlane.xlu0 %7486  ;;  %v8420_v35 = vld [vmem:[%s14371_s18 + $0xd0] sm:$0xff] }
0x229f   :  { %v7501_v37 = vmul.f32 0.015625, %v7487_v15  ;;  %v7556_v48 = vadd.f32 %v8390_v47, %v7540_v46  ;;  %v8416_v46 = vld [vmem:[%s14371_s18 + $0xb0] sm:$0xff]  ;;  %v8415_v15 = vld [vmem:[%s14371_s18 + $0xa8] sm:$0xff] }
0x22a0   :  { %v7484_v36 = vpop.xlane.xlu1 %7483 }
0x22a1   :  { %v7511_v62 = vadd.f32 1e-05, %v7501_v37  ;;  %v7500_v40 = vmul.f32 0.015625, %v7484_v36  ;;  %9850 = vmatprep.mubr.msk.f32.mxu0 %vm465_vm1, %v7556_v48  ;;  %v8414_v37 = vld [vmem:[%s14371_s18 + $0xa0] sm:$0xff]  ;;  %v8413_v48 = vld [vmem:[%s14371_s18 + $0x98] sm:$0xff]  ;;  %v8411_v36 = vld [vmem:[%s14371_s18 + $0x88] sm:$0xff] }
0x22a2   :  { %v10377_v9 = vpop.eup %10376  ;;  %9851 = vmatmul.mubr.msk.f32.vlgmr.msra.gmra.mxu0 %vm465_vm1, %v7557_v13  ;;  %v8412_v13 = vld [vmem:[%s14371_s18 + $0x90] sm:$0xff] }
0x22a3   :  { %10384 = vrsqrt.f32 %v7511_v62  ;;  %v7510_v28 = vadd.f32 1e-05, %v7500_v40  ;;  %v7526_v44 = vmul.f32 %v10377_v9, %v14120_v43  ;;  %v8410_v62 = vld [vmem:[%s14371_s18 + $0x80] sm:$0xff]  ;;  %v14276_v40 = vld [vmem:[#allocation11 + $0x1] ss:$0 sm:$0xff] }
0x22a5   :  { %10386 = vrsqrt.f32 %v7510_v28  ;;  %v7542_v41 = vmul.f32 %v14193_v24, %v7526_v44 }
0x22a6   :  { %v10379_v32 = vpop.eup %10378  ;;  %v7493_v6 = vpop.xlane.xlu0 %7492 }
0x22a7   :  { %v7527_v29 = vmul.f32 %v10379_v32, %v14125_v18  ;;  %v7503_v45 = vmul.f32 0.015625, %v7493_v6  ;;  %v7558_v39 = vadd.f32 %v8390_v47, %v7542_v41 }
0x22a8   :  { %v7490_v21 = vpop.xlane.xlu1 %7489 }
0x22a9   :  { %v7513_v59 = vadd.f32 1e-05, %v7503_v45  ;;  %v7502_v51 = vmul.f32 0.015625, %v7490_v21  ;;  %9853 = vmatprep.mubr.msk.f32.mxu0 %vm465_vm1, %v7558_v39  ;;  %v7543_v49 = vmul.f32 %v14193_v24, %v7527_v29 }
0x22aa   :  { %v10381_v1 = vpop.eup %10380 }
0x22ab   :  { %v10383_v63 = vpop.eup %10382  ;;  %10388 = vrsqrt.f32 %v7513_v59  ;;  %v7512_v43 = vadd.f32 1e-05, %v7502_v51  ;;  %v7559_v7 = vadd.f32 %v8390_v47, %v7543_v49  ;;  %v7528_v25 = vmul.f32 %v10381_v1, %v14130_v34 }
0x22ac   :  { %v7529_v4 = vmul.f32 %v10383_v63, %v14133_v42 }
0x22ad   :  { %10390 = vrsqrt.f32 %v7512_v43  ;;  %9854 = vmatmul.mubr.msk.f32.gmra.mxu0 %vm465_vm1, %v7559_v7  ;;  %v7544_v18 = vmul.f32 %v14193_v24, %v7528_v25 }
0x22ae   :  { %v7545_v2 = vmul.f32 %v14193_v24, %v7529_v4 }
0x22af   :  { %v7560_v61 = vadd.f32 %v8390_v47, %v7544_v18 }
0x22b0   :  { %v10385_v16 = vpop.eup %10384  ;;  %v7561_v56 = vadd.f32 %v8390_v47, %v7545_v2 }
0x22b1   :  { %v7531_v14 = vmul.f32 %v10385_v16, %v14143_v31  ;;  %9856 = vmatprep.mubr.msk.f32.mxu0 %vm465_vm1, %v7560_v61 }
0x22b2   :  { %v10387_v11 = vpop.eup %10386  ;;  %9857 = vmatmul.mubr.msk.f32.gmra.mxu0 %vm465_vm1, %v7561_v56 }
0x22b3   :  { %v7530_v34 = vmul.f32 %v10387_v11, %v14146_v60  ;;  %v7547_v42 = vmul.f32 %v14193_v24, %v7531_v14 }
0x22b5   :  { %v7546_v26 = vmul.f32 %v14193_v24, %v7530_v34  ;;  %v7563_v53 = vadd.f32 %v8390_v47, %v7547_v42 }
0x22b7   :  { %v7562_v52 = vadd.f32 %v8390_v47, %v7546_v26 }
0x22b8   :  { %v10389_v58 = vpop.eup %10388 }
0x22b9   :  { %v7533_v22 = vmul.f32 %v10389_v58, %v14164_v57  ;;  %9859 = vmatprep.mubr.msk.f32.mxu0 %vm465_vm1, %v7562_v52  ;;  %v8425_v57 = vld [vmem:[%s14371_s18 + $0xf8] sm:$0xff] }
0x22ba   :  { %v10391_v20 = vpop.eup %10390  ;;  %9860 = vmatmul.mubr.msk.f32.gmra.mxu0 %vm465_vm1, %v7563_v53  ;;  %9865 = vmatprep.subr.mxu1 %v8425_v57 }
0x22bb   :  { %v7532_v31 = vmul.f32 %v10391_v20, %v14170_v33  ;;  %v7549_v54 = vmul.f32 %v14193_v24, %v7533_v22  ;;  %9866 = vmatpush3.msra.mxu1 %v8425_v57  ;;  %v8424_v33 = vld [vmem:[%s14371_s18 + $0xf0] sm:$0xff] }
0x22bc   :  { %9867 = vmatprep.subr.mxu1 %v8424_v33 }
0x22bd   :  { %v7548_v60 = vmul.f32 %v14193_v24, %v7532_v31  ;;  %v7565_v3 = vadd.f32 %v8390_v47, %v7549_v54  ;;  %9868 = vmatpush3.msra.mxu1 %v8424_v33  ;;  %v8423_v24 = vld [vmem:[%s14371_s18 + $0xe8] sm:$0xff] }
0x22be   :  { %9869 = vmatprep.subr.mxu1 %v8423_v24 }
0x22bf   :  { %v7564_v30 = vadd.f32 %v8390_v47, %v7548_v60  ;;  %9870 = vmatpush3.msra.mxu1 %v8423_v24  ;;  %v8417_v47 = vld [vmem:[%s14371_s18 + $0xb8] sm:$0xff]  ;;  %s10648_s18 = smov [#allocation17]  }
0x22c0   :  { %9871 = vmatprep.subr.mxu1 %v8422_v0  ;;  %s8034_s2 = sshll.u32 %s10648_s18, 4  ;;  %s8035_s2 = int_to_ptr.vmem [resolvable:$true] %s8034_s2 }
0x22c1   :  { %9862 = vmatprep.mubr.msk.f32.mxu0 %vm465_vm1, %v7564_v30  ;;  %9872 = vmatpush3.msra.mxu1 %v8422_v0  ;;  %s10597_s27 = scalar_lea.vmem %s8035_s2, 32  ;;  %p10602_p4 = scmp.lt.s32.totalorder %s8035_s2, %s8035_s2 }
0x22c2   :  { %9863 = vmatmul.mubr.msk.f32.gmra.mxu0 %vm465_vm1, %v7565_v3  ;;  %9873 = vmatprep.subr.mxu1 %v8421_v17  ;;  %p10598_p3 = scmp.ne.s32.totalorder %s8035_s2, %s10597_s27  ;;  %p10603_p5 = scmp.lt.s32.totalorder %s10597_s27, %s10597_s27 }
0x22c3   :  { %9874 = vmatpush3.msra.mxu1 %v8421_v17 }
0x22c4   :  { %9875 = vmatprep.subr.mxu1 %v8420_v35  ;;  %p10604_p6 = por %p10603_p5, %p10602_p4 }
0x22c5   :  { %9876 = vmatpush3.msra.mxu1 %v8420_v35 }
0x22c6   :  { %9877 = vmatprep.subr.mxu1 %v8419_v10  ;;  %p10605_p7 = pnand %p10604_p6, %p10598_p3 }
0x22c7   :  { %9878 = vmatpush3.msra.mxu1 %v8419_v10 }
0x22c8   :  { %9879 = vmatprep.subr.mxu1 %v8418_v19 }
0x22c9   :  { %9880 = vmatpush3.msra.mxu1 %v8418_v19 }
0x22ca   :  { %9881 = vmatprep.subr.mxu1 %v8417_v47 }
0x22cb   :  { %9882 = vmatpush3.msra.mxu1 %v8417_v47 }
0x22cc   :  { %9883 = vmatprep.subr.mxu1 %v8416_v46 }
0x22cd   :  { %9884 = vmatpush3.msra.mxu1 %v8416_v46 }
0x22ce   :  { %9885 = vmatprep.subr.mxu1 %v8415_v15 }
0x22cf   :  { %9886 = vmatpush3.msra.mxu1 %v8415_v15 }
0x22d0   :  { %9887 = vmatprep.subr.mxu1 %v8414_v37 }
0x22d1   :  { %9888 = vmatpush3.msra.mxu1 %v8414_v37 }
0x22d2   :  { %9889 = vmatprep.subr.mxu1 %v8413_v48 }
0x22d3   :  { %9890 = vmatpush3.msra.mxu1 %v8413_v48 }
0x22d4   :  { %9891 = vmatprep.subr.mxu1 %v8412_v13 }
0x22d5   :  { %9892 = vmatpush3.msra.mxu1 %v8412_v13 }
0x22d6   :  { %9893 = vmatprep.subr.mxu1 %v8411_v36 }
0x22d7   :  { %9894 = vmatpush3.msra.mxu1 %v8411_v36 }
0x22d8   :  { %9895 = vmatprep.subr.mxu1 %v8410_v62 }
0x22d9   :  { %9896 = vmatpush3.msra.mxu1 %v8410_v62 }
0x2362   :  { %v9852_v9 = vpop.f32.mrf.mxu0 }
0x2363   :  { %v7685_v28 = vadd.f32 %v9852_v9, %v14276_v40 }
0x2364   :  { %v7679_v44 = vpop.f32.mrf.mxu0 }
0x2365   :  { %v7739_v41 = vmul.f32 0.044715, %v7685_v28  ;;  %v7680_v32 = vadd.f32 %v14276_v40, %v7679_v44  ;;  %v7729_v36 = vmul.f32 0.5, %v7685_v28 }
0x2367   :  { %v7749_v6 = vmul.f32 %v7739_v41, %v7685_v28  ;;  %v7738_v29 = vmul.f32 0.044715, %v7680_v32  ;;  %v7728_v48 = vmul.f32 0.5, %v7680_v32 }
0x2369   :  { %v7759_v45 = vmul.f32 %v7749_v6, %v7685_v28  ;;  %v7748_v39 = vmul.f32 %v7738_v29, %v7680_v32 }
0x236b   :  { %v7769_v21 = vadd.f32 %v7759_v45, %v7685_v28  ;;  %v7758_v59 = vmul.f32 %v7748_v39, %v7680_v32 }
0x236d   :  { %v7779_v51 = vmul.f32 0.7978846, %v7769_v21  ;;  %v9855_v49 = vpop.f32.mrf.mxu0  ;;  %v7768_v1 = vadd.f32 %v7758_v59, %v7680_v32 }
0x236e   :  { %v14281_v63 = vadd.f32 %v9855_v49, %v14276_v40 }
0x236f   :  { %10392 = vtanh.f32 %v7779_v51  ;;  %v7689_v43 = vpop.f32.mrf.mxu0  ;;  %v7778_v7 = vmul.f32 0.7978846, %v7768_v1 }
0x2370   :  { %v7741_v25 = vmul.f32 0.044715, %v14281_v63  ;;  %v14285_v4 = vadd.f32 %v14276_v40, %v7689_v43 }
0x2371   :  { %10394 = vtanh.f32 %v7778_v7 }
0x2372   :  { %v7751_v18 = vmul.f32 %v7741_v25, %v14281_v63  ;;  %v7740_v2 = vmul.f32 0.044715, %v14285_v4  ;;  %v9858_v61 = vpop.f32.mrf.mxu0 }
0x2373   :  { %v14290_v16 = vadd.f32 %v9858_v61, %v14276_v40 }
0x2374   :  { %v7761_v56 = vmul.f32 %v7751_v18, %v14281_v63  ;;  %v7750_v14 = vmul.f32 %v7740_v2, %v14285_v4  ;;  %v7699_v11 = vpop.f32.mrf.mxu0 }
0x2375   :  { %v7743_v34 = vmul.f32 0.044715, %v14290_v16  ;;  %v14296_v42 = vadd.f32 %v14276_v40, %v7699_v11 }
0x2376   :  { %v7771_v26 = vadd.f32 %v7761_v56, %v14281_v63  ;;  %v7760_v52 = vmul.f32 %v7750_v14, %v14285_v4  ;;  %v7730_v14 = vmul.f32 0.5, %v14285_v4 }
0x2377   :  { %v7753_v58 = vmul.f32 %v7743_v34, %v14290_v16  ;;  %v7742_v53 = vmul.f32 0.044715, %v14296_v42 }
0x2378   :  { %v7770_v22 = vadd.f32 %v7760_v52, %v14285_v4  ;;  %v7781_v20 = vmul.f32 0.7978846, %v7771_v26  ;;  %v7731_v26 = vmul.f32 0.5, %v14281_v63  ;;  %v7733_v4 = vmul.f32 0.5, %v14290_v16 }
0x2379   :  { %v7763_v31 = vmul.f32 %v7753_v58, %v14290_v16  ;;  %v7752_v54 = vmul.f32 %v7742_v53, %v14296_v42 }
0x237a   :  { %v9861_v60 = vpop.f32.mrf.mxu0  ;;  %v7780_v30 = vmul.f32 0.7978846, %v7770_v22  ;;  %10396 = vtanh.f32 %v7781_v20 }
0x237b   :  { %v7773_v3 = vadd.f32 %v7763_v31, %v14290_v16  ;;  %v14307_v57 = vadd.f32 %v9861_v60, %v14276_v40  ;;  %v7762_v33 = vmul.f32 %v7752_v54, %v14296_v42 }
0x237c   :  { %v10393_v24 = vpop.eup %10392  ;;  %v7709_v0 = vpop.f32.mrf.mxu0  ;;  %10398 = vtanh.f32 %v7780_v30  ;;  %v7732_v30 = vmul.f32 0.5, %v14296_v42 }
0x237d   :  { %v7745_v17 = vmul.f32 0.044715, %v14307_v57  ;;  %v14312_v35 = vadd.f32 %v14276_v40, %v7709_v0  ;;  %v7772_v10 = vadd.f32 %v7762_v33, %v14296_v42  ;;  %v7799_v47 = vadd.f32 1.0, %v10393_v24 }
0x237e   :  { %v10395_v19 = vpop.eup %10394  ;;  %v7783_v46 = vmul.f32 0.7978846, %v7773_v3 }
0x237f   :  { %v7755_v15 = vmul.f32 %v7745_v17, %v14307_v57  ;;  %v7744_v37 = vmul.f32 0.044715, %v14312_v35  ;;  %v7798_v13 = vadd.f32 1.0, %v10395_v19  ;;  %v7782_v62 = vmul.f32 0.7978846, %v7772_v10 }
0x2380   :  { %10400 = vtanh.f32 %v7783_v46  ;;  %v7809_v6 = vmul.f32 %v7799_v47, %v7729_v36  ;;  %v7734_v10 = vmul.f32 0.5, %v14312_v35  ;;  %v7735_v47 = vmul.f32 0.5, %v14307_v57 }
0x2381   :  { %v7765_v9 = vmul.f32 %v7755_v15, %v14307_v57  ;;  %v7754_v44 = vmul.f32 %v7744_v37, %v14312_v35  ;;  %v7808_v41 = vmul.f32 %v7798_v13, %v7728_v48  ;;  %10402 = vtanh.f32 %v7782_v62 }
0x2382   :  { %v9864_v29 = vpop.f32.mrf.mxu0 }
0x2383   :  { %v7775_v45 = vadd.f32 %v7765_v9, %v14307_v57  ;;  %v7725_v39 = vadd.f32 %v9864_v29, %v14276_v40  ;;  %9897 = vmatprep.mubr.f32.mxu1 %v7808_v41  ;;  %v7764_v21 = vmul.f32 %v7754_v44, %v14312_v35 }
0x2384   :  { %v7719_v32 = vpop.f32.mrf.mxu0  ;;  %9898 = vmatmul.mubr.f32.vlgmr.msra.gmra.mxu1 %v7809_v6 }
0x2385   :  { %v7747_v28 = vmul.f32 0.044715, %v7725_v39  ;;  %v7720_v59 = vadd.f32 %v14276_v40, %v7719_v32  ;;  %v7774_v51 = vadd.f32 %v7764_v21, %v14312_v35  ;;  %v7785_v49 = vmul.f32 0.7978846, %v7775_v45  ;;  %v8426_v35 = vld [vmem:[#allocation13 + $0x1] ss:$0 sm:$0xff] }
0x2386   :  { %v7737_v36 = vmul.f32 0.5, %v7725_v39 }
0x2387   :  { %v10397_v1 = vpop.eup %10396  ;;  %v7757_v43 = vmul.f32 %v7747_v28, %v7725_v39  ;;  %v7746_v7 = vmul.f32 0.044715, %v7720_v59  ;;  %v7784_v25 = vmul.f32 0.7978846, %v7774_v51  ;;  %10404 = vtanh.f32 %v7785_v49 }
0x2388   :  { %v7801_v56 = vadd.f32 1.0, %v10397_v1  ;;  %v7736_v48 = vmul.f32 0.5, %v7720_v59 }
0x2389   :  { %v10399_v18 = vpop.eup %10398  ;;  %v7767_v2 = vmul.f32 %v7757_v43, %v7725_v39  ;;  %v7756_v61 = vmul.f32 %v7746_v7, %v7720_v59  ;;  %10406 = vtanh.f32 %v7784_v25 }
0x238a   :  { %v7800_v11 = vadd.f32 1.0, %v10399_v18  ;;  %v7811_v53 = vmul.f32 %v7801_v56, %v7731_v26 }
0x238b   :  { %v7777_v34 = vadd.f32 %v7767_v2, %v7725_v39  ;;  %v7766_v40 = vmul.f32 %v7756_v61, %v7720_v59 }
0x238c   :  { %v7810_v52 = vmul.f32 %v7800_v11, %v7730_v14 }
0x238d   :  { %v10401_v58 = vpop.eup %10400  ;;  %v7776_v22 = vadd.f32 %v7766_v40, %v7720_v59  ;;  %v7787_v20 = vmul.f32 0.7978846, %v7777_v34 }
0x238e   :  { %9900 = vmatprep.mubr.f32.mxu1 %v7810_v52  ;;  %v10403_v31 = vpop.eup %10402  ;;  %v7803_v54 = vadd.f32 1.0, %v10401_v58 }
0x238f   :  { %9901 = vmatmul.mubr.f32.gmra.mxu1 %v7811_v53  ;;  %v7786_v60 = vmul.f32 0.7978846, %v7776_v22  ;;  %10408 = vtanh.f32 %v7787_v20  ;;  %v7802_v3 = vadd.f32 1.0, %v10403_v31 }
0x2390   :  { %v7813_v63 = vmul.f32 %v7803_v54, %v7733_v4 }
0x2391   :  { %10410 = vtanh.f32 %v7786_v60  ;;  %v7812_v33 = vmul.f32 %v7802_v3, %v7732_v30 }
0x2393   :  { %9903 = vmatprep.mubr.f32.mxu1 %v7812_v33 }
0x2394   :  { %v10405_v24 = vpop.eup %10404  ;;  %9904 = vmatmul.mubr.f32.gmra.mxu1 %v7813_v63 }
0x2395   :  { %v7805_v17 = vadd.f32 1.0, %v10405_v24 }
0x2396   :  { %v10407_v0 = vpop.eup %10406 }
0x2397   :  { %v7804_v19 = vadd.f32 1.0, %v10407_v0  ;;  %v7815_v15 = vmul.f32 %v7805_v17, %v7735_v47 }
0x2399   :  { %v7814_v46 = vmul.f32 %v7804_v19, %v7734_v10 }
0x239b   :  { %9906 = vmatprep.mubr.f32.mxu1 %v7814_v46 }
0x239c   :  { %v10409_v42 = vpop.eup %10408  ;;  %9907 = vmatmul.mubr.f32.gmra.mxu1 %v7815_v15 }
0x239d   :  { %v7807_v16 = vadd.f32 1.0, %v10409_v42 }
0x239e   :  { %v10411_v37 = vpop.eup %10410 }
0x239f   :  { %v7806_v13 = vadd.f32 1.0, %v10411_v37  ;;  %v7817_v9 = vmul.f32 %v7807_v16, %v7737_v36 }
0x23a1   :  { %v7816_v62 = vmul.f32 %v7806_v13, %v7736_v48 }
0x23a3   :  { %9909 = vmatprep.mubr.f32.mxu1 %v7816_v62 }
0x23a4   :  { %9910 = vmatmul.mubr.f32.gmra.mxu1 %v7817_v9 }
0x2444   :  { %v9899_v44 = vpop.f32.mrf.mxu1 }
0x2445   :  { %v7915_v29 = vadd.f32 %v9899_v44, %v8426_v35 }
0x2446   :  { %v7909_v41 = vpop.f32.mrf.mxu1 }
0x2447   :  { %v7910_v6 = vadd.f32 %v8426_v35, %v7909_v41  ;;  %v7957_v21 = vadd.f32 %v7915_v29, %v14061_v55 }
0x2449   :  { %v7956_v57 = vadd.f32 %v7910_v6, %v14064_v12  ;;  %v7967_v39 = vsel %vm465_vm1, %v7957_v21, 0.0  ;;  %v7964_v21 = vld [vmem:[#allocation14] sm:$0x1] }
0x244b   :  { %v7966_v59 = vsel %vm465_vm1, %v7956_v57, 0.0 }
0x244c   :  { %v7968_v43 = vadd.f32 %v7967_v39, %v7966_v59 }
0x244f   :  { %v9902_v45 = vpop.f32.mrf.mxu1 }
0x2450   :  { %v7925_v32 = vadd.f32 %v9902_v45, %v8426_v35 }
0x2451   :  { %v7919_v28 = vpop.f32.mrf.mxu1 }
0x2452   :  { %v7920_v51 = vadd.f32 %v8426_v35, %v7919_v28  ;;  %v7959_v49 = vadd.f32 %v7925_v32, %v14074_v5 }
0x2454   :  { %v7958_v1 = vadd.f32 %v7920_v51, %v14071_v27  ;;  %v9905_v7 = vpop.f32.mrf.mxu1  ;;  %v7971_v2 = vsel %vm465_vm1, %v7959_v49, 0.0  ;;  %v7965_v51 = vld [vmem:[#allocation16] sm:$0x1] }
0x2455   :  { %v7934_v14 = vadd.f32 %v9905_v7, %v8426_v35 }
0x2456   :  { %v7969_v25 = vsel %vm465_vm1, %v7958_v1, 0.0  ;;  %v7929_v12 = vpop.f32.mrf.mxu1 }
0x2457   :  { %v7970_v18 = vadd.f32 %v7969_v25, %v7968_v43  ;;  %v7960_v5 = vadd.f32 %v7934_v14, %v14079_v38 }
0x2459   :  { %v7972_v55 = vadd.f32 %v7971_v2, %v7970_v18  ;;  %v7998_v31 = vsel %vm465_vm1, %v7960_v5, 0.0 }
0x245b   :  { %v7973_v61 = vrot.slane %v7972_v55, 4 }
0x245c   :  { %v9908_v56 = vpop.f32.mrf.mxu1 }
0x245d   :  { %v7974_v11 = vadd.f32 %v7973_v61, %v7972_v55  ;;  %v7944_v52 = vadd.f32 %v9908_v56, %v8426_v35 }
0x245e   :  { %v7938_v34 = vpop.f32.mrf.mxu1 }
0x245f   :  { %v7939_v26 = vadd.f32 %v8426_v35, %v7938_v34  ;;  %v7975_v40 = vrot.slane %v7974_v11, 2  ;;  %v7962_v54 = vadd.f32 %v7944_v52, %v14088_v8 }
0x2461   :  { %v7961_v27 = vadd.f32 %v7939_v26, %v14091_v23  ;;  %v7976_v58 = vadd.f32 %v7975_v40, %v7974_v11  ;;  %v8001_v63 = vsel %vm465_vm1, %v7962_v54, 0.0 }
0x2463   :  { %v7999_v53 = vsel %vm465_vm1, %v7961_v27, 0.0  ;;  %v7977_v22 = vrot.slane %v7976_v58, 1 }
0x2464   :  { %v9911_v20 = vpop.f32.mrf.mxu1  ;;  %v8000_v30 = vadd.f32 %v7999_v53, %v7998_v31 }
0x2465   :  { %v7978_v60 = vadd.f32 %v7977_v22, %v7976_v58 }
0x2466   :  { %v7948_v3 = vpop.f32.mrf.mxu1  ;;  %v8002_v24 = vadd.f32 %v8001_v63, %v8000_v30 }
0x2467   :  { %v7949_v4 = vadd.f32 %v8426_v35, %v7948_v3  ;;  %v7980_v33 = vmul.f32 0.03125, %v7978_v60 }
0x2469   :  { %v7963_v38 = vadd.f32 %v7949_v4, %v14101_v50  ;;  %v7981_v23 = vsel %vm465_vm1, %v7980_v33, 0.0 }
0x246a   :  { %7982 = vadd.xlane.f32.xlu1 %v7981_v23 }
0x246b   :  { %v8003_v0 = vsel %vm465_vm1, %v7963_v38, 0.0 }
0x246c   :  { %v8004_v17 = vadd.f32 %v8003_v0, %v8002_v24 }
0x246e   :  { %v8005_v10 = vrot.slane %v8004_v17, 4 }
0x2470   :  { %v8006_v19 = vadd.f32 %v8005_v10, %v8004_v17 }
0x2472   :  { %v8007_v47 = vrot.slane %v8006_v19, 2 }
0x2474   :  { %v8008_v8 = vadd.f32 %v8007_v47, %v8006_v19 }
0x2476   :  { %v8009_v46 = vrot.slane %v8008_v8, 1 }
0x2478   :  { %v8010_v15 = vadd.f32 %v8009_v46, %v8008_v8 }
0x247a   :  { %v8011_v42 = vmul.f32 0.03125, %v8010_v15 }
0x247c   :  { %v8012_v37 = vsel %vm465_vm1, %v8011_v42, 0.0 }
0x247d   :  { %8013 = vadd.xlane.f32.xlu0 %v8012_v37 }
0x24f3   :  { %v7983_v16 = vpop.xlane.xlu1 %7982 }
0x24f4   :  { %v7984_v48 = vmul.f32 0.015625, %v7983_v16 }
0x24f6   :  { %v7985_v50 = vsub.f32 %v7980_v33, %v7984_v48 }
0x24f8   :  { %v7986_v13 = vmul.f32 %v7985_v50, %v7985_v50 }
0x24fa   :  { %v7987_v36 = vsel %vm465_vm1, %v7986_v13, 0.0 }
0x24fb   :  { %7988 = vadd.xlane.f32.xlu1 %v7987_v36 }
0x2506   :  { %v8014_v62 = vpop.xlane.xlu0 %8013 }
0x2507   :  { %v8015_v9 = vmul.f32 0.015625, %v8014_v62 }
0x2509   :  { %v8016_v44 = vsub.f32 %v8011_v42, %v8015_v9 }
0x250b   :  { %v8017_v41 = vmul.f32 %v8016_v44, %v8016_v44 }
0x250d   :  { %v8018_v35 = vsel %vm465_vm1, %v8017_v41, 0.0 }
0x250e   :  { %8019 = vadd.xlane.f32.xlu0 %v8018_v35 }
0x2584   :  { %v7989_v6 = vpop.xlane.xlu1 %7988 }
0x2585   :  { %v7990_v29 = vmul.f32 0.015625, %v7989_v6 }
0x2587   :  { %v7991_v57 = vadd.f32 1e-05, %v7990_v29 }
0x2589   :  { %10412 = vrsqrt.f32 %v7991_v57 }
0x2596   :  { %v10413_v45 = vpop.eup %10412 }
0x2597   :  { %v8020_v32 = vpop.xlane.xlu0 %8019  ;;  %v7993_v28 = vmul.f32 %v10413_v45, %v7985_v50 }
0x2598   :  { %v8021_v59 = vmul.f32 0.015625, %v8020_v32 }
0x2599   :  { %v7994_v39 = vmul.f32 %v7993_v28, %v7964_v21 }
0x259a   :  { %v8022_v49 = vadd.f32 1e-05, %v8021_v59 }
0x259b   :  { %v7995_v1 = vadd.f32 %v7994_v39, %v7965_v51 }
0x259c   :  { %10414 = vrsqrt.f32 %v8022_v49 }
0x259d   :  { %7997 = vst.msk [vmem:[#allocation17] sm:$0x1] %vm7996_vm7, %v7995_v1 }
0x25a9   :  { %v10415_v43 = vpop.eup %10414 }
0x25aa   :  { %v8024_v7 = vmul.f32 %v10415_v43, %v8016_v44 }
0x25ac   :  { %v8025_v25 = vmul.f32 %v8024_v7, %v7964_v21 }
0x25ae   :  { %v8026_v18 = vadd.f32 %v8025_v25, %v7965_v51 }
0x25b0   :  { %8027 = vst.msk [vmem:[#allocation17 + $0x1] sm:$0x1] %vm7996_vm7, %v8026_v18 }
0x25b1   :  { %10608 = shalt.err (!%p10605_p7)
}
0x25b2   :  { %8037 = dma.vmem_to_hbm [thread:$0]  %s8035_s2, 32, %s14375_s22, [#allocation4]  }
0x25b3   :  { %10627 = dma.done.wait [#allocation4], 32  }
0x25b4   :  { %10628 = vsyncadd [#allocation4], 4294967264 }
0x25b5   :  { %8041 = vsyncpa [#allocation3], 1 }
0x25b6   :  { %8042 = vsyncpa [#allocation6], 1 }
0x25b7   :  { %8043 = vsyncpa [#allocation9], 1 }
0x25b8   :  { %8044 = vsyncpa [#allocation12], 1 }
0x25b9   :  { %8045 = vsyncpa [#allocation15], 1 }
0x25ba   :  { %8046 = vsyncpa [#allocation4], 1 }

</bundles_post_ra>
